<compile_context>
chip_gen: v7x
topology: tpu7x:2x2x1
jax: 0.10.0
libtpu: 0.0.40
codegen_flags: <defaults>
</compile_context>

<pallas_src>
import functools

import jax
import jax.numpy as jnp
from jax import lax
from jax.experimental import pallas as pl
from jax.experimental.pallas import tpu as pltpu

EPS = 1e-5
NEG_SLOPE = 0.1


def _lrelu(x):
    return jnp.where(x >= 0, x, NEG_SLOPE * x)


# ------------------------------ fused level kernel ------------------------- #

def _level_kernel(xpad_ref,                        # (Bt, Hp, Wp, Cin) f32
                  w1_ref, b1_ref,                  # (9, Cin, Cm) bf16, (1, Cm) f32
                  w2_ref, b2_ref,                  # (9, Cm, Cm)  bf16, (1, Cm) f32
                  mw1_ref, mb1_ref, mw2_ref, mb2_ref,
                  sw1_ref, sb1_ref, sw2_ref, sb2_ref,
                  code_ref,                        # (Bt, H, W, 2*Cin) f32
                  gstat_ref,                       # (Bt, 2, Cin)      f32
                  f1p_ref,                         # (Bt, Hp, Wp, Cm)  bf16 scratch
                  f2p_ref,                         # (Bt, Hp, Wp, Cm)  f32  scratch
                  *, H, W, Cin, Cm, TR, Bt):
    Hp, Wp = H + 2, W + 2
    nblk = H // TR
    M = Bt * TR * W                                # matmul row count per block
    f32 = jnp.float32
    bf = jnp.bfloat16
    n = float(H * W)

    # Hoist all bias loads out of the loop bodies.
    b1 = b1_ref[...]
    b2 = b2_ref[...]
    mb1 = mb1_ref[...]
    mb2 = mb2_ref[...]
    sb1 = sb1_ref[...]
    sb2 = sb2_ref[...]

    # Zero the conv1 scratch border once (interior is overwritten below).
    f1p_ref[...] = jnp.zeros_like(f1p_ref)

    # ---- conv1: 3x3, zero pad, Cin -> Cm, LeakyReLU(0.1) -------------------
    # 9 accumulating tap matmuls (no im2col tensor).  The per-image global sum
    # of the ORIGINAL feature (pass 1 of the two-pass global stats) is fused in
    # so it overlaps with the MXU work.
    def conv1_block(blk, gsum):
        y0 = pl.multiple_of(blk * TR, TR)
        acc = jnp.zeros((M, Cm), f32)
        for t in range(9):
            dy, dx = t // 3, t % 3
            xt = xpad_ref[:, pl.ds(y0 + dy, TR), dx:dx + W, :]   # (Bt,TR,W,Cin)
            xt = xt.reshape(M, Cin).astype(bf)
            acc = acc + jnp.dot(xt, w1_ref[t], preferred_element_type=f32)
        h = _lrelu(acc + b1).astype(bf).reshape(Bt, TR, W, Cm)
        f1p_ref[:, pl.ds(y0 + 1, TR), 1:W + 1, :] = h            # block store

        xc = xpad_ref[:, pl.ds(y0 + 1, TR), 1:W + 1, :]          # data region
        part = [jnp.sum(xc[bi].reshape(TR * W, Cin), axis=0, keepdims=True)
                for bi in range(Bt)]
        return gsum + jnp.concatenate(part, axis=0)              # (Bt, Cin)

    gsum = lax.fori_loop(0, nblk, conv1_block, jnp.zeros((Bt, Cin), f32))
    gmean = gsum * (1.0 / n)                                     # (Bt, Cin)

    # ---- conv2: 3x3, zero pad, Cm -> Cm, LeakyReLU; reflect-pad columns ----
    # Pass 2 of the global stats (centered sum-of-squares) rides along.
    def conv2_block(blk, gssq):
        y0 = pl.multiple_of(blk * TR, TR)
        acc = jnp.zeros((M, Cm), f32)
        for t in range(9):
            dy, dx = t // 3, t % 3
            ft = f1p_ref[:, pl.ds(y0 + dy, TR), dx:dx + W, :]    # (Bt,TR,W,Cm) bf16
            ft = ft.reshape(M, Cm)
            acc = acc + jnp.dot(ft, w2_ref[t], preferred_element_type=f32)
        h = _lrelu(acc + b2).reshape(Bt, TR, W, Cm)              # f32
        f2p_ref[:, pl.ds(y0 + 1, TR), 1:W + 1, :] = h
        # reflect pad along W: left pad = col 1, right pad = col W-2
        f2p_ref[:, pl.ds(y0 + 1, TR), 0:1, :] = h[:, :, 1:2, :]
        f2p_ref[:, pl.ds(y0 + 1, TR), Wp - 1:Wp, :] = h[:, :, W - 2:W - 1, :]

        xc = xpad_ref[:, pl.ds(y0 + 1, TR), 1:W + 1, :]
        part = []
        for bi in range(Bt):
            d = xc[bi].reshape(TR * W, Cin) - gmean[bi:bi + 1, :]
            part.append(jnp.sum(d * d, axis=0, keepdims=True))
        return gssq + jnp.concatenate(part, axis=0)              # (Bt, Cin)

    gssq = lax.fori_loop(0, nblk, conv2_block, jnp.zeros((Bt, Cin), f32))
    gstd = jnp.sqrt(gssq * (1.0 / (n - 1.0)) + EPS)
    gstat_ref[:, 0:1, :] = gmean.reshape(Bt, 1, Cin)
    gstat_ref[:, 1:2, :] = gstd.reshape(Bt, 1, Cin)

    # reflect pad along H (rows already carry reflected columns -> corners ok)
    f2p_ref[:, 0:1, :, :] = f2p_ref[:, 2:3, :, :]
    f2p_ref[:, Hp - 1:Hp, :, :] = f2p_ref[:, Hp - 3:Hp - 2, :, :]

    # ---- local 3x3 mean / unbiased std + both 1x1-conv heads (fused) -------
    def stats_block(blk, carry):
        y0 = pl.multiple_of(blk * TR, TR)
        blkv = f2p_ref[:, pl.ds(y0, TR + 2), :, :]               # one block load
        s = None
        ssq = None
        for t in range(9):
            dy, dx = t // 3, t % 3
            tap = blkv[:, dy:dy + TR, dx:dx + W, :]              # (Bt,TR,W,Cm)
            if s is None:
                s = tap
                ssq = tap * tap
            else:
                s = s + tap
                ssq = ssq + tap * tap
        lmean = s * (1.0 / 9.0)
        lvar = jnp.maximum(ssq - s * s * (1.0 / 9.0), 0.0) * (1.0 / 8.0)
        lstd = jnp.sqrt(lvar + EPS)

        def head(x2, w1r, b1v, w2r, b2v):
            hh = jnp.dot(x2, w1r[...], preferred_element_type=f32) + b1v
            hh = _lrelu(hh).astype(bf)
            return jnp.dot(hh, w2r[...], preferred_element_type=f32) + b2v

        mcode = head(lmean.reshape(M, Cm).astype(bf), mw1_ref, mb1, mw2_ref, mb2)
        scode = head(lstd.reshape(M, Cm).astype(bf), sw1_ref, sb1, sw2_ref, sb2)
        out = jnp.concatenate([mcode, scode], axis=-1)           # lane-dense 2*Cin
        code_ref[:, pl.ds(y0, TR), :, :] = out.reshape(Bt, TR, W, 2 * Cin)
        return carry

    lax.fori_loop(0, nblk, stats_block, 0)


# ------------------------------ host-side wrapper --------------------------- #

def _pick_tiles(B, H, W, Cm):
    """Choose (batch block Bt, row block TR).

    M = Bt*TR*W is capped at 256 rows (one/two MXU row tiles) and the f32
    accumulator (M, Cm) is capped at ~64 KB (~16 vregs) to avoid spills.
    The batch block restores MXU row utilization at the deep, tiny-spatial
    pyramid levels (H*W = 4..16).
    """
    def ok(m):
        return m <= 256 and m * Cm <= 16384

    TR = 1
    for t in (16, 8, 4, 2, 1):
        if H % t == 0 and ok(t * W):
            TR = t
            break
    Bt = 1
    for c in range(B, 0, -1):
        if B % c == 0 and ok(c * TR * W):
            Bt = c
            break
    return Bt, TR


def forward_level(feat_nchw, p):
    """One pyramid level of StyleExtractorV2.  Input/outputs in NCHW."""
    x = jnp.transpose(feat_nchw, (0, 2, 3, 1)).astype(jnp.float32)   # NHWC
    B, H, W, Cin = x.shape
    assert H >= 2 and W >= 2, "reflect pad / unbiased variance need spatial >= 2"
    Cm = Cin // 2
    Hp, Wp = H + 2, W + 2
    Bt, TR = _pick_tiles(B, H, W, Cm)
    bf = jnp.bfloat16

    xpad = jnp.pad(x, ((0, 0), (1, 1), (1, 1), (0, 0)))              # zero pad

    kernel = functools.partial(_level_kernel, H=H, W=W, Cin=Cin, Cm=Cm,
                               TR=TR, Bt=Bt)

    def wspec(shape):
        zeros = (0,) * len(shape)
        return pl.BlockSpec(shape, lambda g, _z=zeros: _z)

    code, gstat = pl.pallas_call(
        kernel,
        grid=(B // Bt,),
        in_specs=[
            pl.BlockSpec((Bt, Hp, Wp, Cin), lambda g: (g, 0, 0, 0)),
            wspec((9, Cin, Cm)), wspec((1, Cm)),
            wspec((9, Cm, Cm)), wspec((1, Cm)),
            wspec((Cm, Cm)), wspec((1, Cm)), wspec((Cm, Cin)), wspec((1, Cin)),
            wspec((Cm, Cm)), wspec((1, Cm)), wspec((Cm, Cin)), wspec((1, Cin)),
        ],
        out_shape=(jax.ShapeDtypeStruct((B, H, W, 2 * Cin), jnp.float32),
                   jax.ShapeDtypeStruct((B, 2, Cin), jnp.float32)),
        out_specs=(pl.BlockSpec((Bt, H, W, 2 * Cin), lambda g: (g, 0, 0, 0)),
                   pl.BlockSpec((Bt, 2, Cin), lambda g: (g, 0, 0))),
        scratch_shapes=[pltpu.VMEM((Bt, Hp, Wp, Cm), jnp.bfloat16),
                        pltpu.VMEM((Bt, Hp, Wp, Cm), jnp.float32)],
        compiler_params=pltpu.CompilerParams(
            # 2-TC sharding on v7x; a no-op (but harmless) on v5e/v6e.
            dimension_semantics=("parallel",)),
    )(xpad,
      p['w1'].astype(bf), p['b1'],
      p['w2'].astype(bf), p['b2'],
      p['mw1'].astype(bf), p['mb1'], p['mw2'].astype(bf), p['mb2'],
      p['sw1'].astype(bf), p['sb1'], p['sw2'].astype(bf), p['sb2'])

    lmean_code = jnp.transpose(code[..., :Cin], (0, 3, 1, 2))
    lstd_code = jnp.transpose(code[..., Cin:], (0, 3, 1, 2))
    gmean = jnp.broadcast_to(gstat[:, 0, :][:, :, None, None], (B, Cin, H, W))
    gstd = jnp.broadcast_to(gstat[:, 1, :][:, :, None, None], (B, Cin, H, W))
    return lmean_code, lstd_code, gmean, gstd


def style_extractor_v2_forward(multi_level_feats, params):
    lm, ls, gm, gs = [], [], [], []
    for feat, p in zip(multi_level_feats, params):
        a, b, c, d = forward_level(feat, p)
        lm.append(a)
        ls.append(b)
        gm.append(c)
        gs.append(d)
    return lm, ls, gm, gs


# --------------------------- synthetic parameters -------------------------- #

def init_params(key):
    """Deterministic synthetic parameters matching StyleExtractorV2 shapes.

    3x3 conv weights are stored as (9, Cin, Cout) with tap index ky*3 + kx,
    i.e. torch_weight.permute(2, 3, 1, 0).reshape(9, Cin, Cout).
    """
    chans = [64, 128, 256, 512]
    params = []
    for li, ci in enumerate(chans):
        cm = ci // 2
        ks = jax.random.split(jax.random.fold_in(key, li), 12)

        def w(k, shape, scale=0.05):
            return scale * jax.random.normal(k, shape, jnp.float32)

        params.append({
            # pre_feat_lX: Conv(ci->cm, 3x3), Conv(cm->cm, 3x3)
            'w1': w(ks[0], (9, ci, cm)), 'b1': w(ks[1], (1, cm), 0.01),
            'w2': w(ks[2], (9, cm, cm)), 'b2': w(ks[3], (1, cm), 0.01),
            # mean_weight_lX: Conv1x1(cm->cm), Conv1x1(cm->ci)
            'mw1': w(ks[4], (cm, cm)), 'mb1': w(ks[5], (1, cm), 0.01),
            'mw2': w(ks[6], (cm, ci)), 'mb2': w(ks[7], (1, ci), 0.01),
            # std_weight_lX: Conv1x1(cm->cm), Conv1x1(cm->ci)
            'sw1': w(ks[8], (cm, cm)), 'sb1': w(ks[9], (1, cm), 0.01),
            'sw2': w(ks[10], (cm, ci)), 'sb2': w(ks[11], (1, ci), 0.01),
        })
    return params


# ------------------- pure-JAX reference (mirrors bf16 MXU inputs) ----------- #

def _ref_level(feat_nchw, p):
    f32, bf = jnp.float32, jnp.bfloat16
    hp = lax.Precision.HIGHEST
    x = jnp.transpose(feat_nchw, (0, 2, 3, 1)).astype(f32)
    B, H, W, Cin = x.shape

    def conv3x3(inp, w, b):
        xp = jnp.pad(inp, ((0, 0), (1, 1), (1, 1), (0, 0)))
        wf = w.astype(bf).astype(f32)                    # (9, Cin, Cout)
        y = None
        for t in range(9):
            dy, dx = t // 3, t % 3
            tap = xp[:, dy:dy + H, dx:dx + W, :].astype(bf).astype(f32)
            c = jnp.einsum('bhwc,cd->bhwd', tap, wf[t], precision=hp)
            y = c if y is None else y + c
        return _lrelu(y + b[0])

    f = conv3x3(x, p['w1'], p['b1'])
    f = conv3x3(f, p['w2'], p['b2'])
    fr = jnp.pad(f, ((0, 0), (1, 1), (1, 1), (0, 0)), mode='reflect')
    taps = jnp.stack([fr[:, dy:dy + H, dx:dx + W, :]
                      for dy in range(3) for dx in range(3)], axis=0)
    lmean = jnp.mean(taps, axis=0)
    lstd = jnp.sqrt(jnp.var(taps, axis=0, ddof=1) + EPS)

    def head(inp, w1, b1, w2, b2):
        h = jnp.einsum('bhwc,cd->bhwd', inp.astype(bf).astype(f32),
                       w1.astype(bf).astype(f32), precision=hp) + b1[0]
        h = _lrelu(h)
        return jnp.einsum('bhwc,cd->bhwd', h.astype(bf).astype(f32),
                          w2.astype(bf).astype(f32), precision=hp) + b2[0]

    mcode = head(lmean, p['mw1'], p['mb1'], p['mw2'], p['mb2'])
    scode = head(lstd, p['sw1'], p['sb1'], p['sw2'], p['sb2'])

    xf = x.reshape(B, H * W, Cin)
    gmean = jnp.mean(xf, axis=1)
    gstd = jnp.sqrt(jnp.var(xf, axis=1, ddof=1) + EPS)
    return (jnp.transpose(mcode, (0, 3, 1, 2)),
            jnp.transpose(scode, (0, 3, 1, 2)),
            jnp.broadcast_to(gmean[:, :, None, None], (B, Cin, H, W)),
            jnp.broadcast_to(gstd[:, :, None, None], (B, Cin, H, W)))


# ----------------------------------- main ----------------------------------- #

if __name__ == "__main__":
    key = jax.random.PRNGKey(0)
    kp, kx = jax.random.split(key)
    params = init_params(kp)

    # Small multi-scale pyramid consistent with the module's channel counts.
    shapes = [(2, 64, 16, 16), (2, 128, 8, 8), (2, 256, 4, 4), (2, 512, 2, 2)]
    xkeys = jax.random.split(kx, len(shapes))
    feats = [jax.random.normal(xkeys[i], s, jnp.float32)
             for i, s in enumerate(shapes)]

    outs = style_extractor_v2_forward(feats, params)
    outs = jax.block_until_ready(outs)
    local_mean, local_std, global_mean, global_std = outs

    names = ('local_mean', 'local_std', 'global_mean', 'global_std')
    for i, (b, c, h, w) in enumerate(shapes):
        ref = _ref_level(feats[i], params[i])
        got = (local_mean[i], local_std[i], global_mean[i], global_std[i])
        for name, g, r in zip(names, got, ref):
            assert g.shape == (b, c, h, w), (name, g.shape)
            assert bool(jnp.all(jnp.isfinite(g))), name
            err = float(jnp.max(jnp.abs(g - r)))
            scale = float(jnp.max(jnp.abs(r))) + 1e-6
            assert err <= 2e-2 + 2e-2 * scale, (
                f"level {i} {name}: max abs err {err:.3e} vs scale {scale:.3e}")
        assert bool(jnp.all(global_std[i] > 0))

    print("KERNEL_OK")
</pallas_src>

<mosaic_0001>
module attributes {stable_mosaic.version = 11 : i64} {
  func.func @_level_kernel(%arg0: i32, %arg1: memref<1x18x18x64xf32, #tpu.memory_space<vmem>>, %arg2: memref<9x64x32xbf16, #tpu.memory_space<vmem>>, %arg3: memref<1x32xf32, #tpu.memory_space<vmem>>, %arg4: memref<9x32x32xbf16, #tpu.memory_space<vmem>>, %arg5: memref<1x32xf32, #tpu.memory_space<vmem>>, %arg6: memref<32x32xbf16, #tpu.memory_space<vmem>>, %arg7: memref<1x32xf32, #tpu.memory_space<vmem>>, %arg8: memref<32x64xbf16, #tpu.memory_space<vmem>>, %arg9: memref<1x64xf32, #tpu.memory_space<vmem>>, %arg10: memref<32x32xbf16, #tpu.memory_space<vmem>>, %arg11: memref<1x32xf32, #tpu.memory_space<vmem>>, %arg12: memref<32x64xbf16, #tpu.memory_space<vmem>>, %arg13: memref<1x64xf32, #tpu.memory_space<vmem>>, %arg14: memref<1x16x16x128xf32, #tpu.memory_space<vmem>>, %arg15: memref<1x2x64xf32, #tpu.memory_space<vmem>>, %arg16: memref<1x18x18x32xbf16, #tpu.memory_space<vmem>>, %arg17: memref<1x18x18x32xf32, #tpu.memory_space<vmem>>) attributes {dimension_semantics = [#tpu.dimension_semantics<parallel>], iteration_bounds = array<i64: 2>, scalar_prefetch = 0 : i64, scratch_operands = 2 : i64, tpu.core_type = #tpu.core_type<tc>, window_params = [{transform_indices = @transform_0, window_bounds = array<i64: 1, 18, 18, 64>}, {pipeline_mode = #tpu.pipeline_mode<synchronous>, transform_indices = @transform_1, window_bounds = array<i64: 9, 64, 32>}, {pipeline_mode = #tpu.pipeline_mode<synchronous>, transform_indices = @transform_2, window_bounds = array<i64: 1, 32>}, {pipeline_mode = #tpu.pipeline_mode<synchronous>, transform_indices = @transform_3, window_bounds = array<i64: 9, 32, 32>}, {pipeline_mode = #tpu.pipeline_mode<synchronous>, transform_indices = @transform_4, window_bounds = array<i64: 1, 32>}, {pipeline_mode = #tpu.pipeline_mode<synchronous>, transform_indices = @transform_5, window_bounds = array<i64: 32, 32>}, {pipeline_mode = #tpu.pipeline_mode<synchronous>, transform_indices = @transform_6, window_bounds = array<i64: 1, 32>}, {pipeline_mode = #tpu.pipeline_mode<synchronous>, transform_indices = @transform_7, window_bounds = array<i64: 32, 64>}, {pipeline_mode = #tpu.pipeline_mode<synchronous>, transform_indices = @transform_8, window_bounds = array<i64: 1, 64>}, {pipeline_mode = #tpu.pipeline_mode<synchronous>, transform_indices = @transform_9, window_bounds = array<i64: 32, 32>}, {pipeline_mode = #tpu.pipeline_mode<synchronous>, transform_indices = @transform_10, window_bounds = array<i64: 1, 32>}, {pipeline_mode = #tpu.pipeline_mode<synchronous>, transform_indices = @transform_11, window_bounds = array<i64: 32, 64>}, {pipeline_mode = #tpu.pipeline_mode<synchronous>, transform_indices = @transform_12, window_bounds = array<i64: 1, 64>}, {transform_indices = @transform_13, window_bounds = array<i64: 1, 16, 16, 128>}, {transform_indices = @transform_14, window_bounds = array<i64: 1, 2, 64>}]} {
    %c0 = arith.constant 0 : index
    %c0_0 = arith.constant 0 : index
    %0 = vector.load %arg3[%c0, %c0_0] : memref<1x32xf32, #tpu.memory_space<vmem>>, vector<1x32xf32>
    %c0_1 = arith.constant 0 : index
    %c0_2 = arith.constant 0 : index
    %1 = vector.load %arg5[%c0_1, %c0_2] : memref<1x32xf32, #tpu.memory_space<vmem>>, vector<1x32xf32>
    %c0_3 = arith.constant 0 : index
    %c0_4 = arith.constant 0 : index
    %2 = vector.load %arg7[%c0_3, %c0_4] : memref<1x32xf32, #tpu.memory_space<vmem>>, vector<1x32xf32>
    %c0_5 = arith.constant 0 : index
    %c0_6 = arith.constant 0 : index
    %3 = vector.load %arg9[%c0_5, %c0_6] : memref<1x64xf32, #tpu.memory_space<vmem>>, vector<1x64xf32>
    %c0_7 = arith.constant 0 : index
    %c0_8 = arith.constant 0 : index
    %4 = vector.load %arg11[%c0_7, %c0_8] : memref<1x32xf32, #tpu.memory_space<vmem>>, vector<1x32xf32>
    %c0_9 = arith.constant 0 : index
    %c0_10 = arith.constant 0 : index
    %5 = vector.load %arg13[%c0_9, %c0_10] : memref<1x64xf32, #tpu.memory_space<vmem>>, vector<1x64xf32>
    %cst = arith.constant 0.000000e+00 : bf16
    %6 = vector.broadcast %cst : bf16 to vector<1x18x18x32xbf16>
    %c0_11 = arith.constant 0 : index
    %c0_12 = arith.constant 0 : index
    %c0_13 = arith.constant 0 : index
    %c0_14 = arith.constant 0 : index
    %7 = vector.load %arg16[%c0_11, %c0_12, %c0_13, %c0_14] : memref<1x18x18x32xbf16, #tpu.memory_space<vmem>>, vector<1x18x18x32xbf16>
    tpu.vector_store %arg16[%c0_11, %c0_12, %c0_13, %c0_14], %6 {strides = array<i32>} : memref<1x18x18x32xbf16, #tpu.memory_space<vmem>>, vector<1x18x18x32xbf16>,
    %cst_15 = arith.constant 0.000000e+00 : f32
    %8 = vector.broadcast %cst_15 : f32 to vector<1x64xf32>
    %c0_i32 = arith.constant 0 : i32
    %c16_i32 = arith.constant 16 : i32
    %9 = arith.muli %c0_i32, %c16_i32 : i32
    %10 = tpu.assume_multiple %9, 16 : i32
    %cst_16 = arith.constant 0.000000e+00 : f32
    %11 = vector.broadcast %cst_16 : f32 to vector<256x32xf32>
    %c0_i32_17 = arith.constant 0 : i32
    %12 = arith.addi %10, %c0_i32_17 : i32
    %c0_18 = arith.constant 0 : index
    %13 = arith.index_cast %12 : i32 to index
    %c0_19 = arith.constant 0 : index
    %c0_20 = arith.constant 0 : index
    %14 = vector.load %arg1[%c0_18, %13, %c0_19, %c0_20] : memref<1x18x18x64xf32, #tpu.memory_space<vmem>>, vector<1x16x16x64xf32>
    %15 = vector.shape_cast %14 : vector<1x16x16x64xf32> to vector<256x64xf32>
    %16 = arith.truncf %15 : vector<256x64xf32> to vector<256x64xbf16>
    %c0_21 = arith.constant 0 : index
    %c0_22 = arith.constant 0 : index
    %c0_23 = arith.constant 0 : index
    %17 = vector.load %arg2[%c0_21, %c0_22, %c0_23] : memref<9x64x32xbf16, #tpu.memory_space<vmem>>, vector<1x64x32xbf16>
    %18 = vector.shape_cast %17 : vector<1x64x32xbf16> to vector<64x32xbf16>
    %cst_24 = arith.constant dense<0.000000e+00> : vector<256x32xf32>
    %19 = tpu.matmul %16, %18, %cst_24 {dimension_numbers = #tpu.dot_dimension_numbers<[1], [0], [0], [1], [0, 0, 1, 1], [], []>} : vector<256x64xbf16>, vector<64x32xbf16>, vector<256x32xf32> -> vector<256x32xf32>
    %20 = arith.addf %11, %19 : vector<256x32xf32>
    %c0_i32_25 = arith.constant 0 : i32
    %21 = arith.addi %10, %c0_i32_25 : i32
    %c0_26 = arith.constant 0 : index
    %22 = arith.index_cast %21 : i32 to index
    %c1 = arith.constant 1 : index
    %c0_27 = arith.constant 0 : index
    %23 = vector.load %arg1[%c0_26, %22, %c1, %c0_27] : memref<1x18x18x64xf32, #tpu.memory_space<vmem>>, vector<1x16x16x64xf32>
    %24 = vector.shape_cast %23 : vector<1x16x16x64xf32> to vector<256x64xf32>
    %25 = arith.truncf %24 : vector<256x64xf32> to vector<256x64xbf16>
    %c1_28 = arith.constant 1 : index
    %c0_29 = arith.constant 0 : index
    %c0_30 = arith.constant 0 : index
    %26 = vector.load %arg2[%c1_28, %c0_29, %c0_30] : memref<9x64x32xbf16, #tpu.memory_space<vmem>>, vector<1x64x32xbf16>
    %27 = vector.shape_cast %26 : vector<1x64x32xbf16> to vector<64x32xbf16>
    %cst_31 = arith.constant dense<0.000000e+00> : vector<256x32xf32>
    %28 = tpu.matmul %25, %27, %cst_31 {dimension_numbers = #tpu.dot_dimension_numbers<[1], [0], [0], [1], [0, 0, 1, 1], [], []>} : vector<256x64xbf16>, vector<64x32xbf16>, vector<256x32xf32> -> vector<256x32xf32>
    %29 = arith.addf %20, %28 : vector<256x32xf32>
    %c0_i32_32 = arith.constant 0 : i32
    %30 = arith.addi %10, %c0_i32_32 : i32
    %c0_33 = arith.constant 0 : index
    %31 = arith.index_cast %30 : i32 to index
    %c2 = arith.constant 2 : index
    %c0_34 = arith.constant 0 : index
    %32 = vector.load %arg1[%c0_33, %31, %c2, %c0_34] : memref<1x18x18x64xf32, #tpu.memory_space<vmem>>, vector<1x16x16x64xf32>
    %33 = vector.shape_cast %32 : vector<1x16x16x64xf32> to vector<256x64xf32>
    %34 = arith.truncf %33 : vector<256x64xf32> to vector<256x64xbf16>
    %c2_35 = arith.constant 2 : index
    %c0_36 = arith.constant 0 : index
    %c0_37 = arith.constant 0 : index
    %35 = vector.load %arg2[%c2_35, %c0_36, %c0_37] : memref<9x64x32xbf16, #tpu.memory_space<vmem>>, vector<1x64x32xbf16>
    %36 = vector.shape_cast %35 : vector<1x64x32xbf16> to vector<64x32xbf16>
    %cst_38 = arith.constant dense<0.000000e+00> : vector<256x32xf32>
    %37 = tpu.matmul %34, %36, %cst_38 {dimension_numbers = #tpu.dot_dimension_numbers<[1], [0], [0], [1], [0, 0, 1, 1], [], []>} : vector<256x64xbf16>, vector<64x32xbf16>, vector<256x32xf32> -> vector<256x32xf32>
    %38 = arith.addf %29, %37 : vector<256x32xf32>
    %c1_i32 = arith.constant 1 : i32
    %39 = arith.addi %10, %c1_i32 : i32
    %c0_39 = arith.constant 0 : index
    %40 = arith.index_cast %39 : i32 to index
    %c0_40 = arith.constant 0 : index
    %c0_41 = arith.constant 0 : index
    %41 = vector.load %arg1[%c0_39, %40, %c0_40, %c0_41] : memref<1x18x18x64xf32, #tpu.memory_space<vmem>>, vector<1x16x16x64xf32>
    %42 = vector.shape_cast %41 : vector<1x16x16x64xf32> to vector<256x64xf32>
    %43 = arith.truncf %42 : vector<256x64xf32> to vector<256x64xbf16>
    %c3 = arith.constant 3 : index
    %c0_42 = arith.constant 0 : index
    %c0_43 = arith.constant 0 : index
    %44 = vector.load %arg2[%c3, %c0_42, %c0_43] : memref<9x64x32xbf16, #tpu.memory_space<vmem>>, vector<1x64x32xbf16>
    %45 = vector.shape_cast %44 : vector<1x64x32xbf16> to vector<64x32xbf16>
    %cst_44 = arith.constant dense<0.000000e+00> : vector<256x32xf32>
    %46 = tpu.matmul %43, %45, %cst_44 {dimension_numbers = #tpu.dot_dimension_numbers<[1], [0], [0], [1], [0, 0, 1, 1], [], []>} : vector<256x64xbf16>, vector<64x32xbf16>, vector<256x32xf32> -> vector<256x32xf32>
    %47 = arith.addf %38, %46 : vector<256x32xf32>
    %c1_i32_45 = arith.constant 1 : i32
    %48 = arith.addi %10, %c1_i32_45 : i32
    %c0_46 = arith.constant 0 : index
    %49 = arith.index_cast %48 : i32 to index
    %c1_47 = arith.constant 1 : index
    %c0_48 = arith.constant 0 : index
    %50 = vector.load %arg1[%c0_46, %49, %c1_47, %c0_48] : memref<1x18x18x64xf32, #tpu.memory_space<vmem>>, vector<1x16x16x64xf32>
    %51 = vector.shape_cast %50 : vector<1x16x16x64xf32> to vector<256x64xf32>
    %52 = arith.truncf %51 : vector<256x64xf32> to vector<256x64xbf16>
    %c4 = arith.constant 4 : index
    %c0_49 = arith.constant 0 : index
    %c0_50 = arith.constant 0 : index
    %53 = vector.load %arg2[%c4, %c0_49, %c0_50] : memref<9x64x32xbf16, #tpu.memory_space<vmem>>, vector<1x64x32xbf16>
    %54 = vector.shape_cast %53 : vector<1x64x32xbf16> to vector<64x32xbf16>
    %cst_51 = arith.constant dense<0.000000e+00> : vector<256x32xf32>
    %55 = tpu.matmul %52, %54, %cst_51 {dimension_numbers = #tpu.dot_dimension_numbers<[1], [0], [0], [1], [0, 0, 1, 1], [], []>} : vector<256x64xbf16>, vector<64x32xbf16>, vector<256x32xf32> -> vector<256x32xf32>
    %56 = arith.addf %47, %55 : vector<256x32xf32>
    %c1_i32_52 = arith.constant 1 : i32
    %57 = arith.addi %10, %c1_i32_52 : i32
    %c0_53 = arith.constant 0 : index
    %58 = arith.index_cast %57 : i32 to index
    %c2_54 = arith.constant 2 : index
    %c0_55 = arith.constant 0 : index
    %59 = vector.load %arg1[%c0_53, %58, %c2_54, %c0_55] : memref<1x18x18x64xf32, #tpu.memory_space<vmem>>, vector<1x16x16x64xf32>
    %60 = vector.shape_cast %59 : vector<1x16x16x64xf32> to vector<256x64xf32>
    %61 = arith.truncf %60 : vector<256x64xf32> to vector<256x64xbf16>
    %c5 = arith.constant 5 : index
    %c0_56 = arith.constant 0 : index
    %c0_57 = arith.constant 0 : index
    %62 = vector.load %arg2[%c5, %c0_56, %c0_57] : memref<9x64x32xbf16, #tpu.memory_space<vmem>>, vector<1x64x32xbf16>
    %63 = vector.shape_cast %62 : vector<1x64x32xbf16> to vector<64x32xbf16>
    %cst_58 = arith.constant dense<0.000000e+00> : vector<256x32xf32>
    %64 = tpu.matmul %61, %63, %cst_58 {dimension_numbers = #tpu.dot_dimension_numbers<[1], [0], [0], [1], [0, 0, 1, 1], [], []>} : vector<256x64xbf16>, vector<64x32xbf16>, vector<256x32xf32> -> vector<256x32xf32>
    %65 = arith.addf %56, %64 : vector<256x32xf32>
    %c2_i32 = arith.constant 2 : i32
    %66 = arith.addi %10, %c2_i32 : i32
    %c0_59 = arith.constant 0 : index
    %67 = arith.index_cast %66 : i32 to index
    %c0_60 = arith.constant 0 : index
    %c0_61 = arith.constant 0 : index
    %68 = vector.load %arg1[%c0_59, %67, %c0_60, %c0_61] : memref<1x18x18x64xf32, #tpu.memory_space<vmem>>, vector<1x16x16x64xf32>
    %69 = vector.shape_cast %68 : vector<1x16x16x64xf32> to vector<256x64xf32>
    %70 = arith.truncf %69 : vector<256x64xf32> to vector<256x64xbf16>
    %c6 = arith.constant 6 : index
    %c0_62 = arith.constant 0 : index
    %c0_63 = arith.constant 0 : index
    %71 = vector.load %arg2[%c6, %c0_62, %c0_63] : memref<9x64x32xbf16, #tpu.memory_space<vmem>>, vector<1x64x32xbf16>
    %72 = vector.shape_cast %71 : vector<1x64x32xbf16> to vector<64x32xbf16>
    %cst_64 = arith.constant dense<0.000000e+00> : vector<256x32xf32>
    %73 = tpu.matmul %70, %72, %cst_64 {dimension_numbers = #tpu.dot_dimension_numbers<[1], [0], [0], [1], [0, 0, 1, 1], [], []>} : vector<256x64xbf16>, vector<64x32xbf16>, vector<256x32xf32> -> vector<256x32xf32>
    %74 = arith.addf %65, %73 : vector<256x32xf32>
    %c2_i32_65 = arith.constant 2 : i32
    %75 = arith.addi %10, %c2_i32_65 : i32
    %c0_66 = arith.constant 0 : index
    %76 = arith.index_cast %75 : i32 to index
    %c1_67 = arith.constant 1 : index
    %c0_68 = arith.constant 0 : index
    %77 = vector.load %arg1[%c0_66, %76, %c1_67, %c0_68] : memref<1x18x18x64xf32, #tpu.memory_space<vmem>>, vector<1x16x16x64xf32>
    %78 = vector.shape_cast %77 : vector<1x16x16x64xf32> to vector<256x64xf32>
    %79 = arith.truncf %78 : vector<256x64xf32> to vector<256x64xbf16>
    %c7 = arith.constant 7 : index
    %c0_69 = arith.constant 0 : index
    %c0_70 = arith.constant 0 : index
    %80 = vector.load %arg2[%c7, %c0_69, %c0_70] : memref<9x64x32xbf16, #tpu.memory_space<vmem>>, vector<1x64x32xbf16>
    %81 = vector.shape_cast %80 : vector<1x64x32xbf16> to vector<64x32xbf16>
    %cst_71 = arith.constant dense<0.000000e+00> : vector<256x32xf32>
    %82 = tpu.matmul %79, %81, %cst_71 {dimension_numbers = #tpu.dot_dimension_numbers<[1], [0], [0], [1], [0, 0, 1, 1], [], []>} : vector<256x64xbf16>, vector<64x32xbf16>, vector<256x32xf32> -> vector<256x32xf32>
    %83 = arith.addf %74, %82 : vector<256x32xf32>
    %c2_i32_72 = arith.constant 2 : i32
    %84 = arith.addi %10, %c2_i32_72 : i32
    %c0_73 = arith.constant 0 : index
    %85 = arith.index_cast %84 : i32 to index
    %c2_74 = arith.constant 2 : index
    %c0_75 = arith.constant 0 : index
    %86 = vector.load %arg1[%c0_73, %85, %c2_74, %c0_75] : memref<1x18x18x64xf32, #tpu.memory_space<vmem>>, vector<1x16x16x64xf32>
    %87 = vector.shape_cast %86 : vector<1x16x16x64xf32> to vector<256x64xf32>
    %88 = arith.truncf %87 : vector<256x64xf32> to vector<256x64xbf16>
    %c8 = arith.constant 8 : index
    %c0_76 = arith.constant 0 : index
    %c0_77 = arith.constant 0 : index
    %89 = vector.load %arg2[%c8, %c0_76, %c0_77] : memref<9x64x32xbf16, #tpu.memory_space<vmem>>, vector<1x64x32xbf16>
    %90 = vector.shape_cast %89 : vector<1x64x32xbf16> to vector<64x32xbf16>
    %cst_78 = arith.constant dense<0.000000e+00> : vector<256x32xf32>
    %91 = tpu.matmul %88, %90, %cst_78 {dimension_numbers = #tpu.dot_dimension_numbers<[1], [0], [0], [1], [0, 0, 1, 1], [], []>} : vector<256x64xbf16>, vector<64x32xbf16>, vector<256x32xf32> -> vector<256x32xf32>
    %92 = arith.addf %83, %91 : vector<256x32xf32>
    %93 = vector.broadcast %0 : vector<1x32xf32> to vector<256x32xf32>
    %94 = arith.addf %92, %93 : vector<256x32xf32>
    %cst_79 = arith.constant 0.000000e+00 : f32
    %95 = vector.broadcast %cst_79 : f32 to vector<256x32xf32>
    %96 = arith.cmpf oge, %94, %95 : vector<256x32xf32>
    %cst_80 = arith.constant 1.000000e-01 : f32
    %97 = vector.broadcast %cst_80 : f32 to vector<256x32xf32>
    %98 = arith.mulf %97, %94 : vector<256x32xf32>
    %99 = arith.select %96, %94, %98 : vector<256x32xi1>, vector<256x32xf32>
    %100 = arith.truncf %99 : vector<256x32xf32> to vector<256x32xbf16>
    %101 = vector.shape_cast %100 : vector<256x32xbf16> to vector<1x16x16x32xbf16>
    %c1_i32_81 = arith.constant 1 : i32
    %102 = arith.addi %10, %c1_i32_81 : i32
    %c0_82 = arith.constant 0 : index
    %103 = arith.index_cast %102 : i32 to index
    %c1_83 = arith.constant 1 : index
    %c0_84 = arith.constant 0 : index
    %104 = vector.load %arg16[%c0_82, %103, %c1_83, %c0_84] : memref<1x18x18x32xbf16, #tpu.memory_space<vmem>>, vector<1x16x16x32xbf16>
    tpu.vector_store %arg16[%c0_82, %103, %c1_83, %c0_84], %101 {strides = array<i32>} : memref<1x18x18x32xbf16, #tpu.memory_space<vmem>>, vector<1x16x16x32xbf16>,
    %c1_i32_85 = arith.constant 1 : i32
    %105 = arith.addi %10, %c1_i32_85 : i32
    %c0_86 = arith.constant 0 : index
    %106 = arith.index_cast %105 : i32 to index
    %c1_87 = arith.constant 1 : index
    %c0_88 = arith.constant 0 : index
    %107 = vector.load %arg1[%c0_86, %106, %c1_87, %c0_88] : memref<1x18x18x64xf32, #tpu.memory_space<vmem>>, vector<1x16x16x64xf32>
    %108 = vector.shape_cast %107 : vector<1x16x16x64xf32> to vector<16x16x64xf32>
    %109 = vector.shape_cast %108 : vector<16x16x64xf32> to vector<256x64xf32>
    %cst_89 = arith.constant dense<0.000000e+00> : vector<64xf32>
    %110 = vector.multi_reduction <add>, %109, %cst_89 [0] : vector<256x64xf32> to vector<64xf32>
    %111 = vector.shape_cast %110 : vector<64xf32> to vector<1x64xf32>
    %112 = arith.addf %8, %111 : vector<1x64xf32>
    %c1_i32_90 = arith.constant 1 : i32
    %cst_91 = arith.constant 3.906250e-03 : f32
    %113 = vector.broadcast %cst_91 : f32 to vector<1x64xf32>
    %114 = arith.mulf %112, %113 : vector<1x64xf32>
    %cst_92 = arith.constant 0.000000e+00 : f32
    %115 = vector.broadcast %cst_92 : f32 to vector<1x64xf32>
    %c0_i32_93 = arith.constant 0 : i32
    %c16_i32_94 = arith.constant 16 : i32
    %116 = arith.muli %c0_i32_93, %c16_i32_94 : i32
    %117 = tpu.assume_multiple %116, 16 : i32
    %cst_95 = arith.constant 0.000000e+00 : f32
    %118 = vector.broadcast %cst_95 : f32 to vector<256x32xf32>
    %c0_i32_96 = arith.constant 0 : i32
    %119 = arith.addi %117, %c0_i32_96 : i32
    %c0_97 = arith.constant 0 : index
    %120 = arith.index_cast %119 : i32 to index
    %c0_98 = arith.constant 0 : index
    %c0_99 = arith.constant 0 : index
    %121 = vector.load %arg16[%c0_97, %120, %c0_98, %c0_99] : memref<1x18x18x32xbf16, #tpu.memory_space<vmem>>, vector<1x16x16x32xbf16>
    %122 = vector.shape_cast %121 : vector<1x16x16x32xbf16> to vector<256x32xbf16>
    %c0_100 = arith.constant 0 : index
    %c0_101 = arith.constant 0 : index
    %c0_102 = arith.constant 0 : index
    %123 = vector.load %arg4[%c0_100, %c0_101, %c0_102] : memref<9x32x32xbf16, #tpu.memory_space<vmem>>, vector<1x32x32xbf16>
    %124 = vector.shape_cast %123 : vector<1x32x32xbf16> to vector<32x32xbf16>
    %cst_103 = arith.constant dense<0.000000e+00> : vector<256x32xf32>
    %125 = tpu.matmul %122, %124, %cst_103 {dimension_numbers = #tpu.dot_dimension_numbers<[1], [0], [0], [1], [0, 0, 1, 1], [], []>} : vector<256x32xbf16>, vector<32x32xbf16>, vector<256x32xf32> -> vector<256x32xf32>
    %126 = arith.addf %118, %125 : vector<256x32xf32>
    %c0_i32_104 = arith.constant 0 : i32
    %127 = arith.addi %117, %c0_i32_104 : i32
    %c0_105 = arith.constant 0 : index
    %128 = arith.index_cast %127 : i32 to index
    %c1_106 = arith.constant 1 : index
    %c0_107 = arith.constant 0 : index
    %129 = vector.load %arg16[%c0_105, %128, %c1_106, %c0_107] : memref<1x18x18x32xbf16, #tpu.memory_space<vmem>>, vector<1x16x16x32xbf16>
    %130 = vector.shape_cast %129 : vector<1x16x16x32xbf16> to vector<256x32xbf16>
    %c1_108 = arith.constant 1 : index
    %c0_109 = arith.constant 0 : index
    %c0_110 = arith.constant 0 : index
    %131 = vector.load %arg4[%c1_108, %c0_109, %c0_110] : memref<9x32x32xbf16, #tpu.memory_space<vmem>>, vector<1x32x32xbf16>
    %132 = vector.shape_cast %131 : vector<1x32x32xbf16> to vector<32x32xbf16>
    %cst_111 = arith.constant dense<0.000000e+00> : vector<256x32xf32>
    %133 = tpu.matmul %130, %132, %cst_111 {dimension_numbers = #tpu.dot_dimension_numbers<[1], [0], [0], [1], [0, 0, 1, 1], [], []>} : vector<256x32xbf16>, vector<32x32xbf16>, vector<256x32xf32> -> vector<256x32xf32>
    %134 = arith.addf %126, %133 : vector<256x32xf32>
    %c0_i32_112 = arith.constant 0 : i32
    %135 = arith.addi %117, %c0_i32_112 : i32
    %c0_113 = arith.constant 0 : index
    %136 = arith.index_cast %135 : i32 to index
    %c2_114 = arith.constant 2 : index
    %c0_115 = arith.constant 0 : index
    %137 = vector.load %arg16[%c0_113, %136, %c2_114, %c0_115] : memref<1x18x18x32xbf16, #tpu.memory_space<vmem>>, vector<1x16x16x32xbf16>
    %138 = vector.shape_cast %137 : vector<1x16x16x32xbf16> to vector<256x32xbf16>
    %c2_116 = arith.constant 2 : index
    %c0_117 = arith.constant 0 : index
    %c0_118 = arith.constant 0 : index
    %139 = vector.load %arg4[%c2_116, %c0_117, %c0_118] : memref<9x32x32xbf16, #tpu.memory_space<vmem>>, vector<1x32x32xbf16>
    %140 = vector.shape_cast %139 : vector<1x32x32xbf16> to vector<32x32xbf16>
    %cst_119 = arith.constant dense<0.000000e+00> : vector<256x32xf32>
    %141 = tpu.matmul %138, %140, %cst_119 {dimension_numbers = #tpu.dot_dimension_numbers<[1], [0], [0], [1], [0, 0, 1, 1], [], []>} : vector<256x32xbf16>, vector<32x32xbf16>, vector<256x32xf32> -> vector<256x32xf32>
    %142 = arith.addf %134, %141 : vector<256x32xf32>
    %c1_i32_120 = arith.constant 1 : i32
    %143 = arith.addi %117, %c1_i32_120 : i32
    %c0_121 = arith.constant 0 : index
    %144 = arith.index_cast %143 : i32 to index
    %c0_122 = arith.constant 0 : index
    %c0_123 = arith.constant 0 : index
    %145 = vector.load %arg16[%c0_121, %144, %c0_122, %c0_123] : memref<1x18x18x32xbf16, #tpu.memory_space<vmem>>, vector<1x16x16x32xbf16>
    %146 = vector.shape_cast %145 : vector<1x16x16x32xbf16> to vector<256x32xbf16>
    %c3_124 = arith.constant 3 : index
    %c0_125 = arith.constant 0 : index
    %c0_126 = arith.constant 0 : index
    %147 = vector.load %arg4[%c3_124, %c0_125, %c0_126] : memref<9x32x32xbf16, #tpu.memory_space<vmem>>, vector<1x32x32xbf16>
    %148 = vector.shape_cast %147 : vector<1x32x32xbf16> to vector<32x32xbf16>
    %cst_127 = arith.constant dense<0.000000e+00> : vector<256x32xf32>
    %149 = tpu.matmul %146, %148, %cst_127 {dimension_numbers = #tpu.dot_dimension_numbers<[1], [0], [0], [1], [0, 0, 1, 1], [], []>} : vector<256x32xbf16>, vector<32x32xbf16>, vector<256x32xf32> -> vector<256x32xf32>
    %150 = arith.addf %142, %149 : vector<256x32xf32>
    %c1_i32_128 = arith.constant 1 : i32
    %151 = arith.addi %117, %c1_i32_128 : i32
    %c0_129 = arith.constant 0 : index
    %152 = arith.index_cast %151 : i32 to index
    %c1_130 = arith.constant 1 : index
    %c0_131 = arith.constant 0 : index
    %153 = vector.load %arg16[%c0_129, %152, %c1_130, %c0_131] : memref<1x18x18x32xbf16, #tpu.memory_space<vmem>>, vector<1x16x16x32xbf16>
    %154 = vector.shape_cast %153 : vector<1x16x16x32xbf16> to vector<256x32xbf16>
    %c4_132 = arith.constant 4 : index
    %c0_133 = arith.constant 0 : index
    %c0_134 = arith.constant 0 : index
    %155 = vector.load %arg4[%c4_132, %c0_133, %c0_134] : memref<9x32x32xbf16, #tpu.memory_space<vmem>>, vector<1x32x32xbf16>
    %156 = vector.shape_cast %155 : vector<1x32x32xbf16> to vector<32x32xbf16>
    %cst_135 = arith.constant dense<0.000000e+00> : vector<256x32xf32>
    %157 = tpu.matmul %154, %156, %cst_135 {dimension_numbers = #tpu.dot_dimension_numbers<[1], [0], [0], [1], [0, 0, 1, 1], [], []>} : vector<256x32xbf16>, vector<32x32xbf16>, vector<256x32xf32> -> vector<256x32xf32>
    %158 = arith.addf %150, %157 : vector<256x32xf32>
    %c1_i32_136 = arith.constant 1 : i32
    %159 = arith.addi %117, %c1_i32_136 : i32
    %c0_137 = arith.constant 0 : index
    %160 = arith.index_cast %159 : i32 to index
    %c2_138 = arith.constant 2 : index
    %c0_139 = arith.constant 0 : index
    %161 = vector.load %arg16[%c0_137, %160, %c2_138, %c0_139] : memref<1x18x18x32xbf16, #tpu.memory_space<vmem>>, vector<1x16x16x32xbf16>
    %162 = vector.shape_cast %161 : vector<1x16x16x32xbf16> to vector<256x32xbf16>
    %c5_140 = arith.constant 5 : index
    %c0_141 = arith.constant 0 : index
    %c0_142 = arith.constant 0 : index
    %163 = vector.load %arg4[%c5_140, %c0_141, %c0_142] : memref<9x32x32xbf16, #tpu.memory_space<vmem>>, vector<1x32x32xbf16>
    %164 = vector.shape_cast %163 : vector<1x32x32xbf16> to vector<32x32xbf16>
    %cst_143 = arith.constant dense<0.000000e+00> : vector<256x32xf32>
    %165 = tpu.matmul %162, %164, %cst_143 {dimension_numbers = #tpu.dot_dimension_numbers<[1], [0], [0], [1], [0, 0, 1, 1], [], []>} : vector<256x32xbf16>, vector<32x32xbf16>, vector<256x32xf32> -> vector<256x32xf32>
    %166 = arith.addf %158, %165 : vector<256x32xf32>
    %c2_i32_144 = arith.constant 2 : i32
    %167 = arith.addi %117, %c2_i32_144 : i32
    %c0_145 = arith.constant 0 : index
    %168 = arith.index_cast %167 : i32 to index
    %c0_146 = arith.constant 0 : index
    %c0_147 = arith.constant 0 : index
    %169 = vector.load %arg16[%c0_145, %168, %c0_146, %c0_147] : memref<1x18x18x32xbf16, #tpu.memory_space<vmem>>, vector<1x16x16x32xbf16>
    %170 = vector.shape_cast %169 : vector<1x16x16x32xbf16> to vector<256x32xbf16>
    %c6_148 = arith.constant 6 : index
    %c0_149 = arith.constant 0 : index
    %c0_150 = arith.constant 0 : index
    %171 = vector.load %arg4[%c6_148, %c0_149, %c0_150] : memref<9x32x32xbf16, #tpu.memory_space<vmem>>, vector<1x32x32xbf16>
    %172 = vector.shape_cast %171 : vector<1x32x32xbf16> to vector<32x32xbf16>
    %cst_151 = arith.constant dense<0.000000e+00> : vector<256x32xf32>
    %173 = tpu.matmul %170, %172, %cst_151 {dimension_numbers = #tpu.dot_dimension_numbers<[1], [0], [0], [1], [0, 0, 1, 1], [], []>} : vector<256x32xbf16>, vector<32x32xbf16>, vector<256x32xf32> -> vector<256x32xf32>
    %174 = arith.addf %166, %173 : vector<256x32xf32>
    %c2_i32_152 = arith.constant 2 : i32
    %175 = arith.addi %117, %c2_i32_152 : i32
    %c0_153 = arith.constant 0 : index
    %176 = arith.index_cast %175 : i32 to index
    %c1_154 = arith.constant 1 : index
    %c0_155 = arith.constant 0 : index
    %177 = vector.load %arg16[%c0_153, %176, %c1_154, %c0_155] : memref<1x18x18x32xbf16, #tpu.memory_space<vmem>>, vector<1x16x16x32xbf16>
    %178 = vector.shape_cast %177 : vector<1x16x16x32xbf16> to vector<256x32xbf16>
    %c7_156 = arith.constant 7 : index
    %c0_157 = arith.constant 0 : index
    %c0_158 = arith.constant 0 : index
    %179 = vector.load %arg4[%c7_156, %c0_157, %c0_158] : memref<9x32x32xbf16, #tpu.memory_space<vmem>>, vector<1x32x32xbf16>
    %180 = vector.shape_cast %179 : vector<1x32x32xbf16> to vector<32x32xbf16>
    %cst_159 = arith.constant dense<0.000000e+00> : vector<256x32xf32>
    %181 = tpu.matmul %178, %180, %cst_159 {dimension_numbers = #tpu.dot_dimension_numbers<[1], [0], [0], [1], [0, 0, 1, 1], [], []>} : vector<256x32xbf16>, vector<32x32xbf16>, vector<256x32xf32> -> vector<256x32xf32>
    %182 = arith.addf %174, %181 : vector<256x32xf32>
    %c2_i32_160 = arith.constant 2 : i32
    %183 = arith.addi %117, %c2_i32_160 : i32
    %c0_161 = arith.constant 0 : index
    %184 = arith.index_cast %183 : i32 to index
    %c2_162 = arith.constant 2 : index
    %c0_163 = arith.constant 0 : index
    %185 = vector.load %arg16[%c0_161, %184, %c2_162, %c0_163] : memref<1x18x18x32xbf16, #tpu.memory_space<vmem>>, vector<1x16x16x32xbf16>
    %186 = vector.shape_cast %185 : vector<1x16x16x32xbf16> to vector<256x32xbf16>
    %c8_164 = arith.constant 8 : index
    %c0_165 = arith.constant 0 : index
    %c0_166 = arith.constant 0 : index
    %187 = vector.load %arg4[%c8_164, %c0_165, %c0_166] : memref<9x32x32xbf16, #tpu.memory_space<vmem>>, vector<1x32x32xbf16>
    %188 = vector.shape_cast %187 : vector<1x32x32xbf16> to vector<32x32xbf16>
    %cst_167 = arith.constant dense<0.000000e+00> : vector<256x32xf32>
    %189 = tpu.matmul %186, %188, %cst_167 {dimension_numbers = #tpu.dot_dimension_numbers<[1], [0], [0], [1], [0, 0, 1, 1], [], []>} : vector<256x32xbf16>, vector<32x32xbf16>, vector<256x32xf32> -> vector<256x32xf32>
    %190 = arith.addf %182, %189 : vector<256x32xf32>
    %191 = vector.broadcast %1 : vector<1x32xf32> to vector<256x32xf32>
    %192 = arith.addf %190, %191 : vector<256x32xf32>
    %cst_168 = arith.constant 0.000000e+00 : f32
    %193 = vector.broadcast %cst_168 : f32 to vector<256x32xf32>
    %194 = arith.cmpf oge, %192, %193 : vector<256x32xf32>
    %cst_169 = arith.constant 1.000000e-01 : f32
    %195 = vector.broadcast %cst_169 : f32 to vector<256x32xf32>
    %196 = arith.mulf %195, %192 : vector<256x32xf32>
    %197 = arith.select %194, %192, %196 : vector<256x32xi1>, vector<256x32xf32>
    %198 = vector.shape_cast %197 : vector<256x32xf32> to vector<1x16x16x32xf32>
    %c1_i32_170 = arith.constant 1 : i32
    %199 = arith.addi %117, %c1_i32_170 : i32
    %c0_171 = arith.constant 0 : index
    %200 = arith.index_cast %199 : i32 to index
    %c1_172 = arith.constant 1 : index
    %c0_173 = arith.constant 0 : index
    %201 = vector.load %arg17[%c0_171, %200, %c1_172, %c0_173] : memref<1x18x18x32xf32, #tpu.memory_space<vmem>>, vector<1x16x16x32xf32>
    tpu.vector_store %arg17[%c0_171, %200, %c1_172, %c0_173], %198 {strides = array<i32>} : memref<1x18x18x32xf32, #tpu.memory_space<vmem>>, vector<1x16x16x32xf32>,
    %202 = vector.extract_strided_slice %198 {offsets = [0, 0, 1, 0], sizes = [1, 16, 1, 32], strides = [1, 1, 1, 1]} : vector<1x16x16x32xf32> to vector<1x16x1x32xf32>
    %c1_i32_174 = arith.constant 1 : i32
    %203 = arith.addi %117, %c1_i32_174 : i32
    %c0_175 = arith.constant 0 : index
    %204 = arith.index_cast %203 : i32 to index
    %c0_176 = arith.constant 0 : index
    %c0_177 = arith.constant 0 : index
    %205 = vector.load %arg17[%c0_175, %204, %c0_176, %c0_177] : memref<1x18x18x32xf32, #tpu.memory_space<vmem>>, vector<1x16x1x32xf32>
    tpu.vector_store %arg17[%c0_175, %204, %c0_176, %c0_177], %202 {strides = array<i32>} : memref<1x18x18x32xf32, #tpu.memory_space<vmem>>, vector<1x16x1x32xf32>,
    %206 = vector.extract_strided_slice %198 {offsets = [0, 0, 14, 0], sizes = [1, 16, 1, 32], strides = [1, 1, 1, 1]} : vector<1x16x16x32xf32> to vector<1x16x1x32xf32>
    %c1_i32_178 = arith.constant 1 : i32
    %207 = arith.addi %117, %c1_i32_178 : i32
    %c0_179 = arith.constant 0 : index
    %208 = arith.index_cast %207 : i32 to index
    %c17 = arith.constant 17 : index
    %c0_180 = arith.constant 0 : index
    %209 = vector.load %arg17[%c0_179, %208, %c17, %c0_180] : memref<1x18x18x32xf32, #tpu.memory_space<vmem>>, vector<1x16x1x32xf32>
    tpu.vector_store %arg17[%c0_179, %208, %c17, %c0_180], %206 {strides = array<i32>} : memref<1x18x18x32xf32, #tpu.memory_space<vmem>>, vector<1x16x1x32xf32>,
    %c1_i32_181 = arith.constant 1 : i32
    %210 = arith.addi %117, %c1_i32_181 : i32
    %c0_182 = arith.constant 0 : index
    %211 = arith.index_cast %210 : i32 to index
    %c1_183 = arith.constant 1 : index
    %c0_184 = arith.constant 0 : index
    %212 = vector.load %arg1[%c0_182, %211, %c1_183, %c0_184] : memref<1x18x18x64xf32, #tpu.memory_space<vmem>>, vector<1x16x16x64xf32>
    %213 = vector.shape_cast %212 : vector<1x16x16x64xf32> to vector<16x16x64xf32>
    %214 = vector.shape_cast %213 : vector<16x16x64xf32> to vector<256x64xf32>
    %215 = vector.broadcast %114 : vector<1x64xf32> to vector<256x64xf32>
    %216 = arith.subf %214, %215 : vector<256x64xf32>
    %217 = arith.mulf %216, %216 : vector<256x64xf32>
    %cst_185 = arith.constant dense<0.000000e+00> : vector<64xf32>
    %218 = vector.multi_reduction <add>, %217, %cst_185 [0] : vector<256x64xf32> to vector<64xf32>
    %219 = vector.shape_cast %218 : vector<64xf32> to vector<1x64xf32>
    %220 = arith.addf %115, %219 : vector<1x64xf32>
    %c1_i32_186 = arith.constant 1 : i32
    %cst_187 = arith.constant 0.00392156886 : f32
    %221 = vector.broadcast %cst_187 : f32 to vector<1x64xf32>
    %222 = arith.mulf %220, %221 : vector<1x64xf32>
    %cst_188 = arith.constant 9.99999974E-6 : f32
    %223 = vector.broadcast %cst_188 : f32 to vector<1x64xf32>
    %224 = arith.addf %222, %223 : vector<1x64xf32>
    %225 = math.sqrt %224 : vector<1x64xf32>
    %226 = vector.shape_cast %114 : vector<1x64xf32> to vector<1x1x64xf32>
    %c0_189 = arith.constant 0 : index
    %c0_190 = arith.constant 0 : index
    %c0_191 = arith.constant 0 : index
    %227 = vector.load %arg15[%c0_189, %c0_190, %c0_191] : memref<1x2x64xf32, #tpu.memory_space<vmem>>, vector<1x1x64xf32>
    tpu.vector_store %arg15[%c0_189, %c0_190, %c0_191], %226 {strides = array<i32>} : memref<1x2x64xf32, #tpu.memory_space<vmem>>, vector<1x1x64xf32>,
    %228 = vector.shape_cast %225 : vector<1x64xf32> to vector<1x1x64xf32>
    %c0_192 = arith.constant 0 : index
    %c1_193 = arith.constant 1 : index
    %c0_194 = arith.constant 0 : index
    %229 = vector.load %arg15[%c0_192, %c1_193, %c0_194] : memref<1x2x64xf32, #tpu.memory_space<vmem>>, vector<1x1x64xf32>
    tpu.vector_store %arg15[%c0_192, %c1_193, %c0_194], %228 {strides = array<i32>} : memref<1x2x64xf32, #tpu.memory_space<vmem>>, vector<1x1x64xf32>,
    %c0_195 = arith.constant 0 : index
    %c2_196 = arith.constant 2 : index
    %c0_197 = arith.constant 0 : index
    %c0_198 = arith.constant 0 : index
    %230 = vector.load %arg17[%c0_195, %c2_196, %c0_197, %c0_198] : memref<1x18x18x32xf32, #tpu.memory_space<vmem>>, vector<1x1x18x32xf32>
    %c0_199 = arith.constant 0 : index
    %c0_200 = arith.constant 0 : index
    %c0_201 = arith.constant 0 : index
    %c0_202 = arith.constant 0 : index
    %231 = vector.load %arg17[%c0_199, %c0_200, %c0_201, %c0_202] : memref<1x18x18x32xf32, #tpu.memory_space<vmem>>, vector<1x1x18x32xf32>
    tpu.vector_store %arg17[%c0_199, %c0_200, %c0_201, %c0_202], %230 {strides = array<i32>} : memref<1x18x18x32xf32, #tpu.memory_space<vmem>>, vector<1x1x18x32xf32>,
    %c0_203 = arith.constant 0 : index
    %c15 = arith.constant 15 : index
    %c0_204 = arith.constant 0 : index
    %c0_205 = arith.constant 0 : index
    %232 = vector.load %arg17[%c0_203, %c15, %c0_204, %c0_205] : memref<1x18x18x32xf32, #tpu.memory_space<vmem>>, vector<1x1x18x32xf32>
    %c0_206 = arith.constant 0 : index
    %c17_207 = arith.constant 17 : index
    %c0_208 = arith.constant 0 : index
    %c0_209 = arith.constant 0 : index
    %233 = vector.load %arg17[%c0_206, %c17_207, %c0_208, %c0_209] : memref<1x18x18x32xf32, #tpu.memory_space<vmem>>, vector<1x1x18x32xf32>
    tpu.vector_store %arg17[%c0_206, %c17_207, %c0_208, %c0_209], %232 {strides = array<i32>} : memref<1x18x18x32xf32, #tpu.memory_space<vmem>>, vector<1x1x18x32xf32>,
    %c0_i32_210 = arith.constant 0 : i32
    %c16_i32_211 = arith.constant 16 : i32
    %234 = arith.muli %c0_i32_210, %c16_i32_211 : i32
    %235 = tpu.assume_multiple %234, 16 : i32
    %c0_212 = arith.constant 0 : index
    %236 = arith.index_cast %235 : i32 to index
    %c0_213 = arith.constant 0 : index
    %c0_214 = arith.constant 0 : index
    %237 = vector.load %arg17[%c0_212, %236, %c0_213, %c0_214] : memref<1x18x18x32xf32, #tpu.memory_space<vmem>>, vector<1x18x18x32xf32>
    %238 = vector.extract_strided_slice %237 {offsets = [0, 0, 0, 0], sizes = [1, 16, 16, 32], strides = [1, 1, 1, 1]} : vector<1x18x18x32xf32> to vector<1x16x16x32xf32>
    %239 = arith.mulf %238, %238 : vector<1x16x16x32xf32>
    %240 = vector.extract_strided_slice %237 {offsets = [0, 0, 1, 0], sizes = [1, 16, 16, 32], strides = [1, 1, 1, 1]} : vector<1x18x18x32xf32> to vector<1x16x16x32xf32>
    %241 = arith.addf %238, %240 : vector<1x16x16x32xf32>
    %242 = arith.mulf %240, %240 : vector<1x16x16x32xf32>
    %243 = arith.addf %239, %242 : vector<1x16x16x32xf32>
    %244 = vector.extract_strided_slice %237 {offsets = [0, 0, 2, 0], sizes = [1, 16, 16, 32], strides = [1, 1, 1, 1]} : vector<1x18x18x32xf32> to vector<1x16x16x32xf32>
    %245 = arith.addf %241, %244 : vector<1x16x16x32xf32>
    %246 = arith.mulf %244, %244 : vector<1x16x16x32xf32>
    %247 = arith.addf %243, %246 : vector<1x16x16x32xf32>
    %248 = vector.extract_strided_slice %237 {offsets = [0, 1, 0, 0], sizes = [1, 16, 16, 32], strides = [1, 1, 1, 1]} : vector<1x18x18x32xf32> to vector<1x16x16x32xf32>
    %249 = arith.addf %245, %248 : vector<1x16x16x32xf32>
    %250 = arith.mulf %248, %248 : vector<1x16x16x32xf32>
    %251 = arith.addf %247, %250 : vector<1x16x16x32xf32>
    %252 = vector.extract_strided_slice %237 {offsets = [0, 1, 1, 0], sizes = [1, 16, 16, 32], strides = [1, 1, 1, 1]} : vector<1x18x18x32xf32> to vector<1x16x16x32xf32>
    %253 = arith.addf %249, %252 : vector<1x16x16x32xf32>
    %254 = arith.mulf %252, %252 : vector<1x16x16x32xf32>
    %255 = arith.addf %251, %254 : vector<1x16x16x32xf32>
    %256 = vector.extract_strided_slice %237 {offsets = [0, 1, 2, 0], sizes = [1, 16, 16, 32], strides = [1, 1, 1, 1]} : vector<1x18x18x32xf32> to vector<1x16x16x32xf32>
    %257 = arith.addf %253, %256 : vector<1x16x16x32xf32>
    %258 = arith.mulf %256, %256 : vector<1x16x16x32xf32>
    %259 = arith.addf %255, %258 : vector<1x16x16x32xf32>
    %260 = vector.extract_strided_slice %237 {offsets = [0, 2, 0, 0], sizes = [1, 16, 16, 32], strides = [1, 1, 1, 1]} : vector<1x18x18x32xf32> to vector<1x16x16x32xf32>
    %261 = arith.addf %257, %260 : vector<1x16x16x32xf32>
    %262 = arith.mulf %260, %260 : vector<1x16x16x32xf32>
    %263 = arith.addf %259, %262 : vector<1x16x16x32xf32>
    %264 = vector.extract_strided_slice %237 {offsets = [0, 2, 1, 0], sizes = [1, 16, 16, 32], strides = [1, 1, 1, 1]} : vector<1x18x18x32xf32> to vector<1x16x16x32xf32>
    %265 = arith.addf %261, %264 : vector<1x16x16x32xf32>
    %266 = arith.mulf %264, %264 : vector<1x16x16x32xf32>
    %267 = arith.addf %263, %266 : vector<1x16x16x32xf32>
    %268 = vector.extract_strided_slice %237 {offsets = [0, 2, 2, 0], sizes = [1, 16, 16, 32], strides = [1, 1, 1, 1]} : vector<1x18x18x32xf32> to vector<1x16x16x32xf32>
    %269 = arith.addf %265, %268 : vector<1x16x16x32xf32>
    %270 = arith.mulf %268, %268 : vector<1x16x16x32xf32>
    %271 = arith.addf %267, %270 : vector<1x16x16x32xf32>
    %cst_215 = arith.constant 0.111111112 : f32
    %272 = vector.broadcast %cst_215 : f32 to vector<1x16x16x32xf32>
    %273 = arith.mulf %269, %272 : vector<1x16x16x32xf32>
    %274 = arith.mulf %269, %269 : vector<1x16x16x32xf32>
    %cst_216 = arith.constant 0.111111112 : f32
    %275 = vector.broadcast %cst_216 : f32 to vector<1x16x16x32xf32>
    %276 = arith.mulf %274, %275 : vector<1x16x16x32xf32>
    %277 = arith.subf %271, %276 : vector<1x16x16x32xf32>
    %cst_217 = arith.constant 0.000000e+00 : f32
    %278 = vector.broadcast %cst_217 : f32 to vector<1x16x16x32xf32>
    %279 = arith.maximumf %277, %278 : vector<1x16x16x32xf32>
    %cst_218 = arith.constant 1.250000e-01 : f32
    %280 = vector.broadcast %cst_218 : f32 to vector<1x16x16x32xf32>
    %281 = arith.mulf %279, %280 : vector<1x16x16x32xf32>
    %cst_219 = arith.constant 9.99999974E-6 : f32
    %282 = vector.broadcast %cst_219 : f32 to vector<1x16x16x32xf32>
    %283 = arith.addf %281, %282 : vector<1x16x16x32xf32>
    %284 = math.sqrt %283 : vector<1x16x16x32xf32>
    %285 = vector.shape_cast %273 : vector<1x16x16x32xf32> to vector<256x32xf32>
    %286 = arith.truncf %285 : vector<256x32xf32> to vector<256x32xbf16>
    %c0_220 = arith.constant 0 : index
    %c0_221 = arith.constant 0 : index
    %287 = vector.load %arg6[%c0_220, %c0_221] : memref<32x32xbf16, #tpu.memory_space<vmem>>, vector<32x32xbf16>
    %cst_222 = arith.constant dense<0.000000e+00> : vector<256x32xf32>
    %288 = tpu.matmul %286, %287, %cst_222 {dimension_numbers = #tpu.dot_dimension_numbers<[1], [0], [0], [1], [0, 0, 1, 1], [], []>} : vector<256x32xbf16>, vector<32x32xbf16>, vector<256x32xf32> -> vector<256x32xf32>
    %289 = vector.broadcast %2 : vector<1x32xf32> to vector<256x32xf32>
    %290 = arith.addf %288, %289 : vector<256x32xf32>
    %cst_223 = arith.constant 0.000000e+00 : f32
    %291 = vector.broadcast %cst_223 : f32 to vector<256x32xf32>
    %292 = arith.cmpf oge, %290, %291 : vector<256x32xf32>
    %cst_224 = arith.constant 1.000000e-01 : f32
    %293 = vector.broadcast %cst_224 : f32 to vector<256x32xf32>
    %294 = arith.mulf %293, %290 : vector<256x32xf32>
    %295 = arith.select %292, %290, %294 : vector<256x32xi1>, vector<256x32xf32>
    %296 = arith.truncf %295 : vector<256x32xf32> to vector<256x32xbf16>
    %c0_225 = arith.constant 0 : index
    %c0_226 = arith.constant 0 : index
    %297 = vector.load %arg8[%c0_225, %c0_226] : memref<32x64xbf16, #tpu.memory_space<vmem>>, vector<32x64xbf16>
    %cst_227 = arith.constant dense<0.000000e+00> : vector<256x64xf32>
    %298 = tpu.matmul %296, %297, %cst_227 {dimension_numbers = #tpu.dot_dimension_numbers<[1], [0], [0], [1], [0, 0, 1, 1], [], []>} : vector<256x32xbf16>, vector<32x64xbf16>, vector<256x64xf32> -> vector<256x64xf32>
    %299 = vector.broadcast %3 : vector<1x64xf32> to vector<256x64xf32>
    %300 = arith.addf %298, %299 : vector<256x64xf32>
    %301 = vector.shape_cast %284 : vector<1x16x16x32xf32> to vector<256x32xf32>
    %302 = arith.truncf %301 : vector<256x32xf32> to vector<256x32xbf16>
    %c0_228 = arith.constant 0 : index
    %c0_229 = arith.constant 0 : index
    %303 = vector.load %arg10[%c0_228, %c0_229] : memref<32x32xbf16, #tpu.memory_space<vmem>>, vector<32x32xbf16>
    %cst_230 = arith.constant dense<0.000000e+00> : vector<256x32xf32>
    %304 = tpu.matmul %302, %303, %cst_230 {dimension_numbers = #tpu.dot_dimension_numbers<[1], [0], [0], [1], [0, 0, 1, 1], [], []>} : vector<256x32xbf16>, vector<32x32xbf16>, vector<256x32xf32> -> vector<256x32xf32>
    %305 = vector.broadcast %4 : vector<1x32xf32> to vector<256x32xf32>
    %306 = arith.addf %304, %305 : vector<256x32xf32>
    %cst_231 = arith.constant 0.000000e+00 : f32
    %307 = vector.broadcast %cst_231 : f32 to vector<256x32xf32>
    %308 = arith.cmpf oge, %306, %307 : vector<256x32xf32>
    %cst_232 = arith.constant 1.000000e-01 : f32
    %309 = vector.broadcast %cst_232 : f32 to vector<256x32xf32>
    %310 = arith.mulf %309, %306 : vector<256x32xf32>
    %311 = arith.select %308, %306, %310 : vector<256x32xi1>, vector<256x32xf32>
    %312 = arith.truncf %311 : vector<256x32xf32> to vector<256x32xbf16>
    %c0_233 = arith.constant 0 : index
    %c0_234 = arith.constant 0 : index
    %313 = vector.load %arg12[%c0_233, %c0_234] : memref<32x64xbf16, #tpu.memory_space<vmem>>, vector<32x64xbf16>
    %cst_235 = arith.constant dense<0.000000e+00> : vector<256x64xf32>
    %314 = tpu.matmul %312, %313, %cst_235 {dimension_numbers = #tpu.dot_dimension_numbers<[1], [0], [0], [1], [0, 0, 1, 1], [], []>} : vector<256x32xbf16>, vector<32x64xbf16>, vector<256x64xf32> -> vector<256x64xf32>
    %315 = vector.broadcast %5 : vector<1x64xf32> to vector<256x64xf32>
    %316 = arith.addf %314, %315 : vector<256x64xf32>
    %317 = tpu.concatenate %300, %316 in 1 : vector<256x64xf32>, vector<256x64xf32> -> vector<256x128xf32>
    %318 = vector.shape_cast %317 : vector<256x128xf32> to vector<1x16x16x128xf32>
    %c0_236 = arith.constant 0 : index
    %319 = arith.index_cast %235 : i32 to index
    %c0_237 = arith.constant 0 : index
    %c0_238 = arith.constant 0 : index
    %320 = vector.load %arg14[%c0_236, %319, %c0_237, %c0_238] : memref<1x16x16x128xf32, #tpu.memory_space<vmem>>, vector<1x16x16x128xf32>
    tpu.vector_store %arg14[%c0_236, %319, %c0_237, %c0_238], %318 {strides = array<i32>} : memref<1x16x16x128xf32, #tpu.memory_space<vmem>>, vector<1x16x16x128xf32>,
    %c1_i32_239 = arith.constant 1 : i32
    return
  }
  func.func @transform_0(%arg0: i32) -> (i32, i32, i32, i32) {
    %c0_i32 = arith.constant 0 : i32
    %c0_i32_0 = arith.constant 0 : i32
    %c0_i32_1 = arith.constant 0 : i32
    %c0_i32_2 = arith.constant 0 : i32
    return %arg0, %c0_i32, %c0_i32_0, %c0_i32_1 : i32, i32, i32, i32
  }
  func.func @transform_1(%arg0: i32) -> (i32, i32, i32) {
    %c0_i32 = arith.constant 0 : i32
    %c0_i32_0 = arith.constant 0 : i32
    %c0_i32_1 = arith.constant 0 : i32
    %c0_i32_2 = arith.constant 0 : i32
    return %c0_i32, %c0_i32_0, %c0_i32_1 : i32, i32, i32
  }
  func.func @transform_2(%arg0: i32) -> (i32, i32) {
    %c0_i32 = arith.constant 0 : i32
    %c0_i32_0 = arith.constant 0 : i32
    %c0_i32_1 = arith.constant 0 : i32
    return %c0_i32, %c0_i32_0 : i32, i32
  }
  func.func @transform_3(%arg0: i32) -> (i32, i32, i32) {
    %c0_i32 = arith.constant 0 : i32
    %c0_i32_0 = arith.constant 0 : i32
    %c0_i32_1 = arith.constant 0 : i32
    %c0_i32_2 = arith.constant 0 : i32
    return %c0_i32, %c0_i32_0, %c0_i32_1 : i32, i32, i32
  }
  func.func @transform_4(%arg0: i32) -> (i32, i32) {
    %c0_i32 = arith.constant 0 : i32
    %c0_i32_0 = arith.constant 0 : i32
    %c0_i32_1 = arith.constant 0 : i32
    return %c0_i32, %c0_i32_0 : i32, i32
  }
  func.func @transform_5(%arg0: i32) -> (i32, i32) {
    %c0_i32 = arith.constant 0 : i32
    %c0_i32_0 = arith.constant 0 : i32
    %c0_i32_1 = arith.constant 0 : i32
    return %c0_i32, %c0_i32_0 : i32, i32
  }
  func.func @transform_6(%arg0: i32) -> (i32, i32) {
    %c0_i32 = arith.constant 0 : i32
    %c0_i32_0 = arith.constant 0 : i32
    %c0_i32_1 = arith.constant 0 : i32
    return %c0_i32, %c0_i32_0 : i32, i32
  }
  func.func @transform_7(%arg0: i32) -> (i32, i32) {
    %c0_i32 = arith.constant 0 : i32
    %c0_i32_0 = arith.constant 0 : i32
    %c0_i32_1 = arith.constant 0 : i32
    return %c0_i32, %c0_i32_0 : i32, i32
  }
  func.func @transform_8(%arg0: i32) -> (i32, i32) {
    %c0_i32 = arith.constant 0 : i32
    %c0_i32_0 = arith.constant 0 : i32
    %c0_i32_1 = arith.constant 0 : i32
    return %c0_i32, %c0_i32_0 : i32, i32
  }
  func.func @transform_9(%arg0: i32) -> (i32, i32) {
    %c0_i32 = arith.constant 0 : i32
    %c0_i32_0 = arith.constant 0 : i32
    %c0_i32_1 = arith.constant 0 : i32
    return %c0_i32, %c0_i32_0 : i32, i32
  }
  func.func @transform_10(%arg0: i32) -> (i32, i32) {
    %c0_i32 = arith.constant 0 : i32
    %c0_i32_0 = arith.constant 0 : i32
    %c0_i32_1 = arith.constant 0 : i32
    return %c0_i32, %c0_i32_0 : i32, i32
  }
  func.func @transform_11(%arg0: i32) -> (i32, i32) {
    %c0_i32 = arith.constant 0 : i32
    %c0_i32_0 = arith.constant 0 : i32
    %c0_i32_1 = arith.constant 0 : i32
    return %c0_i32, %c0_i32_0 : i32, i32
  }
  func.func @transform_12(%arg0: i32) -> (i32, i32) {
    %c0_i32 = arith.constant 0 : i32
    %c0_i32_0 = arith.constant 0 : i32
    %c0_i32_1 = arith.constant 0 : i32
    return %c0_i32, %c0_i32_0 : i32, i32
  }
  func.func @transform_13(%arg0: i32) -> (i32, i32, i32, i32) {
    %c0_i32 = arith.constant 0 : i32
    %c0_i32_0 = arith.constant 0 : i32
    %c0_i32_1 = arith.constant 0 : i32
    %c0_i32_2 = arith.constant 0 : i32
    return %arg0, %c0_i32, %c0_i32_0, %c0_i32_1 : i32, i32, i32, i32
  }
  func.func @transform_14(%arg0: i32) -> (i32, i32, i32) {
    %c0_i32 = arith.constant 0 : i32
    %c0_i32_0 = arith.constant 0 : i32
    %c0_i32_1 = arith.constant 0 : i32
    return %arg0, %c0_i32, %c0_i32_0 : i32, i32, i32
  }
}

</mosaic_0001>

<bundles_post_ra>
// kernel: tpu_custom_call.1
= control target key start
LH: loop header
LB: loop body
LE: loop exit
PB: predicated region body
PF: predicated region fallthrough
CT: control target
= control target key end

     0   :  { %s20749_s0 = inlined_call_operand.vmem [shape: f32[2,18,18,64], index: 0, kind: input, shape index: {}]   ;;  %s20750_s1 = inlined_call_operand.vmem [shape: bf16[9,64,32], index: 1, kind: input, shape index: {}]   ;;  %s20751_s2 = inlined_call_operand.vmem [shape: f32[1,32], index: 2, kind: input, shape index: {}]   ;;  %s20752_s3 = inlined_call_operand.vmem [shape: bf16[9,32,32], index: 3, kind: input, shape index: {}]   ;;  %s20753_s4 = inlined_call_operand.vmem [shape: f32[1,32], index: 4, kind: input, shape index: {}]   ;;  %s20754_s5 = inlined_call_operand.vmem [shape: bf16[32,32], index: 5, kind: input, shape index: {}]   ;;  %s20755_s6 = inlined_call_operand.vmem [shape: f32[1,32], index: 6, kind: input, shape index: {}]   ;;  %s20756_s7 = inlined_call_operand.vmem [shape: bf16[32,64], index: 7, kind: input, shape index: {}]   ;;  %s20757_s8 = inlined_call_operand.vmem [shape: f32[1,64], index: 8, kind: input, shape index: {}]   ;;  %s20758_s9 = inlined_call_operand.vmem [shape: bf16[32,32], index: 9, kind: input, shape index: {}]   ;;  %s20759_s10 = inlined_call_operand.vmem [shape: f32[1,32], index: 10, kind: input, shape index: {}]   ;;  %s20760_s11 = inlined_call_operand.vmem [shape: bf16[32,64], index: 11, kind: input, shape index: {}]   ;;  %s20761_s12 = inlined_call_operand.vmem [shape: f32[1,64], index: 12, kind: input, shape index: {}]   ;;  %s20762_s13 = inlined_call_operand.hbm [shape: f32[2,16,16,128], index: 13, kind: output, shape index: {0}]   ;;  %s20763_s14 = inlined_call_operand.hbm [shape: f32[2,2,64], index: 14, kind: output, shape index: {1}]  }
   0x1   :  { %20855 = sst [smem:[#allocation85_spill]] %s20749_s0 }
   0x2   :  { %20856 = sst [smem:[#allocation86_spill]] %s20750_s1 }
   0x3   :  { %20 = vsyncpa [#allocation5], 0 }
   0x4   :  { %22 = vsyncpa [#allocation5 + $0x1], 0 }
   0x5   :  { %23 = vsyncpa [#allocation7], 0 }
   0x6   :  { %25 = vsyncpa [#allocation7 + $0x1], 0  ;;  %s15626_s29 = smov 0   ;;  %s15628_s30 = smov 0  }
   0x7   :  { %s15630_s15 = smov 0   ;;  %s15632_s16 = smov 0  }
   0x8 LB: > { %20857 = sst [smem:[#allocation10_spill]] %s15539_s15  ;;  %s15647_s17 = sadd.s32 4294967295, %s15543_s16   ;;  %s15543_s16 = sphi %s15632_s16, %s21210_s16   ;;  %s15539_s15 = sphi %s15630_s15, %s21212_s15   ;;  %s15535_s30 = sphi %s15628_s30, %s21214_s30   ;;  %s15531_s29 = sphi %s15626_s29, %s21213_s29  }
   0x9   : > { %s12411_s18 = sadd.s32 4294967294, %s15543_s16   ;;  %s15651_s19 = sadd.s32 1, %s15543_s16  }
   0xa   : > { %20858 = sst [smem:[#allocation11_spill]] %s15651_s19  ;;  %s316_s20 = sadd.s32 1, %s15539_s15 }
   0xb   : > { %s313_s21 = ssub.s32 %s15543_s16, %s15651_s19  ;;  %p326_p0 = scmp.ne.s32.totalorder %s15539_s15, %s15535_s30 }
   0xc   : > { %p314_p1 = scmp.eq.s32.totalorder %s313_s21, 0  ;;  %p327_p2 = scmp.eq.s32.totalorder %s15647_s17, 1 }
   0xd   : > { %p332_p3 = scmp.ne.s32.totalorder %s15535_s30, %s15531_s29  ;;  %p333_p4 = scmp.eq.s32.totalorder %s12411_s18, 1 }
   0xe   : > { %s15662_s22 = scalar_select %p314_p1, %s15539_s15, %s316_s20  }
   0xf   : > { %p15664_p5 = por %p327_p2, %p326_p0  ;;  %p15668_p6 = por %p333_p4, %p332_p3 }
  0x10   : > { %20859 = sst [smem:[#allocation12_spill]] %s15662_s22  ;;  %p12414_p7 = scmp.ge.s32.totalorder %s15543_s16, 1 }
  0x11   : > { %p421_p8 = scmp.lt.s32.totalorder %s15543_s16, 3 }
  0x13   : > { %p422_p9 = pnand %p12414_p7, %p421_p8 }
  0x15   : > { %425 = sbr.rel (%p422_p9) target bundleno = 2588 (0xa1c), region = 72 }
  0x1c   : > { %s20862_s1 = sld [smem:[#allocation86_spill]]  ;;  %p472_p10 = scmp.lt.s32.totalorder %s15647_s17, 1  ;;  %vm20854_vm0 = vcmask 523264   ;;  %vm484_vm1 = vcmask 257024   ;;  %vm487_vm2 = vcmask 253952   ;;  %vm4665_vm6 = vcmask 261120  }
  0x1d   : > { %s20863_s0 = sld [smem:[#allocation85_spill]]  ;;  %vm4213_vm3 = vsmask.f32 3328  ;;  %vm4214_vm4 = vsmask.f32 7440  ;;  %s20502_s21 = sand.u32 1, %s15535_s30  }
  0x1e   : > { %s473_s18 = scalar_select %p472_p10, %s15647_s17, 1  ;;  %vm16407_vm5 = vmor %vm4213_vm3, %vm4214_vm4  ;;  %vm3939_vm9 = vsmask.f32 7938  ;;  %vm3612_vm12 = vsmask.f32 256 }
  0x1f   : > { %vm3613_vm13 = vsmask.f32 4368  ;;  %vm16435_vm14 = vmand %vm484_vm1, %vm3939_vm9  ;;  %s12416_s26 = sshll.u32 %s20502_s21, 1  ;;  %s13418_s15 = sshll.u32 %s15647_s17, 5 }
  0x20   : > { %s15208_s22 = smul.u32 432, %s473_s18  ;;  %vm16441_vm3 = vmor %vm3612_vm12, %vm3613_vm13  ;;  %s20519_s27 = scalar_lea.vmem [#allocation6], %s12416_s26 }
  0x21   : > { %vm16447_vm4 = vmand %vm487_vm2, %vm3612_vm12  ;;  %s12315_s19 = sshll.u32 %s20519_s27, 4  ;;  %s20535_s18 = scalar_lea.hbm %s20763_s14, %s13418_s15  ;;  %s20537_s19 = int_to_ptr.vmem [resolvable:$true] %s12315_s19 }
  0x22   : > { %v15257_v0 = vld [vmem:[%s20862_s1 + $0x20] sm:$0xff]   ;;  %v15258_v1 = vld [vmem:[%s20862_s1 + $0x28] sm:$0xff]   ;;  %v15259_v2 = vld [vmem:[%s20862_s1 + $0x30] sm:$0xff]   ;;  %s12286_s20 = scalar_lea.sflag [#allocation7], %s20502_s21  ;;  %s15547_s26 = smov [#allocation6]  }
  0x23   : > { %13868 = vmatprep.subr.bf16.mxu0 %v15257_v0  ;;  %s15688_s25 = scalar_lea.vmem %s20863_s0, %s15208_s22  ;;  %v15260_v5 = vld [vmem:[%s20862_s1 + $0x38] sm:$0xff]   ;;  %v15261_v9 = vld [vmem:[%s20862_s1] sm:$0xff]   ;;  %v15262_v14 = vld [vmem:[%s20862_s1 + $0x8] sm:$0xff]   ;;  %s15453_s0 = sshll.u32 %s15547_s26, 4  ;;  %s15454_s0 = int_to_ptr.vmem [resolvable:$false] %s15453_s0 }
  0x24   : > { %13869 = vmatpush3.bf16.msra.mxu0 %v15257_v0  ;;  %v598_v3 = vld [vmem:[%s15688_s25 + $0x1] sm:$0xff]  ;;  %v599_v4 = vld [vmem:[%s15688_s25 + $0x9] sm:$0xff]  ;;  %v600_v7 = vld [vmem:[%s15688_s25 + $0x19] sm:$0xff]  ;;  %s15455_s22 = scalar_lea.vmem %s15454_s0, 64  ;;  %p15456_p0 = scmp.lt.s32.totalorder %s20537_s19, %s15454_s0 }
  0x25   : > { %13870 = vmatprep.subr.bf16.mxu0 %v15258_v1  ;;  %v630_v6 = vpack.c.bf16 %v599_v4, %v598_v3  ;;  %v601_v8 = vld [vmem:[%s15688_s25 + $0x21] sm:$0xff]  ;;  %v602_v10 = vld [vmem:[%s15688_s25 + $0x31] sm:$0xff]  ;;  %v603_v11 = vld [vmem:[%s15688_s25 + $0x39] sm:$0xff] }
  0x26   : > { %v15703_v12 = vpack.c.bf16 %v601_v8, %v600_v7  ;;  %v15705_v13 = vpack.c.bf16 %v603_v11, %v602_v10  ;;  %v15263_v15 = vld [vmem:[%s20862_s1 + $0x10] sm:$0xff]   ;;  %v606_v18 = vld [vmem:[%s15688_s25 + $0x61] sm:$0xff]  ;;  %v15264_v22 = vld [vmem:[%s20862_s1 + $0x18] sm:$0xff]  }
  0x27   : > { %13876 = vmatprep.mubr.msk.bf16.mxu0 %vm20854_vm0, %v630_v6  ;;  %v604_v16 = vld [vmem:[%s15688_s25 + $0x49] sm:$0xff]  ;;  %v605_v17 = vld [vmem:[%s15688_s25 + $0x51] sm:$0xff]  ;;  %v608_v23 = vld [vmem:[%s15688_s25 + $0x79] sm:$0xff] }
  0x28   : > { %13871 = vmatpush3.bf16.msra.mxu0 %v15258_v1  ;;  %v607_v19 = vld [vmem:[%s15688_s25 + $0x69] sm:$0xff]  ;;  %v15721_v20 = vpack.c.bf16 %v605_v17, %v604_v16  ;;  %v609_v24 = vld [vmem:[%s15688_s25 + $0x81] sm:$0xff]  ;;  %v610_v25 = vld [vmem:[%s15688_s25 + $0x91] sm:$0xff] }
  0x29   : > { %13872 = vmatprep.subr.bf16.mxu0 %v15259_v2  ;;  %v15723_v21 = vpack.c.bf16 %v607_v19, %v606_v18  ;;  %v611_v26 = vld [vmem:[%s15688_s25 + $0x99] sm:$0xff]  ;;  %v15739_v28 = vpack.c.bf16 %v609_v24, %v608_v23  ;;  %v612_v30 = vld [vmem:[%s15688_s25 + $0xa9] sm:$0xff]  ;;  %v613_v31 = vld [vmem:[%s15688_s25 + $0xb1] sm:$0xff] }
  0x2a   : > { %v15265_v27 = vld [vmem:[%s20862_s1 + $0x40] sm:$0xff]   ;;  %v15741_v29 = vpack.c.bf16 %v611_v26, %v610_v25  ;;  %v615_v33 = vld [vmem:[%s15688_s25 + $0xc9] sm:$0xff]  ;;  %v15751_v34 = vpack.c.bf16 %v613_v31, %v612_v30  ;;  %v618_v38 = vld [vmem:[%s15688_s25 + $0xf1] sm:$0xff] }
  0x2b   : > { %v614_v32 = vld [vmem:[%s15688_s25 + $0xc1] sm:$0xff]  ;;  %v616_v36 = vld [vmem:[%s15688_s25 + $0xd9] sm:$0xff]  ;;  %v620_v42 = vld [vmem:[%s15688_s25 + $0x109] sm:$0xff] }
  0x2c   : > { %13873 = vmatpush3.bf16.msra.mxu0 %v15259_v2  ;;  %v15753_v35 = vpack.c.bf16 %v615_v33, %v614_v32  ;;  %v617_v37 = vld [vmem:[%s15688_s25 + $0xe1] sm:$0xff]  ;;  %v619_v39 = vld [vmem:[%s15688_s25 + $0xf9] sm:$0xff]  ;;  %v621_v43 = vld [vmem:[%s15688_s25 + $0x111] sm:$0xff] }
  0x2d   : > { %13874 = vmatprep.subr.bf16.mxu0 %v15260_v5  ;;  %v15763_v40 = vpack.c.bf16 %v617_v37, %v616_v36  ;;  %v15765_v41 = vpack.c.bf16 %v619_v39, %v618_v38  ;;  %v622_v44 = vld [vmem:[%s15688_s25 + $0x121] sm:$0xff]  ;;  %v623_v45 = vld [vmem:[%s15688_s25 + $0x129] sm:$0xff]  ;;  %v15775_v46 = vpack.c.bf16 %v621_v43, %v620_v42  ;;  %v624_v48 = vld [vmem:[%s15688_s25 + $0x139] sm:$0xff] }
  0x2e   : > { %v15777_v47 = vpack.c.bf16 %v623_v45, %v622_v44  ;;  %v625_v49 = vld [vmem:[%s15688_s25 + $0x141] sm:$0xff]  ;;  %v626_v50 = vld [vmem:[%s15688_s25 + $0x151] sm:$0xff]  ;;  %v627_v51 = vld [vmem:[%s15688_s25 + $0x159] sm:$0xff] }
  0x2f   : > { %v15787_v52 = vpack.c.bf16 %v625_v49, %v624_v48  ;;  %v15789_v53 = vpack.c.bf16 %v627_v51, %v626_v50  ;;  %v628_v54 = vld [vmem:[%s15688_s25 + $0x169] sm:$0xff]  ;;  %v629_v55 = vld [vmem:[%s15688_s25 + $0x171] sm:$0xff]  ;;  %v542_v56 = vld [vmem:[%s15688_s25] sm:$0xff] }
  0x30   : > { %13875 = vmatpush3.bf16.msra.mxu0 %v15260_v5  ;;  %v543_v57 = vld [vmem:[%s15688_s25 + $0x8] sm:$0xff]  ;;  %v15799_v58 = vpack.c.bf16 %v629_v55, %v628_v54  ;;  %v544_v60 = vld [vmem:[%s15688_s25 + $0x18] sm:$0xff]  ;;  %v545_v61 = vld [vmem:[%s15688_s25 + $0x20] sm:$0xff] }
  0x31   : > { %13908 = vmatprep.subr.bf16.mxu0 %v15261_v9  ;;  %v574_v59 = vpack.c.bf16 %v543_v57, %v542_v56  ;;  %v546_v62 = vld [vmem:[%s15688_s25 + $0x30] sm:$0xff]  ;;  %v547_v63 = vld [vmem:[%s15688_s25 + $0x38] sm:$0xff]  ;;  %v15808_v0 = vpack.c.bf16 %v545_v61, %v544_v60  ;;  %v15266_v2 = vld [vmem:[%s20862_s1 + $0x48] sm:$0xff]  }
  0x32   : > { %v15810_v1 = vpack.c.bf16 %v547_v63, %v546_v62  ;;  %v548_v3 = vld [vmem:[%s15688_s25 + $0x48] sm:$0xff]  ;;  %v549_v4 = vld [vmem:[%s15688_s25 + $0x50] sm:$0xff]  ;;  %v550_v5 = vld [vmem:[%s15688_s25 + $0x60] sm:$0xff] }
  0x33   : > { %13877 = vmatmul.mubr.msk.bf16.vlgmr.msra.gmra.mrb[0].mxu0 %vm20854_vm0, %v15703_v12  ;;  %v551_v6 = vld [vmem:[%s15688_s25 + $0x68] sm:$0xff]  ;;  %v15267_v7 = vld [vmem:[%s20862_s1 + $0x50] sm:$0xff]   ;;  %v15826_v8 = vpack.c.bf16 %v549_v4, %v548_v3  ;;  %v15268_v10 = vld [vmem:[%s20862_s1 + $0x58] sm:$0xff]  }
  0x34   : > { %13909 = vmatpush3.bf16.msra.mxu0 %v15261_v9  ;;  %13880 = vmatprep.mubr.msk.bf16.mxu0 %vm20854_vm0, %v15705_v13  ;;  %v15828_v9 = vpack.c.bf16 %v551_v6, %v550_v5  ;;  %v552_v11 = vld [vmem:[%s15688_s25 + $0x78] sm:$0xff]  ;;  %v15269_v17 = vld [vmem:[%s20862_s1 + $0x60] sm:$0xff]   ;;  %v557_v23 = vld [vmem:[%s15688_s25 + $0xb0] sm:$0xff] }
  0x35   : > { %13910 = vmatprep.subr.bf16.mxu0 %v15262_v14  ;;  %v555_v16 = vld [vmem:[%s15688_s25 + $0x98] sm:$0xff]  ;;  %v558_v24 = vld [vmem:[%s15688_s25 + $0xc0] sm:$0xff]  ;;  %v559_v25 = vld [vmem:[%s15688_s25 + $0xc8] sm:$0xff] }
  0x36   : > { %v560_v30 = vld [vmem:[%s15688_s25 + $0xd8] sm:$0xff]  ;;  %v561_v31 = vld [vmem:[%s15688_s25 + $0xe0] sm:$0xff]  ;;  %v562_v32 = vld [vmem:[%s15688_s25 + $0xf0] sm:$0xff] }
  0x37   : > { %v563_v33 = vld [vmem:[%s15688_s25 + $0xf8] sm:$0xff]  ;;  %v15868_v36 = vpack.c.bf16 %v561_v31, %v560_v30  ;;  %v564_v38 = vld [vmem:[%s15688_s25 + $0x108] sm:$0xff]  ;;  %v565_v39 = vld [vmem:[%s15688_s25 + $0x110] sm:$0xff] }
  0x38   : > { %13911 = vmatpush3.bf16.msra.mxu0 %v15262_v14  ;;  %v553_v14 = vld [vmem:[%s15688_s25 + $0x80] sm:$0xff]  ;;  %v15870_v37 = vpack.c.bf16 %v563_v33, %v562_v32  ;;  %v567_v43 = vld [vmem:[%s15688_s25 + $0x128] sm:$0xff]  ;;  %v15880_v44 = vpack.c.bf16 %v565_v39, %v564_v38  ;;  %v568_v48 = vld [vmem:[%s15688_s25 + $0x138] sm:$0xff] }
  0x39   : > { %13912 = vmatprep.subr.bf16.mxu0 %v15263_v15  ;;  %v15844_v18 = vpack.c.bf16 %v553_v14, %v552_v11  ;;  %v566_v42 = vld [vmem:[%s15688_s25 + $0x120] sm:$0xff]  ;;  %v570_v50 = vld [vmem:[%s15688_s25 + $0x150] sm:$0xff]  ;;  %v571_v51 = vld [vmem:[%s15688_s25 + $0x158] sm:$0xff] }
  0x3a   : > { %v15882_v45 = vpack.c.bf16 %v567_v43, %v566_v42  ;;  %v569_v49 = vld [vmem:[%s15688_s25 + $0x140] sm:$0xff]  ;;  %v15894_v55 = vpack.c.bf16 %v571_v51, %v570_v50  ;;  %v572_v56 = vld [vmem:[%s15688_s25 + $0x168] sm:$0xff]  ;;  %v573_v57 = vld [vmem:[%s15688_s25 + $0x170] sm:$0xff] }
  0x3b   : > { %13881 = vmatmul.mubr.msk.bf16.gmra.mrb[4].mxu0 %vm20854_vm0, %v15721_v20  ;;  %v15892_v54 = vpack.c.bf16 %v569_v49, %v568_v48  ;;  %v1123_v60 = vld [vmem:[%s15688_s25 + $0xa] sm:$0xff]  ;;  %v15904_v61 = vpack.c.bf16 %v573_v57, %v572_v56  ;;  %v1124_v63 = vld [vmem:[%s15688_s25 + $0x1a] sm:$0xff]  ;;  %v1126_v3 = vld [vmem:[%s15688_s25 + $0x32] sm:$0xff] }
  0x3c   : > { %13884 = vmatprep.mubr.msk.bf16.mxu0 %vm20854_vm0, %v15723_v21  ;;  %13913 = vmatpush3.bf16.msra.mxu0 %v15263_v15  ;;  %v554_v15 = vld [vmem:[%s15688_s25 + $0x90] sm:$0xff]  ;;  %v1127_v4 = vld [vmem:[%s15688_s25 + $0x3a] sm:$0xff]  ;;  %v1130_v14 = vld [vmem:[%s15688_s25 + $0x62] sm:$0xff] }
  0x3d   : > { %13914 = vmatprep.subr.bf16.mxu0 %v15264_v22  ;;  %v15846_v19 = vpack.c.bf16 %v555_v16, %v554_v15  ;;  %v15915_v6 = vpack.c.bf16 %v1127_v4, %v1126_v3  ;;  %v1129_v11 = vld [vmem:[%s15688_s25 + $0x52] sm:$0xff]  ;;  %v1131_v15 = vld [vmem:[%s15688_s25 + $0x6a] sm:$0xff]  ;;  %v1135_v31 = vld [vmem:[%s15688_s25 + $0x9a] sm:$0xff] }
  0x3e   : > { %v15271_v16 = vld [vmem:[%s20862_s1 + $0x70] sm:$0xff]   ;;  %v15273_v32 = vld [vmem:[%s20862_s1 + $0x80] sm:$0xff]  }
  0x3f   : > { %v1134_v30 = vld [vmem:[%s15688_s25 + $0x92] sm:$0xff]  ;;  %v1136_v39 = vld [vmem:[%s15688_s25 + $0xaa] sm:$0xff]  ;;  %v1138_v43 = vld [vmem:[%s15688_s25 + $0xc2] sm:$0xff] }
  0x40   : > { %13915 = vmatpush3.bf16.msra.mxu0 %v15264_v22  ;;  %v556_v22 = vld [vmem:[%s15688_s25 + $0xa8] sm:$0xff]  ;;  %v15951_v38 = vpack.c.bf16 %v1135_v31, %v1134_v30  ;;  %v1137_v42 = vld [vmem:[%s15688_s25 + $0xb2] sm:$0xff]  ;;  %v1140_v51 = vld [vmem:[%s15688_s25 + $0xda] sm:$0xff] }
  0x41   : > { %13948 = vmatprep.subr.bf16.mxu0 %v15265_v27  ;;  %v15856_v26 = vpack.c.bf16 %v557_v23, %v556_v22  ;;  %v15933_v23 = vpack.c.bf16 %v1131_v15, %v1130_v14  ;;  %v1139_v48 = vld [vmem:[%s15688_s25 + $0xca] sm:$0xff]  ;;  %v15961_v49 = vpack.c.bf16 %v1137_v42, %v1136_v39  ;;  %v1141_v56 = vld [vmem:[%s15688_s25 + $0xe2] sm:$0xff]  ;;  %v1142_v57 = vld [vmem:[%s15688_s25 + $0xf2] sm:$0xff] }
  0x42   : > { %v15963_v50 = vpack.c.bf16 %v1139_v48, %v1138_v43  ;;  %v1146_v3 = vld [vmem:[%s15688_s25 + $0x122] sm:$0xff]  ;;  %v1147_v4 = vld [vmem:[%s15688_s25 + $0x12a] sm:$0xff]  ;;  %v1150_v15 = vld [vmem:[%s15688_s25 + $0x152] sm:$0xff] }
  0x43   : > { %13885 = vmatmul.mubr.msk.bf16.gmra.mrb[8].mxu0 %vm20854_vm0, %v15739_v28  ;;  %v1149_v14 = vld [vmem:[%s15688_s25 + $0x142] sm:$0xff]  ;;  %v1153_v30 = vld [vmem:[%s15688_s25 + $0x172] sm:$0xff] }
  0x44   : > { %13888 = vmatprep.mubr.msk.bf16.mxu0 %vm20854_vm0, %v15741_v29  ;;  %v15274_v39 = vld [vmem:[%s20862_s1 + $0x88] sm:$0xff]   ;;  %v15275_v42 = vld [vmem:[%s20862_s1 + $0x90] sm:$0xff]   ;;  %v12524_v43 = vld [vmem:[%s15688_s25 + $0x180] sm:$0xff] }
  0x45   : > { %v12525_v48 = vld [vmem:[%s15688_s25 + $0x188] sm:$0xff] }
  0x4b   : > { %13889 = vmatmul.mubr.msk.bf16.gmra.mrb[12].mxu0 %vm20854_vm0, %v15751_v34 }
  0x4c   : > { %13892 = vmatprep.mubr.msk.bf16.mxu0 %vm20854_vm0, %v15753_v35 }
  0x53   : > { %13893 = vmatmul.mubr.msk.bf16.gmra.mrb[16].mxu0 %vm20854_vm0, %v15763_v40 }
  0x54   : > { %13896 = vmatprep.mubr.msk.bf16.mxu0 %vm20854_vm0, %v15765_v41 }
  0x5b   : > { %13897 = vmatmul.mubr.msk.bf16.gmra.mrb[20].mxu0 %vm20854_vm0, %v15775_v46 }
  0x5c   : > { %13900 = vmatprep.mubr.msk.bf16.mxu0 %vm20854_vm0, %v15777_v47 }
  0x63   : > { %13901 = vmatmul.mubr.msk.bf16.gmra.mrb[24].mxu0 %vm20854_vm0, %v15787_v52 }
  0x64   : > { %13904 = vmatprep.mubr.msk.bf16.mxu0 %vm20854_vm0, %v15789_v53 }
  0x6b   : > { %13905 = vmatmul.mubr.msk.bf16.gmra.mrb[28].mxu0 %vm20854_vm0, %v15799_v58 }
  0x6c   : > { %13916 = vmatprep.mubr.msk.bf16.mxu0 %vm20854_vm0, %v574_v59  ;;  %v1122_v59 = vld [vmem:[%s15688_s25 + $0x2] sm:$0xff] }
  0x6d   : > { %v1154_v62 = vpack.c.bf16 %v1123_v60, %v1122_v59  ;;  %v1143_v59 = vld [vmem:[%s15688_s25 + $0xfa] sm:$0xff]  ;;  %v15973_v60 = vpack.c.bf16 %v1141_v56, %v1140_v51  ;;  %v16055_v51 = vpack.c.bf16 %v12525_v48, %v12524_v43  ;;  %v15278_v56 = vld [vmem:[%s20862_s1 + $0xa8] sm:$0xff]   ;;  %v12750_v48 = vld [vmem:[%s15688_s25 + $0xf1] sm:$0xff] }
  0x6e   : > { %v12749_v43 = vld [vmem:[%s15688_s25 + $0xe1] sm:$0xff] }
  0x73   : > { %13917 = vmatmul.mubr.msk.bf16.vlgmr.msra.gmra.mrb[0].mxu0 %vm20854_vm0, %v15808_v0 }
  0x74   : > { %13949 = vmatpush3.bf16.msra.mxu0 %v15265_v27  ;;  %13920 = vmatprep.mubr.msk.bf16.mxu0 %vm20854_vm0, %v15810_v1  ;;  %v15858_v27 = vpack.c.bf16 %v559_v25, %v558_v24  ;;  %v1132_v24 = vld [vmem:[%s15688_s25 + $0x7a] sm:$0xff]  ;;  %v1133_v25 = vld [vmem:[%s15688_s25 + $0x82] sm:$0xff] }
  0x75   : > { %13950 = vmatprep.subr.bf16.mxu0 %v15266_v2  ;;  %v15949_v33 = vpack.c.bf16 %v1133_v25, %v1132_v24  ;;  %v1152_v25 = vld [vmem:[%s15688_s25 + $0x16a] sm:$0xff] }
  0x76   : > { %v16007_v31 = vpack.c.bf16 %v1153_v30, %v1152_v25  ;;  %v12745_v25 = vld [vmem:[%s15688_s25 + $0xb1] sm:$0xff]  ;;  %v12746_v30 = vld [vmem:[%s15688_s25 + $0xc1] sm:$0xff] }
  0x78   : > { %13951 = vmatpush3.bf16.msra.mxu0 %v15266_v2  ;;  %v1125_v2 = vld [vmem:[%s15688_s25 + $0x22] sm:$0xff] }
  0x79   : > { %13952 = vmatprep.subr.bf16.mxu0 %v15267_v7  ;;  %v15913_v5 = vpack.c.bf16 %v1125_v2, %v1124_v63  ;;  %v1144_v63 = vld [vmem:[%s15688_s25 + $0x10a] sm:$0xff]  ;;  %v1145_v2 = vld [vmem:[%s15688_s25 + $0x112] sm:$0xff] }
  0x7b   : > { %13921 = vmatmul.mubr.msk.bf16.gmra.mrb[4].mxu0 %vm20854_vm0, %v15826_v8 }
  0x7c   : > { %13924 = vmatprep.mubr.msk.bf16.mxu0 %vm20854_vm0, %v15828_v9  ;;  %13953 = vmatpush3.bf16.msra.mxu0 %v15267_v7  ;;  %v15270_v7 = vld [vmem:[%s20862_s1 + $0x68] sm:$0xff]  }
  0x7d   : > { %13954 = vmatprep.subr.bf16.mxu0 %v15268_v10 }
  0x80   : > { %13955 = vmatpush3.bf16.msra.mxu0 %v15268_v10  ;;  %v1128_v10 = vld [vmem:[%s15688_s25 + $0x4a] sm:$0xff] }
  0x81   : > { %13988 = vmatprep.subr.bf16.mxu0 %v15269_v17  ;;  %v15931_v22 = vpack.c.bf16 %v1129_v11, %v1128_v10  ;;  %v15987_v10 = vpack.c.bf16 %v1147_v4, %v1146_v3  ;;  %v1148_v11 = vld [vmem:[%s15688_s25 + $0x13a] sm:$0xff]  ;;  %v15291_v4 = vld [vmem:[%s20862_s1 + $0x110] sm:$0xff]  }
  0x82   : > { %v12743_v3 = vld [vmem:[%s15688_s25 + $0x99] sm:$0xff] }
  0x83   : > { %13925 = vmatmul.mubr.msk.bf16.gmra.mrb[8].mxu0 %vm20854_vm0, %v15844_v18 }
  0x84   : > { %13928 = vmatprep.mubr.msk.bf16.mxu0 %vm20854_vm0, %v15846_v19 }
  0x8b   : > { %13929 = vmatmul.mubr.msk.bf16.gmra.mrb[12].mxu0 %vm20854_vm0, %v15856_v26 }
  0x8c   : > { %13932 = vmatprep.mubr.msk.bf16.mxu0 %vm20854_vm0, %v15858_v27 }
  0x93   : > { %13933 = vmatmul.mubr.msk.bf16.gmra.mrb[16].mxu0 %vm20854_vm0, %v15868_v36 }
  0x94   : > { %13936 = vmatprep.mubr.msk.bf16.mxu0 %vm20854_vm0, %v15870_v37 }
  0x9b   : > { %13937 = vmatmul.mubr.msk.bf16.gmra.mrb[20].mxu0 %vm20854_vm0, %v15880_v44 }
  0x9c   : > { %13940 = vmatprep.mubr.msk.bf16.mxu0 %vm20854_vm0, %v15882_v45 }
  0xa3   : > { %13941 = vmatmul.mubr.msk.bf16.gmra.mrb[24].mxu0 %vm20854_vm0, %v15892_v54 }
  0xa4   : > { %13944 = vmatprep.mubr.msk.bf16.mxu0 %vm20854_vm0, %v15894_v55 }
  0xab   : > { %13945 = vmatmul.mubr.msk.bf16.gmra.mrb[28].mxu0 %vm20854_vm0, %v15904_v61 }
  0xac   : > { %13956 = vmatprep.mubr.msk.bf16.mxu0 %vm20854_vm0, %v1154_v62  ;;  %v15975_v62 = vpack.c.bf16 %v1143_v59, %v1142_v57  ;;  %v15279_v57 = vld [vmem:[%s20862_s1 + $0xb0] sm:$0xff]   ;;  %v12740_v59 = vld [vmem:[%s15688_s25 + $0x79] sm:$0xff] }
  0xb3   : > { %13957 = vmatmul.mubr.msk.bf16.vlgmr.msra.gmra.mrb[0].mxu0 %vm20854_vm0, %v15913_v5 }
  0xb4   : > { %13989 = vmatpush3.bf16.msra.mxu0 %v15269_v17  ;;  %13960 = vmatprep.mubr.msk.bf16.mxu0 %vm20854_vm0, %v15915_v6  ;;  %v15272_v17 = vld [vmem:[%s20862_s1 + $0x78] sm:$0xff]  }
  0xb5   : > { %13990 = vmatprep.subr.bf16.mxu0 %v15270_v7 }
  0xb8   : > { %13991 = vmatpush3.bf16.msra.mxu0 %v15270_v7  ;;  %v15985_v7 = vpack.c.bf16 %v1145_v2, %v1144_v63  ;;  %v12741_v63 = vld [vmem:[%s15688_s25 + $0x81] sm:$0xff]  ;;  %v12742_v2 = vld [vmem:[%s15688_s25 + $0x91] sm:$0xff] }
  0xb9   : > { %13992 = vmatprep.subr.bf16.mxu0 %v15271_v16 }
  0xbb   : > { %13961 = vmatmul.mubr.msk.bf16.gmra.mrb[4].mxu0 %vm20854_vm0, %v15931_v22 }
  0xbc   : > { %13964 = vmatprep.mubr.msk.bf16.mxu0 %vm20854_vm0, %v15933_v23  ;;  %13993 = vmatpush3.bf16.msra.mxu0 %v15271_v16  ;;  %v1151_v16 = vld [vmem:[%s15688_s25 + $0x15a] sm:$0xff] }
  0xbd   : > { %13994 = vmatprep.subr.bf16.mxu0 %v15272_v17  ;;  %v15999_v24 = vpack.c.bf16 %v1151_v16, %v1150_v15  ;;  %v15292_v15 = vld [vmem:[%s20862_s1 + $0x118] sm:$0xff]   ;;  %v12744_v16 = vld [vmem:[%s15688_s25 + $0xa9] sm:$0xff] }
  0xc0   : > { %13995 = vmatpush3.bf16.msra.mxu0 %v15272_v17  ;;  %v15997_v17 = vpack.c.bf16 %v1149_v14, %v1148_v11  ;;  %v2773_v11 = vpack.c.bf16 %v12741_v63, %v12740_v59  ;;  %v2774_v14 = vpack.c.bf16 %v12743_v3, %v12742_v2  ;;  %v16419_v59 = vld [vmem:[%s20752_s3] sm:$0xff]  }
  0xc1   : > { %14028 = vmatprep.subr.bf16.mxu0 %v15273_v32  ;;  %v16425_v63 = vld [vmem:[%s20751_s2] ss:$0 sm:$0xff] }
  0xc3   : > { %13965 = vmatmul.mubr.msk.bf16.gmra.mrb[8].mxu0 %vm20854_vm0, %v15949_v33 }
  0xc4   : > { %13968 = vmatprep.mubr.msk.bf16.mxu0 %vm20854_vm0, %v15951_v38 }
  0xcb   : > { %13969 = vmatmul.mubr.msk.bf16.gmra.mrb[12].mxu0 %vm20854_vm0, %v15961_v49 }
  0xcc   : > { %13972 = vmatprep.mubr.msk.bf16.mxu0 %vm20854_vm0, %v15963_v50 }
  0xd3   : > { %13973 = vmatmul.mubr.msk.bf16.gmra.mrb[16].mxu0 %vm20854_vm0, %v15973_v60 }
  0xd4   : > { %13976 = vmatprep.mubr.msk.bf16.mxu0 %vm20854_vm0, %v15975_v62 }
  0xdb   : > { %13977 = vmatmul.mubr.msk.bf16.gmra.mrb[20].mxu0 %vm20854_vm0, %v15985_v7 }
  0xdc   : > { %13980 = vmatprep.mubr.msk.bf16.mxu0 %vm20854_vm0, %v15987_v10 }
  0xe3   : > { %13981 = vmatmul.mubr.msk.bf16.gmra.mrb[24].mxu0 %vm20854_vm0, %v15997_v17 }
  0xe4   : > { %13984 = vmatprep.mubr.msk.bf16.mxu0 %vm20854_vm0, %v15999_v24 }
  0xeb   : > { %13985 = vmatmul.mubr.msk.bf16.gmra.mrb[28].mxu0 %vm20854_vm0, %v16007_v31 }
  0xec   : > { %13996 = vmatprep.mubr.msk.bf16.mxu0 %vm20854_vm0, %v15808_v0  ;;  %v15276_v0 = vld [vmem:[%s20862_s1 + $0x98] sm:$0xff]  }
  0xf3   : > { %13997 = vmatmul.mubr.msk.bf16.vlgmr.msra.gmra.mrb[0].mxu0 %vm20854_vm0, %v15810_v1 }
  0xf4   : > { %14029 = vmatpush3.bf16.msra.mxu0 %v15273_v32  ;;  %14000 = vmatprep.mubr.msk.bf16.mxu0 %vm20854_vm0, %v15826_v8  ;;  %v15277_v32 = vld [vmem:[%s20862_s1 + $0xa0] sm:$0xff]  }
  0xf5   : > { %14030 = vmatprep.subr.bf16.mxu0 %v15274_v39 }
  0xf8   : > { %14031 = vmatpush3.bf16.msra.mxu0 %v15274_v39  ;;  %v12747_v39 = vld [vmem:[%s15688_s25 + $0xc9] sm:$0xff] }
  0xf9   : > { %14032 = vmatprep.subr.bf16.mxu0 %v15275_v42 }
  0xfb   : > { %14001 = vmatmul.mubr.msk.bf16.gmra.mrb[4].mxu0 %vm20854_vm0, %v15828_v9 }
  0xfc   : > { %14004 = vmatprep.mubr.msk.bf16.mxu0 %vm20854_vm0, %v15844_v18  ;;  %14033 = vmatpush3.bf16.msra.mxu0 %v15275_v42  ;;  %v2775_v42 = vpack.c.bf16 %v12745_v25, %v12744_v16 }
  0xfd   : > { %14034 = vmatprep.subr.bf16.mxu0 %v15276_v0 }
 0x100   : > { %14035 = vmatpush3.bf16.msra.mxu0 %v15276_v0  ;;  %v2776_v0 = vpack.c.bf16 %v12747_v39, %v12746_v30 }
 0x101   : > { %14068 = vmatprep.subr.bf16.mxu0 %v15277_v32 }
 0x103   : > { %14005 = vmatmul.mubr.msk.bf16.gmra.mrb[8].mxu0 %vm20854_vm0, %v15846_v19 }
 0x104   : > { %14008 = vmatprep.mubr.msk.bf16.mxu0 %vm20854_vm0, %v15856_v26 }
 0x10b   : > { %14009 = vmatmul.mubr.msk.bf16.gmra.mrb[12].mxu0 %vm20854_vm0, %v15858_v27 }
 0x10c   : > { %14012 = vmatprep.mubr.msk.bf16.mxu0 %vm20854_vm0, %v15868_v36 }
 0x113   : > { %14013 = vmatmul.mubr.msk.bf16.gmra.mrb[16].mxu0 %vm20854_vm0, %v15870_v37 }
 0x114   : > { %14016 = vmatprep.mubr.msk.bf16.mxu0 %vm20854_vm0, %v15880_v44 }
 0x11b   : > { %14017 = vmatmul.mubr.msk.bf16.gmra.mrb[20].mxu0 %vm20854_vm0, %v15882_v45 }
 0x11c   : > { %14020 = vmatprep.mubr.msk.bf16.mxu0 %vm20854_vm0, %v15892_v54 }
 0x123   : > { %14021 = vmatmul.mubr.msk.bf16.gmra.mrb[24].mxu0 %vm20854_vm0, %v15894_v55 }
 0x124   : > { %14024 = vmatprep.mubr.msk.bf16.mxu0 %vm20854_vm0, %v15904_v61 }
 0x12b   : > { %14025 = vmatmul.mubr.msk.bf16.gmra.mrb[28].mxu0 %vm20854_vm0, %v16055_v51 }
 0x12c   : > { %14036 = vmatprep.mubr.msk.bf16.mxu0 %vm20854_vm0, %v15703_v12  ;;  %v15280_v12 = vld [vmem:[%s20862_s1 + $0xb8] sm:$0xff]  }
 0x133   : > { %14037 = vmatmul.mubr.msk.bf16.vlgmr.msra.gmra.mrb[0].mxu0 %vm20854_vm0, %v15705_v13  ;;  %v15281_v13 = vld [vmem:[%s20862_s1 + $0xc0] sm:$0xff]  }
 0x134   : > { %14069 = vmatpush3.bf16.msra.mxu0 %v15277_v32  ;;  %14040 = vmatprep.mubr.msk.bf16.mxu0 %vm20854_vm0, %v15721_v20  ;;  %v12584_v20 = vld [vmem:[%s15688_s25 + $0x181] sm:$0xff]  ;;  %v12748_v32 = vld [vmem:[%s15688_s25 + $0xd9] sm:$0xff] }
 0x135   : > { %14070 = vmatprep.subr.bf16.mxu0 %v15278_v56 }
 0x138   : > { %14071 = vmatpush3.bf16.msra.mxu0 %v15278_v56  ;;  %v2777_v56 = vpack.c.bf16 %v12749_v43, %v12748_v32 }
 0x139   : > { %14072 = vmatprep.subr.bf16.mxu0 %v15279_v57 }
 0x13b   : > { %14041 = vmatmul.mubr.msk.bf16.gmra.mrb[4].mxu0 %vm20854_vm0, %v15723_v21  ;;  %v12585_v21 = vld [vmem:[%s15688_s25 + $0x189] sm:$0xff] }
 0x13c   : > { %14044 = vmatprep.mubr.msk.bf16.mxu0 %vm20854_vm0, %v15739_v28  ;;  %14073 = vmatpush3.bf16.msra.mxu0 %v15279_v57  ;;  %v16103_v28 = vpack.c.bf16 %v12585_v21, %v12584_v20  ;;  %v12754_v20 = vld [vmem:[%s15688_s25 + $0x121] sm:$0xff]  ;;  %v12755_v21 = vld [vmem:[%s15688_s25 + $0x129] sm:$0xff] }
 0x13d   : > { %14074 = vmatprep.subr.bf16.mxu0 %v15280_v12 }
 0x140   : > { %14075 = vmatpush3.bf16.msra.mxu0 %v15280_v12  ;;  %v12752_v12 = vld [vmem:[%s15688_s25 + $0x109] sm:$0xff] }
 0x141   : > { %14108 = vmatprep.subr.bf16.mxu0 %v15281_v13 }
 0x143   : > { %14045 = vmatmul.mubr.msk.bf16.gmra.mrb[8].mxu0 %vm20854_vm0, %v15741_v29  ;;  %v15282_v29 = vld [vmem:[%s20862_s1 + $0xc8] sm:$0xff]  }
 0x144   : > { %14048 = vmatprep.mubr.msk.bf16.mxu0 %vm20854_vm0, %v15751_v34  ;;  %v15283_v34 = vld [vmem:[%s20862_s1 + $0xd0] sm:$0xff]  }
 0x14b   : > { %14049 = vmatmul.mubr.msk.bf16.gmra.mrb[12].mxu0 %vm20854_vm0, %v15753_v35  ;;  %v15284_v35 = vld [vmem:[%s20862_s1 + $0xd8] sm:$0xff]  }
 0x14c   : > { %14052 = vmatprep.mubr.msk.bf16.mxu0 %vm20854_vm0, %v15763_v40  ;;  %v15285_v40 = vld [vmem:[%s20862_s1 + $0xe0] sm:$0xff]  }
 0x153   : > { %14053 = vmatmul.mubr.msk.bf16.gmra.mrb[16].mxu0 %vm20854_vm0, %v15765_v41  ;;  %v12644_v41 = vld [vmem:[%s15688_s25 + $0x182] sm:$0xff] }
 0x154   : > { %14056 = vmatprep.mubr.msk.bf16.mxu0 %vm20854_vm0, %v15775_v46  ;;  %v12645_v46 = vld [vmem:[%s15688_s25 + $0x18a] sm:$0xff] }
 0x15b   : > { %14057 = vmatmul.mubr.msk.bf16.gmra.mrb[20].mxu0 %vm20854_vm0, %v15777_v47  ;;  %v16151_v47 = vpack.c.bf16 %v12645_v46, %v12644_v41  ;;  %v12758_v41 = vld [vmem:[%s15688_s25 + $0x151] sm:$0xff]  ;;  %v12759_v46 = vld [vmem:[%s15688_s25 + $0x159] sm:$0xff] }
 0x15c   : > { %14060 = vmatprep.mubr.msk.bf16.mxu0 %vm20854_vm0, %v15787_v52  ;;  %v15286_v52 = vld [vmem:[%s20862_s1 + $0xe8] sm:$0xff]  }
 0x163   : > { %14061 = vmatmul.mubr.msk.bf16.gmra.mrb[24].mxu0 %vm20854_vm0, %v15789_v53  ;;  %v15287_v53 = vld [vmem:[%s20862_s1 + $0xf0] sm:$0xff]  }
 0x164   : > { %14064 = vmatprep.mubr.msk.bf16.mxu0 %vm20854_vm0, %v15799_v58  ;;  %v15288_v58 = vld [vmem:[%s20862_s1 + $0xf8] sm:$0xff]  }
 0x16b   : > { %14065 = vmatmul.mubr.msk.bf16.gmra.mrb[28].mxu0 %vm20854_vm0, %v16103_v28 }
 0x16c   : > { %14076 = vmatprep.mubr.msk.bf16.mxu0 %vm20854_vm0, %v15913_v5  ;;  %v15290_v5 = vld [vmem:[%s20862_s1 + $0x108] sm:$0xff]  }
 0x173   : > { %14077 = vmatmul.mubr.msk.bf16.vlgmr.msra.gmra.mrb[0].mxu0 %vm20854_vm0, %v15915_v6 }
 0x174   : > { %14109 = vmatpush3.bf16.msra.mxu0 %v15281_v13  ;;  %14080 = vmatprep.mubr.msk.bf16.mxu0 %vm20854_vm0, %v15931_v22  ;;  %v12753_v13 = vld [vmem:[%s15688_s25 + $0x111] sm:$0xff] }
 0x175   : > { %14110 = vmatprep.subr.bf16.mxu0 %v15282_v29 }
 0x178   : > { %14111 = vmatpush3.bf16.msra.mxu0 %v15282_v29  ;;  %v2779_v29 = vpack.c.bf16 %v12753_v13, %v12752_v12 }
 0x179   : > { %14112 = vmatprep.subr.bf16.mxu0 %v15283_v34 }
 0x17b   : > { %14081 = vmatmul.mubr.msk.bf16.gmra.mrb[4].mxu0 %vm20854_vm0, %v15933_v23 }
 0x17c   : > { %14084 = vmatprep.mubr.msk.bf16.mxu0 %vm20854_vm0, %v15949_v33  ;;  %14113 = vmatpush3.bf16.msra.mxu0 %v15283_v34  ;;  %v2780_v34 = vpack.c.bf16 %v12755_v21, %v12754_v20 }
 0x17d   : > { %14114 = vmatprep.subr.bf16.mxu0 %v15284_v35 }
 0x180   : > { %14115 = vmatpush3.bf16.msra.mxu0 %v15284_v35  ;;  %v12756_v35 = vld [vmem:[%s15688_s25 + $0x139] sm:$0xff] }
 0x181   : > { %14148 = vmatprep.subr.bf16.mxu0 %v15285_v40 }
 0x183   : > { %14085 = vmatmul.mubr.msk.bf16.gmra.mrb[8].mxu0 %vm20854_vm0, %v15951_v38 }
 0x184   : > { %14088 = vmatprep.mubr.msk.bf16.mxu0 %vm20854_vm0, %v15961_v49 }
 0x18b   : > { %14089 = vmatmul.mubr.msk.bf16.gmra.mrb[12].mxu0 %vm20854_vm0, %v15963_v50 }
 0x18c   : > { %14092 = vmatprep.mubr.msk.bf16.mxu0 %vm20854_vm0, %v15973_v60 }
 0x193   : > { %14093 = vmatmul.mubr.msk.bf16.gmra.mrb[16].mxu0 %vm20854_vm0, %v15975_v62 }
 0x194   : > { %14096 = vmatprep.mubr.msk.bf16.mxu0 %vm20854_vm0, %v15985_v7 }
 0x19b   : > { %14097 = vmatmul.mubr.msk.bf16.gmra.mrb[20].mxu0 %vm20854_vm0, %v15987_v10 }
 0x19c   : > { %14100 = vmatprep.mubr.msk.bf16.mxu0 %vm20854_vm0, %v15997_v17 }
 0x1a3   : > { %14101 = vmatmul.mubr.msk.bf16.gmra.mrb[24].mxu0 %vm20854_vm0, %v15999_v24 }
 0x1a4   : > { %14104 = vmatprep.mubr.msk.bf16.mxu0 %vm20854_vm0, %v16007_v31 }
 0x1ab   : > { %14105 = vmatmul.mubr.msk.bf16.gmra.mrb[28].mxu0 %vm20854_vm0, %v16151_v47 }
 0x1ac   : > { %14116 = vmatprep.mubr.msk.bf16.mxu0 %vm20854_vm0, %v15810_v1  ;;  %v16177_v1 = vld [vmem:[%s20862_s1 + $0x100] sm:$0xff]  }
 0x1b3   : > { %14117 = vmatmul.mubr.msk.bf16.vlgmr.msra.gmra.mrb[0].mxu0 %vm20854_vm0, %v15826_v8  ;;  %v12704_v8 = vld [vmem:[%s15688_s25 + $0x198] sm:$0xff] }
 0x1b4   : > { %14149 = vmatpush3.bf16.msra.mxu0 %v15285_v40  ;;  %14120 = vmatprep.mubr.msk.bf16.mxu0 %vm20854_vm0, %v15828_v9  ;;  %v12705_v9 = vld [vmem:[%s15688_s25 + $0x1a0] sm:$0xff] }
 0x1b5   : > { %14150 = vmatprep.subr.bf16.mxu0 %v15286_v52  ;;  %v12757_v40 = vld [vmem:[%s15688_s25 + $0x141] sm:$0xff] }
 0x1b8   : > { %14151 = vmatpush3.bf16.msra.mxu0 %v15286_v52  ;;  %v2781_v52 = vpack.c.bf16 %v12757_v40, %v12756_v35 }
 0x1b9   : > { %14152 = vmatprep.subr.bf16.mxu0 %v15287_v53 }
 0x1bb   : > { %14121 = vmatmul.mubr.msk.bf16.gmra.mrb[4].mxu0 %vm20854_vm0, %v15844_v18  ;;  %v12734_v18 = vld [vmem:[%s15688_s25 + $0x31] sm:$0xff] }
 0x1bc   : > { %14124 = vmatprep.mubr.msk.bf16.mxu0 %vm20854_vm0, %v15846_v19  ;;  %14153 = vmatpush3.bf16.msra.mxu0 %v15287_v53  ;;  %v12735_v19 = vld [vmem:[%s15688_s25 + $0x39] sm:$0xff]  ;;  %v2782_v53 = vpack.c.bf16 %v12759_v46, %v12758_v41 }
 0x1bd   : > { %14154 = vmatprep.subr.bf16.mxu0 %v15288_v58 }
 0x1c0   : > { %14155 = vmatpush3.bf16.msra.mxu0 %v15288_v58  ;;  %v12760_v58 = vld [vmem:[%s15688_s25 + $0x169] sm:$0xff] }
 0x1c1   : > { %14188 = vmatprep.subr.bf16.mxu0 %v16177_v1 }
 0x1c3   : > { %14125 = vmatmul.mubr.msk.bf16.gmra.mrb[8].mxu0 %vm20854_vm0, %v15856_v26  ;;  %v2463_v26 = vpack.c.bf16 %v12705_v9, %v12704_v8  ;;  %v12764_v9 = vld [vmem:[%s15688_s25 + $0x199] sm:$0xff] }
 0x1c4   : > { %14128 = vmatprep.mubr.msk.bf16.mxu0 %vm20854_vm0, %v15858_v27  ;;  %v2770_v27 = vpack.c.bf16 %v12735_v19, %v12734_v18  ;;  %v12765_v18 = vld [vmem:[%s15688_s25 + $0x1a1] sm:$0xff] }
 0x1c5   : > { %v2785_v19 = vpack.c.bf16 %v12765_v18, %v12764_v9 }
 0x1cb   : > { %14129 = vmatmul.mubr.msk.bf16.gmra.mrb[12].mxu0 %vm20854_vm0, %v15868_v36  ;;  %v12736_v36 = vld [vmem:[%s15688_s25 + $0x49] sm:$0xff] }
 0x1cc   : > { %14132 = vmatprep.mubr.msk.bf16.mxu0 %vm20854_vm0, %v15870_v37  ;;  %v12737_v37 = vld [vmem:[%s15688_s25 + $0x51] sm:$0xff] }
 0x1d3   : > { %14133 = vmatmul.mubr.msk.bf16.gmra.mrb[16].mxu0 %vm20854_vm0, %v15880_v44  ;;  %v15545_v44 = vmov 0  }
 0x1d4   : > { %14136 = vmatprep.mubr.msk.bf16.mxu0 %vm20854_vm0, %v15882_v45  ;;  %492 = vst.msk [vmem:[#allocation2 + $0x18] sm:$0xf] %vm484_vm1, %v15545_v44  ;;  %485 = vst.msk [vmem:[#allocation2] sm:$0xf] %vm484_vm1, %v15545_v44  ;;  %v12738_v45 = vld [vmem:[%s15688_s25 + $0x61] sm:$0xff] }
 0x1d5   : > { %486 = vst.msk [vmem:[#allocation2 + $0x4] sm:$0xf] %vm484_vm1, %v15545_v44  ;;  %489 = vst.msk [vmem:[#allocation2 + $0xc] sm:$0xf] %vm484_vm1, %v15545_v44 }
 0x1d6   : > { %490 = vst.msk [vmem:[#allocation2 + $0x10] sm:$0xf] %vm484_vm1, %v15545_v44  ;;  %493 = vst.msk [vmem:[#allocation2 + $0x1c] sm:$0xf] %vm484_vm1, %v15545_v44 }
 0x1d7   : > { %495 = vst.msk [vmem:[#allocation2 + $0x24] sm:$0xf] %vm484_vm1, %v15545_v44  ;;  %496 = vst.msk [vmem:[#allocation2 + $0x28] sm:$0xf] %vm484_vm1, %v15545_v44 }
 0x1d8   : > { %498 = vst.msk [vmem:[#allocation2 + $0x30] sm:$0xf] %vm484_vm1, %v15545_v44  ;;  %499 = vst.msk [vmem:[#allocation2 + $0x34] sm:$0xf] %vm484_vm1, %v15545_v44 }
 0x1d9   : > { %501 = vst.msk [vmem:[#allocation2 + $0x3c] sm:$0xf] %vm484_vm1, %v15545_v44  ;;  %502 = vst.msk [vmem:[#allocation2 + $0x40] sm:$0xf] %vm484_vm1, %v15545_v44 }
 0x1da   : > { %504 = vst.msk [vmem:[#allocation2 + $0x48] sm:$0xf] %vm484_vm1, %v15545_v44  ;;  %505 = vst.msk [vmem:[#allocation2 + $0x4c] sm:$0xf] %vm484_vm1, %v15545_v44 }
 0x1db   : > { %14137 = vmatmul.mubr.msk.bf16.gmra.mrb[20].mxu0 %vm20854_vm0, %v15892_v54  ;;  %507 = vst.msk [vmem:[#allocation2 + $0x54] sm:$0xf] %vm484_vm1, %v15545_v44  ;;  %508 = vst.msk [vmem:[#allocation2 + $0x58] sm:$0xf] %vm484_vm1, %v15545_v44  ;;  %v12739_v54 = vld [vmem:[%s15688_s25 + $0x69] sm:$0xff] }
 0x1dc   : > { %14140 = vmatprep.mubr.msk.bf16.mxu0 %vm20854_vm0, %v15894_v55  ;;  %510 = vst.msk [vmem:[#allocation2 + $0x60] sm:$0xf] %vm484_vm1, %v15545_v44  ;;  %511 = vst.msk [vmem:[#allocation2 + $0x64] sm:$0xf] %vm484_vm1, %v15545_v44  ;;  %v2771_v55 = vpack.c.bf16 %v12737_v37, %v12736_v36 }
 0x1dd   : > { %513 = vst.msk [vmem:[#allocation2 + $0x6c] sm:$0xf] %vm484_vm1, %v15545_v44  ;;  %514 = vst.msk [vmem:[#allocation2 + $0x70] sm:$0xf] %vm484_vm1, %v15545_v44 }
 0x1de   : > { %516 = vst.msk [vmem:[#allocation2 + $0x78] sm:$0xf] %vm484_vm1, %v15545_v44  ;;  %517 = vst.msk [vmem:[#allocation2 + $0x7c] sm:$0xf] %vm484_vm1, %v15545_v44 }
 0x1df   : > { %519 = vst.msk [vmem:[#allocation2 + $0x84] sm:$0xf] %vm484_vm1, %v15545_v44  ;;  %520 = vst.msk [vmem:[#allocation2 + $0x88] sm:$0xf] %vm484_vm1, %v15545_v44 }
 0x1e0   : > { %522 = vst.msk [vmem:[#allocation2 + $0x90] sm:$0xf] %vm484_vm1, %v15545_v44  ;;  %523 = vst.msk [vmem:[#allocation2 + $0x94] sm:$0xf] %vm484_vm1, %v15545_v44 }
 0x1e1   : > { %525 = vst.msk [vmem:[#allocation2 + $0x9c] sm:$0xf] %vm484_vm1, %v15545_v44  ;;  %526 = vst.msk [vmem:[#allocation2 + $0xa0] sm:$0xf] %vm484_vm1, %v15545_v44 }
 0x1e2   : > { %528 = vst.msk [vmem:[#allocation2 + $0xa8] sm:$0xf] %vm484_vm1, %v15545_v44  ;;  %529 = vst.msk [vmem:[#allocation2 + $0xac] sm:$0xf] %vm484_vm1, %v15545_v44 }
 0x1e3   : > { %14141 = vmatmul.mubr.msk.bf16.gmra.mrb[24].mxu0 %vm20854_vm0, %v15904_v61  ;;  %531 = vst.msk [vmem:[#allocation2 + $0xb4] sm:$0xf] %vm484_vm1, %v15545_v44  ;;  %532 = vst.msk [vmem:[#allocation2 + $0xb8] sm:$0xf] %vm484_vm1, %v15545_v44  ;;  %v2772_v61 = vpack.c.bf16 %v12739_v54, %v12738_v45 }
 0x1e4   : > { %14144 = vmatprep.mubr.msk.bf16.mxu0 %vm20854_vm0, %v16055_v51  ;;  %534 = vst.msk [vmem:[#allocation2 + $0xc0] sm:$0xf] %vm484_vm1, %v15545_v44  ;;  %535 = vst.msk [vmem:[#allocation2 + $0xc4] sm:$0xf] %vm484_vm1, %v15545_v44  ;;  %v12751_v51 = vld [vmem:[%s15688_s25 + $0xf9] sm:$0xff] }
 0x1e5   : > { %537 = vst.msk [vmem:[#allocation2 + $0xcc] sm:$0xf] %vm484_vm1, %v15545_v44  ;;  %538 = vst.msk [vmem:[#allocation2 + $0xd0] sm:$0xf] %vm484_vm1, %v15545_v44  ;;  %v2778_v57 = vpack.c.bf16 %v12751_v51, %v12750_v48 }
 0x1e6   : > { %494 = vst.msk [vmem:[#allocation2 + $0x20] sm:$0x1] %vm487_vm2, %v15545_v44  ;;  %488 = vst.msk [vmem:[#allocation2 + $0x8] sm:$0x1] %vm487_vm2, %v15545_v44 }
 0x1e7   : > { %491 = vst.msk [vmem:[#allocation2 + $0x14] sm:$0x1] %vm487_vm2, %v15545_v44  ;;  %497 = vst.msk [vmem:[#allocation2 + $0x2c] sm:$0x1] %vm487_vm2, %v15545_v44 }
 0x1e8   : > { %500 = vst.msk [vmem:[#allocation2 + $0x38] sm:$0x1] %vm487_vm2, %v15545_v44  ;;  %503 = vst.msk [vmem:[#allocation2 + $0x44] sm:$0x1] %vm487_vm2, %v15545_v44 }
 0x1e9   : > { %506 = vst.msk [vmem:[#allocation2 + $0x50] sm:$0x1] %vm487_vm2, %v15545_v44  ;;  %509 = vst.msk [vmem:[#allocation2 + $0x5c] sm:$0x1] %vm487_vm2, %v15545_v44 }
 0x1ea   : > { %512 = vst.msk [vmem:[#allocation2 + $0x68] sm:$0x1] %vm487_vm2, %v15545_v44  ;;  %515 = vst.msk [vmem:[#allocation2 + $0x74] sm:$0x1] %vm487_vm2, %v15545_v44 }
 0x1eb   : > { %14145 = vmatmul.mubr.msk.bf16.gmra.mrb[28].mxu0 %vm20854_vm0, %v2463_v26  ;;  %518 = vst.msk [vmem:[#allocation2 + $0x80] sm:$0x1] %vm487_vm2, %v15545_v44  ;;  %521 = vst.msk [vmem:[#allocation2 + $0x8c] sm:$0x1] %vm487_vm2, %v15545_v44 }
 0x1ec   : > { %14156 = vmatprep.mubr.msk.bf16.mxu0 %vm20854_vm0, %v2770_v27  ;;  %524 = vst.msk [vmem:[#allocation2 + $0x98] sm:$0x1] %vm487_vm2, %v15545_v44  ;;  %527 = vst.msk [vmem:[#allocation2 + $0xa4] sm:$0x1] %vm487_vm2, %v15545_v44 }
 0x1ed   : > { %530 = vst.msk [vmem:[#allocation2 + $0xb0] sm:$0x1] %vm487_vm2, %v15545_v44  ;;  %533 = vst.msk [vmem:[#allocation2 + $0xbc] sm:$0x1] %vm487_vm2, %v15545_v44 }
 0x1ee   : > { %536 = vst.msk [vmem:[#allocation2 + $0xc8] sm:$0x1] %vm487_vm2, %v15545_v44  ;;  %539 = vst.msk [vmem:[#allocation2 + $0xd4] sm:$0x1] %vm487_vm2, %v15545_v44 }
 0x1f3   : > { %14157 = vmatmul.mubr.msk.bf16.vlgmr.msra.gmra.mrb[0].mxu0 %vm20854_vm0, %v2771_v55 }
 0x1f4   : > { %14189 = vmatpush3.bf16.msra.mxu0 %v16177_v1  ;;  %14160 = vmatprep.mubr.msk.bf16.mxu0 %vm20854_vm0, %v2772_v61  ;;  %v12761_v1 = vld [vmem:[%s15688_s25 + $0x171] sm:$0xff] }
 0x1f5   : > { %14190 = vmatprep.subr.bf16.mxu0 %v15290_v5  ;;  %v2783_v8 = vpack.c.bf16 %v12761_v1, %v12760_v58 }
 0x1f8   : > { %14191 = vmatpush3.bf16.msra.mxu0 %v15290_v5 }
 0x1f9   : > { %14192 = vmatprep.subr.bf16.mxu0 %v15291_v4 }
 0x1fb   : > { %14161 = vmatmul.mubr.msk.bf16.gmra.mrb[4].mxu0 %vm20854_vm0, %v2773_v11 }
 0x1fc   : > { %14164 = vmatprep.mubr.msk.bf16.mxu0 %vm20854_vm0, %v2774_v14  ;;  %14193 = vmatpush3.bf16.msra.mxu0 %v15291_v4 }
 0x1fd   : > { %14194 = vmatprep.subr.bf16.mxu0 %v15292_v15 }
 0x200   : > { %14195 = vmatpush3.bf16.msra.mxu0 %v15292_v15 }
 0x203   : > { %14165 = vmatmul.mubr.msk.bf16.gmra.mrb[8].mxu0 %vm20854_vm0, %v2775_v42 }
 0x204   : > { %14168 = vmatprep.mubr.msk.bf16.mxu0 %vm20854_vm0, %v2776_v0 }
 0x20b   : > { %14169 = vmatmul.mubr.msk.bf16.gmra.mrb[12].mxu0 %vm20854_vm0, %v2777_v56 }
 0x20c   : > { %14172 = vmatprep.mubr.msk.bf16.mxu0 %vm20854_vm0, %v2778_v57 }
 0x213   : > { %14173 = vmatmul.mubr.msk.bf16.gmra.mrb[16].mxu0 %vm20854_vm0, %v2779_v29 }
 0x214   : > { %14176 = vmatprep.mubr.msk.bf16.mxu0 %vm20854_vm0, %v2780_v34 }
 0x21b   : > { %14177 = vmatmul.mubr.msk.bf16.gmra.mrb[20].mxu0 %vm20854_vm0, %v2781_v52  ;;  %v3950_v52 = vld [vmem:[#allocation2 + $0x18] sm:$0xf] }
 0x21c   : > { %14180 = vmatprep.mubr.msk.bf16.mxu0 %vm20854_vm0, %v2782_v53 }
 0x223   : > { %14181 = vmatmul.mubr.msk.bf16.gmra.mrb[24].mxu0 %vm20854_vm0, %v2783_v8 }
 0x224   : > { %14184 = vmatprep.mubr.msk.bf16.mxu0 %vm20854_vm0, %v16103_v28  ;;  %v15294_v28 = vld [vmem:[%s20752_s3 + $0x18] sm:$0xff]  }
 0x22b   : > { %14185 = vmatmul.mubr.msk.bf16.gmra.mrb[28].mxu0 %vm20854_vm0, %v2785_v19 }
 0x22c   : > { %14196 = vmatprep.mubr.msk.bf16.mxu0 %vm20854_vm0, %v15915_v6  ;;  %v12824_v6 = vld [vmem:[%s15688_s25 + $0x19a] sm:$0xff] }
 0x233   : > { %14197 = vmatmul.mubr.msk.bf16.vlgmr.msra.gmra.mrb[0].mxu0 %vm20854_vm0, %v15931_v22  ;;  %v12825_v22 = vld [vmem:[%s15688_s25 + $0x1a2] sm:$0xff] }
 0x234   : > { %14200 = vmatprep.mubr.msk.bf16.mxu0 %vm20854_vm0, %v15933_v23  ;;  %v3107_v23 = vpack.c.bf16 %v12825_v22, %v12824_v6 }
 0x23b   : > { %14201 = vmatmul.mubr.msk.bf16.gmra.mrb[4].mxu0 %vm20854_vm0, %v15949_v33  ;;  %v15293_v33 = vld [vmem:[%s20752_s3 + $0x10] sm:$0xff]  }
 0x23c   : > { %14204 = vmatprep.mubr.msk.bf16.mxu0 %vm20854_vm0, %v15951_v38  ;;  %14228 = vmatprep.subr.bf16.mxu1 %v15293_v33  ;;  %v4161_v38 = vld [vmem:[#allocation2] sm:$0xf] }
 0x23d   : > { %14229 = vmatpush3.bf16.msra.mxu1 %v15293_v33 }
 0x23e   : > { %14230 = vmatprep.subr.bf16.mxu1 %v15294_v28 }
 0x241   : > { %14231 = vmatpush3.bf16.msra.mxu1 %v15294_v28 }
 0x242   : > { %14264 = vmatprep.subr.bf16.mxu1 %v16419_v59 }
 0x243   : > { %14205 = vmatmul.mubr.msk.bf16.gmra.mrb[8].mxu0 %vm20854_vm0, %v15961_v49  ;;  %v4162_v49 = vld [vmem:[#allocation2 + $0x4] sm:$0xf] }
 0x244   : > { %14208 = vmatprep.mubr.msk.bf16.mxu0 %vm20854_vm0, %v15963_v50  ;;  %v4217_v50 = vshrl.u32 %v4161_v38, 16 }
 0x24b   : > { %14209 = vmatmul.mubr.msk.bf16.gmra.mrb[12].mxu0 %vm20854_vm0, %v15973_v60  ;;  %v4220_v60 = vshll.u32 %v4161_v38, 16  ;;  %v3941_v38 = vld [vmem:[#allocation2 + $0xc] sm:$0xf] }
 0x24c   : > { %14212 = vmatprep.mubr.msk.bf16.mxu0 %vm20854_vm0, %v15975_v62  ;;  %v4226_v62 = vshll.u32 %v4162_v49, 16 }
 0x253   : > { %14213 = vmatmul.mubr.msk.bf16.gmra.mrb[16].mxu0 %vm20854_vm0, %v15985_v7  ;;  %v4230_v7 = vshrl.u32 %v4162_v49, 16 }
 0x254   : > { %14216 = vmatprep.mubr.msk.bf16.mxu0 %vm20854_vm0, %v15987_v10  ;;  %v4219_v10 = vrot.slane %v4217_v50, 4 }
 0x25b   : > { %14217 = vmatmul.mubr.msk.bf16.gmra.mrb[20].mxu0 %vm20854_vm0, %v15997_v17  ;;  %v4222_v17 = vrot.slane %v4220_v60, 5 }
 0x25c   : > { %14220 = vmatprep.mubr.msk.bf16.mxu0 %vm20854_vm0, %v15999_v24  ;;  %v4228_v24 = vrot.slane %v4226_v62, 5 }
 0x25d   : > { %v4223_v26 = vor.u32 %v4222_v17, %v4219_v10  ;;  %v3954_v17 = vld [vmem:[#allocation2 + $0x20] sm:$0x1] }
 0x25f   : > { %v4224_v37 = vrot.slane %v4223_v26, 4  ;;  %v3947_v26 = vld [vmem:[#allocation2 + $0x14] sm:$0x1] }
 0x261   : > { %v4229_v55 = vsel %vm16407_vm5, %v4224_v37, %v4228_v24 }
 0x263   : > { %14221 = vmatmul.mubr.msk.bf16.gmra.mrb[24].mxu0 %vm20854_vm0, %v16007_v31  ;;  %v4232_v31 = vrot.slane %v4230_v7, 4 }
 0x264   : > { %14224 = vmatprep.mubr.msk.bf16.mxu0 %vm20854_vm0, %v16151_v47  ;;  %v4197_v47 = vld [vmem:[#allocation2 + $0x8] sm:$0x1] }
 0x265   : > { %v4233_v27 = vor.u32 %v4232_v31, %v4228_v24  ;;  %v4236_v36 = vshll.u32 %v4197_v47, 16 }
 0x267   : > { %v4234_v44 = vrot.slane %v4233_v27, 4  ;;  %v4238_v54 = vrot.slane %v4236_v36, 5 }
 0x269   : > { %v4239_v61 = vsel %vm16407_vm5, %v4234_v44, %v4238_v54 }
 0x26a   : > { %v12923_v5 = vcombine.low %v4229_v55, %v4239_v61 }
 0x26b   : > { %14225 = vmatmul.mubr.msk.bf16.gmra.mrb[28].mxu0 %vm20854_vm0, %v3107_v23 }
 0x26c   : > { %14232 = vmatprep.mubr.msk.bf16.mxu1 %vm4665_vm6, %v12923_v5 }
 0x306   : > { %v14198_v2 = vpop.f32.mrb[0].mxu0 }
 0x307   : > { %v3390_v3 = vadd.f32 %v14198_v2, %v16425_v63  ;;  %v3223_v4 = vpop.f32.mrb[1].mxu0 }
 0x308   : > { %v3388_v11 = vadd.f32 %v16425_v63, %v3223_v4  ;;  %v14199_v14 = vpop.f32.mrb[2].mxu0 }
 0x309   : > { %vm3422_vm7 = vcmp.ge.f32.partialorder %v3390_v3, 0.0  ;;  %v3454_v15 = vmul.f32 0.1, %v3390_v3  ;;  %v3391_v16 = vadd.f32 %v14199_v14, %v16425_v63  ;;  %v3226_v25 = vpop.f32.mrb[3].mxu0 }
 0x30a   : > { %vm3420_vm8 = vcmp.ge.f32.partialorder %v3388_v11, 0.0  ;;  %v3452_v30 = vmul.f32 0.1, %v3388_v11  ;;  %v3389_v39 = vadd.f32 %v16425_v63, %v3226_v25 }
 0x30b   : > { %v3486_v42 = vsel %vm3422_vm7, %v3390_v3, %v3454_v15  ;;  %vm3423_vm10 = vcmp.ge.f32.partialorder %v3391_v16, 0.0  ;;  %v3455_v0 = vmul.f32 0.1, %v3391_v16 }
 0x30c   : > { %v13423_v32 = vpack.c.bf16 %v3486_v42, %v3486_v42  ;;  %v3484_v43 = vsel %vm3420_vm8, %v3388_v11, %v3452_v30  ;;  %vm3421_vm11 = vcmp.ge.f32.partialorder %v3389_v39, 0.0  ;;  %v3453_v48 = vmul.f32 0.1, %v3389_v39 }
 0x30d   : > { %v13421_v51 = vpack.c.bf16 %v3484_v43, %v3484_v43  ;;  %v3487_v56 = vsel %vm3423_vm10, %v3391_v16, %v3455_v0 }
 0x30e   : > { %v3633_v57 = vshrl.u32 %v13423_v32, 16  ;;  %v3636_v12 = vshll.u32 %v13423_v32, 16  ;;  %v13424_v13 = vpack.c.bf16 %v3487_v56, %v3487_v56  ;;  %v3485_v20 = vsel %vm3421_vm11, %v3389_v39, %v3453_v48  ;;  %v14202_v21 = vpop.f32.mrb[4].mxu0  ;;  %v3964_v56 = vld [vmem:[#allocation2 + $0x30] sm:$0xf] }
 0x30f   : > { %v3616_v29 = vshrl.u32 %v13421_v51, 16  ;;  %v3619_v34 = vshll.u32 %v13421_v51, 16  ;;  %v13422_v35 = vpack.c.bf16 %v3485_v20, %v3485_v20  ;;  %v3394_v40 = vadd.f32 %v14202_v21, %v16425_v63  ;;  %v3239_v41 = vpop.f32.mrb[5].mxu0 }
 0x310   : > { %v3635_v46 = vrot.slane %v3633_v57, 7  ;;  %v3641_v53 = vshrl.u32 %v13424_v13, 16  ;;  %v3644_v58 = vshll.u32 %v13424_v13, 16  ;;  %v3392_v1 = vadd.f32 %v16425_v63, %v3239_v41  ;;  %v14203_v8 = vpop.f32.mrb[6].mxu0 }
 0x311   : > { %v3618_v18 = vrot.slane %v3616_v29, 7  ;;  %v3624_v19 = vshrl.u32 %v13422_v35, 16  ;;  %v3627_v6 = vshll.u32 %v13422_v35, 16  ;;  %vm3426_vm15 = vcmp.ge.f32.partialorder %v3394_v40, 0.0  ;;  %v3242_v22 = vpop.f32.mrb[7].mxu0 }
 0x312   : > { %v3638_v23 = vor.u32 %v3636_v12, %v3635_v46  ;;  %v3639_v33 = vrot.slane %v3635_v46, 4  ;;  %v3643_v50 = vrot.slane %v3641_v53, 7  ;;  %v3458_v60 = vmul.f32 0.1, %v3394_v40  ;;  %v3957_v53 = vld [vmem:[#allocation2 + $0x24] sm:$0xf] }
 0x313   : > { %v3621_v62 = vor.u32 %v3619_v34, %v3618_v18  ;;  %v3622_v7 = vrot.slane %v3618_v18, 4  ;;  %v3626_v24 = vrot.slane %v3624_v19, 7  ;;  %vm3424_vm7 = vcmp.ge.f32.partialorder %v3392_v1, 0.0 }
 0x314   : > { %v3951_v31 = vsel %vm16435_vm14, %v3638_v23, %v3950_v52  ;;  %v3646_v28 = vor.u32 %v3644_v58, %v3643_v50  ;;  %v3648_v47 = vrot.slane %v3643_v50, 4  ;;  %v3490_v27 = vsel %vm3426_vm15, %v3394_v40, %v3458_v60 }
 0x315   : > { %3952 = vst [vmem:[#allocation2 + $0x18] sm:$0xf] %v3951_v31  ;;  %v3942_v36 = vsel %vm16435_vm14, %v3621_v62, %v3941_v38  ;;  %v3629_v37 = vor.u32 %v3627_v6, %v3626_v24  ;;  %v3631_v44 = vrot.slane %v3626_v24, 4  ;;  %v13427_v54 = vpack.c.bf16 %v3490_v27, %v3490_v27  ;;  %v3968_v31 = vld [vmem:[#allocation2 + $0x38] sm:$0x1] }
 0x316   : > { %3943 = vst [vmem:[#allocation2 + $0xc] sm:$0xf] %v3942_v36  ;;  %v3647_v55 = vsel %vm16441_vm3, %v3639_v33, %v3646_v28  ;;  %v3955_v61 = vsel %vm16447_vm4, %v3648_v47, %v3954_v17  ;;  %v3456_v5 = vmul.f32 0.1, %v3392_v1  ;;  %v3395_v2 = vadd.f32 %v14203_v8, %v16425_v63  ;;  %v14206_v3 = vpop.f32.mrb[8].mxu0 }
 0x317   : > { %3953 = vst.msk [vmem:[#allocation2 + $0x1c] sm:$0xf] %vm484_vm1, %v3647_v55  ;;  %3956 = vst [vmem:[#allocation2 + $0x20] sm:$0x1] %v3955_v61  ;;  %v3630_v4 = vsel %vm16441_vm3, %v3622_v7, %v3629_v37  ;;  %v3948_v11 = vsel %vm16447_vm4, %v3631_v44, %v3947_v26  ;;  %v3667_v14 = vshrl.u32 %v13427_v54, 16  ;;  %v3670_v15 = vshll.u32 %v13427_v54, 16 }
 0x318   : > { %v3255_v16 = vpop.f32.mrb[9].mxu0  ;;  %3944 = vst.msk [vmem:[#allocation2 + $0x10] sm:$0xf] %vm484_vm1, %v3630_v4  ;;  %3949 = vst [vmem:[#allocation2 + $0x14] sm:$0x1] %v3948_v11  ;;  %v3488_v25 = vsel %vm3424_vm7, %v3392_v1, %v3456_v5  ;;  %vm3427_vm2 = vcmp.ge.f32.partialorder %v3395_v2, 0.0  ;;  %v3393_v39 = vadd.f32 %v16425_v63, %v3242_v22  ;;  %v3398_v43 = vadd.f32 %v14206_v3, %v16425_v63 }
 0x319   : > { %v3459_v30 = vmul.f32 0.1, %v3395_v2  ;;  %v14207_v42 = vpop.f32.mrb[10].mxu0  ;;  %v3669_v0 = vrot.slane %v3667_v14, 7  ;;  %v13425_v32 = vpack.c.bf16 %v3488_v25, %v3488_v25  ;;  %v3396_v48 = vadd.f32 %v16425_v63, %v3255_v16  ;;  %v3961_v44 = vld [vmem:[#allocation2 + $0x2c] sm:$0x1] }
 0x31a   : > { %v16471_v51 = vpop.f32.mrb[11].mxu0  ;;  %vm3425_vm8 = vcmp.ge.f32.partialorder %v3393_v39, 0.0  ;;  %v3457_v12 = vmul.f32 0.1, %v3393_v39  ;;  %v3399_v13 = vadd.f32 %v14207_v42, %v16425_v63  ;;  %vm3430_vm9 = vcmp.ge.f32.partialorder %v3398_v43, 0.0 }
 0x31b   : > { %v3491_v57 = vsel %vm3427_vm2, %v3395_v2, %v3459_v30  ;;  %v3672_v20 = vor.u32 %v3670_v15, %v3669_v0  ;;  %v3673_v21 = vrot.slane %v3669_v0, 4  ;;  %v3650_v29 = vshrl.u32 %v13425_v32, 16  ;;  %v3978_v2 = vld [vmem:[#allocation2 + $0x48] sm:$0xf]  ;;  %v3971_v42 = vld [vmem:[#allocation2 + $0x3c] sm:$0xf] }
 0x31c   : > { %v3653_v34 = vshll.u32 %v13425_v32, 16  ;;  %v13428_v35 = vpack.c.bf16 %v3491_v57, %v3491_v57  ;;  %v3489_v40 = vsel %vm3425_vm8, %v3393_v39, %v3457_v12  ;;  %v3462_v41 = vmul.f32 0.1, %v3398_v43 }
 0x31d   : > { %v3965_v46 = vsel %vm16435_vm14, %v3672_v20, %v3964_v56  ;;  %v3652_v52 = vrot.slane %v3650_v29, 7  ;;  %v13426_v58 = vpack.c.bf16 %v3489_v40, %v3489_v40  ;;  %vm3428_vm10 = vcmp.ge.f32.partialorder %v3396_v48, 0.0 }
 0x31e   : > { %3966 = vst [vmem:[#allocation2 + $0x30] sm:$0xf] %v3965_v46  ;;  %v3675_v1 = vshrl.u32 %v13428_v35, 16  ;;  %v3678_v8 = vshll.u32 %v13428_v35, 16  ;;  %v3494_v18 = vsel %vm3430_vm9, %v3398_v43, %v3462_v41  ;;  %v3460_v19 = vmul.f32 0.1, %v3396_v48 }
 0x31f   : > { %v14210_v6 = vpop.f32.mrb[12].mxu0  ;;  %v3655_v22 = vor.u32 %v3653_v34, %v3652_v52  ;;  %v3656_v23 = vrot.slane %v3652_v52, 4  ;;  %v3658_v33 = vshrl.u32 %v13426_v58, 16  ;;  %v3661_v38 = vshll.u32 %v13426_v58, 16  ;;  %v3982_v58 = vld [vmem:[#allocation2 + $0x50] sm:$0x1] }
 0x320   : > { %v3271_v50 = vpop.f32.mrb[13].mxu0  ;;  %v3677_v60 = vrot.slane %v3675_v1, 7  ;;  %v13431_v62 = vpack.c.bf16 %v3494_v18, %v3494_v18  ;;  %v3492_v7 = vsel %vm3428_vm10, %v3396_v48, %v3460_v19  ;;  %vm3431_vm11 = vcmp.ge.f32.partialorder %v3399_v13, 0.0 }
 0x321   : > { %v14211_v17 = vpop.f32.mrb[14].mxu0  ;;  %v3958_v24 = vsel %vm16435_vm14, %v3655_v22, %v3957_v53  ;;  %v3660_v28 = vrot.slane %v3658_v33, 7  ;;  %v13429_v47 = vpack.c.bf16 %v3492_v7, %v3492_v7  ;;  %v3463_v26 = vmul.f32 0.1, %v3399_v13 }
 0x322   : > { %v3274_v27 = vpop.f32.mrb[15].mxu0  ;;  %3959 = vst [vmem:[#allocation2 + $0x24] sm:$0xf] %v3958_v24  ;;  %v3680_v36 = vor.u32 %v3678_v8, %v3677_v60  ;;  %v3682_v37 = vrot.slane %v3677_v60, 4  ;;  %v3701_v54 = vshrl.u32 %v13431_v62, 16  ;;  %v3704_v55 = vshll.u32 %v13431_v62, 16 }
 0x323   : > { %v3663_v61 = vor.u32 %v3661_v38, %v3660_v28  ;;  %v3665_v5 = vrot.slane %v3660_v28, 4  ;;  %v3684_v3 = vshrl.u32 %v13429_v47, 16  ;;  %v3687_v4 = vshll.u32 %v13429_v47, 16  ;;  %v3975_v24 = vld [vmem:[#allocation2 + $0x44] sm:$0x1] }
 0x324   : > { %v3681_v11 = vsel %vm16441_vm3, %v3673_v21, %v3680_v36  ;;  %v3969_v14 = vsel %vm16447_vm4, %v3682_v37, %v3968_v31  ;;  %v3703_v15 = vrot.slane %v3701_v54, 7  ;;  %v3495_v16 = vsel %vm3431_vm11, %v3399_v13, %v3463_v26 }
 0x325   : > { %3967 = vst.msk [vmem:[#allocation2 + $0x34] sm:$0xf] %vm484_vm1, %v3681_v11  ;;  %3970 = vst [vmem:[#allocation2 + $0x38] sm:$0x1] %v3969_v14  ;;  %v3664_v25 = vsel %vm16441_vm3, %v3656_v23, %v3663_v61  ;;  %v3962_v30 = vsel %vm16447_vm4, %v3665_v5, %v3961_v44  ;;  %v16488_v39 = vrot.slane %v3684_v3, 7  ;;  %v13432_v0 = vpack.c.bf16 %v3495_v16, %v3495_v16 }
 0x326   : > { %3960 = vst.msk [vmem:[#allocation2 + $0x28] sm:$0xf] %vm484_vm1, %v3664_v25  ;;  %3963 = vst [vmem:[#allocation2 + $0x2c] sm:$0x1] %v3962_v30  ;;  %v3706_v32 = vor.u32 %v3704_v55, %v3703_v15  ;;  %v3707_v43 = vrot.slane %v3703_v15, 4  ;;  %v3397_v48 = vadd.f32 %v16425_v63, %v16471_v51  ;;  %v3402_v56 = vadd.f32 %v14210_v6, %v16425_v63  ;;  %v14214_v57 = vpop.f32.mrb[16].mxu0 }
 0x327   : > { %v3689_v12 = vor.u32 %v3687_v4, %v16488_v39  ;;  %v3690_v13 = vrot.slane %v16488_v39, 4  ;;  %v3709_v20 = vshrl.u32 %v13432_v0, 16  ;;  %v3712_v21 = vshll.u32 %v13432_v0, 16  ;;  %v16496_v29 = vpop.f32.mrb[17].mxu0  ;;  %v3992_v11 = vld [vmem:[#allocation2 + $0x60] sm:$0xf] }
 0x328   : > { %v3979_v34 = vsel %vm16435_vm14, %v3706_v32, %v3978_v2  ;;  %vm3429_vm12 = vcmp.ge.f32.partialorder %v3397_v48, 0.0  ;;  %v3461_v35 = vmul.f32 0.1, %v3397_v48  ;;  %vm3434_vm13 = vcmp.ge.f32.partialorder %v3402_v56, 0.0  ;;  %v16500_v40 = vpop.f32.mrb[18].mxu0 }
 0x329   : > { %3980 = vst [vmem:[#allocation2 + $0x48] sm:$0xf] %v3979_v34  ;;  %v3972_v51 = vsel %vm16435_vm14, %v3689_v12, %v3971_v42  ;;  %v3711_v41 = vrot.slane %v3709_v20, 7  ;;  %v3466_v46 = vmul.f32 0.1, %v3402_v56  ;;  %v3400_v52 = vadd.f32 %v16425_v63, %v3271_v50  ;;  %v16505_v53 = vpop.f32.mrb[19].mxu0 }
 0x32a   : > { %3973 = vst [vmem:[#allocation2 + $0x3c] sm:$0xf] %v3972_v51  ;;  %v3493_v1 = vsel %vm3429_vm12, %v3397_v48, %v3461_v35  ;;  %v3403_v8 = vadd.f32 %v14211_v17, %v16425_v63  ;;  %v3401_v18 = vadd.f32 %v16425_v63, %v3274_v27  ;;  %v3406_v19 = vadd.f32 %v14214_v57, %v16425_v63  ;;  %v3985_v48 = vld [vmem:[#allocation2 + $0x54] sm:$0xf]  ;;  %v16530_v57 = vld [vmem:[#allocation2 + $0xc] sm:$0xf] }
 0x32b   : > { %v3714_v6 = vor.u32 %v3712_v21, %v3711_v41  ;;  %v3716_v22 = vrot.slane %v3711_v41, 4  ;;  %v13430_v23 = vpack.c.bf16 %v3493_v1, %v3493_v1  ;;  %v3498_v33 = vsel %vm3434_vm13, %v3402_v56, %v3466_v46 }
 0x32c   : > { %v13435_v38 = vpack.c.bf16 %v3498_v33, %v3498_v33  ;;  %vm3432_vm15 = vcmp.ge.f32.partialorder %v3400_v52, 0.0  ;;  %v3464_v60 = vmul.f32 0.1, %v3400_v52  ;;  %vm3435_vm7 = vcmp.ge.f32.partialorder %v3403_v8, 0.0 }
 0x32d   : > { %v3715_v50 = vsel %vm16441_vm3, %v3707_v43, %v3714_v6  ;;  %v3983_v62 = vsel %vm16447_vm4, %v3716_v22, %v3982_v58  ;;  %v3692_v7 = vshrl.u32 %v13430_v23, 16  ;;  %v3695_v17 = vshll.u32 %v13430_v23, 16  ;;  %v3989_v58 = vld [vmem:[#allocation2 + $0x5c] sm:$0x1] }
 0x32e   : > { %3981 = vst.msk [vmem:[#allocation2 + $0x4c] sm:$0xf] %vm484_vm1, %v3715_v50  ;;  %3984 = vst [vmem:[#allocation2 + $0x50] sm:$0x1] %v3983_v62  ;;  %v3735_v31 = vshrl.u32 %v13435_v38, 16  ;;  %v3738_v28 = vshll.u32 %v13435_v38, 16  ;;  %v3496_v47 = vsel %vm3432_vm15, %v3400_v52, %v3464_v60  ;;  %v3405_v23 = vadd.f32 %v16425_v63, %v16505_v53 }
 0x32f   : > { %v3467_v26 = vmul.f32 0.1, %v3403_v8  ;;  %v16516_v27 = vpop.f32.mrb[20].mxu0  ;;  %v3694_v36 = vrot.slane %v3692_v7, 7  ;;  %v13433_v37 = vpack.c.bf16 %v3496_v47, %v3496_v47  ;;  %vm3433_vm2 = vcmp.ge.f32.partialorder %v3401_v18, 0.0 }
 0x330   : > { %v3465_v44 = vmul.f32 0.1, %v3401_v18  ;;  %v16518_v54 = vpop.f32.mrb[21].mxu0  ;;  %v3737_v55 = vrot.slane %v3735_v31, 7  ;;  %vm3438_vm8 = vcmp.ge.f32.partialorder %v3406_v19, 0.0  ;;  %v4241_v33 = vshrl.u32 %v16530_v57, 16 }
 0x331   : > { %v3499_v61 = vsel %vm3435_vm7, %v3403_v8, %v3467_v26  ;;  %v3470_v5 = vmul.f32 0.1, %v3406_v19  ;;  %v16521_v2 = vpop.f32.mrb[22].mxu0  ;;  %v3697_v3 = vor.u32 %v3695_v17, %v3694_v36  ;;  %v3699_v4 = vrot.slane %v3694_v36, 4  ;;  %v3996_v52 = vld [vmem:[#allocation2 + $0x68] sm:$0x1] }
 0x332   : > { %v3718_v14 = vshrl.u32 %v13433_v37, 16  ;;  %v3721_v15 = vshll.u32 %v13433_v37, 16  ;;  %v16523_v16 = vpop.f32.mrb[23].mxu0  ;;  %v3740_v25 = vor.u32 %v3738_v28, %v3737_v55  ;;  %v3741_v30 = vrot.slane %v3737_v55, 4  ;;  %v4006_v37 = vld [vmem:[#allocation2 + $0x78] sm:$0xf] }
 0x333   : > { %v13436_v39 = vpack.c.bf16 %v3499_v61, %v3499_v61  ;;  %v3497_v42 = vsel %vm3433_vm2, %v3401_v18, %v3465_v44  ;;  %v3698_v0 = vsel %vm16441_vm3, %v3690_v13, %v3697_v3  ;;  %v3976_v32 = vsel %vm16447_vm4, %v3699_v4, %v3975_v24  ;;  %v4164_v3 = vld [vmem:[#allocation2 + $0x10] sm:$0xf] }
 0x334   : > { %v3720_v43 = vrot.slane %v3718_v14, 7  ;;  %v13434_v56 = vpack.c.bf16 %v3497_v42, %v3497_v42  ;;  %3974 = vst.msk [vmem:[#allocation2 + $0x40] sm:$0xf] %vm484_vm1, %v3698_v0  ;;  %3977 = vst [vmem:[#allocation2 + $0x44] sm:$0x1] %v3976_v32  ;;  %v3993_v12 = vsel %vm16435_vm14, %v3740_v25, %v3992_v11  ;;  %v3502_v34 = vsel %vm3438_vm8, %v3406_v19, %v3470_v5 }
 0x335   : > { %v3743_v20 = vshrl.u32 %v13436_v39, 16  ;;  %v3746_v21 = vshll.u32 %v13436_v39, 16  ;;  %3994 = vst [vmem:[#allocation2 + $0x60] sm:$0xf] %v3993_v12  ;;  %v13439_v1 = vpack.c.bf16 %v3502_v34, %v3502_v34  ;;  %v3404_v8 = vadd.f32 %v16425_v63, %v16496_v29  ;;  %v4198_v42 = vld [vmem:[#allocation2 + $0x14] sm:$0x1] }
 0x336   : > { %v3723_v13 = vor.u32 %v3721_v15, %v3720_v43  ;;  %v3724_v35 = vrot.slane %v3720_v43, 4  ;;  %v3726_v51 = vshrl.u32 %v13434_v56, 16  ;;  %v3729_v41 = vshll.u32 %v13434_v56, 16  ;;  %v16540_v6 = vpop.f32.mrb[24].mxu0  ;;  %v3999_v32 = vld [vmem:[#allocation2 + $0x6c] sm:$0xf] }
 0x337   : > { %v3745_v46 = vrot.slane %v3743_v20, 7  ;;  %v3407_v18 = vadd.f32 %v16500_v40, %v16425_v63  ;;  %v16547_v38 = vpop.f32.mrb[25].mxu0  ;;  %v3769_v29 = vshrl.u32 %v13439_v1, 16  ;;  %v3772_v62 = vshll.u32 %v13439_v1, 16 }
 0x338   : > { %v3986_v19 = vsel %vm16435_vm14, %v3723_v13, %v3985_v48  ;;  %v3728_v22 = vrot.slane %v3726_v51, 7  ;;  %v16549_v7 = vpop.f32.mrb[26].mxu0  ;;  %vm3436_vm9 = vcmp.ge.f32.partialorder %v3404_v8, 0.0  ;;  %v3468_v24 = vmul.f32 0.1, %v3404_v8 }
 0x339   : > { %3987 = vst [vmem:[#allocation2 + $0x54] sm:$0xf] %v3986_v19  ;;  %v3748_v60 = vor.u32 %v3746_v21, %v3745_v46  ;;  %v3750_v50 = vrot.slane %v3745_v46, 4  ;;  %v16551_v31 = vpop.f32.mrb[27].mxu0  ;;  %v16557_v47 = vrot.slane %v3769_v29, 7  ;;  %vm3439_vm10 = vcmp.ge.f32.partialorder %v3407_v18, 0.0 }
 0x33a   : > { %v3731_v40 = vor.u32 %v3729_v41, %v3728_v22  ;;  %v3733_v17 = vrot.slane %v3728_v22, 4  ;;  %v3500_v44 = vsel %vm3436_vm9, %v3404_v8, %v3468_v24  ;;  %v3471_v55 = vmul.f32 0.1, %v3407_v18  ;;  %v4165_v24 = vld [vmem:[#allocation2 + $0x18] sm:$0xf] }
 0x33b   : > { %v3749_v53 = vsel %vm16441_vm3, %v3741_v30, %v3748_v60  ;;  %v3997_v28 = vsel %vm16447_vm4, %v3750_v50, %v3996_v52  ;;  %v3774_v61 = vor.u32 %v3772_v62, %v16557_v47  ;;  %v13437_v5 = vpack.c.bf16 %v3500_v44, %v3500_v44 }
 0x33c   : > { %3995 = vst.msk [vmem:[#allocation2 + $0x64] sm:$0xf] %vm484_vm1, %v3749_v53  ;;  %3998 = vst [vmem:[#allocation2 + $0x68] sm:$0x1] %v3997_v28  ;;  %v3732_v26 = vsel %vm16441_vm3, %v3724_v35, %v3731_v40  ;;  %v3990_v36 = vsel %vm16447_vm4, %v3733_v17, %v3989_v58  ;;  %vm3437_vm11 = vcmp.ge.f32.partialorder %v3405_v23, 0.0  ;;  %v3503_v4 = vsel %vm3439_vm10, %v3407_v18, %v3471_v55 }
 0x33d   : > { %3988 = vst.msk [vmem:[#allocation2 + $0x58] sm:$0xf] %vm484_vm1, %v3732_v26  ;;  %3991 = vst [vmem:[#allocation2 + $0x5c] sm:$0x1] %v3990_v36  ;;  %v3469_v11 = vmul.f32 0.1, %v3405_v23  ;;  %v4007_v25 = vsel %vm16435_vm14, %v3774_v61, %v4006_v37  ;;  %v13440_v39 = vpack.c.bf16 %v3503_v4, %v3503_v4 }
 0x33e   : > { %v4243_v14 = vrot.slane %v4241_v33, 4  ;;  %v4244_v15 = vshll.u32 %v16530_v57, 16  ;;  %v3752_v30 = vshrl.u32 %v13437_v5, 16  ;;  %v16569_v0 = vpop.f32.mrb[28].mxu0  ;;  %4008 = vst [vmem:[#allocation2 + $0x78] sm:$0xf] %v4007_v25 }
 0x33f   : > { %v3501_v43 = vsel %vm3437_vm11, %v3405_v23, %v3469_v11  ;;  %v4250_v56 = vshll.u32 %v4164_v3, 16  ;;  %v4254_v12 = vshrl.u32 %v4164_v3, 16  ;;  %v16571_v20 = vpop.f32.mrb[29].mxu0  ;;  %v3755_v34 = vshll.u32 %v13437_v5, 16  ;;  %v4010_v23 = vld [vmem:[#allocation2 + $0x80] sm:$0x1] }
 0x340   : > { %v4246_v48 = vrot.slane %v4244_v15, 5  ;;  %v3754_v21 = vrot.slane %v3752_v30, 7  ;;  %v3777_v13 = vshrl.u32 %v13440_v39, 16  ;;  %v13438_v57 = vpack.c.bf16 %v3501_v43, %v3501_v43  ;;  %v16573_v35 = vpop.f32.mrb[30].mxu0  ;;  %v4166_v53 = vld [vmem:[#allocation2 + $0x1c] sm:$0xf] }
 0x341   : > { %v4252_v41 = vrot.slane %v4250_v56, 5  ;;  %v4256_v46 = vrot.slane %v4254_v12, 4  ;;  %v4260_v52 = vshll.u32 %v4198_v42, 16  ;;  %v16575_v58 = vpop.f32.mrb[31].mxu0  ;;  %v3780_v18 = vshll.u32 %v13440_v39, 16  ;;  %v15296_v43 = vld [vmem:[%s20752_s3 + $0x8] sm:$0xff]  }
 0x342   : > { %v4247_v51 = vor.u32 %v4246_v48, %v4243_v14  ;;  %v3757_v1 = vor.u32 %v3755_v34, %v3754_v21  ;;  %v3779_v8 = vrot.slane %v3777_v13, 7  ;;  %v3760_v19 = vshrl.u32 %v13438_v57, 16  ;;  %v4003_v26 = vld [vmem:[#allocation2 + $0x74] sm:$0x1]  ;;  %v4199_v3 = vld [vmem:[#allocation2 + $0x20] sm:$0x1] }
 0x343   : > { %v3775_v22 = vrot.slane %v16557_v47, 4  ;;  %v3763_v33 = vshll.u32 %v13438_v57, 16  ;;  %v4257_v50 = vor.u32 %v4256_v46, %v4252_v41  ;;  %v3758_v28 = vrot.slane %v3754_v21, 4  ;;  %v16586_v4 = vld [vmem:[#allocation2 + $0x24] sm:$0xf] }
 0x344   : > { %v4248_v60 = vrot.slane %v4247_v51, 4  ;;  %v4000_v29 = vsel %vm16435_vm14, %v3757_v1, %v3999_v32  ;;  %v3782_v62 = vor.u32 %v3780_v18, %v3779_v8  ;;  %v3784_v40 = vrot.slane %v3779_v8, 4 }
 0x345   : > { %v3762_v17 = vrot.slane %v3760_v19, 7  ;;  %4001 = vst [vmem:[#allocation2 + $0x6c] sm:$0xf] %v4000_v29  ;;  %v4258_v37 = vrot.slane %v4257_v50, 4  ;;  %v4262_v47 = vrot.slane %v4260_v52, 5  ;;  %v4265_v14 = vshrl.u32 %v4165_v24, 16 }
 0x346   : > { %v4253_v36 = vsel %vm16407_vm5, %v4248_v60, %v4252_v41  ;;  %v3783_v44 = vsel %vm16441_vm3, %v3775_v22, %v3782_v62  ;;  %v4011_v55 = vsel %vm16447_vm4, %v3784_v40, %v4010_v23  ;;  %v4268_v15 = vshll.u32 %v4165_v24, 16  ;;  %v16768_v49 = vld [vmem:[#allocation2 + $0x78] sm:$0xf] }
 0x347   : > { %v3765_v61 = vor.u32 %v3763_v33, %v3762_v17  ;;  %v3767_v5 = vrot.slane %v3762_v17, 4  ;;  %4009 = vst.msk [vmem:[#allocation2 + $0x7c] sm:$0xf] %vm484_vm1, %v3783_v44  ;;  %4012 = vst [vmem:[#allocation2 + $0x80] sm:$0x1] %v4011_v55  ;;  %v4263_v11 = vsel %vm16407_vm5, %v4258_v37, %v4262_v47  ;;  %v4274_v25 = vshll.u32 %v4166_v53, 16 }
 0x348   : > { %v12924_v42 = vcombine.low %v4253_v36, %v4263_v11  ;;  %v4278_v32 = vshrl.u32 %v4166_v53, 16  ;;  %v4267_v48 = vrot.slane %v4265_v14, 4  ;;  %v4270_v56 = vrot.slane %v4268_v15, 5  ;;  %v16620_v36 = vld [vmem:[#allocation2 + $0x28] sm:$0xf] }
 0x349   : > { %v3766_v30 = vsel %vm16441_vm3, %v3758_v28, %v3765_v61  ;;  %v4004_v39 = vsel %vm16447_vm4, %v3767_v5, %v4003_v26  ;;  %v4276_v12 = vrot.slane %v4274_v25, 5  ;;  %v4284_v21 = vshll.u32 %v4199_v3, 16  ;;  %v4020_v5 = vld [vmem:[#allocation2 + $0x90] sm:$0xf]  ;;  %v4013_v25 = vld [vmem:[#allocation2 + $0x84] sm:$0xf] }
 0x34a   : > { %4002 = vst.msk [vmem:[#allocation2 + $0x70] sm:$0xf] %vm484_vm1, %v3766_v30  ;;  %4005 = vst [vmem:[#allocation2 + $0x74] sm:$0x1] %v4004_v39  ;;  %14233 = vmatmul.mubr.msk.bf16.vlgmr.msra.gmra.mrb[0].mxu1 %vm4665_vm6, %v12924_v42  ;;  %v4280_v34 = vrot.slane %v4278_v32, 4  ;;  %v3410_v13 = vadd.f32 %v16516_v27, %v16425_v63  ;;  %v3408_v57 = vadd.f32 %v16425_v63, %v16518_v54  ;;  %v4289_v1 = vshrl.u32 %v16586_v4, 16 }
 0x34b   : > { %v3411_v51 = vadd.f32 %v16521_v2, %v16425_v63  ;;  %v4271_v41 = vor.u32 %v4270_v56, %v4267_v48  ;;  %v4286_v46 = vrot.slane %v4284_v21, 5  ;;  %14265 = vmatpush3.bf16.msra.mxu1 %v16419_v59  ;;  %v3409_v52 = vadd.f32 %v16425_v63, %v16523_v16  ;;  %v16613_v27 = vld [vmem:[%s20752_s3 + $0x20] sm:$0xff]   ;;  %v4024_v48 = vld [vmem:[#allocation2 + $0x98] sm:$0x1] }
 0x34c   : > { %v4281_v8 = vor.u32 %v4280_v34, %v4276_v12  ;;  %vm3442_vm12 = vcmp.ge.f32.partialorder %v3410_v13, 0.0  ;;  %v3474_v18 = vmul.f32 0.1, %v3410_v13  ;;  %vm3440_vm13 = vcmp.ge.f32.partialorder %v3408_v57, 0.0  ;;  %14266 = vmatprep.subr.bf16.mxu1 %v15296_v43 }
 0x34d   : > { %v4272_v54 = vrot.slane %v4271_v41, 4  ;;  %v3472_v2 = vmul.f32 0.1, %v3408_v57  ;;  %vm3443_vm15 = vcmp.ge.f32.partialorder %v3411_v51, 0.0  ;;  %v3475_v19 = vmul.f32 0.1, %v3411_v51 }
 0x34e   : > { %v4282_v59 = vrot.slane %v4281_v8, 4  ;;  %v3506_v22 = vsel %vm3442_vm12, %v3410_v13, %v3474_v18  ;;  %vm3441_vm7 = vcmp.ge.f32.partialorder %v3409_v52, 0.0  ;;  %v3473_v16 = vmul.f32 0.1, %v3409_v52  ;;  %v16626_v41 = vld [vmem:[#allocation2 + $0x30] sm:$0xf] }
 0x34f   : > { %v4277_v23 = vsel %vm16407_vm5, %v4272_v54, %v4276_v12  ;;  %v13443_v33 = vpack.c.bf16 %v3506_v22, %v3506_v22  ;;  %v3504_v60 = vsel %vm3440_vm13, %v3408_v57, %v3472_v2  ;;  %v3507_v50 = vsel %vm3443_vm15, %v3411_v51, %v3475_v19  ;;  %14267 = vmatpush3.bf16.msra.mxu1 %v15296_v43  ;;  %v4017_v51 = vld [vmem:[#allocation2 + $0x8c] sm:$0x1]  ;;  %v16630_v18 = vld [vmem:[#allocation2 + $0x34] sm:$0xf]  ;;  %v4201_v22 = vld [vmem:[#allocation2 + $0x38] sm:$0x1] }
 0x350   : > { %v4287_v29 = vsel %vm16407_vm5, %v4282_v59, %v4286_v46  ;;  %v13441_v62 = vpack.c.bf16 %v3504_v60, %v3504_v60  ;;  %v13444_v40 = vpack.c.bf16 %v3507_v50, %v3507_v50  ;;  %v3505_v17 = vsel %vm3441_vm7, %v3409_v52, %v3473_v16  ;;  %14300 = vmatprep.subr.bf16.mxu1 %v16613_v27 }
 0x351   : > { %v12925_v24 = vcombine.low %v4277_v23, %v4287_v29  ;;  %v3803_v53 = vshrl.u32 %v13443_v33, 16  ;;  %v3806_v28 = vshll.u32 %v13443_v33, 16  ;;  %v13442_v26 = vpack.c.bf16 %v3505_v17, %v3505_v17 }
 0x352   : > { %v3786_v37 = vshrl.u32 %v13441_v62, 16  ;;  %v3789_v47 = vshll.u32 %v13441_v62, 16  ;;  %v3811_v44 = vshrl.u32 %v13444_v40, 16  ;;  %v3814_v55 = vshll.u32 %v13444_v40, 16 }
 0x353   : > { %14236 = vmatprep.mubr.msk.bf16.mxu1 %vm4665_vm6, %v12925_v24  ;;  %v3805_v61 = vrot.slane %v3803_v53, 7  ;;  %v3794_v3 = vshrl.u32 %v13442_v26, 16  ;;  %v3797_v11 = vshll.u32 %v13442_v26, 16  ;;  %v4291_v14 = vrot.slane %v4289_v1, 4  ;;  %v4200_v1 = vld [vmem:[#allocation2 + $0x2c] sm:$0x1] }
 0x354   : > { %v3788_v15 = vrot.slane %v3786_v37, 7  ;;  %v3813_v30 = vrot.slane %v3811_v44, 7  ;;  %v4292_v39 = vshll.u32 %v16586_v4, 16  ;;  %v4298_v42 = vshll.u32 %v16620_v36, 16 }
 0x355   : > { %v3808_v32 = vor.u32 %v3806_v28, %v3805_v61  ;;  %v3809_v43 = vrot.slane %v3805_v61, 4  ;;  %v3796_v56 = vrot.slane %v3794_v3, 7  ;;  %v4302_v12 = vshrl.u32 %v16620_v36, 16 }
 0x356   : > { %v3791_v21 = vor.u32 %v3789_v47, %v3788_v15  ;;  %v3792_v34 = vrot.slane %v3788_v15, 4  ;;  %v3816_v13 = vor.u32 %v3814_v55, %v3813_v30  ;;  %v3818_v57 = vrot.slane %v3813_v30, 4  ;;  %v16648_v55 = vld [vmem:[#allocation2 + $0x3c] sm:$0xf] }
 0x357   : > { %v4021_v46 = vsel %vm16435_vm14, %v3808_v32, %v4020_v5  ;;  %v3799_v52 = vor.u32 %v3797_v11, %v3796_v56  ;;  %v3801_v4 = vrot.slane %v3796_v56, 4  ;;  %v4294_v8 = vrot.slane %v4292_v39, 5 }
 0x358   : > { %4022 = vst [vmem:[#allocation2 + $0x90] sm:$0xf] %v4021_v46  ;;  %v4014_v54 = vsel %vm16435_vm14, %v3791_v21, %v4013_v25  ;;  %v3817_v2 = vsel %vm16441_vm3, %v3809_v43, %v3816_v13  ;;  %v4025_v19 = vsel %vm16447_vm4, %v3818_v57, %v4024_v48  ;;  %v4300_v59 = vrot.slane %v4298_v42, 5 }
 0x359   : > { %4015 = vst [vmem:[#allocation2 + $0x84] sm:$0xf] %v4014_v54  ;;  %4023 = vst.msk [vmem:[#allocation2 + $0x94] sm:$0xf] %vm484_vm1, %v3817_v2  ;;  %v3800_v16 = vsel %vm16441_vm3, %v3792_v34, %v3799_v52  ;;  %v4018_v23 = vsel %vm16447_vm4, %v3801_v4, %v4017_v51  ;;  %v4295_v33 = vor.u32 %v4294_v8, %v4291_v14  ;;  %v4304_v60 = vrot.slane %v4302_v12, 4 }
 0x35a   : > { %4026 = vst [vmem:[#allocation2 + $0x98] sm:$0x1] %v4025_v19  ;;  %4016 = vst.msk [vmem:[#allocation2 + $0x88] sm:$0xf] %vm484_vm1, %v3800_v16  ;;  %v4308_v50 = vshll.u32 %v4200_v1, 16  ;;  %v4313_v29 = vshrl.u32 %v16626_v41, 16  ;;  %v3414_v15 = vadd.f32 %v16540_v6, %v16425_v63  ;;  %v3412_v25 = vadd.f32 %v16425_v63, %v16547_v38 }
 0x35b   : > { %4019 = vst [vmem:[#allocation2 + $0x8c] sm:$0x1] %v4018_v23  ;;  %v4316_v62 = vshll.u32 %v16626_v41, 16  ;;  %v4322_v40 = vshll.u32 %v16630_v18, 16  ;;  %v4296_v17 = vrot.slane %v4295_v33, 4  ;;  %v4305_v24 = vor.u32 %v4304_v60, %v4300_v59 }
 0x35c   : > { %v4326_v53 = vshrl.u32 %v16630_v18, 16  ;;  %v4332_v28 = vshll.u32 %v4201_v22, 16  ;;  %v4310_v26 = vrot.slane %v4308_v50, 5  ;;  %v4315_v37 = vrot.slane %v4313_v29, 4  ;;  %v16668_v4 = vld [vmem:[#allocation2 + $0x40] sm:$0xf] }
 0x35d   : > { %v4318_v47 = vrot.slane %v4316_v62, 5  ;;  %v4324_v44 = vrot.slane %v4322_v40, 5  ;;  %v4301_v61 = vsel %vm16407_vm5, %v4296_v17, %v4300_v59  ;;  %v4306_v5 = vrot.slane %v4305_v24, 4  ;;  %v4034_v62 = vld [vmem:[#allocation2 + $0xa8] sm:$0xf] }
 0x35e   : > { %v4328_v3 = vrot.slane %v4326_v53, 4  ;;  %v4334_v11 = vrot.slane %v4332_v28, 5  ;;  %v3415_v30 = vadd.f32 %v16549_v7, %v16425_v63  ;;  %v3413_v32 = vadd.f32 %v16425_v63, %v16551_v31 }
 0x35f   : > { %v4319_v14 = vor.u32 %v4318_v47, %v4315_v37  ;;  %v4311_v39 = vsel %vm16407_vm5, %v4306_v5, %v4310_v26  ;;  %v4337_v43 = vshrl.u32 %v16648_v55, 16  ;;  %vm3446_vm2 = vcmp.ge.f32.partialorder %v3414_v15, 0.0  ;;  %v4027_v37 = vld [vmem:[#allocation2 + $0x9c] sm:$0xf] }
 0x360   : > { %v4329_v42 = vor.u32 %v4328_v3, %v4324_v44  ;;  %v12926_v48 = vcombine.low %v4301_v61, %v4311_v39  ;;  %v3478_v12 = vmul.f32 0.1, %v3414_v15  ;;  %vm3444_vm8 = vcmp.ge.f32.partialorder %v3412_v25, 0.0  ;;  %v4038_v3 = vld [vmem:[#allocation2 + $0xb0] sm:$0x1] }
 0x361   : > { %v4320_v56 = vrot.slane %v4319_v14, 4  ;;  %v3476_v21 = vmul.f32 0.1, %v3412_v25  ;;  %vm3447_vm9 = vcmp.ge.f32.partialorder %v3415_v30, 0.0  ;;  %v3479_v34 = vmul.f32 0.1, %v3415_v30 }
 0x362   : > { %v4330_v6 = vrot.slane %v4329_v42, 4  ;;  %14237 = vmatmul.mubr.msk.bf16.gmra.mrb[4].mxu1 %vm4665_vm6, %v12926_v48  ;;  %v3510_v7 = vsel %vm3446_vm2, %v3414_v15, %v3478_v12  ;;  %vm3445_vm10 = vcmp.ge.f32.partialorder %v3413_v32, 0.0  ;;  %v3477_v57 = vmul.f32 0.1, %v3413_v32  ;;  %v16673_v14 = vld [vmem:[#allocation2 + $0x44] sm:$0x1] }
 0x363   : > { %v4325_v38 = vsel %vm16407_vm5, %v4320_v56, %v4324_v44  ;;  %v13447_v31 = vpack.c.bf16 %v3510_v7, %v3510_v7  ;;  %v3508_v13 = vsel %vm3444_vm8, %v3412_v25, %v3476_v21  ;;  %v3511_v52 = vsel %vm3447_vm9, %v3415_v30, %v3479_v34  ;;  %v4031_v42 = vld [vmem:[#allocation2 + $0xa4] sm:$0x1]  ;;  %v16682_v21 = vld [vmem:[#allocation2 + $0x4c] sm:$0xf] }
 0x364   : > { %v4335_v63 = vsel %vm16407_vm5, %v4330_v6, %v4334_v11  ;;  %v13445_v46 = vpack.c.bf16 %v3508_v13, %v3508_v13  ;;  %v4339_v1 = vrot.slane %v4337_v43, 4  ;;  %v13448_v2 = vpack.c.bf16 %v3511_v52, %v3511_v52  ;;  %v16678_v43 = vld [vmem:[#allocation2 + $0x48] sm:$0xf] }
 0x365   : > { %v12927_v51 = vcombine.low %v4325_v38, %v4335_v63  ;;  %v3837_v8 = vshrl.u32 %v13447_v31, 16  ;;  %v3840_v54 = vshll.u32 %v13447_v31, 16  ;;  %v3509_v19 = vsel %vm3445_vm10, %v3413_v32, %v3477_v57  ;;  %v16689_v31 = vld [vmem:[#allocation2 + $0x50] sm:$0x1] }
 0x366   : > { %v3820_v59 = vshrl.u32 %v13445_v46, 16  ;;  %v3823_v22 = vshll.u32 %v13445_v46, 16  ;;  %v13446_v16 = vpack.c.bf16 %v3509_v19, %v3509_v19  ;;  %v4340_v23 = vshll.u32 %v16648_v55, 16 }
 0x367   : > { %14240 = vmatprep.mubr.msk.bf16.mxu1 %vm4665_vm6, %v12927_v51  ;;  %v3839_v33 = vrot.slane %v3837_v8, 7  ;;  %v3845_v60 = vshrl.u32 %v13448_v2, 16  ;;  %v3848_v50 = vshll.u32 %v13448_v2, 16  ;;  %v4346_v29 = vshll.u32 %v16668_v4, 16 }
 0x368   : > { %v3822_v40 = vrot.slane %v3820_v59, 7  ;;  %v3828_v17 = vshrl.u32 %v13446_v16, 16  ;;  %v3831_v24 = vshll.u32 %v13446_v16, 16  ;;  %v4342_v53 = vrot.slane %v4340_v23, 5 }
 0x369   : > { %v3842_v28 = vor.u32 %v3840_v54, %v3839_v33  ;;  %v3843_v26 = vrot.slane %v3839_v33, 4  ;;  %v3847_v47 = vrot.slane %v3845_v60, 7  ;;  %v4348_v44 = vrot.slane %v4346_v29, 5 }
 0x36a   : > { %v3825_v61 = vor.u32 %v3823_v22, %v3822_v40  ;;  %v3826_v5 = vrot.slane %v3822_v40, 4  ;;  %v3830_v11 = vrot.slane %v3828_v17, 7  ;;  %v4343_v15 = vor.u32 %v4342_v53, %v4339_v1  ;;  %v15426_v22 = vld [vmem:[%s20751_s2] ss:$0 sm:$0xff] }
 0x36b   : > { %v4035_v25 = vsel %vm16435_vm14, %v3842_v28, %v4034_v62  ;;  %v3850_v30 = vor.u32 %v3848_v50, %v3847_v47  ;;  %v3852_v39 = vrot.slane %v3847_v47, 4  ;;  %v4350_v32 = vshrl.u32 %v16668_v4, 16 }
 0x36c   : > { %4036 = vst [vmem:[#allocation2 + $0xa8] sm:$0xf] %v4035_v25  ;;  %v4028_v48 = vsel %vm16435_vm14, %v3825_v61, %v4027_v37  ;;  %v3833_v56 = vor.u32 %v3831_v24, %v3830_v11  ;;  %v3835_v12 = vrot.slane %v3830_v11, 4  ;;  %v4344_v6 = vrot.slane %v4343_v15, 4  ;;  %v16714_v15 = vld [vmem:[#allocation2 + $0x54] sm:$0xf] }
 0x36d   : > { %4029 = vst [vmem:[#allocation2 + $0x9c] sm:$0xf] %v4028_v48  ;;  %v3851_v38 = vsel %vm16441_vm3, %v3843_v26, %v3850_v30  ;;  %v4039_v7 = vsel %vm16447_vm4, %v3852_v39, %v4038_v3  ;;  %v4352_v34 = vrot.slane %v4350_v32, 4  ;;  %v4356_v63 = vshll.u32 %v16673_v14, 16 }
 0x36e   : > { %4037 = vst.msk [vmem:[#allocation2 + $0xac] sm:$0xf] %vm484_vm1, %v3851_v38  ;;  %4040 = vst [vmem:[#allocation2 + $0xb0] sm:$0x1] %v4039_v7  ;;  %v3834_v13 = vsel %vm16441_vm3, %v3826_v5, %v3833_v56  ;;  %v4032_v57 = vsel %vm16447_vm4, %v3835_v12, %v4031_v42  ;;  %v4349_v51 = vsel %vm16407_vm5, %v4344_v6, %v4348_v44  ;;  %v4361_v46 = vshrl.u32 %v16678_v43, 16 }
 0x36f   : > { %4030 = vst.msk [vmem:[#allocation2 + $0xa0] sm:$0xf] %vm484_vm1, %v3834_v13  ;;  %4033 = vst [vmem:[#allocation2 + $0xa4] sm:$0x1] %v4032_v57  ;;  %v4353_v52 = vor.u32 %v4352_v34, %v4348_v44  ;;  %v4358_v1 = vrot.slane %v4356_v63, 5  ;;  %v4364_v8 = vshll.u32 %v16678_v43, 16  ;;  %v3418_v16 = vadd.f32 %v15426_v22, %v16569_v0 }
 0x370   : > { %v4370_v54 = vshll.u32 %v16682_v21, 16  ;;  %v4363_v2 = vrot.slane %v4361_v46, 4  ;;  %v4374_v19 = vshrl.u32 %v16682_v21, 16  ;;  %v4380_v59 = vshll.u32 %v16689_v31, 16  ;;  %v4041_v38 = vld [vmem:[#allocation2 + $0xb4] sm:$0xf] }
 0x371   : > { %v4354_v23 = vrot.slane %v4353_v52, 4  ;;  %v4366_v33 = vrot.slane %v4364_v8, 5  ;;  %v3416_v50 = vadd.f32 %v15426_v22, %v16571_v20  ;;  %vm3450_vm11 = vcmp.ge.f32.partialorder %v3418_v16, 0.0 }
 0x372   : > { %v4372_v60 = vrot.slane %v4370_v54, 5  ;;  %v4376_v29 = vrot.slane %v4374_v19, 4  ;;  %v4382_v62 = vrot.slane %v4380_v59, 5  ;;  %v3482_v40 = vmul.f32 0.1, %v3418_v16 }
 0x373   : > { %v4359_v17 = vsel %vm16407_vm5, %v4354_v23, %v4358_v1  ;;  %v4367_v24 = vor.u32 %v4366_v33, %v4363_v2  ;;  %vm3448_vm12 = vcmp.ge.f32.partialorder %v3416_v50, 0.0  ;;  %v3480_v53 = vmul.f32 0.1, %v3416_v50  ;;  %v16726_v54 = vld [vmem:[#allocation2 + $0x5c] sm:$0x1] }
 0x374   : > { %v12928_v28 = vcombine.low %v4349_v51, %v4359_v17  ;;  %v4377_v26 = vor.u32 %v4376_v29, %v4372_v60  ;;  %v3514_v37 = vsel %vm3450_vm11, %v3418_v16, %v3482_v40  ;;  %v3419_v0 = vadd.f32 %v15426_v22, %v16573_v35  ;;  %v16718_v35 = vld [vmem:[#allocation2 + $0x58] sm:$0xf] }
 0x375   : > { %v4368_v47 = vrot.slane %v4367_v24, 4  ;;  %v13451_v44 = vpack.c.bf16 %v3514_v37, %v3514_v37  ;;  %v3512_v61 = vsel %vm3448_vm12, %v3416_v50, %v3480_v53  ;;  %v3417_v20 = vadd.f32 %v15426_v22, %v16575_v58  ;;  %v4048_v58 = vld [vmem:[#allocation2 + $0xc0] sm:$0xf] }
 0x376   : > { %14241 = vmatmul.mubr.msk.bf16.gmra.mrb[8].mxu1 %vm4665_vm6, %v12928_v28  ;;  %v4378_v5 = vrot.slane %v4377_v26, 4  ;;  %v13449_v3 = vpack.c.bf16 %v3512_v61, %v3512_v61  ;;  %vm3451_vm13 = vcmp.ge.f32.partialorder %v3419_v0, 0.0  ;;  %v3483_v11 = vmul.f32 0.1, %v3419_v0  ;;  %v16731_v50 = vld [vmem:[#allocation2 + $0x60] sm:$0xf] }
 0x377   : > { %v4373_v25 = vsel %vm16407_vm5, %v4368_v47, %v4372_v60  ;;  %v3871_v30 = vshrl.u32 %v13451_v44, 16  ;;  %v3874_v39 = vshll.u32 %v13451_v44, 16  ;;  %vm3449_vm15 = vcmp.ge.f32.partialorder %v3417_v20, 0.0  ;;  %v4045_v47 = vld [vmem:[#allocation2 + $0xbc] sm:$0x1] }
 0x378   : > { %v4383_v42 = vsel %vm16407_vm5, %v4378_v5, %v4382_v62  ;;  %v3854_v32 = vshrl.u32 %v13449_v3, 16  ;;  %v3857_v48 = vshll.u32 %v13449_v3, 16  ;;  %v3515_v56 = vsel %vm3451_vm13, %v3419_v0, %v3483_v11  ;;  %v4052_v62 = vld [vmem:[#allocation2 + $0xc8] sm:$0x1]  ;;  %v16737_v0 = vld [vmem:[#allocation2 + $0x64] sm:$0xf] }
 0x379   : > { %v12929_v12 = vcombine.low %v4373_v25, %v4383_v42  ;;  %v3873_v6 = vrot.slane %v3871_v30, 7  ;;  %v13452_v7 = vpack.c.bf16 %v3515_v56, %v3515_v56  ;;  %v3481_v34 = vmul.f32 0.1, %v3417_v20  ;;  %v16744_v25 = vld [vmem:[#allocation2 + $0x68] sm:$0x1] }
 0x37a   : > { %v3856_v63 = vrot.slane %v3854_v32, 7  ;;  %v4385_v13 = vshrl.u32 %v16714_v15, 16  ;;  %v4388_v57 = vshll.u32 %v16714_v15, 16  ;;  %v4394_v51 = vshll.u32 %v16718_v35, 16  ;;  %v16751_v56 = vld [vmem:[#allocation2 + $0x70] sm:$0xf] }
 0x37b   : > { %14244 = vmatprep.mubr.msk.bf16.mxu1 %vm4665_vm6, %v12929_v12  ;;  %v3876_v46 = vor.u32 %v3874_v39, %v3873_v6  ;;  %v3877_v52 = vrot.slane %v3873_v6, 4  ;;  %v3879_v1 = vshrl.u32 %v13452_v7, 16  ;;  %v3882_v8 = vshll.u32 %v13452_v7, 16  ;;  %v16747_v39 = vld [vmem:[#allocation2 + $0x6c] sm:$0xf] }
 0x37c   : > { %v3859_v2 = vor.u32 %v3857_v48, %v3856_v63  ;;  %v3860_v19 = vrot.slane %v3856_v63, 4  ;;  %v3513_v59 = vsel %vm3449_vm15, %v3417_v20, %v3481_v34  ;;  %v4387_v22 = vrot.slane %v4385_v13, 4 }
 0x37d   : > { %v4049_v16 = vsel %vm16435_vm14, %v3876_v46, %v4048_v58  ;;  %v3881_v23 = vrot.slane %v3879_v1, 7  ;;  %v13450_v33 = vpack.c.bf16 %v3513_v59, %v3513_v59  ;;  %v4390_v60 = vrot.slane %v4388_v57, 5 }
 0x37e   : > { %4050 = vst [vmem:[#allocation2 + $0xc0] sm:$0xf] %v4049_v16  ;;  %v4042_v29 = vsel %vm16435_vm14, %v3859_v2, %v4041_v38  ;;  %v4396_v40 = vrot.slane %v4394_v51, 5  ;;  %v4398_v17 = vshrl.u32 %v16718_v35, 16  ;;  %v4404_v24 = vshll.u32 %v16726_v54, 16 }
 0x37f   : > { %4043 = vst [vmem:[#allocation2 + $0xb4] sm:$0xf] %v4042_v29  ;;  %v3884_v53 = vor.u32 %v3882_v8, %v3881_v23  ;;  %v3886_v28 = vrot.slane %v3881_v23, 4  ;;  %v3862_v26 = vshrl.u32 %v13450_v33, 16  ;;  %v3865_v37 = vshll.u32 %v13450_v33, 16 }
 0x380   : > { %v4391_v44 = vor.u32 %v4390_v60, %v4387_v22  ;;  %v4400_v61 = vrot.slane %v4398_v17, 4  ;;  %v4406_v20 = vrot.slane %v4404_v24, 5  ;;  %v4409_v9 = vshrl.u32 %v16731_v50, 16  ;;  %v16761_v8 = vld [vmem:[#allocation2 + $0x74] sm:$0x1] }
 0x381   : > { %v3885_v5 = vsel %vm16441_vm3, %v3877_v52, %v3884_v53  ;;  %v4053_v3 = vsel %vm16447_vm4, %v3886_v28, %v4052_v62  ;;  %v3864_v11 = vrot.slane %v3862_v26, 7  ;;  %v4412_v30 = vshll.u32 %v16731_v50, 16  ;;  %v16771_v60 = vld [vmem:[#allocation2 + $0x7c] sm:$0xf]  ;;  %v16775_v24 = vld [vmem:[#allocation2 + $0x80] sm:$0x1] }
 0x382   : > { %4051 = vst.msk [vmem:[#allocation2 + $0xc4] sm:$0xf] %vm484_vm1, %v3885_v5  ;;  %4054 = vst [vmem:[#allocation2 + $0xc8] sm:$0x1] %v4053_v3  ;;  %v4392_v42 = vrot.slane %v4391_v44, 4  ;;  %v4401_v58 = vor.u32 %v4400_v61, %v4396_v40  ;;  %v4411_v32 = vrot.slane %v4409_v9, 4 }
 0x383   : > { %v4418_v48 = vshll.u32 %v16737_v0, 16  ;;  %v3867_v12 = vor.u32 %v3865_v37, %v3864_v11  ;;  %v3869_v6 = vrot.slane %v3864_v11, 4  ;;  %v4414_v38 = vrot.slane %v4412_v30, 5  ;;  %v16782_v9 = vld [vmem:[#allocation2 + $0x84] sm:$0xf] }
 0x384   : > { %v4422_v7 = vshrl.u32 %v16737_v0, 16  ;;  %v4397_v34 = vsel %vm16407_vm5, %v4392_v42, %v4396_v40  ;;  %v4402_v63 = vrot.slane %v4401_v58, 4  ;;  %v4428_v57 = vshll.u32 %v16744_v25, 16 }
 0x385   : > { %v4420_v13 = vrot.slane %v4418_v48, 5  ;;  %v3868_v51 = vsel %vm16441_vm3, %v3860_v19, %v3867_v12  ;;  %v4046_v46 = vsel %vm16447_vm4, %v3869_v6, %v4045_v47  ;;  %v4415_v52 = vor.u32 %v4414_v38, %v4411_v32  ;;  %v16788_v12 = vld [vmem:[#allocation2 + $0x88] sm:$0xf] }
 0x386   : > { %v4424_v1 = vrot.slane %v4422_v7, 4  ;;  %4044 = vst.msk [vmem:[#allocation2 + $0xb8] sm:$0xf] %vm484_vm1, %v3868_v51  ;;  %4047 = vst [vmem:[#allocation2 + $0xbc] sm:$0x1] %v4046_v46  ;;  %v4407_v2 = vsel %vm16407_vm5, %v4402_v63, %v4406_v20  ;;  %v4430_v59 = vrot.slane %v4428_v57, 5 }
 0x387   : > { %v4433_v22 = vshrl.u32 %v16747_v39, 16  ;;  %v4436_v16 = vshll.u32 %v16747_v39, 16  ;;  %v12930_v19 = vcombine.low %v4397_v34, %v4407_v2  ;;  %v4416_v10 = vrot.slane %v4415_v52, 4  ;;  %v16795_v51 = vld [vmem:[#allocation2 + $0x8c] sm:$0x1] }
 0x388   : > { %v4425_v23 = vor.u32 %v4424_v1, %v4420_v13  ;;  %v4442_v33 = vshll.u32 %v16751_v56, 16  ;;  %v4446_v40 = vshrl.u32 %v16751_v56, 16  ;;  %v4452_v17 = vshll.u32 %v16761_v8, 16 }
 0x389   : > { %v4435_v29 = vrot.slane %v4433_v22, 4  ;;  %v4438_v62 = vrot.slane %v4436_v16, 5  ;;  %14245 = vmatmul.mubr.msk.bf16.gmra.mrb[12].mxu1 %vm4665_vm6, %v12930_v19  ;;  %v4421_v53 = vsel %vm16407_vm5, %v4416_v10, %v4420_v13  ;;  %v4457_v37 = vshrl.u32 %v16768_v49, 16  ;;  %v16799_v22 = vld [vmem:[#allocation2 + $0x90] sm:$0xf] }
 0x38a   : > { %v4426_v28 = vrot.slane %v4425_v23, 4  ;;  %v4444_v26 = vrot.slane %v4442_v33, 5  ;;  %v4448_v44 = vrot.slane %v4446_v40, 4  ;;  %v4454_v61 = vrot.slane %v4452_v17, 5  ;;  %v16804_v33 = vld [vmem:[#allocation2 + $0x94] sm:$0xf] }
 0x38b   : > { %v4439_v47 = vor.u32 %v4438_v62, %v4435_v29  ;;  %v4460_v20 = vshll.u32 %v16768_v49, 16  ;;  %v4459_v3 = vrot.slane %v4457_v37, 4  ;;  %v4466_v11 = vshll.u32 %v16771_v60, 16  ;;  %v16809_v37 = vld [vmem:[#allocation2 + $0x98] sm:$0x1] }
 0x38c   : > { %v4431_v5 = vsel %vm16407_vm5, %v4426_v28, %v4430_v59  ;;  %v4470_v30 = vshrl.u32 %v16771_v60, 16  ;;  %v4449_v32 = vor.u32 %v4448_v44, %v4444_v26  ;;  %v4476_v7 = vshll.u32 %v16775_v24, 16 }
 0x38d   : > { %v12931_v42 = vcombine.low %v4421_v53, %v4431_v5  ;;  %v4440_v58 = vrot.slane %v4439_v47, 4  ;;  %v4462_v48 = vrot.slane %v4460_v20, 5  ;;  %v4468_v6 = vrot.slane %v4466_v11, 5 }
 0x38e   : > { %v4472_v38 = vrot.slane %v4470_v30, 4  ;;  %v4481_v34 = vshrl.u32 %v16782_v9, 16  ;;  %v4450_v13 = vrot.slane %v4449_v32, 4  ;;  %v4484_v46 = vshll.u32 %v16782_v9, 16  ;;  %v16819_v32 = vld [vmem:[#allocation2 + $0xa0] sm:$0xf] }
 0x38f   : > { %14248 = vmatprep.mubr.msk.bf16.mxu1 %vm4665_vm6, %v12931_v42  ;;  %v4445_v63 = vsel %vm16407_vm5, %v4440_v58, %v4444_v26  ;;  %v4463_v57 = vor.u32 %v4462_v48, %v4459_v3  ;;  %v4478_v1 = vrot.slane %v4476_v7, 5  ;;  %v4490_v59 = vshll.u32 %v16788_v12, 16  ;;  %v16817_v3 = vld [vmem:[#allocation2 + $0x9c] sm:$0xf] }
 0x390   : > { %v4473_v52 = vor.u32 %v4472_v38, %v4468_v6  ;;  %v4483_v2 = vrot.slane %v4481_v34, 4  ;;  %v4455_v16 = vsel %vm16407_vm5, %v4450_v13, %v4454_v61  ;;  %v4486_v10 = vrot.slane %v4484_v46, 5  ;;  %v16823_v34 = vld [vmem:[#allocation2 + $0xa4] sm:$0x1] }
 0x391   : > { %v4464_v19 = vrot.slane %v4463_v57, 4  ;;  %v4494_v23 = vshrl.u32 %v16788_v12, 16  ;;  %v12932_v29 = vcombine.low %v4445_v63, %v4455_v16  ;;  %v4492_v40 = vrot.slane %v4490_v59, 5  ;;  %v16825_v63 = vld [vmem:[#allocation2 + $0xa8] sm:$0xf] }
 0x392   : > { %v4474_v62 = vrot.slane %v4473_v52, 4  ;;  %v4500_v17 = vshll.u32 %v16795_v51, 16  ;;  %v4487_v28 = vor.u32 %v4486_v10, %v4483_v2  ;;  %v4505_v47 = vshrl.u32 %v16799_v22, 16 }
 0x393   : > { %v4469_v53 = vsel %vm16407_vm5, %v4464_v19, %v4468_v6  ;;  %v4496_v26 = vrot.slane %v4494_v23, 4  ;;  %14249 = vmatmul.mubr.msk.bf16.gmra.mrb[16].mxu1 %vm4665_vm6, %v12932_v29  ;;  %v4508_v20 = vshll.u32 %v16799_v22, 16  ;;  %v4514_v5 = vshll.u32 %v16804_v33, 16 }
 0x394   : > { %v4479_v44 = vsel %vm16407_vm5, %v4474_v62, %v4478_v1  ;;  %v4502_v61 = vrot.slane %v4500_v17, 5  ;;  %v4488_v30 = vrot.slane %v4487_v28, 4  ;;  %v4507_v58 = vrot.slane %v4505_v47, 4  ;;  %v16832_v1 = vld [vmem:[#allocation2 + $0xac] sm:$0xf] }
 0x395   : > { %v12933_v11 = vcombine.low %v4469_v53, %v4479_v44  ;;  %v4497_v42 = vor.u32 %v4496_v26, %v4492_v40  ;;  %v4510_v48 = vrot.slane %v4508_v20, 5  ;;  %v4516_v6 = vrot.slane %v4514_v5, 5  ;;  %v16838_v26 = vld [vmem:[#allocation2 + $0xb0] sm:$0x1] }
 0x396   : > { %v4518_v38 = vshrl.u32 %v16804_v33, 16  ;;  %v4524_v7 = vshll.u32 %v16809_v37, 16  ;;  %v4493_v13 = vsel %vm16407_vm5, %v4488_v30, %v4492_v40  ;;  %v4529_v46 = vshrl.u32 %v16817_v3, 16 }
 0x397   : > { %14252 = vmatprep.mubr.msk.bf16.mxu1 %vm4665_vm6, %v12933_v11  ;;  %v4498_v57 = vrot.slane %v4497_v42, 4  ;;  %v4532_v52 = vshll.u32 %v16817_v3, 16  ;;  %v4511_v2 = vor.u32 %v4510_v48, %v4507_v58  ;;  %v4538_v19 = vshll.u32 %v16819_v32, 16  ;;  %v16842_v11 = vld [vmem:[#allocation2 + $0xb4] sm:$0xf] }
 0x398   : > { %v4520_v59 = vrot.slane %v4518_v38, 4  ;;  %v4526_v16 = vrot.slane %v4524_v7, 5  ;;  %v4531_v23 = vrot.slane %v4529_v46, 4  ;;  %v4542_v62 = vshrl.u32 %v16819_v32, 16  ;;  %v16849_v48 = vld [vmem:[#allocation2 + $0xb8] sm:$0xf] }
 0x399   : > { %v4503_v10 = vsel %vm16407_vm5, %v4498_v57, %v4502_v61  ;;  %v4534_v29 = vrot.slane %v4532_v52, 5  ;;  %v4512_v17 = vrot.slane %v4511_v2, 4  ;;  %v4540_v28 = vrot.slane %v4538_v19, 5  ;;  %v16854_v19 = vld [vmem:[#allocation2 + $0xbc] sm:$0x1] }
 0x39a   : > { %v12934_v40 = vcombine.low %v4493_v13, %v4503_v10  ;;  %v4521_v53 = vor.u32 %v4520_v59, %v4516_v6  ;;  %v4544_v44 = vrot.slane %v4542_v62, 4  ;;  %v4548_v20 = vshll.u32 %v16823_v34, 16 }
 0x39b   : > { %v4535_v47 = vor.u32 %v4534_v29, %v4531_v23  ;;  %v4553_v5 = vshrl.u32 %v16825_v63, 16  ;;  %v4517_v61 = vsel %vm16407_vm5, %v4512_v17, %v4516_v6  ;;  %v4556_v42 = vshll.u32 %v16825_v63, 16 }
 0x39c   : > { %14253 = vmatmul.mubr.msk.bf16.gmra.mrb[20].mxu1 %vm4665_vm6, %v12934_v40  ;;  %v4522_v30 = vrot.slane %v4521_v53, 4  ;;  %v4562_v58 = vshll.u32 %v16832_v1, 16  ;;  %v4545_v7 = vor.u32 %v4544_v44, %v4540_v28  ;;  %v4550_v13 = vrot.slane %v4548_v20, 5 }
 0x39d   : > { %v4536_v38 = vrot.slane %v4535_v47, 4  ;;  %v4555_v57 = vrot.slane %v4553_v5, 4  ;;  %v4558_v52 = vrot.slane %v4556_v42, 5  ;;  %v4566_v59 = vshrl.u32 %v16832_v1, 16 }
 0x39e   : > { %v4527_v46 = vsel %vm16407_vm5, %v4522_v30, %v4526_v16  ;;  %v4564_v2 = vrot.slane %v4562_v58, 5  ;;  %v4546_v10 = vrot.slane %v4545_v7, 4  ;;  %v4572_v23 = vshll.u32 %v16838_v26, 16 }
 0x39f   : > { %v12935_v6 = vcombine.low %v4517_v61, %v4527_v46  ;;  %v4559_v29 = vor.u32 %v4558_v52, %v4555_v57  ;;  %v4568_v62 = vrot.slane %v4566_v59, 4  ;;  %v4577_v40 = vshrl.u32 %v16842_v11, 16 }
 0x3a0   : > { %v4580_v17 = vshll.u32 %v16842_v11, 16  ;;  %v4541_v16 = vsel %vm16407_vm5, %v4536_v38, %v4540_v28  ;;  %v4551_v53 = vsel %vm16407_vm5, %v4546_v10, %v4550_v13  ;;  %v4586_v47 = vshll.u32 %v16849_v48, 16  ;;  %v16872_v10 = vld [vmem:[#allocation2 + $0x4] sm:$0xf] }
 0x3a1   : > { %14256 = vmatprep.mubr.msk.bf16.mxu1 %vm4665_vm6, %v12935_v6  ;;  %v4590_v44 = vshrl.u32 %v16849_v48, 16  ;;  %v12936_v20 = vcombine.low %v4541_v16, %v4551_v53  ;;  %v4560_v5 = vrot.slane %v4559_v29, 4  ;;  %v4569_v61 = vor.u32 %v4568_v62, %v4564_v2  ;;  %v15427_v6 = vld [vmem:[#allocation2] sm:$0xf] }
 0x3a2   : > { %v4579_v30 = vrot.slane %v4577_v40, 4  ;;  %v4582_v42 = vrot.slane %v4580_v17, 5  ;;  %v4588_v58 = vrot.slane %v4586_v47, 5  ;;  %v4596_v57 = vshll.u32 %v16854_v19, 16 }
 0x3a3   : > { %v4592_v7 = vrot.slane %v4590_v44, 4  ;;  %v4570_v46 = vrot.slane %v4569_v61, 4  ;;  %v4574_v28 = vrot.slane %v4572_v23, 5  ;;  %v4565_v13 = vsel %vm16407_vm5, %v4560_v5, %v4564_v2 }
 0x3a4   : > { %14257 = vmatmul.mubr.msk.bf16.gmra.mrb[24].mxu1 %vm4665_vm6, %v12936_v20  ;;  %v4583_v38 = vor.u32 %v4582_v42, %v4579_v30  ;;  %v12957_v29 = vcombine.low %v15427_v6, %v16872_v10  ;;  %v4598_v16 = vrot.slane %v4596_v57, 5  ;;  %v12964_v23 = vcombine.low %v16714_v15, %v16718_v35  ;;  %v5183_v6 = vld [vmem:[#allocation2 + $0x54] sm:$0xe] }
 0x3a5   : > { %v4593_v52 = vor.u32 %v4592_v7, %v4588_v58  ;;  %v4575_v59 = vsel %vm16407_vm5, %v4570_v46, %v4574_v28  ;;  %v12965_v53 = vcombine.low %v16731_v50, %v16737_v0  ;;  %v12966_v2 = vcombine.low %v16747_v39, %v16751_v56  ;;  %v16900_v46 = vld [vmem:[#allocation2 + $0x10] sm:$0xf]  ;;  %v5176_v50 = vld [vmem:[#allocation2] sm:$0xe] }
 0x3a6   : > { %v12937_v62 = vcombine.low %v4565_v13, %v4575_v59  ;;  %v4584_v40 = vrot.slane %v4583_v38, 4  ;;  %v12967_v47 = vcombine.low %v16768_v49, %v16771_v60  ;;  %v12968_v5 = vcombine.low %v16782_v9, %v16788_v12  ;;  %v15301_v38 = vld [vmem:[%s20752_s3 + $0x28] sm:$0xff]   ;;  %v16906_v13 = vld [vmem:[#allocation2 + $0x1c] sm:$0xf]  ;;  %v5188_v7 = vld [vmem:[#allocation2 + $0x90] sm:$0xe] }
 0x3a7   : > { %v4594_v17 = vrot.slane %v4593_v52, 4  ;;  %v15431_v52 = vld [vmem:[#allocation2 + $0x18] sm:$0xf]  ;;  %vm5224_vm1 = vcmask 1042432   ;;  %vm5225_vm14 = vcmask 1046532   ;;  %v5292_v57 = vrot.slane %v16751_v56, 5 }
 0x3a8   : > { %14260 = vmatprep.mubr.msk.bf16.mxu1 %vm4665_vm6, %v12937_v62  ;;  %v4589_v44 = vsel %vm16407_vm5, %v4584_v40, %v4588_v58  ;;  %v15429_v58 = vld [vmem:[#allocation2 + $0xc] sm:$0xf]  ;;  %v12959_v59 = vcombine.low %v15431_v52, %v16906_v13  ;;  %v16915_v62 = vld [vmem:[%s20752_s3 + $0x30] sm:$0xff]   ;;  %v12998_v40 = vrot.slane %v5183_v6, 9  ;;  %vm16921_vm3 = vmor %vm5224_vm1, %vm5225_vm14  ;;  %v12962_v52 = vcombine.low %v16648_v55, %v16668_v4 }
 0x3a9   : > { %v4599_v20 = vsel %vm16407_vm5, %v4594_v17, %v4598_v16  ;;  %v12958_v28 = vcombine.low %v15429_v58, %v16900_v46  ;;  %v5278_v17 = vrot.slane %v16718_v35, 5  ;;  %v15433_v16 = vld [vmem:[#allocation2 + $0x24] sm:$0xf]  ;;  %v5285_v58 = vrot.slane %v16737_v0, 5  ;;  %v15434_v0 = vld [vmem:[#allocation2 + $0x8] sm:$0x1] }
 0x3aa   : > { %v12938_v30 = vcombine.low %v4589_v44, %v4599_v20  ;;  %v12960_v44 = vcombine.low %v15433_v16, %v16620_v36  ;;  %v12961_v20 = vcombine.low %v16626_v41, %v16630_v18  ;;  %v5281_v36 = vrot.slane %v16726_v54, 5  ;;  %v5186_v16 = vld [vmem:[#allocation2 + $0x78] sm:$0xe] }
 0x3ab   : > { %v5280_v6 = vrot.slane %v5278_v17, 4  ;;  %v5287_v18 = vrot.slane %v5285_v58, 4  ;;  %v5295_v54 = vrot.slane %v16761_v8, 5  ;;  %v5323_v42 = vrot.slane %v16823_v34, 5 }
 0x3ac   : > { %14261 = vmatmul.mubr.msk.bf16.gmra.mrb[28].mxu1 %vm4665_vm6, %v12938_v30  ;;  %v5334_v34 = vrot.slane %v16849_v48, 5  ;;  %v20874_v15 = vcombine.low %v16799_v22, %v16804_v33  ;;  %v5229_v35 = vrot.slane %v16872_v10, 5  ;;  %v5232_v39 = vrot.slane %v15434_v0, 5  ;;  %v7626_v30 = vld [vmem:[#allocation2 + $0x60] sm:$0xf] }
 0x3ad   : > { %14268 = vmatprep.mubr.msk.bf16.mxu1 %vm4665_vm6, %v12957_v29  ;;  %v5184_v29 = vld [vmem:[#allocation2 + $0x60] sm:$0xe]  ;;  %v16942_v55 = vsel %vm16921_vm3, %v5280_v6, %v5281_v36  ;;  %v12963_v6 = vcombine.low %v16678_v43, %v16682_v21  ;;  %v5302_v36 = vrot.slane %v16775_v24, 5  ;;  %v12991_v56 = vrot.slane %v5176_v50, 9  ;;  %v5179_v50 = vld [vmem:[#allocation2 + $0x24] sm:$0xe] }
 0x3ae   : > { %v20875_v49 = vcombine.low %v16817_v3, %v16819_v32  ;;  %v5236_v22 = vrot.slane %v16900_v46, 5  ;;  %v20877_v3 = vcombine.low %v16842_v11, %v16849_v48  ;;  %v15438_v48 = vld [vmem:[#allocation2 + $0x34] sm:$0xf]  ;;  %vm8995_vm4 = vcmask 254977  }
 0x3af   : > { %v5230_v9 = vsel %vm16921_vm3, %v12991_v56, %v5229_v35  ;;  %vm9012_vm8 = vcmask 260102   ;;  %vm9213_vm12 = vcmask 254976   ;;  %vm9358_vm1 = vcmask 1046528  }
 0x3b4   : > { %14269 = vmatmul.mubr.msk.bf16.vlgmr.msra.gmra.mrb[0].mxu1 %vm4665_vm6, %v12958_v28  ;;  %v5185_v28 = vld [vmem:[#allocation2 + $0x6c] sm:$0xe] }
 0x3b5   : > { %14272 = vmatprep.mubr.msk.bf16.mxu1 %vm4665_vm6, %v12959_v59  ;;  %14301 = vmatpush3.bf16.msra.mxu1 %v16613_v27  ;;  %v12999_v27 = vrot.slane %v5184_v29, 9  ;;  %v16930_v59 = vsel %vm16921_vm3, %v12998_v40, %v5278_v17  ;;  %v5288_v29 = vrot.slane %v16744_v25, 5  ;;  %v13000_v4 = vrot.slane %v5185_v28, 9 }
 0x3b6   : > { %14302 = vmatprep.subr.bf16.mxu1 %v15301_v38  ;;  %v5294_v25 = vrot.slane %v5292_v57, 4  ;;  %v5316_v40 = vrot.slane %v16809_v37, 5 }
 0x3b7   : > { %v16935_v41 = vsel %vm16921_vm3, %v12999_v27, %v5285_v58  ;;  %v16950_v17 = vsel %vm16921_vm3, %v5287_v18, %v5288_v29  ;;  %v13001_v27 = vrot.slane %v5186_v16, 9  ;;  %v5187_v58 = vld [vmem:[#allocation2 + $0x84] sm:$0xe]  ;;  %v16961_v18 = vsel %vm16921_vm3, %v13000_v4, %v5292_v57  ;;  %v5189_v4 = vld [vmem:[#allocation2 + $0x9c] sm:$0xe] }
 0x3b8   : > { %v16965_v16 = vsel %vm16921_vm3, %v5294_v25, %v5295_v54  ;;  %v13002_v29 = vrot.slane %v5187_v58, 9  ;;  %v5313_v57 = vrot.slane %v16804_v33, 5  ;;  %v5190_v58 = vld [vmem:[#allocation2 + $0xa8] sm:$0xe]  ;;  %v5243_v33 = vrot.slane %v16906_v13, 5 }
 0x3b9   : > { %14303 = vmatpush3.bf16.msra.mxu1 %v15301_v38  ;;  %v5299_v38 = vrot.slane %v16771_v60, 5  ;;  %v20876_v60 = vcombine.low %v16825_v63, %v16832_v1  ;;  %v15437_v13 = vld [vmem:[#allocation2 + $0x28] sm:$0xf] }
 0x3ba   : > { %14336 = vmatprep.subr.bf16.mxu1 %v16915_v62  ;;  %v5315_v24 = vrot.slane %v5313_v57, 4  ;;  %v5245_v63 = vrot.slane %v5243_v33, 4 }
 0x3bb   : > { %v5301_v28 = vrot.slane %v5299_v38, 4  ;;  %v16969_v43 = vsel %vm16921_vm3, %v13001_v27, %v5299_v38  ;;  %v5309_v38 = vrot.slane %v16795_v51, 5  ;;  %v13003_v27 = vrot.slane %v5188_v7, 9 }
 0x3bc   : > { %14273 = vmatmul.mubr.msk.bf16.gmra.mrb[4].mxu1 %vm4665_vm6, %v12960_v44  ;;  %v5306_v44 = vrot.slane %v16788_v12, 5  ;;  %v13004_v51 = vrot.slane %v5189_v4, 9  ;;  %v5327_v7 = vrot.slane %v16832_v1, 5  ;;  %v17001_v37 = vsel %vm16921_vm3, %v5315_v24, %v5316_v40  ;;  %v5191_v4 = vld [vmem:[#allocation2 + $0xb4] sm:$0xe] }
 0x3bd   : > { %14276 = vmatprep.mubr.msk.bf16.mxu1 %vm4665_vm6, %v12961_v20  ;;  %v16976_v20 = vsel %vm16921_vm3, %v5301_v28, %v5302_v36  ;;  %v5320_v28 = vrot.slane %v16819_v32, 5  ;;  %v16994_v54 = vsel %vm16921_vm3, %v13003_v27, %v5313_v57  ;;  %v5330_v57 = vrot.slane %v16838_v26, 5  ;;  %v5177_v32 = vld [vmem:[#allocation2 + $0xc] sm:$0xe]  ;;  %v15435_v1 = vld [vmem:[#allocation2 + $0x14] sm:$0x1] }
 0x3be   : > { %v5308_v25 = vrot.slane %v5306_v44, 4  ;;  %v16984_v8 = vsel %vm16921_vm3, %v13002_v29, %v5306_v44  ;;  %v5329_v61 = vrot.slane %v5327_v7, 4  ;;  %v6764_v24 = vld [vmem:[#allocation2 + $0x90] sm:$0xe] }
 0x3bf   : > { %v5322_v29 = vrot.slane %v5320_v28, 4  ;;  %v17010_v27 = vsel %vm16921_vm3, %v13004_v51, %v5320_v28  ;;  %v5337_v51 = vrot.slane %v16854_v19, 5  ;;  %v5231_v19 = vrot.slane %v5229_v35, 4 }
 0x3c0   : > { %v16990_v36 = vsel %vm16921_vm3, %v5308_v25, %v5309_v38  ;;  %v13005_v38 = vrot.slane %v5190_v58, 9  ;;  %v5336_v58 = vrot.slane %v5334_v34, 4  ;;  %v6765_v25 = vld [vmem:[#allocation2 + $0x9c] sm:$0xe] }
 0x3c1   : > { %v13022_v44 = vcombine.low %v16984_v8, %v16990_v36  ;;  %v17014_v40 = vsel %vm16921_vm3, %v5322_v29, %v5323_v42  ;;  %v13006_v42 = vrot.slane %v5191_v4, 9  ;;  %v5233_v12 = vsel %vm16921_vm3, %v5231_v19, %v5232_v39  ;;  %v15439_v39 = vld [vmem:[#allocation2 + $0x2c] sm:$0x1]  ;;  %v5180_v19 = vld [vmem:[#allocation2 + $0x30] sm:$0xe] }
 0x3c2   : > { %v17022_v26 = vsel %vm16921_vm3, %v13005_v38, %v5327_v7  ;;  %v17037_v29 = vsel %vm16921_vm3, %v5336_v58, %v5337_v51  ;;  %v13011_v10 = vcombine.low %v5230_v9, %v5233_v12  ;;  %v5250_v38 = vrot.slane %v15437_v13, 5  ;;  %v15309_v51 = vld [vmem:[%s20752_s3 + $0x38] sm:$0xff]   ;;  %v17102_v9 = vld [vmem:[%s20752_s3 + $0x40] sm:$0xff]  }
 0x3c3   : > { %v5257_v4 = vrot.slane %v15438_v48, 5  ;;  %v5253_v56 = vrot.slane %v15439_v39, 5  ;;  %v12994_v12 = vrot.slane %v5179_v50, 9  ;;  %v6756_v50 = vld [vmem:[#allocation2 + $0x30] sm:$0xe] }
 0x3c4   : > { %14277 = vmatmul.mubr.msk.bf16.gmra.mrb[8].mxu1 %vm4665_vm6, %v12962_v52  ;;  %v17026_v52 = vsel %vm16921_vm3, %v5329_v61, %v5330_v57  ;;  %v12992_v61 = vrot.slane %v5177_v32, 9  ;;  %v5252_v35 = vrot.slane %v5250_v38, 4  ;;  %v17143_v39 = vld [vmem:[#allocation2 + $0x38] sm:$0x1] }
 0x3c5   : > { %14280 = vmatprep.mubr.msk.bf16.mxu1 %vm4665_vm6, %v12963_v6  ;;  %v17033_v6 = vsel %vm16921_vm3, %v13006_v42, %v5334_v34  ;;  %v5259_v0 = vrot.slane %v5257_v4, 4  ;;  %v5251_v32 = vsel %vm16921_vm3, %v12994_v12, %v5250_v38  ;;  %v17150_v12 = vld [vmem:[#allocation2 + $0x44] sm:$0x1] }
 0x3c6   : > { %v5237_v34 = vsel %vm16921_vm3, %v12992_v61, %v5236_v22  ;;  %v5182_v61 = vld [vmem:[#allocation2 + $0x48] sm:$0xe] }
 0x3cc   : > { %14281 = vmatmul.mubr.msk.bf16.gmra.mrb[12].mxu1 %vm4665_vm6, %v12964_v23  ;;  %v5238_v23 = vrot.slane %v5236_v22, 4  ;;  %v5254_v22 = vsel %vm16921_vm3, %v5252_v35, %v5253_v56  ;;  %v17145_v56 = vld [vmem:[#allocation2 + $0x40] sm:$0xf] }
 0x3cd   : > { %14284 = vmatprep.mubr.msk.bf16.mxu1 %vm4665_vm6, %v12965_v53  ;;  %v5239_v53 = vrot.slane %v15435_v1, 5 }
 0x3cf   : > { %v5240_v46 = vsel %vm16921_vm3, %v5238_v23, %v5239_v53  ;;  %v12995_v23 = vrot.slane %v5180_v19, 9  ;;  %v6757_v19 = vld [vmem:[#allocation2 + $0x3c] sm:$0xe] }
 0x3d0   : > { %v13012_v42 = vcombine.low %v5237_v34, %v5240_v46  ;;  %v5274_v46 = vrot.slane %v16689_v31, 5  ;;  %v17130_v31 = vld [vmem:[#allocation2 + $0x2c] sm:$0x1] }
 0x3d1   : > { %v5258_v1 = vsel %vm16921_vm3, %v12995_v23, %v5257_v4 }
 0x3d4   : > { %14285 = vmatmul.mubr.msk.bf16.gmra.mrb[16].mxu1 %vm4665_vm6, %v12966_v2  ;;  %v5178_v2 = vld [vmem:[#allocation2 + $0x18] sm:$0xe] }
 0x3d5   : > { %14288 = vmatprep.mubr.msk.bf16.mxu1 %vm4665_vm6, %v12967_v47  ;;  %v15436_v47 = vld [vmem:[#allocation2 + $0x20] sm:$0x1]  ;;  %v12993_v57 = vrot.slane %v5178_v2, 9 }
 0x3d7   : > { %v5244_v58 = vsel %vm16921_vm3, %v12993_v57, %v5243_v33  ;;  %v15441_v33 = vld [vmem:[#allocation2 + $0x40] sm:$0xf]  ;;  %v12997_v57 = vrot.slane %v5182_v61, 9 }
 0x3dc   : > { %14289 = vmatmul.mubr.msk.bf16.gmra.mrb[20].mxu1 %vm4665_vm6, %v12968_v5  ;;  %v5246_v5 = vrot.slane %v15436_v47, 5  ;;  %v5181_v47 = vld [vmem:[#allocation2 + $0x3c] sm:$0xe] }
 0x3dd   : > { %14292 = vmatprep.mubr.msk.bf16.mxu1 %vm4665_vm6, %v20874_v15  ;;  %v12996_v13 = vrot.slane %v5181_v47, 9  ;;  %v6843_v47 = vrot.slane %v17143_v39, 5 }
 0x3de   : > { %v5247_v11 = vsel %vm16921_vm3, %v5245_v63, %v5246_v5  ;;  %v13014_v63 = vcombine.low %v5251_v32, %v5254_v22  ;;  %v17152_v22 = vld [vmem:[#allocation2 + $0x50] sm:$0x1]  ;;  %v6758_v32 = vld [vmem:[#allocation2 + $0x48] sm:$0xe] }
 0x3df   : > { %v13013_v15 = vcombine.low %v5244_v58, %v5247_v11  ;;  %v6755_v58 = vld [vmem:[#allocation2 + $0x24] sm:$0xe] }
 0x3e4   : > { %14293 = vmatmul.mubr.msk.bf16.gmra.mrb[24].mxu1 %vm4665_vm6, %v20875_v49  ;;  %v15440_v49 = vld [vmem:[#allocation2 + $0x38] sm:$0x1] }
 0x3e5   : > { %14296 = vmatprep.mubr.msk.bf16.mxu1 %vm4665_vm6, %v20876_v60  ;;  %v5260_v60 = vrot.slane %v15440_v49, 5  ;;  %v17147_v49 = vld [vmem:[#allocation2 + $0x4c] sm:$0xf] }
 0x3ec   : > { %14297 = vmatmul.mubr.msk.bf16.gmra.mrb[28].mxu1 %vm4665_vm6, %v20877_v3  ;;  %v5271_v3 = vrot.slane %v16682_v21, 5  ;;  %v5267_v21 = vrot.slane %v16673_v14, 5  ;;  %v17128_v14 = vld [vmem:[#allocation2 + $0x28] sm:$0xf] }
 0x3ed   : > { %14304 = vmatprep.mubr.msk.bf16.mxu1 %vm4665_vm6, %v13011_v10  ;;  %v5264_v10 = vrot.slane %v15441_v33, 5  ;;  %v6833_v35 = vrot.slane %v17128_v14, 5  ;;  %v13124_v33 = vrot.slane %v6756_v50, 9 }
 0x3ee   : > { %v5273_v5 = vrot.slane %v5271_v3, 4  ;;  %v5272_v34 = vsel %vm16921_vm3, %v12997_v57, %v5271_v3  ;;  %v6847_v3 = vrot.slane %v17145_v56, 5 }
 0x3ef   : > { %v5266_v2 = vrot.slane %v5264_v10, 4  ;;  %v5265_v48 = vsel %vm16921_vm3, %v12996_v13, %v5264_v10  ;;  %v6850_v13 = vrot.slane %v17150_v12, 5 }
 0x3f0   : > { %v5275_v11 = vsel %vm16921_vm3, %v5273_v5, %v5274_v46  ;;  %v6759_v5 = vld [vmem:[#allocation2 + $0x54] sm:$0xe]  ;;  %v6849_v46 = vrot.slane %v6847_v3, 4 }
 0x3f1   : > { %v5268_v38 = vsel %vm16921_vm3, %v5266_v2, %v5267_v21  ;;  %v17175_v21 = vld [vmem:[#allocation2 + $0x64] sm:$0xf] }
 0x3f2   : > { %v13016_v4 = vcombine.low %v5265_v48, %v5268_v38  ;;  %v6854_v38 = vrot.slane %v17147_v49, 5  ;;  %v6857_v48 = vrot.slane %v17152_v22, 5 }
 0x3f4   : > { %14305 = vmatmul.mubr.msk.bf16.vlgmr.msra.gmra.mrb[0].mxu1 %vm4665_vm6, %v13012_v42  ;;  %v13017_v42 = vcombine.low %v5272_v34, %v5275_v11  ;;  %v13126_v11 = vrot.slane %v6758_v32, 9  ;;  %v6760_v34 = vld [vmem:[#allocation2 + $0x60] sm:$0xe]  ;;  %v6856_v50 = vrot.slane %v6854_v38, 4 }
 0x3f5   : > { %14308 = vmatprep.mubr.msk.bf16.mxu1 %vm4665_vm6, %v13013_v15  ;;  %14337 = vmatpush3.bf16.msra.mxu1 %v16915_v62  ;;  %v5261_v62 = vsel %vm16921_vm3, %v5259_v0, %v5260_v60  ;;  %v17136_v15 = vld [vmem:[#allocation2 + $0x34] sm:$0xf]  ;;  %v20879_v0 = vcombine.low %v16935_v41, %v16950_v17  ;;  %v6836_v60 = vrot.slane %v17130_v31, 5  ;;  %v17155_v17 = vld [vmem:[#allocation2 + $0x58] sm:$0xf]  ;;  %v13128_v32 = vrot.slane %v6760_v34, 9 }
 0x3f6   : > { %14338 = vmatprep.subr.bf16.mxu1 %v15309_v51  ;;  %v13015_v53 = vcombine.low %v5258_v1, %v5261_v62  ;;  %v6840_v41 = vrot.slane %v17136_v15, 5  ;;  %v13125_v62 = vrot.slane %v6757_v19, 9  ;;  %v6761_v19 = vld [vmem:[#allocation2 + $0x6c] sm:$0xe]  ;;  %v17263_v1 = vld [vmem:[#allocation2 + $0xa0] sm:$0xf] }
 0x3f8   : > { %v6842_v2 = vrot.slane %v6840_v41, 4  ;;  %v17179_v61 = vsel %vm16921_vm3, %v13125_v62, %v6847_v3  ;;  %v17216_v62 = vld [vmem:[#allocation2 + $0x7c] sm:$0xf]  ;;  %v17218_v3 = vld [vmem:[#allocation2 + $0x80] sm:$0x1] }
 0x3f9   : > { %14339 = vmatpush3.bf16.msra.mxu1 %v15309_v51  ;;  %v20878_v51 = vcombine.low %v16930_v59, %v16942_v55  ;;  %v13123_v59 = vrot.slane %v6755_v58, 9  ;;  %v6835_v55 = vrot.slane %v6833_v35, 4  ;;  %20883 = vst [vmem:[#allocation16_spill] sm:$0xff] %v17179_v61  ;;  %v17193_v58 = vld [vmem:[#allocation2 + $0x70] sm:$0xf] }
 0x3fa   : > { %14372 = vmatprep.subr.bf16.mxu1 %v17102_v9  ;;  %v17185_v57 = vsel %vm16921_vm3, %v6842_v2, %v6843_v47  ;;  %v6868_v2 = vrot.slane %v17175_v21, 5  ;;  %v17229_v47 = vld [vmem:[#allocation2 + $0x88] sm:$0xf] }
 0x3fb   : > { %v17159_v10 = vsel %vm16921_vm3, %v13123_v59, %v6833_v35  ;;  %v17163_v23 = vsel %vm16921_vm3, %v6835_v55, %v6836_v60  ;;  %20884 = vst [vmem:[#allocation17_spill] sm:$0xff] %v17185_v57  ;;  %v17199_v35 = vsel %vm16921_vm3, %v6849_v46, %v6850_v13  ;;  %v20887_v59 = vcombine.low %v16969_v43, %v16976_v20 }
 0x3fc   : > { %14309 = vmatmul.mubr.msk.bf16.gmra.mrb[4].mxu1 %vm4665_vm6, %v13014_v63  ;;  %20880 = vst [vmem:[#allocation13_spill] sm:$0xff] %v17159_v10  ;;  %20881 = vst [vmem:[#allocation14_spill] sm:$0xff] %v17163_v23  ;;  %v17166_v63 = vld [vmem:[#allocation2 + $0x5c] sm:$0x1]  ;;  %v17213_v60 = vsel %vm16921_vm3, %v13126_v11, %v6854_v38  ;;  %v17222_v43 = vsel %vm16921_vm3, %v6856_v50, %v6857_v48  ;;  %v13129_v13 = vrot.slane %v6761_v19, 9  ;;  %v6875_v38 = vrot.slane %v17193_v58, 5 }
 0x3fd   : > { %14312 = vmatprep.mubr.msk.bf16.mxu1 %vm4665_vm6, %v13015_v53  ;;  %v17172_v53 = vsel %vm16921_vm3, %v13124_v33, %v6840_v41  ;;  %20886 = vst [vmem:[#allocation18_spill] sm:$0xff] %v17199_v35  ;;  %20888 = vst [vmem:[#allocation19_spill] sm:$0xff] %v17213_v60  ;;  %v6864_v41 = vrot.slane %v17166_v63, 5  ;;  %v6762_v11 = vld [vmem:[#allocation2 + $0x78] sm:$0xe]  ;;  %v17244_v34 = vsel %vm16921_vm3, %v13128_v32, %v6868_v2  ;;  %v6885_v55 = vrot.slane %v17218_v3, 5 }
 0x3fe   : > { %20882 = vst [vmem:[#allocation15_spill] sm:$0xff] %v17172_v53  ;;  %20889 = vst [vmem:[#allocation20_spill] sm:$0xff] %v17222_v43  ;;  %v17238_v48 = vld [vmem:[#allocation2 + $0x8c] sm:$0x1]  ;;  %v17251_v19 = vsel %vm16921_vm3, %v13129_v13, %v6875_v38  ;;  %v6131_v60 = vshll.u32 %v17130_v31, 16  ;;  %v15322_v23 = vld [vmem:[#allocation2 + $0x84] sm:$0xff]  }
 0x3ff   : > { %20892 = vst [vmem:[#allocation23_spill] sm:$0xff] %v17244_v34  ;;  %20893 = vst [vmem:[#allocation24_spill] sm:$0xff] %v17251_v19  ;;  %v6892_v13 = vrot.slane %v17238_v48, 5  ;;  %v13133_v19 = vrot.slane %v6765_v25, 9 }
 0x404   : > { %14313 = vmatmul.mubr.msk.bf16.gmra.mrb[8].mxu1 %vm4665_vm6, %v13016_v4  ;;  %v6861_v4 = vrot.slane %v17155_v17, 5 }
 0x405   : > { %14316 = vmatprep.mubr.msk.bf16.mxu1 %vm4665_vm6, %v13017_v42  ;;  %v20885_v42 = vcombine.low %v16961_v18, %v16965_v16  ;;  %v17205_v18 = vld [vmem:[#allocation2 + $0x68] sm:$0x1]  ;;  %v17207_v16 = vld [vmem:[#allocation2 + $0x74] sm:$0x1] }
 0x406   : > { %v6863_v33 = vrot.slane %v6861_v4, 4  ;;  %v6871_v50 = vrot.slane %v17205_v18, 5 }
 0x408   : > { %v17235_v46 = vsel %vm16921_vm3, %v6863_v33, %v6864_v41  ;;  %v6877_v33 = vrot.slane %v6875_v38, 4  ;;  %v6878_v41 = vrot.slane %v17207_v16, 5 }
 0x409   : > { %20891 = vst [vmem:[#allocation22_spill] sm:$0xff] %v17235_v46 }
 0x40a   : > { %v17269_v38 = vsel %vm16921_vm3, %v6877_v33, %v6878_v41  ;;  %v20896_v33 = vcombine.low %v16994_v54, %v17001_v37  ;;  %v6056_v41 = vld [vmem:[#allocation2 + $0xb0] sm:$0x1]  ;;  %v17299_v54 = vld [vmem:[#allocation2 + $0xb8] sm:$0xf] }
 0x40b   : > { %20895 = vst [vmem:[#allocation26_spill] sm:$0xff] %v17269_v38  ;;  %v6913_v46 = vrot.slane %v6056_v41, 5 }
 0x40c   : > { %14317 = vmatmul.mubr.msk.bf16.gmra.mrb[12].mxu1 %vm4665_vm6, %v20878_v51  ;;  %v6889_v51 = vrot.slane %v17229_v47, 5 }
 0x40d   : > { %14320 = vmatprep.mubr.msk.bf16.mxu1 %vm4665_vm6, %v20879_v0  ;;  %v13127_v0 = vrot.slane %v6759_v5, 9  ;;  %v6882_v5 = vrot.slane %v17216_v62, 5 }
 0x40f   : > { %v17226_v20 = vsel %vm16921_vm3, %v13127_v0, %v6861_v4  ;;  %v6763_v0 = vld [vmem:[#allocation2 + $0x84] sm:$0xe]  ;;  %v17255_v4 = vld [vmem:[#allocation2 + $0x98] sm:$0x1]  ;;  %v6884_v7 = vrot.slane %v6882_v5, 4 }
 0x410   : > { %20890 = vst [vmem:[#allocation21_spill] sm:$0xff] %v17226_v20  ;;  %v13131_v28 = vrot.slane %v6763_v0, 9  ;;  %v17284_v0 = vld [vmem:[#allocation2 + $0xac] sm:$0xf]  ;;  %v6899_v38 = vrot.slane %v17255_v4, 5 }
 0x411   : > { %v17292_v36 = vsel %vm16921_vm3, %v6884_v7, %v6885_v55  ;;  %v6766_v7 = vld [vmem:[#allocation2 + $0xa8] sm:$0xe]  ;;  %v17308_v55 = vld [vmem:[#allocation2 + $0xbc] sm:$0x1] }
 0x412   : > { %20898 = vst [vmem:[#allocation28_spill] sm:$0xff] %v17292_v36  ;;  %v13134_v25 = vrot.slane %v6766_v7, 9  ;;  %v20905_v7 = vcombine.low %v17010_v27, %v17014_v40 }
 0x414   : > { %14321 = vmatmul.mubr.msk.bf16.gmra.mrb[16].mxu1 %vm4665_vm6, %v20885_v42  ;;  %v6870_v42 = vrot.slane %v6868_v2, 4  ;;  %v13130_v2 = vrot.slane %v6762_v11, 9  ;;  %v17275_v11 = vld [vmem:[#allocation2 + $0xa4] sm:$0x1] }
 0x415   : > { %14324 = vmatprep.mubr.msk.bf16.mxu1 %vm4665_vm6, %v20887_v59  ;;  %v17247_v59 = vld [vmem:[#allocation2 + $0x94] sm:$0xf] }
 0x416   : > { %v17259_v32 = vsel %vm16921_vm3, %v6870_v42, %v6871_v50  ;;  %v6891_v50 = vrot.slane %v6889_v51, 4  ;;  %v17288_v8 = vsel %vm16921_vm3, %v13130_v2, %v6882_v5  ;;  %v6896_v42 = vrot.slane %v17247_v59, 5 }
 0x417   : > { %20894 = vst [vmem:[#allocation25_spill] sm:$0xff] %v17259_v32  ;;  %20897 = vst [vmem:[#allocation27_spill] sm:$0xff] %v17288_v8  ;;  %v13132_v5 = vrot.slane %v6764_v24, 9  ;;  %v6903_v2 = vrot.slane %v17263_v1, 5  ;;  %v6910_v24 = vrot.slane %v17284_v0, 5 }
 0x418   : > { %v17319_v8 = vld [vmem:[#allocation2 + $0xc4] sm:$0xf] }
 0x419   : > { %v17315_v37 = vsel %vm16921_vm3, %v13132_v5, %v6896_v42  ;;  %v6905_v36 = vrot.slane %v6903_v2, 4  ;;  %v6062_v5 = vld [vmem:[#allocation2 + $0xc8] sm:$0x1]  ;;  %v6912_v34 = vrot.slane %v6910_v24, 4 }
 0x41a   : > { %20901 = vst [vmem:[#allocation31_spill] sm:$0xff] %v17315_v37  ;;  %v6027_v37 = vld [vmem:[#allocation2 + $0x3c] sm:$0xf] }
 0x41b   : > { %v17349_v41 = vsel %vm16921_vm3, %v6912_v34, %v6913_v46  ;;  %v17401_v46 = vld [vmem:[#allocation2 + $0x1c] sm:$0xf]  ;;  %v6160_v61 = vshrl.u32 %v6027_v37, 16 }
 0x41c   : > { %14325 = vmatmul.mubr.msk.bf16.gmra.mrb[20].mxu1 %vm4665_vm6, %v13022_v44  ;;  %v17296_v44 = vsel %vm16921_vm3, %v13131_v28, %v6889_v51  ;;  %v6898_v51 = vrot.slane %v6896_v42, 4  ;;  %v17327_v28 = vsel %vm16921_vm3, %v13133_v19, %v6903_v2  ;;  %v6917_v42 = vrot.slane %v17299_v54, 5  ;;  %v6768_v2 = vld [vmem:[#allocation2 + $0xc0] sm:$0xe]  ;;  %20907 = vst [vmem:[#allocation36_spill] sm:$0xff] %v17349_v41  ;;  %20914 = vst [vmem:[#allocation41_spill] sm:$0xff] %v17401_v46 }
 0x41d   : > { %14328 = vmatprep.mubr.msk.bf16.mxu1 %vm4665_vm6, %v20896_v33  ;;  %20899 = vst [vmem:[#allocation29_spill] sm:$0xff] %v17296_v44  ;;  %v17305_v33 = vsel %vm16921_vm3, %v6891_v50, %v6892_v13  ;;  %v6906_v13 = vrot.slane %v17275_v11, 5  ;;  %v6767_v50 = vld [vmem:[#allocation2 + $0xb4] sm:$0xe]  ;;  %20903 = vst [vmem:[#allocation33_spill] sm:$0xff] %v17327_v28  ;;  %v6920_v19 = vrot.slane %v17308_v55, 5 }
 0x41e   : > { %20900 = vst [vmem:[#allocation30_spill] sm:$0xff] %v17305_v33  ;;  %v17323_v32 = vsel %vm16921_vm3, %v6898_v51, %v6899_v38  ;;  %v13135_v51 = vrot.slane %v6767_v50, 9  ;;  %v6919_v20 = vrot.slane %v6917_v42, 4  ;;  %v17345_v33 = vsel %vm16921_vm3, %v13134_v25, %v6910_v24 }
 0x41f   : > { %20902 = vst [vmem:[#allocation32_spill] sm:$0xff] %v17323_v32  ;;  %v17334_v44 = vsel %vm16921_vm3, %v6905_v36, %v6906_v13  ;;  %20906 = vst [vmem:[#allocation35_spill] sm:$0xff] %v17345_v33  ;;  %v6924_v36 = vrot.slane %v17319_v8, 5  ;;  %v20908_v13 = vcombine.low %v17022_v26, %v17026_v52  ;;  %v13136_v34 = vrot.slane %v6768_v2, 9  ;;  %v15313_v2 = vld [vmem:[#allocation2 + $0x24] sm:$0xff]  }
 0x420   : > { %20904 = vst [vmem:[#allocation34_spill] sm:$0xff] %v17334_v44  ;;  %v17360_v40 = vsel %vm16921_vm3, %v13135_v51, %v6917_v42  ;;  %v17364_v24 = vsel %vm16921_vm3, %v6919_v20, %v6920_v19  ;;  %v6927_v25 = vrot.slane %v6062_v5, 5  ;;  %v15310_v51 = vld [vmem:[#allocation2 + $0xc] sm:$0xff]   ;;  %v20913_v20 = vcombine.low %v17033_v6, %v17037_v29  ;;  %v15311_v5 = vld [vmem:[#allocation2 + $0x18] sm:$0xff]  }
 0x421   : > { %20909 = vst [vmem:[#allocation37_spill] sm:$0xff] %v17360_v40  ;;  %20910 = vst [vmem:[#allocation38_spill] sm:$0xff] %v17364_v24  ;;  %v6926_v50 = vrot.slane %v6924_v36, 4  ;;  %v17370_v26 = vsel %vm16921_vm3, %v13136_v34, %v6924_v36  ;;  %v15321_v19 = vld [vmem:[%s20752_s3 + $0x48] sm:$0xff]   ;;  %v17394_v29 = vld [vmem:[%s20752_s3 + $0x50] sm:$0xff]  }
 0x422   : > { %20911 = vst [vmem:[#allocation39_spill] sm:$0xff] %v17370_v26  ;;  %v6015_v6 = vld [vmem:[#allocation2 + $0xc] sm:$0xf]  ;;  %v6101_v26 = vshrl.u32 %v17401_v46, 16 }
 0x423   : > { %v17374_v52 = vsel %vm16921_vm3, %v6926_v50, %v6927_v25  ;;  %v6064_v34 = vshrl.u32 %v6015_v6, 16  ;;  %v6067_v50 = vshll.u32 %v6015_v6, 16  ;;  %v15314_v25 = vld [vmem:[#allocation2 + $0x30] sm:$0xff]   ;;  %v15316_v40 = vld [vmem:[#allocation2 + $0x48] sm:$0xff]  }
 0x424   : > { %14329 = vmatmul.mubr.msk.bf16.gmra.mrb[24].mxu1 %vm4665_vm6, %v20905_v7  ;;  %20912 = vst [vmem:[#allocation40_spill] sm:$0xff] %v17374_v52  ;;  %v17389_v7 = vld [vmem:[#allocation2 + $0x10] sm:$0xf]  ;;  %v6097_v52 = vshll.u32 %v17401_v46, 16  ;;  %v17589_v46 = vld [vmem:[#allocation2 + $0x58] sm:$0xf] }
 0x425   : > { %14332 = vmatprep.mubr.msk.bf16.mxu1 %vm4665_vm6, %v20908_v13  ;;  %v6073_v36 = vshll.u32 %v17389_v7, 16  ;;  %v6077_v13 = vshrl.u32 %v17389_v7, 16  ;;  %v6069_v42 = vrot.slane %v6067_v50, 5  ;;  %v15317_v50 = vld [vmem:[#allocation2 + $0x54] sm:$0xff]   ;;  %20931 = vst [vmem:[#allocation58_spill] sm:$0xff] %v17589_v46 }
 0x426   : > { %v17411_v41 = vrot.slane %v6097_v52, 5  ;;  %v6125_v52 = vshrl.u32 %v17128_v14, 16 }
 0x42c   : > { %14333 = vmatmul.mubr.msk.bf16.gmra.mrb[28].mxu1 %vm4665_vm6, %v20913_v20  ;;  %v6075_v20 = vrot.slane %v6073_v36, 5 }
 0x42d   : > { %14340 = vmatprep.mubr.msk.bf16.mxu1 %vm4665_vm6, %v15310_v51  ;;  %v6018_v51 = vld [vmem:[#allocation2 + $0x18] sm:$0xf] }
 0x42e   : > { %v6088_v27 = vshrl.u32 %v6018_v51, 16  ;;  %v6091_v38 = vshll.u32 %v6018_v51, 16 }
 0x434   : > { %14341 = vmatmul.mubr.msk.bf16.vlgmr.msra.gmra.mrb[0].mxu1 %vm4665_vm6, %v15311_v5  ;;  %v6079_v5 = vrot.slane %v6077_v13, 4  ;;  %v17408_v13 = vld [vmem:[#allocation2 + $0x20] sm:$0x1] }
 0x435   : > { %14344 = vmatprep.mubr.msk.bf16.mxu1 %vm4665_vm6, %v15313_v2  ;;  %14373 = vmatpush3.bf16.msra.mxu1 %v17102_v9  ;;  %v15315_v9 = vld [vmem:[#allocation2 + $0x3c] sm:$0xff]   ;;  %v6066_v2 = vrot.slane %v6064_v34, 4  ;;  %20916 = vst [vmem:[#allocation43_spill] sm:$0xff] %v17408_v13  ;;  %v6093_v34 = vrot.slane %v6091_v38, 5 }
 0x436   : > { %14374 = vmatprep.subr.bf16.mxu1 %v15321_v19  ;;  %v6080_v6 = vor.u32 %v6079_v5, %v6075_v20  ;;  %v6103_v5 = vrot.slane %v6101_v26, 4  ;;  %v15318_v26 = vld [vmem:[#allocation2 + $0x60] sm:$0xff]  }
 0x437   : > { %v6070_v24 = vor.u32 %v6069_v42, %v6066_v2  ;;  %v6107_v42 = vshll.u32 %v17408_v13, 16 }
 0x438   : > { %v6081_v51 = vrot.slane %v6080_v6, 4  ;;  %v6024_v6 = vld [vmem:[#allocation2 + $0x30] sm:$0xf] }
 0x439   : > { %14375 = vmatpush3.bf16.msra.mxu1 %v15321_v19  ;;  %v17403_v19 = vld [vmem:[#allocation2 + $0x14] sm:$0x1]  ;;  %v6071_v33 = vrot.slane %v6070_v24, 4  ;;  %v6136_v35 = vshrl.u32 %v6024_v6, 16 }
 0x43a   : > { %14408 = vmatprep.subr.bf16.mxu1 %v17394_v29  ;;  %20915 = vst [vmem:[#allocation42_spill] sm:$0xff] %v17403_v19  ;;  %v6083_v36 = vshll.u32 %v17403_v19, 16  ;;  %v8356_v19 = vld [vmem:[#allocation2 + $0x90] sm:$0xe] }
 0x43b   : > { %v6076_v24 = vsel %vm16407_vm5, %v6071_v33, %v6075_v20  ;;  %v6030_v33 = vld [vmem:[#allocation2 + $0x48] sm:$0xf] }
 0x43c   : > { %14345 = vmatmul.mubr.msk.bf16.gmra.mrb[4].mxu1 %vm4665_vm6, %v15314_v25  ;;  %v6090_v25 = vrot.slane %v6088_v27, 4  ;;  %v6085_v2 = vrot.slane %v6083_v36, 5  ;;  %v6104_v27 = vor.u32 %v6103_v5, %v17411_v41  ;;  %v6145_v36 = vshll.u32 %v17136_v15, 16 }
 0x43d   : > { %14348 = vmatprep.mubr.msk.bf16.mxu1 %vm4665_vm6, %v15315_v9  ;;  %v6021_v9 = vld [vmem:[#allocation2 + $0x24] sm:$0xf]  ;;  %v6173_v5 = vshrl.u32 %v17145_v56, 16  ;;  %v6184_v31 = vshrl.u32 %v6030_v33, 16  ;;  %v6187_v57 = vshll.u32 %v6030_v33, 16  ;;  %v6155_v33 = vshll.u32 %v17143_v39, 16 }
 0x43e   : > { %v6094_v44 = vor.u32 %v6093_v34, %v6090_v25  ;;  %v6112_v28 = vshrl.u32 %v6021_v9, 16  ;;  %v6115_v32 = vshll.u32 %v6021_v9, 16  ;;  %v6086_v38 = vsel %vm16407_vm5, %v6081_v51, %v6085_v2  ;;  %v15319_v2 = vld [vmem:[#allocation2 + $0x6c] sm:$0xff]  }
 0x43f   : > { %v6149_v25 = vshrl.u32 %v17136_v15, 16  ;;  %v6169_v51 = vshll.u32 %v17145_v56, 16  ;;  %v17426_v43 = vcombine.low %v6076_v24, %v6086_v38  ;;  %v6105_v20 = vrot.slane %v6104_v27, 4 }
 0x440   : > { %v6095_v34 = vrot.slane %v6094_v44, 4  ;;  %v6114_v9 = vrot.slane %v6112_v28, 4  ;;  %v6127_v15 = vrot.slane %v6125_v52, 4  ;;  %v6139_v44 = vshll.u32 %v6024_v6, 16 }
 0x441   : > { %v17433_v28 = vrot.slane %v6145_v36, 5  ;;  %v6151_v56 = vrot.slane %v6149_v25, 4  ;;  %v6163_v38 = vshll.u32 %v6027_v37, 16  ;;  %v17435_v24 = vrot.slane %v6169_v51, 5  ;;  %v6033_v51 = vld [vmem:[#allocation2 + $0x54] sm:$0xf] }
 0x442   : > { %v6100_v27 = vsel %vm16407_vm5, %v6095_v34, %v17411_v41  ;;  %v6193_v52 = vshll.u32 %v17147_v49, 16  ;;  %v6197_v6 = vshrl.u32 %v17147_v49, 16  ;;  %v17445_v37 = vrot.slane %v6131_v60, 5  ;;  %v15320_v34 = vld [vmem:[#allocation2 + $0x78] sm:$0xff]  }
 0x443   : > { %v6138_v25 = vrot.slane %v6136_v35, 4  ;;  %v6162_v41 = vrot.slane %v6160_v61, 4  ;;  %v6186_v49 = vrot.slane %v6184_v31, 4  ;;  %v6189_v53 = vrot.slane %v6187_v57, 5  ;;  %v6036_v31 = vld [vmem:[#allocation2 + $0x60] sm:$0xf] }
 0x444   : > { %14349 = vmatmul.mubr.msk.bf16.gmra.mrb[8].mxu1 %vm4665_vm6, %v15316_v40  ;;  %v6121_v40 = vshll.u32 %v17128_v14, 16  ;;  %v6117_v14 = vrot.slane %v6115_v32, 5  ;;  %v6175_v32 = vrot.slane %v6173_v5, 4  ;;  %v6141_v5 = vrot.slane %v6139_v44, 5 }
 0x445   : > { %14352 = vmatprep.mubr.msk.bf16.mxu1 %vm4665_vm6, %v15317_v50  ;;  %v6109_v50 = vrot.slane %v6107_v42, 5  ;;  %v6208_v60 = vshrl.u32 %v6033_v51, 16  ;;  %v6217_v39 = vshll.u32 %v17155_v17, 16  ;;  %v6221_v61 = vshrl.u32 %v17155_v17, 16 }
 0x446   : > { %v17430_v42 = vrot.slane %v6121_v40, 5  ;;  %v6118_v40 = vor.u32 %v6117_v14, %v6114_v9  ;;  %v6165_v9 = vrot.slane %v6163_v38, 5  ;;  %v6176_v14 = vor.u32 %v6175_v32, %v17435_v24 }
 0x447   : > { %v6142_v38 = vor.u32 %v6141_v5, %v6138_v25  ;;  %v6157_v57 = vrot.slane %v6155_v33, 5  ;;  %v6179_v32 = vshll.u32 %v17150_v12, 16  ;;  %v17461_v13 = vrot.slane %v6217_v39, 5 }
 0x448   : > { %v6128_v36 = vor.u32 %v6127_v15, %v17430_v42  ;;  %v6211_v15 = vshll.u32 %v6033_v51, 16  ;;  %v6119_v44 = vrot.slane %v6118_v40, 4  ;;  %v6177_v51 = vrot.slane %v6176_v14, 4  ;;  %v6039_v14 = vld [vmem:[#allocation2 + $0x6c] sm:$0xf] }
 0x449   : > { %v6223_v17 = vrot.slane %v6221_v61, 4  ;;  %v6181_v25 = vrot.slane %v6179_v32, 5  ;;  %v6241_v5 = vshll.u32 %v17175_v21, 16  ;;  %v6143_v33 = vrot.slane %v6142_v38, 4 }
 0x44a   : > { %v6213_v10 = vrot.slane %v6211_v15, 5  ;;  %v6124_v12 = vsel %vm16407_vm5, %v6119_v44, %v17430_v42  ;;  %v6256_v38 = vshrl.u32 %v6039_v14, 16 }
 0x44b   : > { %v6182_v42 = vsel %vm16407_vm5, %v6177_v51, %v6181_v25  ;;  %v6224_v44 = vor.u32 %v6223_v17, %v17461_v13  ;;  %v17478_v61 = vrot.slane %v6241_v5, 5  ;;  %v6148_v32 = vsel %vm16407_vm5, %v6143_v33, %v17433_v28  ;;  %v17509_v25 = vld [vmem:[#allocation2 + $0x1c] sm:$0xf]  ;;  %v17511_v5 = vld [vmem:[#allocation2 + $0x20] sm:$0x1] }
 0x44c   : > { %14353 = vmatmul.mubr.msk.bf16.gmra.mrb[12].mxu1 %vm4665_vm6, %v15318_v26  ;;  %v6110_v26 = vsel %vm16407_vm5, %v6105_v20, %v6109_v50  ;;  %v17450_v50 = vrot.slane %v6193_v52, 5  ;;  %v6199_v20 = vrot.slane %v6197_v6, 4  ;;  %v6166_v6 = vor.u32 %v6165_v9, %v6162_v41  ;;  %20917 = vst [vmem:[#allocation44_spill] sm:$0xff] %v17509_v25  ;;  %20918 = vst [vmem:[#allocation45_spill] sm:$0xff] %v17511_v5 }
 0x44d   : > { %14356 = vmatprep.mubr.msk.bf16.mxu1 %vm4665_vm6, %v15319_v2  ;;  %v6152_v2 = vor.u32 %v6151_v56, %v17433_v28  ;;  %v17453_v35 = vcombine.low %v6100_v27, %v6110_v26  ;;  %v6129_v56 = vrot.slane %v6128_v36, 4  ;;  %v6190_v27 = vor.u32 %v6189_v53, %v6186_v49  ;;  %v15324_v49 = vld [vmem:[#allocation2 + $0x9c] sm:$0xff]  }
 0x44e   : > { %v6200_v40 = vor.u32 %v6199_v20, %v17450_v50  ;;  %v6210_v26 = vrot.slane %v6208_v60, 4  ;;  %v6235_v36 = vshll.u32 %v6036_v31, 16  ;;  %v6167_v9 = vrot.slane %v6166_v6, 4 }
 0x44f   : > { %v6153_v52 = vrot.slane %v6152_v2, 4  ;;  %v6245_v2 = vshrl.u32 %v17175_v21, 16  ;;  %v6134_v53 = vsel %vm16407_vm5, %v6129_v56, %v17445_v37  ;;  %v6191_v20 = vrot.slane %v6190_v27, 4 }
 0x450   : > { %v6201_v60 = vrot.slane %v6200_v40, 4  ;;  %v6214_v21 = vor.u32 %v6213_v10, %v6210_v26  ;;  %v6237_v37 = vrot.slane %v6235_v36, 5  ;;  %v6269_v10 = vshrl.u32 %v17193_v58, 16  ;;  %v15325_v40 = vld [vmem:[#allocation2 + $0xa8] sm:$0xff]  }
 0x451   : > { %v6158_v41 = vsel %vm16407_vm5, %v6153_v52, %v6157_v57  ;;  %v6247_v56 = vrot.slane %v6245_v2, 4  ;;  %v6259_v57 = vshll.u32 %v6039_v14, 16  ;;  %v6265_v52 = vshll.u32 %v17193_v58, 16  ;;  %v6042_v58 = vld [vmem:[#allocation2 + $0x78] sm:$0xf] }
 0x452   : > { %v17486_v6 = vcombine.low %v6124_v12, %v6134_v53  ;;  %v17488_v51 = vcombine.low %v6148_v32, %v6158_v41  ;;  %v17497_v28 = vrot.slane %v6214_v21, 4  ;;  %v17505_v12 = vrot.slane %v6256_v38, 4  ;;  %v15326_v2 = vld [vmem:[#allocation2 + $0xb4] sm:$0xff]  }
 0x453   : > { %v6248_v36 = vor.u32 %v6247_v56, %v17478_v61  ;;  %v17517_v33 = vrot.slane %v6265_v52, 5  ;;  %v17519_v41 = vrot.slane %v6269_v10, 4  ;;  %v6280_v14 = vshrl.u32 %v6042_v58, 16  ;;  %v8347_v52 = vld [vmem:[#allocation2 + $0x24] sm:$0xe] }
 0x454   : > { %14357 = vmatmul.mubr.msk.bf16.gmra.mrb[16].mxu1 %vm4665_vm6, %v15320_v34  ;;  %v6203_v34 = vshll.u32 %v17152_v22, 16  ;;  %v15323_v22 = vld [vmem:[#allocation2 + $0x90] sm:$0xff]   ;;  %v6293_v32 = vshrl.u32 %v17216_v62, 16 }
 0x455   : > { %14360 = vmatprep.mubr.msk.bf16.mxu1 %vm4665_vm6, %v15322_v23  ;;  %v6232_v23 = vshrl.u32 %v6036_v31, 16  ;;  %v6227_v31 = vshll.u32 %v17166_v63, 16  ;;  %v17499_v63 = vrot.slane %v6224_v44, 4  ;;  %v17536_v44 = vld [vmem:[#allocation2 + $0x28] sm:$0xf]  ;;  %v17542_v56 = vrot.slane %v6248_v36, 4 }
 0x456   : > { %v6205_v15 = vrot.slane %v6203_v34, 5  ;;  %v6172_v34 = vsel %vm16407_vm5, %v6167_v9, %v17435_v24  ;;  %v17507_v24 = vrot.slane %v6259_v57, 5  ;;  %20920 = vst [vmem:[#allocation47_spill] sm:$0xff] %v17536_v44  ;;  %v8419_v57 = vrot.slane %v17536_v44, 5  ;;  %v17564_v9 = vld [vmem:[#allocation2 + $0x44] sm:$0x1] }
 0x457   : > { %v6234_v39 = vrot.slane %v6232_v23, 4  ;;  %v17495_v26 = vcombine.low %v6172_v34, %v6182_v42  ;;  %v6196_v23 = vsel %vm16407_vm5, %v6191_v20, %v17450_v50  ;;  %v17515_v53 = vrot.slane %v6227_v31, 5  ;;  %v8346_v50 = vld [vmem:[#allocation2 + $0x18] sm:$0xe]  ;;  %v17523_v20 = vld [vmem:[#allocation2 + $0x34] sm:$0xf] }
 0x458   : > { %v6206_v27 = vsel %vm16407_vm5, %v6201_v60, %v6205_v15  ;;  %v6289_v42 = vshll.u32 %v17216_v62, 16  ;;  %20919 = vst [vmem:[#allocation46_spill] sm:$0xff] %v17523_v20  ;;  %v17548_v31 = vld [vmem:[#allocation2 + $0x38] sm:$0x1]  ;;  %v13251_v34 = vrot.slane %v8346_v50, 9  ;;  %20925 = vst [vmem:[#allocation52_spill] sm:$0xff] %v17564_v9 }
 0x459   : > { %v6238_v17 = vor.u32 %v6237_v37, %v6234_v39  ;;  %v17538_v39 = vld [vmem:[#allocation2 + $0x2c] sm:$0x1]  ;;  %v8412_v37 = vrot.slane %v17509_v25, 5  ;;  %20922 = vst [vmem:[#allocation49_spill] sm:$0xff] %v17548_v31  ;;  %v8349_v60 = vld [vmem:[#allocation2 + $0x3c] sm:$0xe] }
 0x45a   : > { %20921 = vst [vmem:[#allocation48_spill] sm:$0xff] %v17538_v39  ;;  %v17557_v36 = vrot.slane %v6289_v42, 5  ;;  %v17561_v62 = vld [vmem:[#allocation2 + $0x4c] sm:$0xf]  ;;  %v8426_v42 = vrot.slane %v17523_v20, 5  ;;  %v8421_v38 = vrot.slane %v8419_v57, 4 }
 0x45b   : > { %v17534_v21 = vrot.slane %v6238_v17, 4  ;;  %v8348_v17 = vld [vmem:[#allocation2 + $0x30] sm:$0xe]  ;;  %20924 = vst [vmem:[#allocation51_spill] sm:$0xff] %v17561_v62  ;;  %v17568_v50 = vsel %vm16921_vm3, %v13251_v34, %v8412_v37  ;;  %v17575_v15 = vld [vmem:[#allocation2 + $0x50] sm:$0x1] }
 0x45c   : > { %14361 = vmatmul.mubr.msk.bf16.gmra.mrb[20].mxu1 %vm4665_vm6, %v15323_v22  ;;  %v17513_v22 = vcombine.low %v6196_v23, %v6206_v27  ;;  %v8414_v27 = vrot.slane %v8412_v37, 4  ;;  %20926 = vst [vmem:[#allocation53_spill] sm:$0xff] %v17568_v50  ;;  %20928 = vst [vmem:[#allocation55_spill] sm:$0xff] %v17575_v15  ;;  %v13253_v44 = vrot.slane %v8348_v17, 9  ;;  %v15327_v25 = vld [vmem:[#allocation2 + $0xc0] sm:$0xff]   ;;  %v17580_v37 = vrot.slane %v6293_v32, 4 }
 0x45d   : > { %14364 = vmatprep.mubr.msk.bf16.mxu1 %vm4665_vm6, %v15324_v49  ;;  %v6283_v49 = vshll.u32 %v6042_v58, 16  ;;  %v17553_v58 = vrot.slane %v6280_v14, 4  ;;  %v17582_v34 = vld [vmem:[#allocation2 + $0x64] sm:$0xf]  ;;  %v8350_v20 = vld [vmem:[#allocation2 + $0x48] sm:$0xe] }
 0x45e   : > { %20929 = vst [vmem:[#allocation56_spill] sm:$0xff] %v17582_v34  ;;  %v17597_v32 = vsel %vm16921_vm3, %v13253_v44, %v8426_v42  ;;  %v13254_v17 = vrot.slane %v8349_v60, 9  ;;  %v8351_v50 = vld [vmem:[#allocation2 + $0x54] sm:$0xe]  ;;  %v8436_v44 = vrot.slane %v17564_v9, 5  ;;  %v8440_v60 = vrot.slane %v17561_v62, 5 }
 0x45f   : > { %v17555_v23 = vrot.slane %v6283_v49, 5  ;;  %v13252_v49 = vrot.slane %v8347_v52, 9  ;;  %20933 = vst [vmem:[#allocation60_spill] sm:$0xff] %v17597_v32  ;;  %v17625_v9 = vld [vmem:[#allocation2 + $0x70] sm:$0xf] }
 0x460   : > { %20938 = vst [vmem:[#allocation65_spill] sm:$0xff] %v17625_v9 }
 0x461   : > { %v17586_v52 = vsel %vm16921_vm3, %v13252_v49, %v8419_v57  ;;  %v17601_v57 = vld [vmem:[#allocation2 + $0x5c] sm:$0x1]  ;;  %v17603_v49 = vld [vmem:[#allocation2 + $0x68] sm:$0x1] }
 0x462   : > { %20930 = vst [vmem:[#allocation57_spill] sm:$0xff] %v17586_v52  ;;  %20934 = vst [vmem:[#allocation61_spill] sm:$0xff] %v17601_v57  ;;  %v8447_v52 = vrot.slane %v17589_v46, 5  ;;  %v8457_v32 = vrot.slane %v17603_v49, 5 }
 0x463   : > { %20935 = vst [vmem:[#allocation62_spill] sm:$0xff] %v17603_v49 }
 0x464   : > { %14365 = vmatmul.mubr.msk.bf16.gmra.mrb[24].mxu1 %vm4665_vm6, %v15325_v40  ;;  %v8415_v40 = vrot.slane %v17511_v5, 5  ;;  %v8422_v5 = vrot.slane %v17538_v39, 5  ;;  %v8352_v39 = vld [vmem:[#allocation2 + $0x60] sm:$0xe] }
 0x465   : > { %14368 = vmatprep.mubr.msk.bf16.mxu1 %vm4665_vm6, %v15326_v2  ;;  %v17559_v2 = vld [vmem:[#allocation2 + $0x40] sm:$0xf] }
 0x466   : > { %20923 = vst [vmem:[#allocation50_spill] sm:$0xff] %v17559_v2  ;;  %v17572_v14 = vsel %vm16921_vm3, %v8414_v27, %v8415_v40  ;;  %v8428_v27 = vrot.slane %v8426_v42, 4  ;;  %v8429_v40 = vrot.slane %v17548_v31, 5  ;;  %v17593_v10 = vsel %vm16921_vm3, %v8421_v38, %v8422_v5  ;;  %v17618_v31 = vld [vmem:[#allocation2 + $0x7c] sm:$0xf] }
 0x467   : > { %20927 = vst [vmem:[#allocation54_spill] sm:$0xff] %v17572_v14  ;;  %20932 = vst [vmem:[#allocation59_spill] sm:$0xff] %v17593_v10  ;;  %v8433_v14 = vrot.slane %v17559_v2, 5  ;;  %v13255_v42 = vrot.slane %v8350_v20, 9  ;;  %v8443_v2 = vrot.slane %v17575_v15, 5  ;;  %v13256_v10 = vrot.slane %v8351_v50, 9 }
 0x468   : > { %v17609_v5 = vsel %vm16921_vm3, %v8428_v27, %v8429_v40  ;;  %v8442_v40 = vrot.slane %v8440_v60, 4  ;;  %v17639_v50 = vld [vmem:[#allocation2 + $0x80] sm:$0x1]  ;;  %v13257_v15 = vrot.slane %v8352_v39, 9 }
 0x469   : > { %20936 = vst [vmem:[#allocation63_spill] sm:$0xff] %v17609_v5  ;;  %v8435_v38 = vrot.slane %v8433_v14, 4  ;;  %v17622_v27 = vsel %vm16921_vm3, %v13254_v17, %v8433_v14  ;;  %v17633_v20 = vsel %vm16921_vm3, %v13255_v42, %v8440_v60  ;;  %v8454_v5 = vrot.slane %v17582_v34, 5  ;;  %v8353_v14 = vld [vmem:[#allocation2 + $0x6c] sm:$0xe]  ;;  %20942 = vst [vmem:[#allocation69_spill] sm:$0xff] %v17639_v50 }
 0x46a   : > { %20937 = vst [vmem:[#allocation64_spill] sm:$0xff] %v17622_v27  ;;  %20940 = vst [vmem:[#allocation67_spill] sm:$0xff] %v17633_v20  ;;  %v17637_v17 = vld [vmem:[#allocation2 + $0x74] sm:$0x1]  ;;  %v17647_v60 = vld [vmem:[#allocation2 + $0x88] sm:$0xf]  ;;  %v17655_v34 = vsel %vm16921_vm3, %v13256_v10, %v8447_v52 }
 0x46b   : > { %20941 = vst [vmem:[#allocation68_spill] sm:$0xff] %v17637_v17  ;;  %20944 = vst [vmem:[#allocation71_spill] sm:$0xff] %v17647_v60  ;;  %v17649_v42 = vld [vmem:[#allocation2 + $0x94] sm:$0xf]  ;;  %v8456_v46 = vrot.slane %v8454_v5, 4  ;;  %v8461_v10 = vrot.slane %v17625_v9, 5 }
 0x46c   : > { %14369 = vmatmul.mubr.msk.bf16.gmra.mrb[28].mxu1 %vm4665_vm6, %v15327_v25  ;;  %v8450_v25 = vrot.slane %v17601_v57, 5  ;;  %20945 = vst [vmem:[#allocation72_spill] sm:$0xff] %v17649_v42  ;;  %20946 = vst [vmem:[#allocation73_spill] sm:$0xff] %v17655_v34  ;;  %v13258_v57 = vrot.slane %v8353_v14, 9  ;;  %v17672_v20 = vld [vmem:[#allocation2 + $0x8c] sm:$0x1] }
 0x46d   : > { %14376 = vmatprep.mubr.msk.bf16.mxu1 %vm4665_vm6, %v17426_v43  ;;  %v17629_v43 = vsel %vm16921_vm3, %v8435_v38, %v8436_v44  ;;  %v17645_v44 = vsel %vm16921_vm3, %v8442_v40, %v8443_v2  ;;  %v8449_v38 = vrot.slane %v8447_v52, 4  ;;  %v15329_v2 = vld [vmem:[%s20752_s3 + $0x58] sm:$0xff]   ;;  %v17667_v40 = vsel %vm16921_vm3, %v13257_v15, %v8454_v5  ;;  %v8355_v52 = vld [vmem:[#allocation2 + $0x84] sm:$0xe]  ;;  %20949 = vst [vmem:[#allocation76_spill] sm:$0xff] %v17672_v20 }
 0x46e   : > { %20939 = vst [vmem:[#allocation66_spill] sm:$0xff] %v17629_v43  ;;  %20943 = vst [vmem:[#allocation70_spill] sm:$0xff] %v17645_v44  ;;  %v8354_v43 = vld [vmem:[#allocation2 + $0x78] sm:$0xe]  ;;  %v17670_v44 = vld [vmem:[#allocation2 + $0x84] sm:$0xf] }
 0x46f   : > { %v17663_v39 = vsel %vm16921_vm3, %v8449_v38, %v8450_v25  ;;  %20948 = vst [vmem:[#allocation75_spill] sm:$0xff] %v17667_v40  ;;  %v17674_v27 = vld [vmem:[#allocation2 + $0x98] sm:$0x1]  ;;  %v17680_v25 = vsel %vm16921_vm3, %v8456_v46, %v8457_v32  ;;  %v8464_v15 = vrot.slane %v17637_v17, 5  ;;  %v8468_v5 = vrot.slane %v17618_v31, 5 }
 0x470   : > { %20947 = vst [vmem:[#allocation74_spill] sm:$0xff] %v17663_v39  ;;  %20950 = vst [vmem:[#allocation77_spill] sm:$0xff] %v17680_v25  ;;  %v8463_v38 = vrot.slane %v8461_v10, 4  ;;  %v13259_v9 = vrot.slane %v8354_v43, 9  ;;  %v8471_v62 = vrot.slane %v17639_v50, 5  ;;  %v13260_v14 = vrot.slane %v8355_v52, 9 }
 0x471   : > { %v17692_v46 = vld [vmem:[#allocation2 + $0xa0] sm:$0xf]  ;;  %v17694_v32 = vld [vmem:[#allocation2 + $0xac] sm:$0xf]  ;;  %v8470_v49 = vrot.slane %v8468_v5, 4  ;;  %v8475_v43 = vrot.slane %v17647_v60, 5 }
 0x472   : > { %v17704_v25 = vld [vmem:[%s20752_s3 + $0x60] sm:$0xff]   ;;  %v8482_v52 = vrot.slane %v17649_v42, 5  ;;  %v7646_v40 = vld [vmem:[#allocation2 + $0xb0] sm:$0x1]  ;;  %v13261_v60 = vrot.slane %v8356_v19, 9 }
 0x473   : > { %v17722_v34 = vsel %vm16921_vm3, %v8470_v49, %v8471_v62  ;;  %v8477_v50 = vrot.slane %v8475_v43, 4  ;;  %v8358_v42 = vld [vmem:[#allocation2 + $0xa8] sm:$0xe]  ;;  %v17728_v17 = vld [vmem:[#allocation2 + $0xb8] sm:$0xf]  ;;  %v17734_v62 = vsel %vm16921_vm3, %v13260_v14, %v8475_v43 }
 0x474   : > { %14377 = vmatmul.mubr.msk.bf16.vlgmr.msra.gmra.mrb[0].mxu1 %vm4665_vm6, %v17453_v35  ;;  %v17698_v35 = vsel %vm16921_vm3, %v13258_v57, %v8461_v10  ;;  %v17714_v57 = vsel %vm16921_vm3, %v13259_v9, %v8468_v5  ;;  %v8478_v10 = vrot.slane %v17672_v20, 5  ;;  %20953 = vst [vmem:[#allocation80_spill] sm:$0xff] %v17722_v34  ;;  %v8484_v5 = vrot.slane %v8482_v52, 4  ;;  %v17730_v39 = vld [vmem:[#allocation2 + $0xc4] sm:$0xf]  ;;  %20954 = vst [vmem:[#allocation81_spill] sm:$0xff] %v17734_v62 }
 0x475   : > { %14380 = vmatprep.mubr.msk.bf16.mxu1 %vm4665_vm6, %v17486_v6  ;;  %14409 = vmatpush3.bf16.msra.mxu1 %v17394_v29  ;;  %v17706_v6 = vld [vmem:[#allocation2 + $0xa4] sm:$0x1]  ;;  %v17710_v29 = vsel %vm16921_vm3, %v8463_v38, %v8464_v15  ;;  %20952 = vst [vmem:[#allocation79_spill] sm:$0xff] %v17714_v57  ;;  %v8357_v15 = vld [vmem:[#allocation2 + $0x9c] sm:$0xe]  ;;  %v8485_v20 = vrot.slane %v17674_v27, 5  ;;  %v17742_v49 = vsel %vm16921_vm3, %v13261_v60, %v8482_v52 }
 0x476   : > { %14410 = vmatprep.subr.bf16.mxu1 %v15329_v2  ;;  %20951 = vst [vmem:[#allocation78_spill] sm:$0xff] %v17710_v29  ;;  %v17738_v19 = vsel %vm16921_vm3, %v8477_v50, %v8478_v10  ;;  %20956 = vst [vmem:[#allocation83_spill] sm:$0xff] %v17742_v49  ;;  %v8489_v9 = vrot.slane %v17692_v46, 5  ;;  %v13262_v43 = vrot.slane %v8357_v15, 9  ;;  %v8496_v50 = vrot.slane %v17694_v32, 5  ;;  %v21039_v45 = vld [vmem:[#allocation64_spill] sm:$0xff] }
 0x477   : > { %20955 = vst [vmem:[#allocation82_spill] sm:$0xff] %v17738_v19  ;;  %v17750_v14 = vsel %vm16921_vm3, %v8484_v5, %v8485_v20  ;;  %v8359_v10 = vld [vmem:[#allocation2 + $0xb4] sm:$0xe]  ;;  %v7652_v34 = vld [vmem:[#allocation2 + $0xc8] sm:$0x1]  ;;  %v8492_v57 = vrot.slane %v17706_v6, 5 }
 0x478   : > { %20957 = vst [vmem:[#allocation84_spill] sm:$0xff] %v17750_v14  ;;  %v8491_v52 = vrot.slane %v8489_v9, 4  ;;  %v13263_v29 = vrot.slane %v8358_v42, 9  ;;  %v17760_v38 = vsel %vm16921_vm3, %v13262_v43, %v8489_v9  ;;  %v8498_v20 = vrot.slane %v8496_v50, 4  ;;  %v8360_v19 = vld [vmem:[#allocation2 + $0xc0] sm:$0xe] }
 0x479   : > { %14411 = vmatpush3.bf16.msra.mxu1 %v15329_v2  ;;  %v7649_v2 = vld [vmem:[#allocation2 + $0xbc] sm:$0x1]  ;;  %v8499_v15 = vrot.slane %v7646_v40, 5  ;;  %v8503_v5 = vrot.slane %v17728_v17, 5  ;;  %v8510_v9 = vrot.slane %v17730_v39, 5  ;;  %v8513_v62 = vrot.slane %v7652_v34, 5 }
 0x47a   : > { %14444 = vmatprep.subr.bf16.mxu1 %v17704_v25  ;;  %v17767_v60 = vsel %vm16921_vm3, %v8491_v52, %v8492_v57  ;;  %v17771_v42 = vsel %vm16921_vm3, %v13263_v29, %v8496_v50  ;;  %v13265_v52 = vrot.slane %v8360_v19, 9  ;;  %v6313_v29 = vshll.u32 %v17229_v47, 16 }
 0x47b   : > { %v13282_v40 = vcombine.low %v17760_v38, %v17767_v60  ;;  %v17778_v43 = vsel %vm16921_vm3, %v8498_v20, %v8499_v15  ;;  %v8505_v14 = vrot.slane %v8503_v5, 4  ;;  %v8512_v49 = vrot.slane %v8510_v9, 4  ;;  %v15353_v38 = vld [vmem:[%s20754_s5 + $0x8] sm:$0xff]   ;;  %v18271_v60 = vld [vmem:[%s20758_s9] sm:$0xff]  }
 0x47c   : > { %14381 = vmatmul.mubr.msk.bf16.gmra.mrb[4].mxu1 %vm4665_vm6, %v17488_v51  ;;  %v13264_v51 = vrot.slane %v8359_v10, 9  ;;  %v13283_v57 = vcombine.low %v17771_v42, %v17778_v43  ;;  %v6317_v50 = vshrl.u32 %v17229_v47, 16  ;;  %v17797_v34 = vsel %vm16921_vm3, %v13265_v52, %v8510_v9  ;;  %v18277_v42 = vld [vmem:[%s20753_s4] ss:$0 sm:$0xff] }
 0x47d   : > { %14384 = vmatprep.mubr.msk.bf16.mxu1 %vm4665_vm6, %v17495_v26  ;;  %v8506_v26 = vrot.slane %v7649_v2, 5  ;;  %v6307_v2 = vshll.u32 %v17670_v44, 16  ;;  %v17801_v47 = vsel %vm16921_vm3, %v8512_v49, %v8513_v62  ;;  %v20958_v19 = vor.u32 %v17507_v24, %v17505_v12 }
 0x47e   : > { %v17786_v10 = vsel %vm16921_vm3, %v13264_v51, %v8503_v5  ;;  %v13285_v15 = vcombine.low %v17797_v34, %v17801_v47  ;;  %v20960_v62 = vsel %vm16407_vm5, %v17499_v63, %v17515_v53  ;;  %v20961_v12 = vsel %vm16407_vm5, %v17497_v28, %v17461_v13  ;;  %v6048_v53 = vld [vmem:[#allocation2 + $0x90] sm:$0xf] }
 0x47f   : > { %v17790_v20 = vsel %vm16921_vm3, %v8505_v14, %v8506_v26  ;;  %v6263_v5 = vrot.slane %v20958_v19, 4  ;;  %v20959_v14 = vor.u32 %v17519_v41, %v17517_v33  ;;  %v6296_v26 = vor.u32 %v17580_v37, %v17557_v36 }
 0x480   : > { %v13093_v24 = vcombine.low %v20961_v12, %v20960_v62  ;;  %v20962_v41 = vshll.u32 %v17205_v18, 16  ;;  %v20963_v37 = vshll.u32 %v17207_v16, 16  ;;  %v6299_v52 = vshll.u32 %v17218_v3, 16 }
 0x481   : > { %v6273_v51 = vrot.slane %v20959_v14, 4  ;;  %v17830_v19 = vrot.slane %v6313_v29, 5  ;;  %v6319_v63 = vrot.slane %v6317_v50, 4  ;;  %v6244_v18 = vsel %vm16407_vm5, %v17534_v21, %v17478_v61 }
 0x482   : > { %v6253_v49 = vrot.slane %v20962_v41, 5  ;;  %v6277_v9 = vrot.slane %v20963_v37, 5  ;;  %v6286_v13 = vor.u32 %v17555_v23, %v17553_v58  ;;  %v20964_v28 = vshrl.u32 %v17670_v44, 16  ;;  %v6051_v44 = vld [vmem:[#allocation2 + $0x9c] sm:$0xf] }
 0x483   : > { %v6268_v29 = vsel %vm16407_vm5, %v6263_v5, %v17517_v33  ;;  %v6297_v14 = vrot.slane %v6296_v26, 4  ;;  %v6328_v61 = vshrl.u32 %v6048_v53, 16  ;;  %v6331_v21 = vshll.u32 %v6048_v53, 16 }
 0x484   : > { %14385 = vmatmul.mubr.msk.bf16.gmra.mrb[8].mxu1 %vm4665_vm6, %v17513_v22  ;;  %v6306_v16 = vrot.slane %v20964_v28, 4  ;;  %v6309_v22 = vrot.slane %v6307_v2, 5  ;;  %v6254_v3 = vsel %vm16407_vm5, %v17542_v56, %v6253_v49  ;;  %v6278_v50 = vsel %vm16407_vm5, %v6273_v51, %v6277_v9 }
 0x485   : > { %14388 = vmatprep.mubr.msk.bf16.mxu1 %vm4665_vm6, %v13093_v24  ;;  %v6337_v58 = vshll.u32 %v17247_v59, 16  ;;  %v6341_v23 = vshrl.u32 %v17247_v59, 16  ;;  %v6301_v2 = vrot.slane %v6299_v52, 5  ;;  %v6320_v62 = vor.u32 %v6319_v63, %v17830_v19 }
 0x486   : > { %v6361_v56 = vshll.u32 %v17263_v1, 16  ;;  %v6365_v12 = vshrl.u32 %v17263_v1, 16  ;;  %v13094_v24 = vcombine.low %v6244_v18, %v6254_v3  ;;  %v13095_v33 = vcombine.low %v6268_v29, %v6278_v50  ;;  %v6054_v29 = vld [vmem:[#allocation2 + $0xa8] sm:$0xf] }
 0x487   : > { %v6287_v5 = vrot.slane %v6286_v13, 4  ;;  %v6310_v41 = vor.u32 %v6309_v22, %v6306_v16  ;;  %v6302_v51 = vsel %vm16407_vm5, %v6297_v14, %v6301_v2  ;;  %v6323_v26 = vshll.u32 %v17238_v48, 16 }
 0x488   : > { %v6352_v49 = vshrl.u32 %v6051_v44, 16  ;;  %v6355_v37 = vshll.u32 %v6051_v44, 16  ;;  %v6330_v59 = vrot.slane %v6328_v61, 4  ;;  %v6333_v9 = vrot.slane %v6331_v21, 5 }
 0x489   : > { %v6339_v52 = vrot.slane %v6337_v58, 5  ;;  %v6343_v53 = vrot.slane %v6341_v23, 4  ;;  %v6321_v63 = vrot.slane %v6320_v62, 4  ;;  %v6363_v28 = vrot.slane %v6361_v56, 5  ;;  %v6057_v58 = vld [vmem:[#allocation2 + $0xb4] sm:$0xf] }
 0x48a   : > { %v6367_v1 = vrot.slane %v6365_v12, 4  ;;  %v6292_v18 = vsel %vm16407_vm5, %v6287_v5, %v17557_v36  ;;  %v6311_v13 = vrot.slane %v6310_v41, 4  ;;  %v6325_v48 = vrot.slane %v6323_v26, 5 }
 0x48b   : > { %v13096_v16 = vcombine.low %v6292_v18, %v6302_v51  ;;  %v6354_v22 = vrot.slane %v6352_v49, 4  ;;  %v6357_v3 = vrot.slane %v6355_v37, 5  ;;  %v6334_v50 = vor.u32 %v6333_v9, %v6330_v59 }
 0x48c   : > { %14389 = vmatmul.mubr.msk.bf16.gmra.mrb[12].mxu1 %vm4665_vm6, %v13094_v24  ;;  %v6344_v14 = vor.u32 %v6343_v53, %v6339_v52  ;;  %v6385_v61 = vshll.u32 %v17284_v0, 16  ;;  %v6389_v21 = vshrl.u32 %v17284_v0, 16  ;;  %v6326_v23 = vsel %vm16407_vm5, %v6321_v63, %v6325_v48  ;;  %v6060_v48 = vld [vmem:[#allocation2 + $0xc0] sm:$0xf] }
 0x48d   : > { %14392 = vmatprep.mubr.msk.bf16.mxu1 %vm4665_vm6, %v13095_v33  ;;  %v6368_v44 = vor.u32 %v6367_v1, %v6363_v28  ;;  %v6409_v2 = vshll.u32 %v17299_v54, 16  ;;  %v6413_v36 = vshrl.u32 %v17299_v54, 16  ;;  %v6316_v62 = vsel %vm16407_vm5, %v6311_v13, %v17830_v19 }
 0x48e   : > { %v6347_v56 = vshll.u32 %v17255_v4, 16  ;;  %v6376_v12 = vshrl.u32 %v6054_v29, 16  ;;  %v6379_v24 = vshll.u32 %v6054_v29, 16  ;;  %v6358_v33 = vor.u32 %v6357_v3, %v6354_v22 }
 0x48f   : > { %v6371_v0 = vshll.u32 %v17275_v11, 16  ;;  %v6400_v5 = vshrl.u32 %v6057_v58, 16  ;;  %v6403_v41 = vshll.u32 %v6057_v58, 16  ;;  %v13097_v51 = vcombine.low %v6316_v62, %v6326_v23  ;;  %v15442_v58 = vld [vmem:[#allocation2 + $0xb0] sm:$0x1] }
 0x490   : > { %v6345_v26 = vrot.slane %v6344_v14, 4  ;;  %v6387_v49 = vrot.slane %v6385_v61, 5  ;;  %v6391_v37 = vrot.slane %v6389_v21, 4  ;;  %v6335_v54 = vrot.slane %v6334_v50, 4 }
 0x491   : > { %v6369_v59 = vrot.slane %v6368_v44, 4  ;;  %v6411_v9 = vrot.slane %v6409_v2, 5  ;;  %v6415_v53 = vrot.slane %v6413_v36, 4  ;;  %v6349_v4 = vrot.slane %v6347_v56, 5 }
 0x492   : > { %v6378_v19 = vrot.slane %v6376_v12, 4  ;;  %v6381_v63 = vrot.slane %v6379_v24, 5  ;;  %v6359_v1 = vrot.slane %v6358_v33, 4  ;;  %v6373_v18 = vrot.slane %v6371_v0, 5 }
 0x493   : > { %v6402_v11 = vrot.slane %v6400_v5, 4  ;;  %v6405_v13 = vrot.slane %v6403_v41, 5  ;;  %v6350_v22 = vsel %vm16407_vm5, %v6345_v26, %v6349_v4  ;;  %v6392_v3 = vor.u32 %v6391_v37, %v6387_v49 }
 0x494   : > { %14393 = vmatmul.mubr.msk.bf16.gmra.mrb[16].mxu1 %vm4665_vm6, %v13096_v16  ;;  %v6433_v16 = vshll.u32 %v17319_v8, 16  ;;  %v6437_v29 = vshrl.u32 %v17319_v8, 16  ;;  %v6340_v50 = vsel %vm16407_vm5, %v6335_v54, %v6339_v52  ;;  %v6374_v14 = vsel %vm16407_vm5, %v6369_v59, %v6373_v18 }
 0x495   : > { %14396 = vmatprep.mubr.msk.bf16.mxu1 %vm4665_vm6, %v13097_v51  ;;  %v6416_v61 = vor.u32 %v6415_v53, %v6411_v9  ;;  %v6382_v21 = vor.u32 %v6381_v63, %v6378_v19  ;;  %v6395_v23 = vshll.u32 %v15442_v58, 16  ;;  %v6424_v44 = vshrl.u32 %v6060_v48, 16  ;;  %v15443_v63 = vld [vmem:[#allocation2 + $0xc8] sm:$0x1] }
 0x496   : > { %v6427_v2 = vshll.u32 %v6060_v48, 16  ;;  %v13098_v36 = vcombine.low %v6340_v50, %v6350_v22  ;;  %v6364_v62 = vsel %vm16407_vm5, %v6359_v1, %v6363_v28  ;;  %v6406_v56 = vor.u32 %v6405_v13, %v6402_v11 }
 0x497   : > { %v6419_v12 = vshll.u32 %v17308_v55, 16  ;;  %v13099_v8 = vcombine.low %v6364_v62, %v6374_v14  ;;  %v6393_v24 = vrot.slane %v6392_v3, 4  ;;  %v6435_v33 = vrot.slane %v6433_v16, 5  ;;  %v20966_v14 = vld [vmem:[#allocation41_spill] sm:$0xff]  ;;  %v6754_v62 = vld [vmem:[#allocation2 + $0x18] sm:$0xe] }
 0x498   : > { %v6439_v52 = vrot.slane %v6437_v29, 4  ;;  %v6417_v0 = vrot.slane %v6416_v61, 4  ;;  %v6383_v5 = vrot.slane %v6382_v21, 4  ;;  %v6397_v41 = vrot.slane %v6395_v23, 5  ;;  %v20965_v29 = vld [vmem:[#allocation42_spill] sm:$0xff] }
 0x499   : > { %v6426_v51 = vrot.slane %v6424_v44, 4  ;;  %v6429_v26 = vrot.slane %v6427_v2, 5  ;;  %v6407_v37 = vrot.slane %v6406_v56, 4  ;;  %v6421_v54 = vrot.slane %v6419_v12, 5  ;;  %v20967_v56 = vld [vmem:[#allocation43_spill] sm:$0xff]  ;;  %21063 = vst [vmem:[#allocation42_spill] sm:$0xff] %v18271_v60 }
 0x49a   : > { %v6398_v28 = vsel %vm16407_vm5, %v6393_v24, %v6397_v41  ;;  %v6440_v59 = vor.u32 %v6439_v52, %v6435_v33  ;;  %v6819_v53 = vrot.slane %v17389_v7, 5  ;;  %v6388_v4 = vsel %vm16407_vm5, %v6383_v5, %v6387_v49  ;;  %v6753_v7 = vld [vmem:[#allocation2 + $0xc] sm:$0xe]  ;;  %v20969_v41 = vld [vmem:[#allocation14_spill] sm:$0xff] }
 0x49b   : > { %v6422_v55 = vsel %vm16407_vm5, %v6417_v0, %v6421_v54  ;;  %v6430_v19 = vor.u32 %v6429_v26, %v6426_v51  ;;  %v6443_v1 = vshll.u32 %v15443_v63, 16  ;;  %v13100_v18 = vcombine.low %v6388_v4, %v6398_v28  ;;  %v15331_v0 = vld [vmem:[%s20752_s3 + $0x68] sm:$0xff]   ;;  %v15334_v26 = vld [vmem:[%s20752_s3 + $0x70] sm:$0xff]   ;;  %v20977_v4 = vld [vmem:[#allocation19_spill] sm:$0xff] }
 0x49c   : > { %14397 = vmatmul.mubr.msk.bf16.gmra.mrb[20].mxu1 %vm4665_vm6, %v13098_v36  ;;  %v6412_v11 = vsel %vm16407_vm5, %v6407_v37, %v6411_v9  ;;  %v6441_v48 = vrot.slane %v6440_v59, 4  ;;  %v6821_v22 = vrot.slane %v6819_v53, 4  ;;  %v6822_v50 = vrot.slane %v20965_v29, 5  ;;  %v20968_v5 = vld [vmem:[#allocation13_spill] sm:$0xff]  ;;  %v20971_v37 = vld [vmem:[#allocation15_spill] sm:$0xff]  ;;  %v20974_v59 = vld [vmem:[#allocation16_spill] sm:$0xff] }
 0x49d   : > { %14400 = vmatprep.mubr.msk.bf16.mxu1 %vm4665_vm6, %v13099_v8  ;;  %v13101_v13 = vcombine.low %v6412_v11, %v6422_v55  ;;  %v6431_v3 = vrot.slane %v6430_v19, 4  ;;  %v6445_v16 = vrot.slane %v6443_v1, 5  ;;  %v6826_v61 = vrot.slane %v20966_v14, 5  ;;  %v20972_v54 = vld [vmem:[#allocation17_spill] sm:$0xff]  ;;  %v20975_v55 = vld [vmem:[#allocation18_spill] sm:$0xff]  ;;  %v20978_v19 = vld [vmem:[#allocation20_spill] sm:$0xff] }
 0x49e   : > { %v13121_v21 = vrot.slane %v6753_v7, 9  ;;  %v6823_v9 = vsel %vm16921_vm3, %v6821_v22, %v6822_v50  ;;  %v6829_v12 = vrot.slane %v20967_v56, 5  ;;  %v13122_v8 = vrot.slane %v6754_v62, 9  ;;  %v20980_v63 = vld [vmem:[#allocation21_spill] sm:$0xff]  ;;  %v20981_v1 = vld [vmem:[#allocation22_spill] sm:$0xff]  ;;  %v20983_v11 = vld [vmem:[#allocation23_spill] sm:$0xff] }
 0x49f   : > { %v6446_v49 = vsel %vm16407_vm5, %v6441_v48, %v6445_v16  ;;  %v6436_v58 = vsel %vm16407_vm5, %v6431_v3, %v6435_v33  ;;  %v6828_v36 = vrot.slane %v6826_v61, 4  ;;  %v20970_v51 = vcombine.low %v20968_v5, %v20969_v41  ;;  %v20986_v22 = vld [vmem:[#allocation24_spill] sm:$0xff]  ;;  %v20987_v3 = vld [vmem:[#allocation26_spill] sm:$0xff]  ;;  %v20989_v7 = vld [vmem:[#allocation27_spill] sm:$0xff] }
 0x4a0   : > { %v13102_v23 = vcombine.low %v6436_v58, %v6446_v49  ;;  %v6820_v44 = vsel %vm16921_vm3, %v13121_v21, %v6819_v53  ;;  %v6827_v33 = vsel %vm16921_vm3, %v13122_v8, %v6826_v61  ;;  %v20973_v28 = vcombine.low %v20971_v37, %v20972_v54  ;;  %v20990_v29 = vld [vmem:[#allocation28_spill] sm:$0xff]  ;;  %v20992_v49 = vld [vmem:[#allocation29_spill] sm:$0xff]  ;;  %v20993_v14 = vld [vmem:[#allocation30_spill] sm:$0xff] }
 0x4a1   : > { %v13141_v2 = vcombine.low %v6820_v44, %v6823_v9  ;;  %v6830_v24 = vsel %vm16921_vm3, %v6828_v36, %v6829_v12  ;;  %v20976_v53 = vcombine.low %v20974_v59, %v20975_v55  ;;  %v20988_v16 = vcombine.low %v20986_v22, %v20987_v3  ;;  %v20995_v21 = vld [vmem:[#allocation31_spill] sm:$0xff]  ;;  %v20996_v9 = vld [vmem:[#allocation32_spill] sm:$0xff]  ;;  %v20999_v44 = vld [vmem:[#allocation34_spill] sm:$0xff] }
 0x4a2   : > { %v13142_v52 = vcombine.low %v6827_v33, %v6830_v24  ;;  %v20991_v50 = vcombine.low %v20989_v7, %v20990_v29  ;;  %v20994_v61 = vcombine.low %v20992_v49, %v20993_v14  ;;  %v20997_v58 = vcombine.low %v20995_v21, %v20996_v9  ;;  %v21001_v36 = vld [vmem:[#allocation35_spill] sm:$0xff]  ;;  %v21002_v62 = vld [vmem:[#allocation36_spill] sm:$0xff]  ;;  %v21004_v12 = vld [vmem:[#allocation37_spill] sm:$0xff] }
 0x4a3   : > { %v21003_v56 = vcombine.low %v21001_v36, %v21002_v62  ;;  %v21005_v8 = vld [vmem:[#allocation38_spill] sm:$0xff]  ;;  %v15333_v41 = vld [vmem:[#allocation2 + $0x24] sm:$0xff]   ;;  %v21011_v14 = vld [vmem:[#allocation47_spill] sm:$0xff] }
 0x4a4   : > { %14401 = vmatmul.mubr.msk.bf16.gmra.mrb[24].mxu1 %vm4665_vm6, %v13100_v18  ;;  %v20982_v18 = vcombine.low %v20980_v63, %v20981_v1  ;;  %v21006_v24 = vcombine.low %v21004_v12, %v21005_v8  ;;  %v15332_v33 = vld [vmem:[#allocation2 + $0x18] sm:$0xff]   ;;  %v15335_v37 = vld [vmem:[#allocation2 + $0x30] sm:$0xff]   ;;  %v17989_v54 = vld [vmem:[%s20752_s3 + $0x80] sm:$0xff]   ;;  %v7694_v21 = vshrl.u32 %v21011_v14, 16 }
 0x4a5   : > { %14404 = vmatprep.mubr.msk.bf16.mxu1 %vm4665_vm6, %v13101_v13  ;;  %v20984_v13 = vld [vmem:[#allocation25_spill] sm:$0xff]  ;;  %v15338_v55 = vld [vmem:[#allocation2 + $0x54] sm:$0xff]   ;;  %v7611_v22 = vld [vmem:[#allocation2 + $0x24] sm:$0xf] }
 0x4a6   : > { %v20985_v48 = vcombine.low %v20983_v11, %v20984_v13  ;;  %v15337_v59 = vld [vmem:[#allocation2 + $0x48] sm:$0xff]   ;;  %v7684_v49 = vshll.u32 %v7611_v22, 16 }
 0x4a7   : > { %v15346_v12 = vld [vmem:[#allocation2 + $0xa8] sm:$0xff]  }
 0x4ac   : > { %14405 = vmatmul.mubr.msk.bf16.gmra.mrb[28].mxu1 %vm4665_vm6, %v13102_v23  ;;  %v20998_v23 = vld [vmem:[#allocation33_spill] sm:$0xff] }
 0x4ad   : > { %14412 = vmatprep.mubr.msk.bf16.mxu1 %vm4665_vm6, %v13141_v2  ;;  %v21000_v2 = vcombine.low %v20998_v23, %v20999_v44  ;;  %v15345_v23 = vld [vmem:[#allocation2 + $0x9c] sm:$0xff]  }
 0x4b4   : > { %14413 = vmatmul.mubr.msk.bf16.vlgmr.msra.gmra.mrb[0].mxu1 %vm4665_vm6, %v13142_v52  ;;  %v21007_v52 = vld [vmem:[#allocation39_spill] sm:$0xff] }
 0x4b5   : > { %14416 = vmatprep.mubr.msk.bf16.mxu1 %vm4665_vm6, %v20970_v51  ;;  %14445 = vmatpush3.bf16.msra.mxu1 %v17704_v25  ;;  %v20979_v25 = vcombine.low %v20977_v4, %v20978_v19  ;;  %v15343_v51 = vld [vmem:[%s20752_s3 + $0x78] sm:$0xff]  }
 0x4b6   : > { %14446 = vmatprep.subr.bf16.mxu1 %v15331_v0  ;;  %v15341_v4 = vld [vmem:[#allocation2 + $0x78] sm:$0xff]  }
 0x4b7   : > { %v7608_v19 = vld [vmem:[#allocation2 + $0x18] sm:$0xf] }
 0x4b8   : > { %v7657_v11 = vshrl.u32 %v7608_v19, 16  ;;  %v7660_v13 = vshll.u32 %v7608_v19, 16 }
 0x4b9   : > { %14447 = vmatpush3.bf16.msra.mxu1 %v15331_v0  ;;  %v21008_v0 = vld [vmem:[#allocation40_spill] sm:$0xff] }
 0x4ba   : > { %14480 = vmatprep.subr.bf16.mxu1 %v15334_v26  ;;  %v21009_v5 = vcombine.low %v21007_v52, %v21008_v0  ;;  %v7659_v7 = vrot.slane %v7657_v11, 4  ;;  %v7662_v29 = vrot.slane %v7660_v13, 5  ;;  %v15347_v13 = vld [vmem:[#allocation2 + $0xb4] sm:$0xff]  }
 0x4bc   : > { %14417 = vmatmul.mubr.msk.bf16.gmra.mrb[4].mxu1 %vm4665_vm6, %v20973_v28  ;;  %v15336_v28 = vld [vmem:[#allocation2 + $0x3c] sm:$0xff]   ;;  %v7663_v44 = vor.u32 %v7662_v29, %v7659_v7 }
 0x4bd   : > { %14420 = vmatprep.mubr.msk.bf16.mxu1 %vm4665_vm6, %v20976_v53  ;;  %v15339_v53 = vld [vmem:[#allocation2 + $0x60] sm:$0xff]  }
 0x4be   : > { %v15348_v29 = vld [vmem:[#allocation2 + $0xc0] sm:$0xff]  }
 0x4c4   : > { %14421 = vmatmul.mubr.msk.bf16.gmra.mrb[8].mxu1 %vm4665_vm6, %v20979_v25  ;;  %v21010_v25 = vld [vmem:[#allocation44_spill] sm:$0xff] }
 0x4c5   : > { %14424 = vmatprep.mubr.msk.bf16.mxu1 %vm4665_vm6, %v20982_v18  ;;  %v7666_v63 = vshll.u32 %v21010_v25, 16  ;;  %v7670_v1 = vshrl.u32 %v21010_v25, 16  ;;  %v15342_v18 = vld [vmem:[#allocation2 + $0x84] sm:$0xff]  }
 0x4c7   : > { %v7668_v3 = vrot.slane %v7666_v63, 5 }
 0x4cc   : > { %14425 = vmatmul.mubr.msk.bf16.gmra.mrb[12].mxu1 %vm4665_vm6, %v20985_v48  ;;  %v15344_v48 = vld [vmem:[#allocation2 + $0x90] sm:$0xff]  }
 0x4cd   : > { %14428 = vmatprep.mubr.msk.bf16.mxu1 %vm4665_vm6, %v20988_v16  ;;  %v7672_v16 = vrot.slane %v7670_v1, 4 }
 0x4cf   : > { %v7673_v9 = vor.u32 %v7672_v16, %v7668_v3 }
 0x4d4   : > { %14429 = vmatmul.mubr.msk.bf16.gmra.mrb[16].mxu1 %vm4665_vm6, %v20991_v50  ;;  %v7681_v50 = vshrl.u32 %v7611_v22, 16 }
 0x4d5   : > { %14432 = vmatprep.mubr.msk.bf16.mxu1 %vm4665_vm6, %v20994_v61  ;;  %v7690_v61 = vshll.u32 %v21011_v14, 16  ;;  %v21015_v14 = vld [vmem:[#allocation49_spill] sm:$0xff] }
 0x4d6   : > { %v7683_v62 = vrot.slane %v7681_v50, 4 }
 0x4d7   : > { %v18005_v8 = vrot.slane %v7690_v61, 5  ;;  %v7724_v61 = vshll.u32 %v21015_v14, 16 }
 0x4dc   : > { %14433 = vmatmul.mubr.msk.bf16.gmra.mrb[20].mxu1 %vm4665_vm6, %v20997_v58  ;;  %v7614_v58 = vld [vmem:[#allocation2 + $0x30] sm:$0xf] }
 0x4dd   : > { %14436 = vmatprep.mubr.msk.bf16.mxu1 %vm4665_vm6, %v21000_v2  ;;  %v21012_v2 = vld [vmem:[#allocation45_spill] sm:$0xff] }
 0x4de   : > { %v7676_v36 = vshll.u32 %v21012_v2, 16 }
 0x4e4   : > { %14437 = vmatmul.mubr.msk.bf16.gmra.mrb[24].mxu1 %vm4665_vm6, %v21003_v56  ;;  %v7686_v56 = vrot.slane %v7684_v49, 5 }
 0x4e5   : > { %14440 = vmatprep.mubr.msk.bf16.mxu1 %vm4665_vm6, %v21006_v24  ;;  %v7696_v24 = vrot.slane %v7694_v21, 4  ;;  %v21016_v21 = vld [vmem:[#allocation50_spill] sm:$0xff] }
 0x4e6   : > { %v7742_v2 = vshrl.u32 %v21016_v21, 16 }
 0x4ec   : > { %14441 = vmatmul.mubr.msk.bf16.gmra.mrb[28].mxu1 %vm4665_vm6, %v21009_v5  ;;  %v7705_v5 = vshrl.u32 %v7614_v58, 16 }
 0x4ed   : > { %14448 = vmatprep.mubr.msk.bf16.mxu1 %vm4665_vm6, %v15332_v33  ;;  %v21013_v33 = vld [vmem:[#allocation46_spill] sm:$0xff] }
 0x4ee   : > { %v7714_v52 = vshll.u32 %v21013_v33, 16  ;;  %v7718_v0 = vshrl.u32 %v21013_v33, 16  ;;  %v7707_v63 = vrot.slane %v7705_v5, 4  ;;  %v8361_v33 = vld [vmem:[#allocation2 + $0xcc] sm:$0xe] }
 0x4f0   : > { %v18013_v19 = vrot.slane %v7714_v52, 5  ;;  %v7720_v25 = vrot.slane %v7718_v0, 4 }
 0x4f2   : > { %v7721_v49 = vor.u32 %v7720_v25, %v18013_v19  ;;  %v15349_v25 = vld [vmem:[#allocation2 + $0xcc] sm:$0xff]  }
 0x4f4   : > { %14449 = vmatmul.mubr.msk.bf16.vlgmr.msra.gmra.mrb[0].mxu1 %vm4665_vm6, %v15333_v41  ;;  %v7708_v41 = vshll.u32 %v7614_v58, 16  ;;  %v7620_v58 = vld [vmem:[#allocation2 + $0x48] sm:$0xf] }
 0x4f5   : > { %14452 = vmatprep.mubr.msk.bf16.mxu1 %vm4665_vm6, %v15335_v37  ;;  %14481 = vmatpush3.bf16.msra.mxu1 %v15334_v26  ;;  %v15340_v26 = vld [vmem:[#allocation2 + $0x6c] sm:$0xff]   ;;  %v7664_v37 = vrot.slane %v7663_v44, 4 }
 0x4f6   : > { %14482 = vmatprep.subr.bf16.mxu1 %v15343_v51  ;;  %v7710_v1 = vrot.slane %v7708_v41, 5  ;;  %v7623_v41 = vld [vmem:[#allocation2 + $0x54] sm:$0xf] }
 0x4f8   : > { %v7711_v44 = vor.u32 %v7710_v1, %v7707_v63  ;;  %v7744_v63 = vrot.slane %v7742_v2, 4  ;;  %v7756_v1 = vshll.u32 %v7620_v58, 16 }
 0x4f9   : > { %14483 = vmatpush3.bf16.msra.mxu1 %v15343_v51  ;;  %v7674_v51 = vrot.slane %v7673_v9, 4  ;;  %v7738_v9 = vshll.u32 %v21016_v21, 16 }
 0x4fa   : > { %14516 = vmatprep.subr.bf16.mxu1 %v17989_v54 }
 0x4fc   : > { %14453 = vmatmul.mubr.msk.bf16.gmra.mrb[4].mxu1 %vm4665_vm6, %v15336_v28  ;;  %v7687_v28 = vor.u32 %v7686_v56, %v7683_v62  ;;  %v18025_v62 = vld [vmem:[#allocation2 + $0xd0] sm:$0xf]  ;;  %v18027_v56 = vld [vmem:[#allocation2 + $0xd4] sm:$0x1] }
 0x4fd   : > { %14456 = vmatprep.mubr.msk.bf16.mxu1 %vm4665_vm6, %v15337_v59  ;;  %v21014_v59 = vld [vmem:[#allocation48_spill] sm:$0xff]  ;;  %v8517_v52 = vrot.slane %v18025_v62, 5  ;;  %v8520_v0 = vrot.slane %v18027_v56, 5 }
 0x4fe   : > { %v7688_v22 = vrot.slane %v7687_v28, 4 }
 0x504   : > { %14457 = vmatmul.mubr.msk.bf16.gmra.mrb[8].mxu1 %vm4665_vm6, %v15338_v55  ;;  %v7700_v55 = vshll.u32 %v21014_v59, 16  ;;  %v13266_v59 = vrot.slane %v8361_v33, 9 }
 0x505   : > { %14460 = vmatprep.mubr.msk.bf16.mxu1 %vm4665_vm6, %v15339_v53  ;;  %v7617_v53 = vld [vmem:[#allocation2 + $0x3c] sm:$0xf] }
 0x506   : > { %v7729_v11 = vshrl.u32 %v7617_v53, 16  ;;  %v7702_v16 = vrot.slane %v7700_v55, 5  ;;  %v7732_v7 = vshll.u32 %v7617_v53, 16  ;;  %v7722_v55 = vrot.slane %v7721_v49, 4 }
 0x507   : > { %v18035_v53 = vrot.slane %v7738_v9, 5  ;;  %v7726_v49 = vrot.slane %v7724_v61, 5 }
 0x508   : > { %v7734_v5 = vrot.slane %v7732_v7, 5  ;;  %v7780_v7 = vshll.u32 %v7623_v41, 16 }
 0x509   : > { %v7727_v61 = vsel %vm16407_vm5, %v7722_v55, %v7726_v49 }
 0x50c   : > { %14461 = vmatmul.mubr.msk.bf16.gmra.mrb[12].mxu1 %vm4665_vm6, %v15340_v26  ;;  %v7678_v26 = vrot.slane %v7676_v36, 5  ;;  %v21017_v36 = vld [vmem:[#allocation51_spill] sm:$0xff] }
 0x50d   : > { %14464 = vmatprep.mubr.msk.bf16.mxu1 %vm4665_vm6, %v15341_v4  ;;  %v7697_v4 = vor.u32 %v7696_v24, %v18005_v8  ;;  %v7766_v24 = vshrl.u32 %v21017_v36, 16 }
 0x50f   : > { %v7698_v50 = vrot.slane %v7697_v4, 4  ;;  %v8519_v4 = vrot.slane %v8517_v52, 4 }
 0x511   : > { %v7703_v2 = vsel %vm16407_vm5, %v7698_v50, %v7702_v16  ;;  %v7782_v16 = vrot.slane %v7780_v7, 5 }
 0x514   : > { %14465 = vmatmul.mubr.msk.bf16.gmra.mrb[16].mxu1 %vm4665_vm6, %v15342_v18  ;;  %v7679_v18 = vsel %vm16407_vm5, %v7674_v51, %v7678_v26  ;;  %v21018_v51 = vld [vmem:[#allocation58_spill] sm:$0xff]  ;;  %v7753_v26 = vshrl.u32 %v7620_v58, 16  ;;  %v7693_v58 = vsel %vm16407_vm5, %v7688_v22, %v18005_v8 }
 0x515   : > { %14468 = vmatprep.mubr.msk.bf16.mxu1 %vm4665_vm6, %v15344_v48  ;;  %v7669_v48 = vsel %vm16407_vm5, %v7664_v37, %v7668_v3  ;;  %v7762_v3 = vshll.u32 %v21017_v36, 16  ;;  %v7786_v37 = vshll.u32 %v21018_v51, 16  ;;  %v7790_v28 = vshrl.u32 %v21018_v51, 16 }
 0x516   : > { %v7712_v36 = vrot.slane %v7711_v44, 4  ;;  %v13218_v50 = vcombine.low %v7693_v58, %v7703_v2  ;;  %v7801_v51 = vshrl.u32 %v7626_v30, 16 }
 0x517   : > { %v18047_v14 = vrot.slane %v7786_v37, 5  ;;  %v7792_v21 = vrot.slane %v7790_v28, 4  ;;  %v7804_v37 = vshll.u32 %v7626_v30, 16 }
 0x518   : > { %v7717_v28 = vsel %vm16407_vm5, %v7712_v36, %v18013_v19  ;;  %v7803_v2 = vrot.slane %v7801_v51, 4  ;;  %v15351_v36 = vld [vmem:[%s20752_s3 + $0x88] sm:$0xff]  }
 0x519   : > { %v7793_v44 = vor.u32 %v7792_v21, %v18047_v14 }
 0x51b   : > { %v7794_v58 = vrot.slane %v7793_v44, 4 }
 0x51c   : > { %14469 = vmatmul.mubr.msk.bf16.gmra.mrb[20].mxu1 %vm4665_vm6, %v15345_v23  ;;  %v13217_v23 = vcombine.low %v7669_v48, %v7679_v18  ;;  %v18037_v18 = vrot.slane %v7762_v3, 5  ;;  %v7777_v48 = vshrl.u32 %v7623_v41, 16  ;;  %v21019_v3 = vld [vmem:[#allocation52_spill] sm:$0xff]  ;;  %v7758_v41 = vrot.slane %v7756_v1, 5  ;;  %v21022_v1 = vld [vmem:[#allocation61_spill] sm:$0xff] }
 0x51d   : > { %14472 = vmatprep.mubr.msk.bf16.mxu1 %vm4665_vm6, %v15346_v12  ;;  %v7731_v12 = vrot.slane %v7729_v11, 4  ;;  %v18041_v11 = vsel %vm16921_vm3, %v13266_v59, %v8517_v52  ;;  %v7745_v52 = vor.u32 %v7744_v63, %v18035_v53  ;;  %v21021_v59 = vld [vmem:[#allocation56_spill] sm:$0xff] }
 0x51e   : > { %v7779_v22 = vrot.slane %v7777_v48, 4  ;;  %v7810_v55 = vshll.u32 %v21021_v59, 16 }
 0x51f   : > { %v7735_v33 = vor.u32 %v7734_v5, %v7731_v12  ;;  %v21020_v12 = vld [vmem:[#allocation55_spill] sm:$0xff]  ;;  %v7746_v48 = vrot.slane %v7745_v52, 4 }
 0x520   : > { %v7772_v5 = vshll.u32 %v21020_v12, 16  ;;  %v7783_v21 = vor.u32 %v7782_v16, %v7779_v22  ;;  %v18074_v12 = vrot.slane %v7810_v55, 5  ;;  %v7632_v22 = vld [vmem:[#allocation2 + $0x78] sm:$0xf] }
 0x522   : > { %v7774_v30 = vrot.slane %v7772_v5, 5  ;;  %v7784_v51 = vrot.slane %v7783_v21, 4 }
 0x524   : > { %14473 = vmatmul.mubr.msk.bf16.gmra.mrb[24].mxu1 %vm4665_vm6, %v15347_v13  ;;  %v7768_v13 = vrot.slane %v7766_v24, 4  ;;  %v7748_v24 = vshll.u32 %v21019_v3, 16  ;;  %v7806_v3 = vrot.slane %v7804_v37, 5 }
 0x525   : > { %14476 = vmatprep.mubr.msk.bf16.mxu1 %vm4665_vm6, %v15348_v29  ;;  %v18045_v29 = vsel %vm16921_vm3, %v8519_v4, %v8520_v0  ;;  %v7755_v0 = vrot.slane %v7753_v26, 4  ;;  %v7629_v26 = vld [vmem:[#allocation2 + $0x6c] sm:$0xf]  ;;  %v13219_v4 = vcombine.low %v7717_v28, %v7727_v61  ;;  %v21024_v28 = vld [vmem:[#allocation62_spill] sm:$0xff] }
 0x526   : > { %v13286_v9 = vcombine.low %v18041_v11, %v18045_v29  ;;  %v7769_v8 = vor.u32 %v7768_v13, %v18037_v18  ;;  %v7750_v63 = vrot.slane %v7748_v24, 5  ;;  %v7796_v13 = vshll.u32 %v21022_v1, 16 }
 0x527   : > { %v7759_v7 = vor.u32 %v7758_v41, %v7755_v0  ;;  %v7825_v19 = vshrl.u32 %v7629_v26, 16  ;;  %v21023_v0 = vld [vmem:[#allocation65_spill] sm:$0xff]  ;;  %v7807_v37 = vor.u32 %v7806_v3, %v7803_v2  ;;  %v7820_v5 = vshll.u32 %v21024_v28, 16 }
 0x528   : > { %v7770_v49 = vrot.slane %v7769_v8, 4  ;;  %v7798_v52 = vrot.slane %v7796_v13, 5  ;;  %v7834_v41 = vshll.u32 %v21023_v0, 16  ;;  %v7838_v8 = vshrl.u32 %v21023_v0, 16 }
 0x529   : > { %v7751_v16 = vsel %vm16407_vm5, %v7746_v48, %v7750_v63  ;;  %v7760_v44 = vrot.slane %v7759_v7, 4  ;;  %v7858_v1 = vshll.u32 %v17618_v31, 16  ;;  %v7862_v13 = vshrl.u32 %v17618_v31, 16 }
 0x52a   : > { %v7840_v63 = vrot.slane %v7838_v8, 4  ;;  %v7808_v2 = vrot.slane %v7807_v37, 4  ;;  %v7822_v3 = vrot.slane %v7820_v5, 5 }
 0x52b   : > { %v7765_v7 = vsel %vm16407_vm5, %v7760_v44, %v18037_v18 }
 0x52c   : > { %14477 = vmatmul.mubr.msk.bf16.gmra.mrb[28].mxu1 %vm4665_vm6, %v15349_v25  ;;  %v7736_v25 = vrot.slane %v7735_v33, 4  ;;  %v7828_v33 = vshll.u32 %v7629_v26, 16  ;;  %v7849_v26 = vshrl.u32 %v7632_v22, 16  ;;  %v7813_v5 = vsel %vm16407_vm5, %v7808_v2, %v18074_v12  ;;  %v7641_v2 = vld [vmem:[#allocation2 + $0x9c] sm:$0xf] }
 0x52d   : > { %14484 = vmatprep.mubr.msk.bf16.mxu1 %vm4665_vm6, %v13217_v23  ;;  %v7814_v23 = vshrl.u32 %v21021_v59, 16  ;;  %v7827_v59 = vrot.slane %v7825_v19, 4  ;;  %v7635_v19 = vld [vmem:[#allocation2 + $0x84] sm:$0xf] }
 0x52e   : > { %v7741_v24 = vsel %vm16407_vm5, %v7736_v25, %v18035_v53  ;;  %v7799_v53 = vsel %vm16407_vm5, %v7794_v58, %v7798_v52  ;;  %v18097_v25 = vrot.slane %v7834_v41, 5  ;;  %v7638_v52 = vld [vmem:[#allocation2 + $0x90] sm:$0xf]  ;;  %v7873_v41 = vshrl.u32 %v7635_v19, 16 }
 0x52f   : > { %v7816_v61 = vrot.slane %v7814_v23, 4  ;;  %v7830_v23 = vrot.slane %v7828_v33, 5  ;;  %v13220_v48 = vcombine.low %v7741_v24, %v7751_v16  ;;  %v7851_v33 = vrot.slane %v7849_v26, 4 }
 0x530   : > { %v7841_v0 = vor.u32 %v7840_v63, %v18097_v25  ;;  %v7876_v8 = vshll.u32 %v7635_v19, 16 }
 0x531   : > { %v7817_v55 = vor.u32 %v7816_v61, %v18074_v12  ;;  %v21025_v61 = vld [vmem:[#allocation68_spill] sm:$0xff] }
 0x532   : > { %v7844_v31 = vshll.u32 %v21025_v61, 16 }
 0x533   : > { %v7818_v18 = vrot.slane %v7817_v55, 4 }
 0x534   : > { %14485 = vmatmul.mubr.msk.bf16.vlgmr.msra.gmra.mrb[0].mxu1 %vm4665_vm6, %v13218_v50  ;;  %v7775_v50 = vsel %vm16407_vm5, %v7770_v49, %v7774_v30  ;;  %v7789_v49 = vsel %vm16407_vm5, %v7784_v51, %v18047_v14  ;;  %v7831_v30 = vor.u32 %v7830_v23, %v7827_v59  ;;  %v7860_v14 = vrot.slane %v7858_v1, 5  ;;  %v21028_v1 = vld [vmem:[#allocation69_spill] sm:$0xff] }
 0x535   : > { %14488 = vmatprep.mubr.msk.bf16.mxu1 %vm4665_vm6, %v13219_v4  ;;  %14517 = vmatpush3.bf16.msra.mxu1 %v17989_v54  ;;  %v18094_v54 = vld [vmem:[%s20754_s5] sm:$0xff]   ;;  %v7852_v4 = vshll.u32 %v7632_v22, 16  ;;  %v13221_v21 = vcombine.low %v7765_v7, %v7775_v50  ;;  %v13222_v58 = vcombine.low %v7789_v49, %v7799_v53  ;;  %v7897_v50 = vshrl.u32 %v7638_v52, 16 }
 0x536   : > { %14518 = vmatprep.subr.bf16.mxu1 %v15351_v36  ;;  %v21026_v22 = vld [vmem:[#allocation71_spill] sm:$0xff]  ;;  %v7900_v51 = vshll.u32 %v7638_v52, 16  ;;  %v21027_v53 = vld [vmem:[#allocation72_spill] sm:$0xff]  ;;  %v7832_v59 = vrot.slane %v7831_v30, 4  ;;  %v7846_v55 = vrot.slane %v7844_v31, 5  ;;  %v7823_v26 = vsel %vm16407_vm5, %v7818_v18, %v7822_v3 }
 0x537   : > { %v7854_v24 = vrot.slane %v7852_v4, 5  ;;  %v7882_v16 = vshll.u32 %v21026_v22, 16  ;;  %v7886_v44 = vshrl.u32 %v21026_v22, 16  ;;  %v7906_v37 = vshll.u32 %v21027_v53, 16  ;;  %v21029_v22 = vld [vmem:[#allocation76_spill] sm:$0xff] }
 0x538   : > { %v7910_v28 = vshrl.u32 %v21027_v53, 16  ;;  %v7842_v4 = vrot.slane %v7841_v0, 4  ;;  %v7878_v7 = vrot.slane %v7876_v8, 5  ;;  %v7899_v19 = vrot.slane %v7897_v50, 4 }
 0x539   : > { %14519 = vmatpush3.bf16.msra.mxu1 %v15351_v36  ;;  %v7864_v36 = vrot.slane %v7862_v13, 4  ;;  %v7855_v23 = vor.u32 %v7854_v24, %v7851_v33  ;;  %v7868_v13 = vshll.u32 %v21028_v1, 16  ;;  %v18122_v49 = vrot.slane %v7882_v16, 5 }
 0x53a   : > { %14552 = vmatprep.subr.bf16.mxu1 %v18094_v54  ;;  %v7902_v61 = vrot.slane %v7900_v51, 5  ;;  %v18124_v52 = vrot.slane %v7906_v37, 5  ;;  %v7912_v12 = vrot.slane %v7910_v28, 4  ;;  %v13223_v30 = vcombine.low %v7813_v5, %v7823_v26  ;;  %v7644_v37 = vld [vmem:[#allocation2 + $0xa8] sm:$0xf] }
 0x53b   : > { %v7865_v63 = vor.u32 %v7864_v36, %v7860_v14  ;;  %v7856_v31 = vrot.slane %v7855_v23, 4  ;;  %v7837_v3 = vsel %vm16407_vm5, %v7832_v59, %v18097_v25  ;;  %v7847_v33 = vsel %vm16407_vm5, %v7842_v4, %v7846_v55 }
 0x53c   : > { %14489 = vmatmul.mubr.msk.bf16.gmra.mrb[4].mxu1 %vm4665_vm6, %v13220_v48  ;;  %v7875_v48 = vrot.slane %v7873_v41, 4  ;;  %v7921_v36 = vshrl.u32 %v7641_v2, 16  ;;  %v7924_v41 = vshll.u32 %v7641_v2, 16  ;;  %v7870_v8 = vrot.slane %v7868_v13, 5 }
 0x53d   : > { %14492 = vmatprep.mubr.msk.bf16.mxu1 %vm4665_vm6, %v13221_v21  ;;  %v7888_v21 = vrot.slane %v7886_v44, 4  ;;  %v7866_v24 = vrot.slane %v7865_v63, 4  ;;  %v7892_v16 = vshll.u32 %v21029_v22, 16  ;;  %v7903_v44 = vor.u32 %v7902_v61, %v7899_v19  ;;  %v7650_v22 = vld [vmem:[#allocation2 + $0xc0] sm:$0xf] }
 0x53e   : > { %v7879_v18 = vor.u32 %v7878_v7, %v7875_v48  ;;  %v13224_v50 = vcombine.low %v7837_v3, %v7847_v33  ;;  %v7861_v25 = vsel %vm16407_vm5, %v7856_v31, %v7860_v14  ;;  %v7930_v51 = vshll.u32 %v17692_v46, 16 }
 0x53f   : > { %v7889_v0 = vor.u32 %v7888_v21, %v18122_v49  ;;  %v7934_v53 = vshrl.u32 %v17692_v46, 16  ;;  %v7871_v28 = vsel %vm16407_vm5, %v7866_v24, %v7870_v8  ;;  %v7916_v5 = vshll.u32 %v17674_v27, 16 }
 0x540   : > { %v7954_v59 = vshll.u32 %v17694_v32, 16  ;;  %v7958_v55 = vshrl.u32 %v17694_v32, 16  ;;  %v7880_v23 = vrot.slane %v7879_v18, 4  ;;  %v7923_v4 = vrot.slane %v7921_v36, 4  ;;  %v7647_v32 = vld [vmem:[#allocation2 + $0xb4] sm:$0xf] }
 0x541   : > { %v7890_v26 = vrot.slane %v7889_v0, 4  ;;  %v7926_v63 = vrot.slane %v7924_v41, 5  ;;  %v7904_v1 = vrot.slane %v7903_v44, 4  ;;  %v7945_v13 = vshrl.u32 %v7644_v37, 16 }
 0x542   : > { %v7948_v48 = vshll.u32 %v7644_v37, 16  ;;  %v13225_v7 = vcombine.low %v7861_v25, %v7871_v28  ;;  %v7894_v46 = vrot.slane %v7892_v16, 5  ;;  %v18145_v21 = vrot.slane %v7930_v51, 5  ;;  %v15444_v37 = vld [vmem:[#allocation2 + $0xb0] sm:$0x1] }
 0x543   : > { %v7936_v19 = vrot.slane %v7934_v53, 4  ;;  %v7918_v27 = vrot.slane %v7916_v5, 5  ;;  %v18148_v61 = vrot.slane %v7954_v59, 5  ;;  %v7885_v2 = vsel %vm16407_vm5, %v7880_v23, %v18122_v49 }
 0x544   : > { %14493 = vmatmul.mubr.msk.bf16.gmra.mrb[8].mxu1 %vm4665_vm6, %v13222_v58  ;;  %v7913_v58 = vor.u32 %v7912_v12, %v18124_v52  ;;  %v7960_v12 = vrot.slane %v7958_v55, 4  ;;  %v7927_v31 = vor.u32 %v7926_v63, %v7923_v4  ;;  %v7940_v3 = vshll.u32 %v17706_v6, 16  ;;  %v7653_v55 = vld [vmem:[#allocation2 + $0xcc] sm:$0xf] }
 0x545   : > { %14496 = vmatprep.mubr.msk.bf16.mxu1 %vm4665_vm6, %v13223_v30  ;;  %v7895_v30 = vsel %vm16407_vm5, %v7890_v26, %v7894_v46  ;;  %v7909_v33 = vsel %vm16407_vm5, %v7904_v1, %v18124_v52  ;;  %v7947_v18 = vrot.slane %v7945_v13, 4  ;;  %v7950_v0 = vrot.slane %v7948_v48, 5 }
 0x546   : > { %v7914_v14 = vrot.slane %v7913_v58, 4  ;;  %v7937_v36 = vor.u32 %v7936_v19, %v18145_v21  ;;  %v7969_v41 = vshrl.u32 %v7647_v32, 16  ;;  %v7978_v49 = vshll.u32 %v17728_v17, 16 }
 0x547   : > { %v7982_v8 = vshrl.u32 %v17728_v17, 16  ;;  %v7961_v16 = vor.u32 %v7960_v12, %v18148_v61  ;;  %v7972_v6 = vshll.u32 %v7647_v32, 16  ;;  %v8002_v44 = vshll.u32 %v17730_v39, 16 }
 0x548   : > { %v7919_v24 = vsel %vm16407_vm5, %v7914_v14, %v7918_v27  ;;  %v8006_v52 = vshrl.u32 %v17730_v39, 16  ;;  %v13226_v58 = vcombine.low %v7885_v2, %v7895_v30  ;;  %v7928_v25 = vrot.slane %v7927_v31, 4 }
 0x549   : > { %v7942_v51 = vrot.slane %v7940_v3, 5  ;;  %v7951_v53 = vor.u32 %v7950_v0, %v7947_v18  ;;  %v7964_v28 = vshll.u32 %v15444_v37, 16  ;;  %v7993_v5 = vshrl.u32 %v7650_v22, 16 }
 0x54a   : > { %v7996_v59 = vshll.u32 %v7650_v22, 16  ;;  %v7938_v23 = vrot.slane %v7937_v36, 4  ;;  %v7971_v17 = vrot.slane %v7969_v41, 4  ;;  %v7980_v26 = vrot.slane %v7978_v49, 5 }
 0x54b   : > { %v7984_v4 = vrot.slane %v7982_v8, 4  ;;  %v7962_v63 = vrot.slane %v7961_v16, 4  ;;  %v7974_v1 = vrot.slane %v7972_v6, 5  ;;  %v8004_v14 = vrot.slane %v8002_v44, 5  ;;  %v15446_v16 = vld [vmem:[#allocation2 + $0xc8] sm:$0x1] }
 0x54c   : > { %14497 = vmatmul.mubr.msk.bf16.gmra.mrb[12].mxu1 %vm4665_vm6, %v13224_v50  ;;  %v13227_v50 = vcombine.low %v7909_v33, %v7919_v24  ;;  %v8008_v39 = vrot.slane %v8006_v52, 4  ;;  %v8017_v13 = vshrl.u32 %v7653_v55, 16  ;;  %v8020_v48 = vshll.u32 %v7653_v55, 16  ;;  %v15445_v24 = vld [vmem:[#allocation2 + $0xbc] sm:$0x1] }
 0x54d   : > { %14500 = vmatprep.mubr.msk.bf16.mxu1 %vm4665_vm6, %v13225_v7  ;;  %v8026_v7 = vshll.u32 %v18025_v62, 16  ;;  %v8030_v46 = vshrl.u32 %v18025_v62, 16  ;;  %v7952_v19 = vrot.slane %v7951_v53, 4  ;;  %v7966_v27 = vrot.slane %v7964_v28, 5 }
 0x54e   : > { %v7995_v12 = vrot.slane %v7993_v5, 4  ;;  %v7998_v32 = vrot.slane %v7996_v59, 5  ;;  %v7933_v2 = vsel %vm16407_vm5, %v7928_v25, %v18145_v21  ;;  %v7943_v30 = vsel %vm16407_vm5, %v7938_v23, %v7942_v51 }
 0x54f   : > { %v7985_v31 = vor.u32 %v7984_v4, %v7980_v26  ;;  %v7967_v3 = vsel %vm16407_vm5, %v7962_v63, %v7966_v27  ;;  %v7975_v33 = vor.u32 %v7974_v1, %v7971_v17  ;;  %v7988_v18 = vshll.u32 %v15445_v24, 16 }
 0x550   : > { %v8009_v0 = vor.u32 %v8008_v39, %v8004_v14  ;;  %v8019_v62 = vrot.slane %v8017_v13, 4  ;;  %v8022_v36 = vrot.slane %v8020_v48, 5  ;;  %v8028_v41 = vrot.slane %v8026_v7, 5  ;;  %v21031_v7 = vld [vmem:[#allocation54_spill] sm:$0xff] }
 0x551   : > { %v8032_v49 = vrot.slane %v8030_v46, 4  ;;  %v13228_v8 = vcombine.low %v7933_v2, %v7943_v30  ;;  %v7957_v21 = vsel %vm16407_vm5, %v7952_v19, %v18148_v61  ;;  %v7999_v22 = vor.u32 %v7998_v32, %v7995_v12  ;;  %v21034_v19 = vld [vmem:[#allocation59_spill] sm:$0xff]  ;;  %v21036_v12 = vld [vmem:[#allocation60_spill] sm:$0xff]  ;;  %v21040_v30 = vld [vmem:[#allocation66_spill] sm:$0xff] }
 0x552   : > { %v8012_v6 = vshll.u32 %v15446_v16, 16  ;;  %v13229_v44 = vcombine.low %v7957_v21, %v7967_v3  ;;  %v7986_v52 = vrot.slane %v7985_v31, 4  ;;  %v7976_v25 = vrot.slane %v7975_v33, 4  ;;  %v21037_v32 = vld [vmem:[#allocation63_spill] sm:$0xff]  ;;  %v21043_v33 = vld [vmem:[#allocation70_spill] sm:$0xff] }
 0x553   : > { %v8023_v51 = vor.u32 %v8022_v36, %v8019_v62  ;;  %v8033_v53 = vor.u32 %v8032_v49, %v8028_v41  ;;  %v8036_v37 = vshll.u32 %v18027_v56, 16  ;;  %v8000_v28 = vrot.slane %v7999_v22, 4  ;;  %v21042_v3 = vld [vmem:[#allocation67_spill] sm:$0xff]  ;;  %v21054_v22 = vld [vmem:[#allocation80_spill] sm:$0xff] }
 0x554   : > { %14501 = vmatmul.mubr.msk.bf16.gmra.mrb[16].mxu1 %vm4665_vm6, %v13226_v58  ;;  %v7990_v58 = vrot.slane %v7988_v18, 5  ;;  %v8014_v5 = vrot.slane %v8012_v6, 5  ;;  %v7981_v55 = vsel %vm16407_vm5, %v7976_v25, %v7980_v26  ;;  %v21030_v26 = vld [vmem:[#allocation53_spill] sm:$0xff]  ;;  %v21038_v2 = vcombine.low %v21036_v12, %v21037_v32  ;;  %v21048_v36 = vld [vmem:[#allocation75_spill] sm:$0xff] }
 0x555   : > { %14504 = vmatprep.mubr.msk.bf16.mxu1 %vm4665_vm6, %v13227_v50  ;;  %v8010_v50 = vrot.slane %v8009_v0, 4  ;;  %v8024_v23 = vrot.slane %v8023_v51, 4  ;;  %v8034_v17 = vrot.slane %v8033_v53, 4  ;;  %v8038_v4 = vrot.slane %v8036_v37, 5  ;;  %v21045_v18 = vld [vmem:[#allocation73_spill] sm:$0xff]  ;;  %v21046_v0 = vld [vmem:[#allocation74_spill] sm:$0xff] }
 0x556   : > { %v7991_v61 = vsel %vm16407_vm5, %v7986_v52, %v7990_v58  ;;  %v8005_v1 = vsel %vm16407_vm5, %v8000_v28, %v8004_v14  ;;  %v21032_v46 = vcombine.low %v21030_v26, %v21031_v7  ;;  %v21033_v14 = vld [vmem:[#allocation57_spill] sm:$0xff]  ;;  %v21041_v31 = vcombine.low %v21039_v45, %v21040_v30  ;;  %v21053_v21 = vld [vmem:[#allocation79_spill] sm:$0xff] }
 0x557   : > { %v8015_v59 = vsel %vm16407_vm5, %v8010_v50, %v8014_v5  ;;  %v13230_v63 = vcombine.low %v7981_v55, %v7991_v61  ;;  %v8029_v56 = vsel %vm16407_vm5, %v8024_v23, %v8028_v41  ;;  %v8039_v13 = vsel %vm16407_vm5, %v8034_v17, %v8038_v4  ;;  %v21049_v41 = vld [vmem:[#allocation77_spill] sm:$0xff]  ;;  %v21059_v58 = vld [vmem:[#allocation83_spill] sm:$0xff]  ;;  %v21060_v50 = vld [vmem:[#allocation84_spill] sm:$0xff] }
 0x558   : > { %v13231_v39 = vcombine.low %v8005_v1, %v8015_v59  ;;  %v13232_v48 = vcombine.low %v8029_v56, %v8039_v13  ;;  %v21035_v27 = vcombine.low %v21033_v14, %v21034_v19  ;;  %v21044_v24 = vcombine.low %v21042_v3, %v21043_v33  ;;  %v21056_v6 = vld [vmem:[#allocation81_spill] sm:$0xff] }
 0x559   : > { %v21047_v62 = vcombine.low %v21045_v18, %v21046_v0  ;;  %v21050_v49 = vcombine.low %v21048_v36, %v21049_v41  ;;  %v21055_v16 = vcombine.low %v21053_v21, %v21054_v22  ;;  %v21061_v25 = vcombine.low %v21059_v58, %v21060_v50 }
 0x55c   : > { %14505 = vmatmul.mubr.msk.bf16.gmra.mrb[20].mxu1 %vm4665_vm6, %v13228_v8 }
 0x55d   : > { %14508 = vmatprep.mubr.msk.bf16.mxu1 %vm4665_vm6, %v13229_v44  ;;  %v21057_v44 = vld [vmem:[#allocation82_spill] sm:$0xff] }
 0x55e   : > { %v21058_v52 = vcombine.low %v21056_v6, %v21057_v44 }
 0x564   : > { %14509 = vmatmul.mubr.msk.bf16.gmra.mrb[24].mxu1 %vm4665_vm6, %v13230_v63 }
 0x565   : > { %14512 = vmatprep.mubr.msk.bf16.mxu1 %vm4665_vm6, %v13231_v39 }
 0x56c   : > { %14513 = vmatmul.mubr.msk.bf16.gmra.mrb[28].mxu1 %vm4665_vm6, %v13232_v48 }
 0x56d   : > { %14520 = vmatprep.mubr.msk.bf16.mxu1 %vm4665_vm6, %v21032_v46 }
 0x574   : > { %14521 = vmatmul.mubr.msk.bf16.vlgmr.msra.gmra.mrb[0].mxu1 %vm4665_vm6, %v21035_v27 }
 0x575   : > { %14524 = vmatprep.mubr.msk.bf16.mxu1 %vm4665_vm6, %v21038_v2  ;;  %14553 = vmatpush3.bf16.msra.mxu1 %v18094_v54  ;;  %v21051_v54 = vld [vmem:[#allocation78_spill] sm:$0xff] }
 0x576   : > { %v21052_v8 = vcombine.low %v17698_v35, %v21051_v54  ;;  %v21062_v35 = vcombine.low %v17786_v10, %v17790_v20  ;;  %14554 = vmatprep.subr.bf16.mxu1 %v15353_v38 }
 0x579   : > { %14555 = vmatpush3.bf16.msra.mxu1 %v15353_v38 }
 0x57a   : > { %14624 = vmatprep.subr.bf16.mxu1 %v18271_v60 }
 0x57c   : > { %14525 = vmatmul.mubr.msk.bf16.gmra.mrb[4].mxu1 %vm4665_vm6, %v21041_v31 }
 0x57d   : > { %14528 = vmatprep.mubr.msk.bf16.mxu1 %vm4665_vm6, %v21044_v24 }
 0x584   : > { %14529 = vmatmul.mubr.msk.bf16.gmra.mrb[8].mxu1 %vm4665_vm6, %v21047_v62 }
 0x585   : > { %14532 = vmatprep.mubr.msk.bf16.mxu1 %vm4665_vm6, %v21050_v49 }
 0x58c   : > { %14533 = vmatmul.mubr.msk.bf16.gmra.mrb[12].mxu1 %vm4665_vm6, %v21052_v8 }
 0x58d   : > { %14536 = vmatprep.mubr.msk.bf16.mxu1 %vm4665_vm6, %v21055_v16 }
 0x594   : > { %14537 = vmatmul.mubr.msk.bf16.gmra.mrb[16].mxu1 %vm4665_vm6, %v21058_v52 }
 0x595   : > { %14540 = vmatprep.mubr.msk.bf16.mxu1 %vm4665_vm6, %v21061_v25 }
 0x59c   : > { %14541 = vmatmul.mubr.msk.bf16.gmra.mrb[20].mxu1 %vm4665_vm6, %v13282_v40 }
 0x59d   : > { %14544 = vmatprep.mubr.msk.bf16.mxu1 %vm4665_vm6, %v13283_v57 }
 0x5a4   : > { %14545 = vmatmul.mubr.msk.bf16.gmra.mrb[24].mxu1 %vm4665_vm6, %v21062_v35 }
 0x5a5   : > { %14548 = vmatprep.mubr.msk.bf16.mxu1 %vm4665_vm6, %v13285_v15 }
 0x5ac   : > { %14549 = vmatmul.mubr.msk.bf16.gmra.mrb[28].mxu1 %vm4665_vm6, %v13286_v9 }
 0x647   : > { %v14522_v40 = vpop.f32.mrb[0].mxu1 }
 0x648   : > { %v8836_v43 = vadd.f32 %v14522_v40, %v18277_v42  ;;  %v8669_v57 = vpop.f32.mrb[1].mxu1 }
 0x649   : > { %v8834_v10 = vadd.f32 %v18277_v42, %v8669_v57  ;;  %v14523_v20 = vpop.f32.mrb[2].mxu1 }
 0x64a   : > { %vm8868_vm5 = vcmp.ge.f32.partialorder %v8836_v43, 0.0  ;;  %v8900_v15 = vmul.f32 0.1, %v8836_v43  ;;  %v8837_v34 = vadd.f32 %v14523_v20, %v18277_v42  ;;  %v8672_v47 = vpop.f32.mrb[3].mxu1 }
 0x64b   : > { %vm8866_vm7 = vcmp.ge.f32.partialorder %v8834_v10, 0.0  ;;  %v8898_v11 = vmul.f32 0.1, %v8834_v10  ;;  %v8835_v29 = vadd.f32 %v18277_v42, %v8672_v47 }
 0x64c   : > { %v8932_v9 = vsel %vm8868_vm5, %v8836_v43, %v8900_v15  ;;  %vm8869_vm2 = vcmp.ge.f32.partialorder %v8837_v34, 0.0  ;;  %v8901_v51 = vmul.f32 0.1, %v8837_v34 }
 0x64d   : > { %8965 = vst.msk [vmem:[#allocation3 + $0x31] sm:$0xff] %vm4665_vm6, %v8932_v9  ;;  %v8930_v53 = vsel %vm8866_vm7, %v8834_v10, %v8898_v11  ;;  %vm8867_vm9 = vcmp.ge.f32.partialorder %v8835_v29, 0.0  ;;  %v8899_v37 = vmul.f32 0.1, %v8835_v29 }
 0x64e   : > { %8997 = vst.msk [vmem:[#allocation3 + $0x2f] sm:$0x2] %vm8995_vm4, %v8932_v9  ;;  %8996 = vst.msk [vmem:[#allocation3 + $0x17] sm:$0x2] %vm8995_vm4, %v8930_v53  ;;  %v8933_v28 = vsel %vm8869_vm2, %v8837_v34, %v8901_v51 }
 0x64f   : > { %8963 = vst.msk [vmem:[#allocation3 + $0x19] sm:$0xff] %vm4665_vm6, %v8930_v53  ;;  %8966 = vst.msk [vmem:[#allocation3 + $0x39] sm:$0xff] %vm4665_vm6, %v8933_v28  ;;  %v8931_v5 = vsel %vm8867_vm9, %v8835_v29, %v8899_v37  ;;  %v14526_v61 = vpop.f32.mrb[4].mxu1 }
 0x650   : > { %9014 = vst.msk [vmem:[#allocation3 + $0x3b] sm:$0x40] %vm9012_vm8, %v8933_v28  ;;  %9013 = vst.msk [vmem:[#allocation3 + $0x23] sm:$0x40] %vm9012_vm8, %v8931_v5  ;;  %v8840_v59 = vadd.f32 %v14526_v61, %v18277_v42  ;;  %v8685_v55 = vpop.f32.mrb[5].mxu1 }
 0x651   : > { %8964 = vst.msk [vmem:[#allocation3 + $0x21] sm:$0xff] %vm4665_vm6, %v8931_v5  ;;  %v8838_v23 = vadd.f32 %v18277_v42, %v8685_v55  ;;  %v14527_v17 = vpop.f32.mrb[6].mxu1 }
 0x652   : > { %vm8872_vm10 = vcmp.ge.f32.partialorder %v8840_v59, 0.0  ;;  %v8904_v4 = vmul.f32 0.1, %v8840_v59  ;;  %v8841_v63 = vadd.f32 %v14527_v17, %v18277_v42  ;;  %v8688_v1 = vpop.f32.mrb[7].mxu1 }
 0x653   : > { %vm8870_vm11 = vcmp.ge.f32.partialorder %v8838_v23, 0.0  ;;  %v8902_v39 = vmul.f32 0.1, %v8838_v23  ;;  %v8839_v56 = vadd.f32 %v18277_v42, %v8688_v1 }
 0x654   : > { %v8936_v48 = vsel %vm8872_vm10, %v8840_v59, %v8904_v4  ;;  %vm8873_vm13 = vcmp.ge.f32.partialorder %v8841_v63, 0.0  ;;  %v8905_v26 = vmul.f32 0.1, %v8841_v63 }
 0x655   : > { %v18295_v13 = vld [vmem:[#allocation3 + $0x30] sm:$0xff]  ;;  %8969 = vst.msk [vmem:[#allocation3 + $0x61] sm:$0xff] %vm4665_vm6, %v8936_v48  ;;  %v8934_v7 = vsel %vm8870_vm11, %v8838_v23, %v8902_v39  ;;  %vm8871_vm15 = vcmp.ge.f32.partialorder %v8839_v56, 0.0  ;;  %v8903_v46 = vmul.f32 0.1, %v8839_v56 }
 0x656   : > { %9211 = vst.msk [vmem:[#allocation3] sm:$0xff] %vm4665_vm6, %v18295_v13  ;;  %v18301_v14 = vld [vmem:[#allocation3 + $0x18] sm:$0xff]  ;;  %8967 = vst.msk [vmem:[#allocation3 + $0x49] sm:$0xff] %vm4665_vm6, %v8934_v7  ;;  %v8937_v12 = vsel %vm8873_vm13, %v8841_v63, %v8905_v26  ;;  %v18318_v31 = vmul.f32 %v18295_v13, %v18295_v13  ;;  %v9369_v54 = vrot.slane %v18295_v13, 1 }
 0x657   : > { %8999 = vst.msk [vmem:[#allocation3 + $0x5f] sm:$0x2] %vm8995_vm4, %v8936_v48  ;;  %v18303_v19 = vld [vmem:[#allocation3 + $0x38] sm:$0xff]  ;;  %v9210_v27 = vld [vmem:[#allocation3 + $0x40] sm:$0x3]  ;;  %v8935_v32 = vsel %vm8871_vm15, %v8839_v56, %v8903_v46  ;;  %v14530_v2 = vpop.f32.mrb[8].mxu1  ;;  %v18327_v18 = vmul.f32 %v18301_v14, %v18301_v14 }
 0x658   : > { %8998 = vst.msk [vmem:[#allocation3 + $0x47] sm:$0x2] %vm8995_vm4, %v8934_v7  ;;  %v18312_v45 = vld [vmem:[#allocation3 + $0x20] sm:$0xff]  ;;  %v18314_v30 = vld [vmem:[#allocation3 + $0x28] sm:$0x3]  ;;  %v8844_v3 = vadd.f32 %v14530_v2, %v18277_v42  ;;  %v8701_v33 = vpop.f32.mrb[9].mxu1  ;;  %v18331_v0 = vmul.f32 %v18303_v19, %v18303_v19 }
 0x659   : > { %9212 = vst.msk [vmem:[#allocation3 + $0x8] sm:$0xff] %vm4665_vm6, %v18303_v19  ;;  %8970 = vst.msk [vmem:[#allocation3 + $0x69] sm:$0xff] %vm4665_vm6, %v8937_v12  ;;  %v18323_v24 = vld [vmem:[#allocation3 + $0x40] sm:$0x3]  ;;  %v9364_v62 = vrot.slane %v18301_v14, 1  ;;  %v8842_v36 = vadd.f32 %v18277_v42, %v8701_v33  ;;  %v14531_v41 = vpop.f32.mrb[10].mxu1  ;;  %v18346_v38 = vmul.f32 %v18312_v45, %v18312_v45  ;;  %v18369_v29 = vmul.f32 %v18314_v30, %v18314_v30 }
 0x65a   : > { %9214 = vst.msk [vmem:[#allocation3 + $0x10] sm:$0x3] %vm9213_vm12, %v9210_v27  ;;  %v9365_v49 = vrot.slane %v18312_v45, 1  ;;  %v9370_v8 = vrot.slane %v18303_v19, 1  ;;  %vm8876_vm14 = vcmp.ge.f32.partialorder %v8844_v3, 0.0  ;;  %v8845_v22 = vadd.f32 %v14531_v41, %v18277_v42  ;;  %v8704_v16 = vpop.f32.mrb[11].mxu1 }
 0x65b   : > { %9016 = vst.msk [vmem:[#allocation3 + $0x6b] sm:$0x40] %vm9012_vm8, %v8937_v12  ;;  %9015 = vst.msk [vmem:[#allocation3 + $0x53] sm:$0x40] %vm9012_vm8, %v8935_v32  ;;  %v8908_v21 = vmul.f32 0.1, %v8844_v3  ;;  %v8843_v52 = vadd.f32 %v18277_v42, %v8704_v16 }
 0x65c   : > { %8968 = vst.msk [vmem:[#allocation3 + $0x51] sm:$0xff] %vm4665_vm6, %v8935_v32  ;;  %v9367_v6 = vrot.slane %v18314_v30, 1  ;;  %vm8874_vm3 = vcmp.ge.f32.partialorder %v8842_v36, 0.0  ;;  %v8906_v44 = vmul.f32 0.1, %v8842_v36  ;;  %v9372_v58 = vrot.slane %v18323_v24, 1 }
 0x65d   : > { %v8940_v50 = vsel %vm8876_vm14, %v8844_v3, %v8908_v21  ;;  %vm8877_vm5 = vcmp.ge.f32.partialorder %v8845_v22, 0.0  ;;  %v8909_v25 = vmul.f32 0.1, %v8845_v22  ;;  %v18342_v35 = vld [vmem:[#allocation3] sm:$0xff]  ;;  %vm8875_vm7 = vcmp.ge.f32.partialorder %v8843_v52, 0.0 }
 0x65e   : > { %8973 = vst.msk [vmem:[#allocation3 + $0x91] sm:$0xff] %vm4665_vm6, %v8940_v50  ;;  %v8938_v40 = vsel %vm8874_vm3, %v8842_v36, %v8906_v44  ;;  %v8907_v43 = vmul.f32 0.1, %v8843_v52  ;;  %v18353_v10 = vsel %vm9358_vm1, %v9369_v54, %v9370_v8  ;;  %v18362_v47 = vsel %vm9358_vm1, %v9364_v62, %v9365_v49 }
 0x65f   : > { %9001 = vst.msk [vmem:[#allocation3 + $0x8f] sm:$0x2] %vm8995_vm4, %v8940_v50  ;;  %v18350_v57 = vld [vmem:[#allocation3 + $0x48] sm:$0xff]  ;;  %9000 = vst.msk [vmem:[#allocation3 + $0x77] sm:$0x2] %vm8995_vm4, %v8938_v40  ;;  %v8941_v20 = vsel %vm8877_vm5, %v8845_v22, %v8909_v25  ;;  %v18365_v11 = vsel %vm9358_vm1, %v9365_v49, %v9367_v6  ;;  %v14534_v51 = vpop.f32.mrb[12].mxu1  ;;  %v18377_v37 = vmul.f32 %v18342_v35, %v18342_v35 }
 0x660   : > { %8971 = vst.msk [vmem:[#allocation3 + $0x79] sm:$0xff] %vm4665_vm6, %v8938_v40  ;;  %v18357_v15 = vld [vmem:[#allocation3 + $0x8] sm:$0xff]  ;;  %8974 = vst.msk [vmem:[#allocation3 + $0x99] sm:$0xff] %vm4665_vm6, %v8941_v20  ;;  %v8939_v9 = vsel %vm8875_vm7, %v8843_v52, %v8907_v43  ;;  %v18381_v5 = vsel %vm9358_vm1, %v9370_v8, %v9372_v58  ;;  %v8848_v61 = vadd.f32 %v14534_v51, %v18277_v42  ;;  %v8717_v59 = vpop.f32.mrb[13].mxu1  ;;  %v9359_v23 = vrot.slane %v18342_v35, 1 }
 0x661   : > { %v18359_v34 = vld [vmem:[#allocation3 + $0x10] sm:$0x3]  ;;  %9018 = vst.msk [vmem:[#allocation3 + $0x9b] sm:$0x40] %vm9012_vm8, %v8941_v20  ;;  %v9360_v28 = vrot.slane %v18357_v15, 1  ;;  %v18388_v55 = vmul.f32 %v18350_v57, %v18350_v57  ;;  %v9374_v17 = vrot.slane %v18350_v57, 1  ;;  %v8846_v4 = vadd.f32 %v18277_v42, %v8717_v59 }
 0x662   : > { %8972 = vst.msk [vmem:[#allocation3 + $0x81] sm:$0xff] %vm4665_vm6, %v8939_v9  ;;  %v14535_v63 = vpop.f32.mrb[14].mxu1  ;;  %v18397_v39 = vmul.f32 %v18357_v15, %v18357_v15  ;;  %v9362_v48 = vrot.slane %v18359_v34, 1  ;;  %vm8880_vm2 = vcmp.ge.f32.partialorder %v8848_v61, 0.0  ;;  %v8912_v26 = vmul.f32 0.1, %v8848_v61 }
 0x663   : > { %v18373_v53 = vld [vmem:[#allocation3 + $0x50] sm:$0xff]  ;;  %9017 = vst.msk [vmem:[#allocation3 + $0x83] sm:$0x40] %vm9012_vm8, %v8939_v9  ;;  %v18393_v1 = vld [vmem:[#allocation3 + $0x58] sm:$0x3]  ;;  %v8849_v7 = vadd.f32 %v14535_v63, %v18277_v42  ;;  %v8720_v46 = vpop.f32.mrb[15].mxu1  ;;  %v9361_v2 = vsel %vm9358_vm1, %v9359_v23, %v9360_v28  ;;  %v18426_v22 = vadd.f32 %v18362_v47, %v18301_v14  ;;  %v18432_v44 = vmul.f32 %v18359_v34, %v18359_v34 }
 0x664   : > { %v18401_v56 = vmul.f32 %v18373_v53, %v18373_v53  ;;  %v9375_v27 = vrot.slane %v18373_v53, 1  ;;  %vm8878_vm9 = vcmp.ge.f32.partialorder %v8846_v4, 0.0  ;;  %v8910_v12 = vmul.f32 0.1, %v8846_v4 }
 0x665   : > { %v8847_v32 = vadd.f32 %v18277_v42, %v8720_v46  ;;  %v8944_v3 = vsel %vm8880_vm2, %v8848_v61, %v8912_v26  ;;  %vm8881_vm10 = vcmp.ge.f32.partialorder %v8849_v7, 0.0  ;;  %v8913_v33 = vmul.f32 0.1, %v8849_v7 }
 0x666   : > { %v9377_v62 = vrot.slane %v18393_v1, 1  ;;  %8977 = vst.msk [vmem:[#allocation3 + $0xc1] sm:$0xff] %vm4665_vm6, %v8944_v3  ;;  %v8942_v36 = vsel %vm8878_vm9, %v8846_v4, %v8910_v12  ;;  %v18412_v49 = vsel %vm9358_vm1, %v9360_v28, %v9362_v48  ;;  %v18419_v8 = vsel %vm9358_vm1, %v9374_v17, %v9375_v27 }
 0x667   : > { %9003 = vst.msk [vmem:[#allocation3 + $0xbf] sm:$0x2] %vm8995_vm4, %v8944_v3  ;;  %vm8879_vm11 = vcmp.ge.f32.partialorder %v8847_v32, 0.0  ;;  %v8911_v41 = vmul.f32 0.1, %v8847_v32  ;;  %v8945_v54 = vsel %vm8881_vm10, %v8849_v7, %v8913_v33  ;;  %v18422_v21 = vadd.f32 %v9361_v2, %v18342_v35  ;;  %v14538_v6 = vpop.f32.mrb[16].mxu1 }
 0x668   : > { %8975 = vst.msk [vmem:[#allocation3 + $0xa9] sm:$0xff] %vm4665_vm6, %v8942_v36  ;;  %8978 = vst.msk [vmem:[#allocation3 + $0xc9] sm:$0xff] %vm4665_vm6, %v8945_v54  ;;  %v18436_v52 = vmul.f32 %v18323_v24, %v18323_v24  ;;  %v18440_v58 = vmul.f32 %v18393_v1, %v18393_v1  ;;  %v8852_v50 = vadd.f32 %v14538_v6, %v18277_v42  ;;  %v8733_v25 = vpop.f32.mrb[17].mxu1  ;;  %v9567_v40 = vrot.slane %v18377_v37, 1 }
 0x669   : > { %9002 = vst.msk [vmem:[#allocation3 + $0xa7] sm:$0x2] %vm8995_vm4, %v8942_v36  ;;  %v8943_v16 = vsel %vm8879_vm11, %v8847_v32, %v8911_v41  ;;  %v9568_v43 = vrot.slane %v18397_v39, 1  ;;  %v9572_v20 = vrot.slane %v18327_v18, 1  ;;  %v8850_v9 = vadd.f32 %v18277_v42, %v8733_v25  ;;  %v14539_v51 = vpop.f32.mrb[18].mxu1 }
 0x66a   : > { %9020 = vst.msk [vmem:[#allocation3 + $0xcb] sm:$0x40] %vm9012_vm8, %v8945_v54  ;;  %9019 = vst.msk [vmem:[#allocation3 + $0xb3] sm:$0x40] %vm9012_vm8, %v8943_v16  ;;  %v9570_v28 = vrot.slane %v18432_v44, 1  ;;  %v9573_v61 = vrot.slane %v18346_v38, 1  ;;  %v8853_v17 = vadd.f32 %v14539_v51, %v18277_v42 }
 0x66b   : > { %8976 = vst.msk [vmem:[#allocation3 + $0xb1] sm:$0xff] %vm4665_vm6, %v8943_v16  ;;  %v9575_v59 = vrot.slane %v18369_v29, 1  ;;  %vm8884_vm13 = vcmp.ge.f32.partialorder %v8852_v50, 0.0  ;;  %v8916_v23 = vmul.f32 0.1, %v8852_v50  ;;  %v8736_v4 = vpop.f32.mrb[19].mxu1  ;;  %v9569_v63 = vsel %vm9358_vm1, %v9567_v40, %v9568_v43 }
 0x66c   : > { %vm8882_vm15 = vcmp.ge.f32.partialorder %v8850_v9, 0.0  ;;  %v8914_v48 = vmul.f32 0.1, %v8850_v9  ;;  %v8851_v26 = vadd.f32 %v18277_v42, %v8736_v4  ;;  %v9571_v7 = vsel %vm9358_vm1, %v9568_v43, %v9570_v28 }
 0x66d   : > { %v8948_v46 = vsel %vm8884_vm13, %v8852_v50, %v8916_v23  ;;  %vm8885_vm14 = vcmp.ge.f32.partialorder %v8853_v17, 0.0  ;;  %v8917_v12 = vmul.f32 0.1, %v8853_v17  ;;  %v18457_v32 = vsel %vm9358_vm1, %v9572_v20, %v9573_v61 }
 0x66e   : > { %8981 = vst.msk [vmem:[#allocation3 + $0xf1] sm:$0xff] %vm4665_vm6, %v8948_v46  ;;  %v8946_v2 = vsel %vm8882_vm15, %v8850_v9, %v8914_v48  ;;  %vm8883_vm3 = vcmp.ge.f32.partialorder %v8851_v26, 0.0  ;;  %v8915_v3 = vmul.f32 0.1, %v8851_v26  ;;  %v18462_v33 = vsel %vm9358_vm1, %v9573_v61, %v9575_v59 }
 0x66f   : > { %9005 = vst.msk [vmem:[#allocation3 + $0xef] sm:$0x2] %vm8995_vm4, %v8948_v46  ;;  %9004 = vst.msk [vmem:[#allocation3 + $0xd7] sm:$0x2] %vm8995_vm4, %v8946_v2  ;;  %v8949_v36 = vsel %vm8885_vm14, %v8853_v17, %v8917_v12  ;;  %v9577_v41 = vrot.slane %v18318_v31, 1  ;;  %v9578_v54 = vrot.slane %v18331_v0, 1  ;;  %v18484_v61 = vadd.f32 %v9569_v63, %v18377_v37 }
 0x670   : > { %8979 = vst.msk [vmem:[#allocation3 + $0xd9] sm:$0xff] %vm4665_vm6, %v8946_v2  ;;  %v9580_v16 = vrot.slane %v18436_v52, 1  ;;  %8982 = vst.msk [vmem:[#allocation3 + $0xf9] sm:$0xff] %vm4665_vm6, %v8949_v36  ;;  %v8947_v6 = vsel %vm8883_vm3, %v8851_v26, %v8915_v3  ;;  %v14542_v50 = vpop.f32.mrb[20].mxu1  ;;  %v9582_v25 = vrot.slane %v18388_v55, 1  ;;  %v9583_v40 = vrot.slane %v18401_v56, 1 }
 0x671   : > { %9022 = vst.msk [vmem:[#allocation3 + $0xfb] sm:$0x40] %vm9012_vm8, %v8949_v36  ;;  %v9585_v43 = vrot.slane %v18440_v58, 1  ;;  %vm9711_vm5 = vcmask 1045504   ;;  %9021 = vst.msk [vmem:[#allocation3 + $0xe3] sm:$0x40] %vm9012_vm8, %v8947_v6  ;;  %v8856_v20 = vadd.f32 %v14542_v50, %v18277_v42  ;;  %v18478_v51 = vsel %vm9358_vm1, %v9577_v41, %v9578_v54 }
 0x672   : > { %8980 = vst.msk [vmem:[#allocation3 + $0xe1] sm:$0xff] %vm4665_vm6, %v8947_v6  ;;  %v8749_v9 = vpop.f32.mrb[21].mxu1  ;;  %v18481_v28 = vsel %vm9358_vm1, %v9578_v54, %v9580_v16  ;;  %v18488_v17 = vsel %vm9358_vm1, %v9582_v25, %v9583_v40  ;;  %v18494_v48 = vadd.f32 %v9571_v7, %v18397_v39  ;;  %v18499_v63 = vadd.f32 %v18457_v32, %v18327_v18 }
 0x673   : > { %v8854_v59 = vadd.f32 %v18277_v42, %v8749_v9  ;;  %v14543_v23 = vpop.f32.mrb[22].mxu1  ;;  %v18491_v4 = vsel %vm9358_vm1, %v9583_v40, %v9585_v43  ;;  %vm8888_vm7 = vcmp.ge.f32.partialorder %v8856_v20, 0.0  ;;  %v8920_v26 = vmul.f32 0.1, %v8856_v20 }
 0x674   : > { %v8857_v46 = vadd.f32 %v14543_v23, %v18277_v42  ;;  %v8752_v12 = vpop.f32.mrb[23].mxu1  ;;  %v18504_v36 = vadd.f32 %v18462_v33, %v18346_v38  ;;  %v9683_v54 = vadd.f32 %v18478_v51, %v18318_v31  ;;  %v9684_v50 = vadd.f32 %v18481_v28, %v18331_v0 }
 0x675   : > { %vm8886_vm2 = vcmp.ge.f32.partialorder %v8854_v59, 0.0  ;;  %v8918_v2 = vmul.f32 0.1, %v8854_v59  ;;  %v8855_v3 = vadd.f32 %v18277_v42, %v8752_v12  ;;  %v8952_v41 = vsel %vm8888_vm7, %v8856_v20, %v8920_v26 }
 0x676   : > { %vm8889_vm9 = vcmp.ge.f32.partialorder %v8857_v46, 0.0  ;;  %v8921_v7 = vmul.f32 0.1, %v8857_v46  ;;  %8985 = vst.msk [vmem:[#allocation3 + $0x121] sm:$0xff] %vm4665_vm6, %v8952_v41  ;;  %v9472_v40 = vadd.f32 %v18412_v49, %v18357_v15  ;;  %v9713_v43 = vrot.slane %v18357_v15, 2 }
 0x677   : > { %9007 = vst.msk [vmem:[#allocation3 + $0x11f] sm:$0x2] %vm8995_vm4, %v8952_v41  ;;  %v8950_v16 = vsel %vm8886_vm2, %v8854_v59, %v8918_v2  ;;  %vm8887_vm10 = vcmp.ge.f32.partialorder %v8855_v3, 0.0  ;;  %v8919_v6 = vmul.f32 0.1, %v8855_v3  ;;  %v9715_v20 = vrot.slane %v18359_v34, 2 }
 0x678   : > { %8983 = vst.msk [vmem:[#allocation3 + $0x109] sm:$0xff] %vm4665_vm6, %v8950_v16  ;;  %v8953_v25 = vsel %vm8889_vm9, %v8857_v46, %v8921_v7  ;;  %v9712_v59 = vrot.slane %v18342_v35, 2  ;;  %v9718_v23 = vrot.slane %v18312_v45, 2  ;;  %v9720_v26 = vrot.slane %v18314_v30, 2  ;;  %v18523_v12 = vpop.f32.mrb[24].mxu1 }
 0x679   : > { %9006 = vst.msk [vmem:[#allocation3 + $0x107] sm:$0x2] %vm8995_vm4, %v8950_v16  ;;  %v8951_v9 = vsel %vm8887_vm10, %v8855_v3, %v8919_v6  ;;  %v18532_v15 = vsel %vm9358_vm1, %v9375_v27, %v9377_v62  ;;  %v9474_v35 = vadd.f32 %v18365_v11, %v18312_v45  ;;  %v9717_v34 = vrot.slane %v18301_v14, 2  ;;  %v18538_v49 = vpop.f32.mrb[25].mxu1 }
 0x67a   : > { %8986 = vst.msk [vmem:[#allocation3 + $0x129] sm:$0xff] %vm4665_vm6, %v8953_v25  ;;  %8984 = vst.msk [vmem:[#allocation3 + $0x111] sm:$0xff] %vm4665_vm6, %v8951_v9  ;;  %v9723_v30 = vrot.slane %v18303_v19, 2  ;;  %v18542_v46 = vadd.f32 %v18353_v10, %v18295_v13  ;;  %v9714_v2 = vsel %vm9711_vm5, %v9712_v59, %v9713_v43  ;;  %v9716_v3 = vsel %vm9711_vm5, %v9713_v43, %v9715_v20  ;;  %v18547_v62 = vpop.f32.mrb[26].mxu1 }
 0x67b   : > { %9024 = vst.msk [vmem:[#allocation3 + $0x12b] sm:$0x40] %vm9012_vm8, %v8953_v25  ;;  %9023 = vst.msk [vmem:[#allocation3 + $0x113] sm:$0x40] %vm9012_vm8, %v8951_v9  ;;  %v9722_v27 = vrot.slane %v18295_v13, 2  ;;  %v9719_v41 = vsel %vm9711_vm5, %v9717_v34, %v9718_v23  ;;  %v9721_v7 = vsel %vm9711_vm5, %v9718_v23, %v9720_v26  ;;  %v9725_v16 = vrot.slane %v18323_v24, 2 }
 0x67c   : > { %21064 = vst [vmem:[#allocation41_spill] sm:$0xff] %v18547_v62  ;;  %v9824_v6 = vadd.f32 %v9714_v2, %v18422_v21  ;;  %v18553_v25 = vpop.f32.mrb[27].mxu1  ;;  %v9825_v59 = vadd.f32 %v9716_v3, %v9472_v40  ;;  %v9856_v43 = vrot.slane %v18377_v37, 2  ;;  %v9857_v20 = vrot.slane %v18397_v39, 2 }
 0x67d   : > { %21065 = vst [vmem:[#allocation43_spill] sm:$0xff] %v18553_v25  ;;  %v18556_v9 = vsel %vm9711_vm5, %v9722_v27, %v9723_v30  ;;  %v9826_v62 = vadd.f32 %v9719_v41, %v18426_v22  ;;  %v9859_v34 = vrot.slane %v18432_v44, 2  ;;  %v9861_v23 = vrot.slane %v18327_v18, 2 }
 0x67e   : > { %v9862_v24 = vrot.slane %v18346_v38, 2  ;;  %v9858_v21 = vsel %vm9711_vm5, %v9856_v43, %v9857_v20  ;;  %v9864_v26 = vrot.slane %v18369_v29, 2  ;;  %v9866_v2 = vrot.slane %v18318_v31, 2 }
 0x67f   : > { %v9867_v40 = vrot.slane %v18331_v0, 2  ;;  %v9827_v3 = vadd.f32 %v9721_v7, %v9474_v35  ;;  %v9860_v37 = vsel %vm9711_vm5, %v9857_v20, %v9859_v34  ;;  %v9869_v22 = vrot.slane %v18436_v52, 2  ;;  %v18575_v29 = vpop.f32.mrb[28].mxu1 }
 0x680   : > { %v9863_v39 = vsel %vm9711_vm5, %v9861_v23, %v9862_v24  ;;  %v9865_v44 = vsel %vm9711_vm5, %v9862_v24, %v9864_v26  ;;  %v9968_v25 = vadd.f32 %v9858_v21, %v18484_v61  ;;  %v9969_v43 = vadd.f32 %v9860_v37, %v18494_v48  ;;  %v18580_v23 = vpop.f32.mrb[29].mxu1 }
 0x681   : > { %v9868_v27 = vsel %vm9711_vm5, %v9866_v2, %v9867_v40  ;;  %v9870_v60 = vsel %vm9711_vm5, %v9867_v40, %v9869_v22  ;;  %v9970_v35 = vadd.f32 %v9863_v39, %v18499_v63  ;;  %v9971_v20 = vadd.f32 %v9865_v44, %v18504_v36  ;;  %v18585_v21 = vpop.f32.mrb[30].mxu1 }
 0x682   : > { %v9972_v34 = vadd.f32 %v9868_v27, %v9683_v54  ;;  %v9973_v52 = vadd.f32 %v9870_v60, %v9684_v50  ;;  %v10000_v24 = vadd.f32 %v9824_v6, %v18301_v14  ;;  %v10001_v26 = vadd.f32 %v9825_v59, %v18312_v45  ;;  %v18593_v54 = vpop.f32.mrb[31].mxu1 }
 0x683   : > { %v10002_v61 = vadd.f32 %v9826_v62, %v18295_v13  ;;  %v18588_v48 = vsel %vm9711_vm5, %v9723_v30, %v9725_v16  ;;  %v9874_v2 = vrot.slane %v18440_v58, 2  ;;  %v10003_v63 = vadd.f32 %v9827_v3, %v18303_v19 }
 0x684   : > { %v10034_v36 = vadd.f32 %v9968_v25, %v18327_v18  ;;  %v10035_v50 = vadd.f32 %v9969_v43, %v18346_v38  ;;  %v10036_v14 = vadd.f32 %v9970_v35, %v18318_v31  ;;  %v10037_v45 = vadd.f32 %v9971_v20, %v18331_v0 }
 0x685   : > { %v18599_v62 = vadd.f32 %v9972_v34, %v18388_v55  ;;  %v18602_v30 = vadd.f32 %v9973_v52, %v18401_v56  ;;  %v10076_v16 = vadd.f32 %v10000_v24, %v18362_v47  ;;  %v10077_v6 = vadd.f32 %v10001_v26, %v18365_v11 }
 0x686   : > { %v10078_v18 = vadd.f32 %v10002_v61, %v18353_v10  ;;  %v10079_v25 = vadd.f32 %v10003_v63, %v18381_v5  ;;  %v10119_v38 = vadd.f32 %v10034_v36, %v18457_v32  ;;  %v10120_v59 = vadd.f32 %v10035_v50, %v18462_v33 }
 0x687   : > { %v10121_v40 = vadd.f32 %v10036_v14, %v18478_v51  ;;  %v10122_v3 = vadd.f32 %v10037_v45, %v18481_v28  ;;  %v10158_v37 = vadd.f32 %v10076_v16, %v9719_v41  ;;  %v10159_v22 = vadd.f32 %v10077_v6, %v9721_v7 }
 0x688   : > { %v10160_v43 = vadd.f32 %v10078_v18, %v18556_v9  ;;  %v10161_v47 = vadd.f32 %v10079_v25, %v18588_v48  ;;  %v10197_v35 = vadd.f32 %v10119_v38, %v9863_v39  ;;  %v10198_v11 = vadd.f32 %v10120_v59, %v9865_v44 }
 0x689   : > { %v10199_v20 = vadd.f32 %v10121_v40, %v9868_v27  ;;  %v10200_v34 = vadd.f32 %v10122_v3, %v9870_v60  ;;  %v10229_v52 = vadd.f32 %v10158_v37, %v18295_v13  ;;  %v10230_v32 = vadd.f32 %v10159_v22, %v18303_v19 }
 0x68a   : > { %v10231_v33 = vadd.f32 %v10160_v43, %v18350_v57  ;;  %v10232_v24 = vadd.f32 %v10161_v47, %v18373_v53  ;;  %v10263_v26 = vadd.f32 %v10197_v35, %v18318_v31  ;;  %v10264_v41 = vadd.f32 %v10198_v11, %v18331_v0 }
 0x68b   : > { %v10265_v7 = vadd.f32 %v10199_v20, %v18388_v55  ;;  %v10266_v61 = vadd.f32 %v10200_v34, %v18401_v56  ;;  %v10305_v39 = vadd.f32 %v10229_v52, %v18353_v10  ;;  %v10306_v44 = vadd.f32 %v10230_v32, %v18381_v5 }
 0x68c   : > { %v10307_v13 = vadd.f32 %v10231_v33, %v18419_v8  ;;  %v10308_v63 = vadd.f32 %v10232_v24, %v18532_v15  ;;  %v10348_v36 = vadd.f32 %v10263_v26, %v18478_v51  ;;  %v10349_v50 = vadd.f32 %v10264_v41, %v18481_v28 }
 0x68d   : > { %v10350_v31 = vadd.f32 %v10265_v7, %v18488_v17  ;;  %v10351_v0 = vadd.f32 %v10266_v61, %v18491_v4  ;;  %v10387_v14 = vadd.f32 %v10305_v39, %v18556_v9  ;;  %v10388_v45 = vadd.f32 %v10306_v44, %v18588_v48  ;;  %v18662_v44 = vld [vmem:[#allocation3 + $0x60] sm:$0xff] }
 0x68e   : > { %v8860_v10 = vadd.f32 %v18523_v12, %v18277_v42  ;;  %v10426_v16 = vadd.f32 %v10348_v36, %v9868_v27  ;;  %v10427_v6 = vadd.f32 %v10349_v50, %v9870_v60  ;;  %v9727_v18 = vrot.slane %v18350_v57, 2  ;;  %v18664_v36 = vld [vmem:[#allocation3 + $0x68] sm:$0xff] }
 0x68f   : > { %v9728_v25 = vrot.slane %v18373_v53, 2  ;;  %v10458_v51 = vmul.f32 0.11111111, %v10387_v14  ;;  %v10459_v38 = vmul.f32 0.11111111, %v10388_v45  ;;  %v10490_v28 = vmul.f32 %v10387_v14, %v10387_v14 }
 0x690   : > { %v10491_v59 = vmul.f32 %v10388_v45, %v10388_v45  ;;  %vm8892_vm11 = vcmp.ge.f32.partialorder %v8860_v10, 0.0  ;;  %v8924_v40 = vmul.f32 0.1, %v8860_v10  ;;  %v9730_v37 = vrot.slane %v18393_v1, 2 }
 0x691   : > { %v18637_v3 = vsel %vm9711_vm5, %v9727_v18, %v9728_v25  ;;  %v10522_v22 = vmul.f32 0.11111111, %v10490_v28  ;;  %v10906_v12 = vpack.c.bf16 %v10459_v38, %v10458_v51  ;;  %v9871_v60 = vrot.slane %v18388_v55, 2  ;;  %v21066_v51 = vld [vmem:[#allocation42_spill] sm:$0xff] }
 0x692   : > { %v10523_v43 = vmul.f32 0.11111111, %v10491_v59  ;;  %v8956_v27 = vsel %vm8892_vm11, %v8860_v10, %v8924_v40  ;;  %v18642_v47 = vsel %vm9711_vm5, %v9728_v25, %v9730_v37  ;;  %v9872_v35 = vrot.slane %v18401_v56, 2  ;;  %v18688_v37 = vld [vmem:[#allocation3 + $0x80] sm:$0xff] }
 0x693   : > { %v10389_v11 = vadd.f32 %v10307_v13, %v18637_v3  ;;  %v10554_v20 = vsub.f32 %v10426_v16, %v10522_v22  ;;  %14556 = vmatprep.mubr.msk.bf16.mxu1 %vm4665_vm6, %v10906_v12  ;;  %8989 = vst.msk [vmem:[#allocation3 + $0x151] sm:$0xff] %vm4665_vm6, %v8956_v27  ;;  %v10390_v1 = vadd.f32 %v10308_v63, %v18642_v47  ;;  %v9379_v59 = vrot.slane %v18662_v44, 1 }
 0x694   : > { %v10555_v34 = vsub.f32 %v10427_v6, %v10523_v43  ;;  %9009 = vst.msk [vmem:[#allocation3 + $0x14f] sm:$0x2] %vm8995_vm4, %v8956_v27  ;;  %v8858_v52 = vadd.f32 %v18277_v42, %v18538_v49  ;;  %v18653_v32 = vsel %vm9711_vm5, %v9871_v60, %v9872_v35  ;;  %v18658_v33 = vsel %vm9711_vm5, %v9872_v35, %v9874_v2 }
 0x695   : > { %v10460_v24 = vmul.f32 0.11111111, %v10389_v11  ;;  %v10492_v26 = vmul.f32 %v10389_v11, %v10389_v11  ;;  %v10586_v41 = vmax.f32 %v10554_v20, 0.0  ;;  %v10428_v61 = vadd.f32 %v10350_v31, %v18653_v32 }
 0x696   : > { %v10587_v7 = vmax.f32 %v10555_v34, 0.0  ;;  %v10429_v39 = vadd.f32 %v10351_v0, %v18658_v33  ;;  %v10461_v13 = vmul.f32 0.11111111, %v10390_v1  ;;  %v10493_v49 = vmul.f32 %v10390_v1, %v10390_v1  ;;  %v9238_v0 = vld [vmem:[#allocation3 + $0x70] sm:$0x3] }
 0x697   : > { %v10524_v63 = vmul.f32 0.11111111, %v10492_v26  ;;  %vm8890_vm13 = vcmp.ge.f32.partialorder %v8858_v52, 0.0  ;;  %v9476_v58 = vadd.f32 %v18381_v5, %v18303_v19  ;;  %v8922_v2 = vmul.f32 0.1, %v8858_v52 }
 0x698   : > { %v9828_v50 = vadd.f32 %v18556_v9, %v18542_v46  ;;  %v10525_v14 = vmul.f32 0.11111111, %v10493_v49  ;;  %v10907_v31 = vpack.c.bf16 %v10461_v13, %v10460_v24  ;;  %v18672_v16 = vmul.f32 %v18662_v44, %v18662_v44  ;;  %v18682_v46 = vld [vmem:[#allocation3 + $0x78] sm:$0xff] }
 0x699   : > { %v10556_v45 = vsub.f32 %v10428_v61, %v10524_v63  ;;  %v8954_v10 = vsel %vm8890_vm13, %v8858_v52, %v8922_v2  ;;  %v18676_v6 = vmul.f32 %v18664_v36, %v18664_v36  ;;  %v10618_v18 = vmul.f32 0.125, %v10586_v41 }
 0x69a   : > { %v10619_v25 = vmul.f32 0.125, %v10587_v7  ;;  %v10557_v19 = vsub.f32 %v10429_v39, %v10525_v14  ;;  %14557 = vmatmul.mubr.msk.bf16.vlgmr.msra.gmra.mrb[32].mxu1 %vm4665_vm6, %v10907_v31  ;;  %8987 = vst.msk [vmem:[#allocation3 + $0x139] sm:$0xff] %vm4665_vm6, %v8954_v10  ;;  %v9829_v5 = vadd.f32 %v18588_v48, %v9476_v58  ;;  %v9380_v9 = vrot.slane %v18664_v36, 1 }
 0x69b   : > { %9008 = vst.msk [vmem:[#allocation3 + $0x137] sm:$0x2] %vm8995_vm4, %v8954_v10  ;;  %14625 = vmatpush3.bf16.msra.mxu1 %v21066_v51  ;;  %v10004_v38 = vadd.f32 %v9828_v50, %v18350_v57  ;;  %v10588_v28 = vmax.f32 %v10556_v45, 0.0  ;;  %v9507_v40 = vmul.f32 %v9238_v0, %v9238_v0  ;;  %v9382_v22 = vrot.slane %v9238_v0, 1 }
 0x69c   : > { %v9587_v43 = vrot.slane %v18672_v16, 1  ;;  %v9588_v12 = vrot.slane %v18676_v6, 1  ;;  %v9685_v48 = vadd.f32 %v18488_v17, %v18388_v55  ;;  %v10005_v60 = vadd.f32 %v9829_v5, %v18373_v53 }
 0x69d   : > { %v18695_v27 = vadd.f32 1e-05, %v10618_v18  ;;  %v18697_v35 = vadd.f32 1e-05, %v10619_v25  ;;  %v18701_v11 = vmul.f32 %v18682_v46, %v18682_v46  ;;  %v18704_v20 = vsel %vm9358_vm1, %v9379_v59, %v9380_v9 }
 0x69e   : > { %v9589_v34 = vsel %vm9358_vm1, %v9587_v43, %v9588_v12  ;;  %v9590_v1 = vrot.slane %v9507_v40, 1  ;;  %v9686_v52 = vadd.f32 %v18491_v4, %v18401_v56  ;;  %v18711_v55 = vmul.f32 %v18688_v37, %v18688_v37 }
 0x69f   : > { %v9477_v24 = vadd.f32 %v18419_v8, %v18350_v57  ;;  %v9478_v26 = vadd.f32 %v18532_v15, %v18373_v53  ;;  %v9687_v41 = vadd.f32 %v9589_v34, %v18672_v16  ;;  %v18718_v7 = vmax.f32 %v10557_v19, 0.0 }
 0x6a0   : > { %v18720_v61 = vmul.f32 0.125, %v10588_v28  ;;  %v18723_v39 = vsel %vm9358_vm1, %v9380_v9, %v9382_v22  ;;  %v9591_v56 = vsel %vm9358_vm1, %v9588_v12, %v9590_v1  ;;  %v18728_v13 = vadd.f32 %v18704_v20, %v18662_v44 }
 0x6a1   : > { %v9688_v57 = vadd.f32 %v9591_v56, %v18676_v6  ;;  %v9876_v49 = vrot.slane %v18672_v16, 2  ;;  %v9877_v53 = vrot.slane %v18676_v6, 2  ;;  %v9733_v63 = vrot.slane %v18664_v36, 2 }
 0x6a2   : > { %v9735_v58 = vrot.slane %v9238_v0, 2  ;;  %v9879_v2 = vrot.slane %v9507_v40, 2  ;;  %v9974_v50 = vadd.f32 %v18653_v32, %v9685_v48  ;;  %v18737_v14 = vadd.f32 %v18723_v39, %v18664_v36 }
 0x6a3   : > { %v9732_v45 = vrot.slane %v18662_v44, 2  ;;  %v9878_v31 = vsel %vm9711_vm5, %v9876_v49, %v9877_v53  ;;  %v9975_v10 = vadd.f32 %v18658_v33, %v9686_v52  ;;  %v9830_v18 = vadd.f32 %v18637_v3, %v9477_v24 }
 0x6a4   : > { %v9831_v25 = vadd.f32 %v18642_v47, %v9478_v26  ;;  %v9880_v19 = vsel %vm9711_vm5, %v9877_v53, %v9879_v2  ;;  %v9976_v0 = vadd.f32 %v9878_v31, %v9687_v41  ;;  %v10040_v9 = vadd.f32 %v9974_v50, %v18672_v16  ;;  %v21068_v53 = vld [vmem:[#allocation43_spill] sm:$0xff] }
 0x6a5   : > { %v9977_v5 = vadd.f32 %v9880_v19, %v9688_v57  ;;  %v10041_v51 = vadd.f32 %v9975_v10, %v18676_v6  ;;  %v10080_v28 = vadd.f32 %v10004_v38, %v18419_v8  ;;  %v18749_v59 = vsel %vm9711_vm5, %v9732_v45, %v9733_v63 }
 0x6a6   : > { %v18752_v40 = vsel %vm9711_vm5, %v9733_v63, %v9735_v58  ;;  %v18755_v22 = vadd.f32 %v9976_v0, %v18701_v11  ;;  %v10081_v43 = vadd.f32 %v10005_v60, %v18532_v15  ;;  %v10123_v48 = vadd.f32 %v18599_v62, %v18488_v17 }
 0x6a7   : > { %v18759_v12 = vadd.f32 %v9977_v5, %v18711_v55  ;;  %v10124_v8 = vadd.f32 %v18602_v30, %v18491_v4  ;;  %v10125_v38 = vadd.f32 %v10040_v9, %v9589_v34  ;;  %v10006_v1 = vadd.f32 %v9830_v18, %v18662_v44  ;;  %v21067_v30 = vld [vmem:[#allocation41_spill] sm:$0xff]  ;;  %v18793_v5 = vld [vmem:[#allocation3 + $0x88] sm:$0x3] }
 0x6a8   : > { %v10126_v52 = vadd.f32 %v10041_v51, %v9591_v56  ;;  %v10162_v24 = vadd.f32 %v10080_v28, %v18637_v3  ;;  %v10163_v26 = vadd.f32 %v10081_v43, %v18642_v47  ;;  %v10007_v41 = vadd.f32 %v9831_v25, %v18664_v36 }
 0x6a9   : > { %v10201_v15 = vadd.f32 %v10123_v48, %v18653_v32  ;;  %v10202_v60 = vadd.f32 %v10124_v8, %v18658_v33  ;;  %v18771_v57 = vadd.f32 %v10125_v38, %v9878_v31  ;;  %v8861_v49 = vadd.f32 %v21067_v30, %v18277_v42 }
 0x6aa   : > { %v18773_v17 = vadd.f32 %v10126_v52, %v9880_v19  ;;  %v10233_v4 = vadd.f32 %v10162_v24, %v18662_v44  ;;  %v10234_v62 = vadd.f32 %v10163_v26, %v18664_v36  ;;  %v8859_v32 = vadd.f32 %v18277_v42, %v21068_v53 }
 0x6ab   : > { %v10267_v3 = vadd.f32 %v10201_v15, %v18672_v16  ;;  %v10268_v47 = vadd.f32 %v10202_v60, %v18676_v6  ;;  %v8864_v33 = vadd.f32 %v18575_v29, %v18277_v42  ;;  %vm8893_vm15 = vcmp.ge.f32.partialorder %v8861_v49, 0.0 }
 0x6ac   : > { %v10309_v63 = vadd.f32 %v10233_v4, %v18704_v20  ;;  %v10310_v58 = vadd.f32 %v10234_v62, %v18723_v39  ;;  %v8925_v44 = vmul.f32 0.1, %v8861_v49  ;;  %vm8891_vm14 = vcmp.ge.f32.partialorder %v8859_v32, 0.0 }
 0x6ad   : > { %v10352_v36 = vadd.f32 %v10267_v3, %v9589_v34  ;;  %v10353_v2 = vadd.f32 %v10268_v47, %v9591_v56  ;;  %v8923_v50 = vmul.f32 0.1, %v8859_v32  ;;  %vm8896_vm3 = vcmp.ge.f32.partialorder %v8864_v33, 0.0  ;;  %v18828_v47 = vld [vmem:[#allocation3 + $0x98] sm:$0xff] }
 0x6ae   : > { %v10391_v16 = vadd.f32 %v10309_v63, %v18749_v59  ;;  %v10392_v6 = vadd.f32 %v10310_v58, %v18752_v40  ;;  %v8957_v45 = vsel %vm8893_vm15, %v8861_v49, %v8925_v44  ;;  %v8928_v29 = vmul.f32 0.1, %v8864_v33 }
 0x6af   : > { %v10430_v10 = vadd.f32 %v10352_v36, %v9878_v31  ;;  %v10431_v18 = vadd.f32 %v10353_v2, %v9880_v19  ;;  %8990 = vst.msk [vmem:[#allocation3 + $0x159] sm:$0xff] %vm4665_vm6, %v8957_v45  ;;  %v8955_v42 = vsel %vm8891_vm14, %v8859_v32, %v8923_v50  ;;  %v10621_v9 = vmul.f32 0.125, %v18718_v7 }
 0x6b0   : > { %9026 = vst.msk [vmem:[#allocation3 + $0x15b] sm:$0x40] %vm9012_vm8, %v8957_v45  ;;  %v10462_v25 = vmul.f32 0.11111111, %v10391_v16  ;;  %v10463_v0 = vmul.f32 0.11111111, %v10392_v6  ;;  %v10494_v34 = vmul.f32 %v10391_v16, %v10391_v16  ;;  %v10495_v56 = vmul.f32 %v10392_v6, %v10392_v6 }
 0x6b1   : > { %8988 = vst.msk [vmem:[#allocation3 + $0x141] sm:$0xff] %vm4665_vm6, %v8955_v42  ;;  %v9832_v31 = vadd.f32 %v18749_v59, %v18728_v13  ;;  %v10082_v19 = vadd.f32 %v10006_v1, %v18704_v20  ;;  %v8960_v51 = vsel %vm8896_vm3, %v8864_v33, %v8928_v29  ;;  %v10083_v28 = vadd.f32 %v10007_v41, %v18723_v39 }
 0x6b2   : > { %9025 = vst.msk [vmem:[#allocation3 + $0x143] sm:$0x40] %vm9012_vm8, %v8955_v42  ;;  %v10526_v43 = vmul.f32 0.11111111, %v10494_v34  ;;  %v10527_v48 = vmul.f32 0.11111111, %v10495_v56  ;;  %v10908_v8 = vpack.c.bf16 %v10463_v0, %v10462_v25  ;;  %v9508_v7 = vmul.f32 %v18793_v5, %v18793_v5 }
 0x6b3   : > { %8993 = vst.msk [vmem:[#allocation3 + $0x181] sm:$0xff] %vm4665_vm6, %v8960_v51  ;;  %v9385_v38 = vrot.slane %v18688_v37, 1  ;;  %v9592_v13 = vrot.slane %v18701_v11, 1  ;;  %v9593_v20 = vrot.slane %v18711_v55, 1  ;;  %v9833_v1 = vadd.f32 %v18752_v40, %v18737_v14  ;;  %v15355_v25 = vld [vmem:[%s20758_s9 + $0x8] sm:$0xff]  }
 0x6b4   : > { %9011 = vst.msk [vmem:[#allocation3 + $0x17f] sm:$0x2] %vm8995_vm4, %v8960_v51  ;;  %v10558_v39 = vsub.f32 %v10430_v10, %v10526_v43  ;;  %v10559_v52 = vsub.f32 %v10431_v18, %v10527_v48  ;;  %14560 = vmatprep.mubr.msk.bf16.mxu1 %vm4665_vm6, %v10908_v8  ;;  %v9387_v24 = vrot.slane %v18793_v5, 1  ;;  %v18813_v26 = vadd.f32 1e-05, %v18720_v61  ;;  %v18826_v61 = vld [vmem:[#allocation3 + $0x90] sm:$0xff]  ;;  %14626 = vmatprep.subr.bf16.mxu1 %v15355_v25 }
 0x6b5   : > { %v9384_v41 = vrot.slane %v18682_v46, 1  ;;  %v9594_v15 = vsel %vm9358_vm1, %v9592_v13, %v9593_v20  ;;  %v9595_v60 = vrot.slane %v9508_v7, 1  ;;  %v18817_v4 = vadd.f32 1e-05, %v10621_v9  ;;  %14627 = vmatpush3.bf16.msra.mxu1 %v15355_v25 }
 0x6b6   : > { %v10008_v62 = vadd.f32 %v9832_v31, %v18682_v46  ;;  %v18821_v14 = vadd.f32 %v9833_v1, %v18688_v37  ;;  %v9689_v30 = vadd.f32 %v9594_v15, %v18701_v11  ;;  %v10164_v49 = vadd.f32 %v10082_v19, %v18749_v59 }
 0x6b7   : > { %v10165_v3 = vadd.f32 %v10083_v28, %v18752_v40  ;;  %v9386_v53 = vsel %vm9358_vm1, %v9384_v41, %v9385_v38  ;;  %v9596_v32 = vsel %vm9358_vm1, %v9593_v20, %v9595_v60  ;;  %v10590_v33 = vmax.f32 %v10558_v39, 0.0  ;;  %v18887_v41 = vld [vmem:[#allocation3 + $0xa0] sm:$0x3] }
 0x6b8   : > { %v9388_v63 = vsel %vm9358_vm1, %v9385_v38, %v9387_v24  ;;  %v9690_v58 = vadd.f32 %v9596_v32, %v18711_v55  ;;  %v9882_v44 = vrot.slane %v18711_v55, 2  ;;  %v10591_v36 = vmax.f32 %v10559_v52, 0.0 }
 0x6b9   : > { %v9738_v59 = vrot.slane %v18688_v37, 2  ;;  %v9881_v40 = vrot.slane %v18701_v11, 2  ;;  %v9884_v2 = vrot.slane %v9508_v7, 2  ;;  %v18839_v50 = vmul.f32 %v18826_v61, %v18826_v61  ;;  %v18878_v7 = vld [vmem:[%s20753_s4] ss:$0 sm:$0xff] }
 0x6ba   : > { %v18843_v16 = vmul.f32 %v18828_v47, %v18828_v47  ;;  %v9481_v6 = vadd.f32 %v9386_v53, %v18682_v46  ;;  %v9737_v45 = vrot.slane %v18682_v46, 2  ;;  %v9482_v10 = vadd.f32 %v9388_v63, %v18688_v37 }
 0x6bb   : > { %v9883_v18 = vsel %vm9711_vm5, %v9881_v40, %v9882_v44  ;;  %v9885_v42 = vsel %vm9711_vm5, %v9882_v44, %v9884_v2  ;;  %v10127_v29 = vadd.f32 %v18755_v22, %v9594_v15  ;;  %v10622_v0 = vmul.f32 0.125, %v10590_v33 }
 0x6bc   : > { %v9740_v34 = vrot.slane %v18793_v5, 2  ;;  %v9978_v56 = vadd.f32 %v9883_v18, %v9689_v30  ;;  %v9979_v9 = vadd.f32 %v9885_v42, %v9690_v58  ;;  %v10623_v31 = vmul.f32 0.125, %v10591_v36 }
 0x6bd   : > { %v18856_v19 = vsel %vm9711_vm5, %v9737_v45, %v9738_v59  ;;  %v10128_v51 = vadd.f32 %v18759_v12, %v9596_v32  ;;  %v18859_v28 = vadd.f32 %v10127_v29, %v9883_v18  ;;  %v10235_v48 = vadd.f32 %v10164_v49, %v18682_v46 }
 0x6be   : > { %v18862_v22 = vadd.f32 %v9978_v56, %v18839_v50  ;;  %v18865_v43 = vadd.f32 %v9979_v9, %v18843_v16  ;;  %v10236_v5 = vadd.f32 %v10165_v3, %v18688_v37  ;;  %v10269_v38 = vadd.f32 %v18771_v57, %v18701_v11 }
 0x6bf   : > { %v18869_v8 = vadd.f32 %v10128_v51, %v9885_v42  ;;  %v10270_v12 = vadd.f32 %v18773_v17, %v18711_v55  ;;  %v8862_v13 = vadd.f32 %v18878_v7, %v18580_v23  ;;  %v9741_v46 = vsel %vm9711_vm5, %v9738_v59, %v9740_v34 }
 0x6c0   : > { %v9834_v37 = vadd.f32 %v18856_v19, %v9481_v6  ;;  %v10311_v20 = vadd.f32 %v10235_v48, %v9386_v53  ;;  %v10312_v1 = vadd.f32 %v10236_v5, %v9388_v63  ;;  %v10354_v39 = vadd.f32 %v10269_v38, %v9594_v15  ;;  %v18900_v6 = vld [vmem:[#allocation3 + $0xa8] sm:$0xff] }
 0x6c1   : > { %v10355_v52 = vadd.f32 %v10270_v12, %v9596_v32  ;;  %vm8894_vm7 = vcmp.ge.f32.partialorder %v8862_v13, 0.0  ;;  %v8926_v11 = vmul.f32 0.1, %v8862_v13  ;;  %v18884_v57 = vadd.f32 1e-05, %v10622_v0  ;;  %v18910_v0 = vld [vmem:[#allocation3 + $0xb0] sm:$0xff] }
 0x6c2   : > { %v10084_v55 = vadd.f32 %v10008_v62, %v9386_v53  ;;  %v10393_v17 = vadd.f32 %v10311_v20, %v18856_v19  ;;  %v10394_v24 = vadd.f32 %v10312_v1, %v9741_v46  ;;  %v9835_v60 = vadd.f32 %v9741_v46, %v9482_v10 }
 0x6c3   : > { %v10432_v23 = vadd.f32 %v10354_v39, %v9883_v18  ;;  %v10433_v30 = vadd.f32 %v10355_v52, %v9885_v42  ;;  %v8958_v49 = vsel %vm8894_vm7, %v8862_v13, %v8926_v11  ;;  %v18891_v15 = vadd.f32 1e-05, %v10623_v31 }
 0x6c4   : > { %v10464_v3 = vmul.f32 0.11111111, %v10393_v17  ;;  %v10465_v33 = vmul.f32 0.11111111, %v10394_v24  ;;  %v10496_v58 = vmul.f32 %v10393_v17, %v10393_v17  ;;  %v10497_v44 = vmul.f32 %v10394_v24, %v10394_v24  ;;  %8991 = vst.msk [vmem:[#allocation3 + $0x169] sm:$0xff] %vm4665_vm6, %v8958_v49 }
 0x6c5   : > { %9010 = vst.msk [vmem:[#allocation3 + $0x167] sm:$0x2] %vm8995_vm4, %v8958_v49  ;;  %v18894_v62 = vadd.f32 %v9834_v37, %v18826_v61  ;;  %v10085_v53 = vadd.f32 %v18821_v14, %v9388_v63  ;;  %v9509_v32 = vmul.f32 %v18887_v41, %v18887_v41  ;;  %v9390_v2 = vrot.slane %v18828_v47, 1 }
 0x6c6   : > { %v10528_v36 = vmul.f32 0.11111111, %v10496_v58  ;;  %v10529_v59 = vmul.f32 0.11111111, %v10497_v44  ;;  %v10909_v40 = vpack.c.bf16 %v10465_v33, %v10464_v3  ;;  %v9392_v45 = vrot.slane %v18887_v41, 1 }
 0x6c7   : > { %v9597_v10 = vrot.slane %v18839_v50, 1  ;;  %v9598_v18 = vrot.slane %v18843_v16, 1  ;;  %v9600_v42 = vrot.slane %v9509_v32, 1  ;;  %v18906_v29 = vadd.f32 %v9835_v60, %v18828_v47 }
 0x6c8   : > { %v10560_v14 = vsub.f32 %v10432_v23, %v10528_v36  ;;  %v10561_v63 = vsub.f32 %v10433_v30, %v10529_v59  ;;  %14561 = vmatmul.mubr.msk.bf16.gmra.mrb[36].mxu1 %vm4665_vm6, %v10909_v40  ;;  %v9389_v25 = vrot.slane %v18826_v61, 1  ;;  %v9886_v9 = vrot.slane %v18839_v50, 2 }
 0x6c9   : > { %v9599_v34 = vsel %vm9358_vm1, %v9597_v10, %v9598_v18  ;;  %v9601_v56 = vsel %vm9358_vm1, %v9598_v18, %v9600_v42  ;;  %v9887_v31 = vrot.slane %v18843_v16, 2  ;;  %v18918_v51 = vmul.f32 %v18900_v6, %v18900_v6 }
 0x6ca   : > { %v9391_v48 = vsel %vm9358_vm1, %v9389_v25, %v9390_v2  ;;  %v9691_v5 = vadd.f32 %v9599_v34, %v18839_v50  ;;  %v9692_v38 = vadd.f32 %v9601_v56, %v18843_v16  ;;  %v18924_v13 = vsel %vm9358_vm1, %v9390_v2, %v9392_v45 }
 0x6cb   : > { %v9743_v37 = vrot.slane %v18828_v47, 2  ;;  %v9888_v20 = vsel %vm9711_vm5, %v9886_v9, %v9887_v31  ;;  %v9889_v1 = vrot.slane %v9509_v32, 2  ;;  %v10166_v39 = vadd.f32 %v10084_v55, %v18856_v19 }
 0x6cc   : > { %v9216_v12 = vld [vmem:[#allocation3 + $0x168] sm:$0xff]  ;;  %v10592_v52 = vmax.f32 %v10560_v14, 0.0  ;;  %v18932_v11 = vmul.f32 %v18910_v0, %v18910_v0  ;;  %v9745_v17 = vrot.slane %v18887_v41, 2  ;;  %v10167_v24 = vadd.f32 %v10085_v53, %v9741_v46 }
 0x6cd   : > { %9220 = vst.msk [vmem:[#allocation3 + $0x198] sm:$0xff] %vm4665_vm6, %v9216_v12  ;;  %v9742_v60 = vrot.slane %v18826_v61, 2  ;;  %v9890_v23 = vsel %vm9711_vm5, %v9887_v31, %v9889_v1  ;;  %v9980_v30 = vadd.f32 %v9888_v20, %v9691_v5  ;;  %v10593_v49 = vmax.f32 %v10561_v63, 0.0 }
 0x6ce   : > { %v9483_v3 = vadd.f32 %v9391_v48, %v18826_v61  ;;  %v9484_v19 = vadd.f32 %v18924_v13, %v18828_v47  ;;  %v9981_v55 = vadd.f32 %v9890_v23, %v9692_v38  ;;  %v10129_v46 = vadd.f32 %v18862_v22, %v9599_v34 }
 0x6cf   : > { %v18941_v33 = vsel %vm9711_vm5, %v9742_v60, %v9743_v37  ;;  %v18944_v58 = vadd.f32 %v9980_v30, %v18918_v51  ;;  %v10130_v41 = vadd.f32 %v18865_v43, %v9601_v56  ;;  %v10624_v44 = vmul.f32 0.125, %v10592_v52 }
 0x6d0   : > { %v18949_v53 = vsel %vm9711_vm5, %v9743_v37, %v9745_v17  ;;  %v18952_v32 = vadd.f32 %v9981_v55, %v18932_v11  ;;  %v10237_v36 = vadd.f32 %v10166_v39, %v18826_v61  ;;  %v18955_v59 = vadd.f32 %v10129_v46, %v9888_v20 }
 0x6d1   : > { %v18957_v40 = vadd.f32 %v10130_v41, %v9890_v23  ;;  %v10238_v2 = vadd.f32 %v10167_v24, %v18828_v47  ;;  %v10271_v22 = vadd.f32 %v18859_v28, %v18839_v50  ;;  %v10272_v43 = vadd.f32 %v18869_v8, %v18843_v16 }
 0x6d2   : > { %v10313_v45 = vadd.f32 %v10237_v36, %v9391_v48  ;;  %v8865_v10 = vadd.f32 %v18878_v7, %v18585_v21  ;;  %v8863_v18 = vadd.f32 %v18878_v7, %v18593_v54  ;;  %v10625_v61 = vmul.f32 0.125, %v10593_v49  ;;  %v18972_v21 = vld [vmem:[#allocation3 + $0xb8] sm:$0x3]  ;;  %v19002_v36 = vld [vmem:[#allocation3 + $0xc0] sm:$0xff] }
 0x6d3   : > { %v9836_v42 = vadd.f32 %v18941_v33, %v9483_v3  ;;  %v10314_v14 = vadd.f32 %v10238_v2, %v18924_v13  ;;  %v10356_v63 = vadd.f32 %v10271_v22, %v9599_v34  ;;  %v10357_v47 = vadd.f32 %v10272_v43, %v9601_v56  ;;  %v19004_v2 = vld [vmem:[#allocation3 + $0xc8] sm:$0xff] }
 0x6d4   : > { %v10395_v25 = vadd.f32 %v10313_v45, %v18941_v33  ;;  %vm8897_vm4 = vcmp.ge.f32.partialorder %v8865_v10, 0.0  ;;  %v8929_v50 = vmul.f32 0.1, %v8865_v10  ;;  %vm8895_vm2 = vcmp.ge.f32.partialorder %v8863_v18, 0.0 }
 0x6d5   : > { %v10396_v16 = vadd.f32 %v10314_v14, %v18949_v53  ;;  %v10434_v28 = vadd.f32 %v10356_v63, %v9888_v20  ;;  %v8927_v8 = vmul.f32 0.1, %v8863_v18  ;;  %v10435_v9 = vadd.f32 %v10357_v47, %v9890_v23 }
 0x6d6   : > { %v10466_v54 = vmul.f32 0.11111111, %v10395_v25  ;;  %v10498_v7 = vmul.f32 %v10395_v25, %v10395_v25  ;;  %v8961_v31 = vsel %vm8897_vm4, %v8865_v10, %v8929_v50  ;;  %v9837_v5 = vadd.f32 %v18949_v53, %v9484_v19 }
 0x6d7   : > { %v10467_v38 = vmul.f32 0.11111111, %v10396_v16  ;;  %v10499_v34 = vmul.f32 %v10396_v16, %v10396_v16  ;;  %8994 = vst.msk [vmem:[#allocation3 + $0x189] sm:$0xff] %vm4665_vm6, %v8961_v31  ;;  %v8959_v56 = vsel %vm8895_vm2, %v8863_v18, %v8927_v8  ;;  %v10086_v12 = vadd.f32 %v18894_v62, %v9391_v48 }
 0x6d8   : > { %9028 = vst.msk [vmem:[#allocation3 + $0x18b] sm:$0x40] %vm9012_vm8, %v8961_v31  ;;  %v10530_v37 = vmul.f32 0.11111111, %v10498_v7  ;;  %9027 = vst.msk [vmem:[#allocation3 + $0x173] sm:$0x40] %vm9012_vm8, %v8959_v56  ;;  %v9510_v1 = vmul.f32 %v18972_v21, %v18972_v21  ;;  %v10087_v62 = vadd.f32 %v18906_v29, %v18924_v13  ;;  %v10012_v46 = vadd.f32 %v9836_v42, %v18900_v6 }
 0x6d9   : > { %8992 = vst.msk [vmem:[#allocation3 + $0x171] sm:$0xff] %vm4665_vm6, %v8959_v56  ;;  %v9395_v20 = vrot.slane %v18910_v0, 1  ;;  %v10531_v39 = vmul.f32 0.11111111, %v10499_v34  ;;  %v10910_v52 = vpack.c.bf16 %v10467_v38, %v10466_v54  ;;  %v9602_v17 = vrot.slane %v18918_v51, 1 }
 0x6da   : > { %v9603_v24 = vrot.slane %v18932_v11, 1  ;;  %v18985_v60 = vadd.f32 1e-05, %v10624_v44  ;;  %v10562_v48 = vsub.f32 %v10434_v28, %v10530_v37  ;;  %v9605_v23 = vrot.slane %v9510_v1, 1 }
 0x6db   : > { %v10563_v30 = vsub.f32 %v10435_v9, %v10531_v39  ;;  %14564 = vmatprep.mubr.msk.bf16.mxu1 %vm4665_vm6, %v10910_v52  ;;  %v9394_v49 = vrot.slane %v18900_v6, 1  ;;  %v9397_v3 = vrot.slane %v18972_v21, 1  ;;  %v18993_v55 = vadd.f32 1e-05, %v10625_v61 }
 0x6dc   : > { %v9604_v19 = vsel %vm9358_vm1, %v9602_v17, %v9603_v24  ;;  %v9606_v41 = vsel %vm9358_vm1, %v9603_v24, %v9605_v23  ;;  %v18999_v29 = vadd.f32 %v9837_v5, %v18910_v0  ;;  %v10168_v13 = vadd.f32 %v10086_v12, %v18941_v33 }
 0x6dd   : > { %v9693_v44 = vadd.f32 %v9604_v19, %v18918_v51  ;;  %v9396_v22 = vsel %vm9358_vm1, %v9394_v49, %v9395_v20  ;;  %v9694_v43 = vadd.f32 %v9606_v41, %v18932_v11  ;;  %v10594_v45 = vmax.f32 %v10562_v48, 0.0 }
 0x6de   : > { %v9891_v10 = vrot.slane %v18918_v51, 2  ;;  %v9892_v18 = vrot.slane %v18932_v11, 2  ;;  %v9894_v61 = vrot.slane %v9510_v1, 2  ;;  %v10169_v42 = vadd.f32 %v10087_v62, %v18949_v53 }
 0x6df   : > { %v10595_v14 = vmax.f32 %v10563_v30, 0.0  ;;  %v9398_v33 = vsel %vm9358_vm1, %v9395_v20, %v9397_v3  ;;  %v9748_v25 = vrot.slane %v18910_v0, 2  ;;  %v19017_v50 = vmul.f32 %v19002_v36, %v19002_v36 }
 0x6e0   : > { %v9217_v63 = vld [vmem:[#allocation3 + $0x170] sm:$0xff]  ;;  %v9218_v47 = vld [vmem:[#allocation3 + $0x178] sm:$0x3]  ;;  %v19021_v16 = vmul.f32 %v19004_v2, %v19004_v2  ;;  %v9485_v53 = vadd.f32 %v9396_v22, %v18900_v6  ;;  %v9893_v28 = vsel %vm9711_vm5, %v9891_v10, %v9892_v18  ;;  %v9747_v8 = vrot.slane %v18900_v6, 2 }
 0x6e1   : > { %9221 = vst.msk [vmem:[#allocation3 + $0x1a0] sm:$0xff] %vm4665_vm6, %v9217_v63  ;;  %v9750_v9 = vrot.slane %v18972_v21, 2  ;;  %v9895_v54 = vsel %vm9711_vm5, %v9892_v18, %v9894_v61  ;;  %v9982_v7 = vadd.f32 %v9893_v28, %v9693_v44  ;;  %v10626_v31 = vmul.f32 0.125, %v10594_v45 }
 0x6e2   : > { %9222 = vst.msk [vmem:[#allocation3 + $0x1a8] sm:$0x3] %vm9213_vm12, %v9218_v47  ;;  %v9486_v5 = vadd.f32 %v9398_v33, %v18910_v0  ;;  %v9983_v38 = vadd.f32 %v9895_v54, %v9694_v43  ;;  %v10131_v34 = vadd.f32 %v18944_v58, %v9604_v19  ;;  %v10627_v56 = vmul.f32 0.125, %v10595_v14 }
 0x6e3   : > { %v9749_v12 = vsel %vm9711_vm5, %v9747_v8, %v9748_v25  ;;  %v19032_v37 = vadd.f32 %v9982_v7, %v19017_v50  ;;  %v10132_v20 = vadd.f32 %v18952_v32, %v9606_v41  ;;  %v10239_v39 = vadd.f32 %v10168_v13, %v18900_v6  ;;  %v19049_v32 = vld [vmem:[#allocation3 + $0xd0] sm:$0x3]  ;;  %v19064_v8 = vld [vmem:[#allocation3 + $0xd8] sm:$0xff] }
 0x6e4   : > { %v19036_v1 = vadd.f32 %v9983_v38, %v19021_v16  ;;  %v19038_v21 = vadd.f32 %v10131_v34, %v9893_v28  ;;  %v10240_v52 = vadd.f32 %v10169_v42, %v18910_v0  ;;  %v9751_v17 = vsel %vm9711_vm5, %v9748_v25, %v9750_v9 }
 0x6e5   : > { %v19043_v58 = vadd.f32 %v10132_v20, %v9895_v54  ;;  %v10273_v24 = vadd.f32 %v18955_v59, %v18918_v51  ;;  %v10274_v62 = vadd.f32 %v18957_v40, %v18932_v11  ;;  %v19051_v48 = vadd.f32 1e-05, %v10626_v31 }
 0x6e6   : > { %v10088_v23 = vadd.f32 %v10012_v46, %v9396_v22  ;;  %v10315_v30 = vadd.f32 %v10239_v39, %v9396_v22  ;;  %v10316_v49 = vadd.f32 %v10240_v52, %v9398_v33  ;;  %v9838_v6 = vadd.f32 %v9749_v12, %v9485_v53 }
 0x6e7   : > { %v9839_v3 = vadd.f32 %v9751_v17, %v9486_v5  ;;  %v10358_v0 = vadd.f32 %v10273_v24, %v9604_v19  ;;  %v10359_v44 = vadd.f32 %v10274_v62, %v9606_v41  ;;  %v19053_v13 = vadd.f32 1e-05, %v10627_v56 }
 0x6e8   : > { %v10397_v43 = vadd.f32 %v10315_v30, %v9749_v12  ;;  %v10398_v45 = vadd.f32 %v10316_v49, %v9751_v17  ;;  %v9511_v51 = vmul.f32 %v19049_v32, %v19049_v32  ;;  %v9399_v40 = vrot.slane %v19002_v36, 1 }
 0x6e9   : > { %v10436_v59 = vadd.f32 %v10358_v0, %v9893_v28  ;;  %v10437_v11 = vadd.f32 %v10359_v44, %v9895_v54  ;;  %v9400_v10 = vrot.slane %v19004_v2, 1  ;;  %v9402_v19 = vrot.slane %v19049_v32, 1 }
 0x6ea   : > { %v10468_v46 = vmul.f32 0.11111111, %v10397_v43  ;;  %v10469_v22 = vmul.f32 0.11111111, %v10398_v45  ;;  %v10500_v18 = vmul.f32 %v10397_v43, %v10397_v43  ;;  %v10501_v61 = vmul.f32 %v10398_v45, %v10398_v45 }
 0x6eb   : > { %v9607_v41 = vrot.slane %v19017_v50, 1  ;;  %v9608_v42 = vrot.slane %v19021_v16, 1  ;;  %v9610_v14 = vrot.slane %v9511_v51, 1  ;;  %v10089_v63 = vadd.f32 %v18999_v29, %v9398_v33  ;;  %v19072_v33 = vld [vmem:[#allocation3 + $0xe0] sm:$0xff] }
 0x6ec   : > { %v10532_v47 = vmul.f32 0.11111111, %v10500_v18  ;;  %v10533_v25 = vmul.f32 0.11111111, %v10501_v61  ;;  %v10911_v53 = vpack.c.bf16 %v10469_v22, %v10468_v46  ;;  %v10014_v28 = vadd.f32 %v9838_v6, %v19002_v36 }
 0x6ed   : > { %v9401_v9 = vsel %vm9358_vm1, %v9399_v40, %v9400_v10  ;;  %v9609_v54 = vsel %vm9358_vm1, %v9607_v41, %v9608_v42  ;;  %v9611_v7 = vsel %vm9358_vm1, %v9608_v42, %v9610_v14  ;;  %v9403_v34 = vsel %vm9358_vm1, %v9400_v10, %v9402_v19  ;;  %v19111_v42 = vld [vmem:[#allocation3 + $0xe8] sm:$0x3] }
 0x6ee   : > { %v10564_v31 = vsub.f32 %v10436_v59, %v10532_v47  ;;  %v10565_v5 = vsub.f32 %v10437_v11, %v10533_v25  ;;  %14565 = vmatmul.mubr.msk.bf16.gmra.mrb[40].mxu1 %vm4665_vm6, %v10911_v53  ;;  %v9695_v38 = vadd.f32 %v9609_v54, %v19017_v50  ;;  %v9696_v29 = vadd.f32 %v9611_v7, %v19021_v16 }
 0x6ef   : > { %v9753_v56 = vrot.slane %v19004_v2, 2  ;;  %v9896_v20 = vrot.slane %v19017_v50, 2  ;;  %v9897_v39 = vrot.slane %v19021_v16, 2  ;;  %v10015_v52 = vadd.f32 %v9839_v3, %v19004_v2 }
 0x6f0   : > { %v10170_v24 = vadd.f32 %v10088_v23, %v9749_v12  ;;  %v19081_v62 = vmul.f32 %v19064_v8, %v19064_v8  ;;  %v9755_v30 = vrot.slane %v19049_v32, 2  ;;  %v9487_v49 = vadd.f32 %v9401_v9, %v19002_v36 }
 0x6f1   : > { %v9752_v6 = vrot.slane %v19002_v36, 2  ;;  %v9898_v0 = vsel %vm9711_vm5, %v9896_v20, %v9897_v39  ;;  %v9899_v44 = vrot.slane %v9511_v51, 2  ;;  %v10171_v43 = vadd.f32 %v10089_v63, %v9751_v17 }
 0x6f2   : > { %v19089_v45 = vmul.f32 %v19072_v33, %v19072_v33  ;;  %v9488_v12 = vadd.f32 %v9403_v34, %v19004_v2  ;;  %v9984_v23 = vadd.f32 %v9898_v0, %v9695_v38  ;;  %v10133_v32 = vadd.f32 %v19032_v37, %v9609_v54 }
 0x6f3   : > { %v9754_v3 = vsel %vm9711_vm5, %v9752_v6, %v9753_v56  ;;  %v9900_v59 = vsel %vm9711_vm5, %v9897_v39, %v9899_v44  ;;  %v10134_v11 = vadd.f32 %v19036_v1, %v9611_v7  ;;  %v10596_v40 = vmax.f32 %v10564_v31, 0.0 }
 0x6f4   : > { %v9756_v10 = vsel %vm9711_vm5, %v9753_v56, %v9755_v30  ;;  %v9985_v51 = vadd.f32 %v9900_v59, %v9696_v29  ;;  %v19098_v17 = vadd.f32 %v9984_v23, %v19081_v62  ;;  %v10597_v46 = vmax.f32 %v10565_v5, 0.0 }
 0x6f5   : > { %v9840_v22 = vadd.f32 %v9754_v3, %v9487_v49  ;;  %v19100_v18 = vadd.f32 %v10133_v32, %v9898_v0  ;;  %v19102_v61 = vadd.f32 %v10134_v11, %v9900_v59  ;;  %v10241_v37 = vadd.f32 %v10170_v24, %v19002_v36 }
 0x6f6   : > { %v19105_v19 = vadd.f32 %v9985_v51, %v19089_v45  ;;  %v10242_v1 = vadd.f32 %v10171_v43, %v19004_v2  ;;  %v10275_v41 = vadd.f32 %v19038_v21, %v19017_v50  ;;  %v9841_v14 = vadd.f32 %v9756_v10, %v9488_v12 }
 0x6f7   : > { %v10090_v63 = vadd.f32 %v10014_v28, %v9401_v9  ;;  %v10091_v47 = vadd.f32 %v10015_v52, %v9403_v34  ;;  %v10276_v25 = vadd.f32 %v19043_v58, %v19021_v16  ;;  %v10628_v53 = vmul.f32 0.125, %v10596_v40 }
 0x6f8   : > { %v10317_v31 = vadd.f32 %v10241_v37, %v9401_v9  ;;  %v10318_v5 = vadd.f32 %v10242_v1, %v9403_v34  ;;  %v10360_v38 = vadd.f32 %v10275_v41, %v9609_v54  ;;  %v10629_v29 = vmul.f32 0.125, %v10597_v46  ;;  %v19137_v1 = vld [vmem:[#allocation3 + $0xf0] sm:$0xff]  ;;  %v19139_v41 = vld [vmem:[#allocation3 + $0xf8] sm:$0xff] }
 0x6f9   : > { %v10016_v36 = vadd.f32 %v9840_v22, %v19064_v8  ;;  %v10361_v56 = vadd.f32 %v10276_v25, %v9611_v7  ;;  %v9512_v2 = vmul.f32 %v19111_v42, %v19111_v42  ;;  %v19119_v50 = vadd.f32 %v9841_v14, %v19072_v33 }
 0x6fa   : > { %v10399_v21 = vadd.f32 %v10317_v31, %v9754_v3  ;;  %v10400_v28 = vadd.f32 %v10318_v5, %v9756_v10  ;;  %v10438_v20 = vadd.f32 %v10360_v38, %v9898_v0  ;;  %v9405_v16 = vrot.slane %v19072_v33, 1 }
 0x6fb   : > { %v10439_v39 = vadd.f32 %v10361_v56, %v9900_v59  ;;  %v9612_v58 = vrot.slane %v19081_v62, 1  ;;  %v9613_v9 = vrot.slane %v19089_v45, 1  ;;  %v9404_v24 = vrot.slane %v19064_v8, 1 }
 0x6fc   : > { %v10470_v54 = vmul.f32 0.11111111, %v10399_v21  ;;  %v10471_v34 = vmul.f32 0.11111111, %v10400_v28  ;;  %v10502_v52 = vmul.f32 %v10399_v21, %v10399_v21  ;;  %v10503_v7 = vmul.f32 %v10400_v28, %v10400_v28 }
 0x6fd   : > { %v9407_v30 = vrot.slane %v19111_v42, 1  ;;  %v9614_v49 = vsel %vm9358_vm1, %v9612_v58, %v9613_v9  ;;  %v9615_v6 = vrot.slane %v9512_v2, 1  ;;  %v19128_v23 = vadd.f32 1e-05, %v10628_v53 }
 0x6fe   : > { %v10534_v44 = vmul.f32 0.11111111, %v10502_v52  ;;  %v10535_v0 = vmul.f32 0.11111111, %v10503_v7  ;;  %v10912_v43 = vpack.c.bf16 %v10471_v34, %v10470_v54  ;;  %v9697_v12 = vadd.f32 %v9614_v49, %v19081_v62 }
 0x6ff   : > { %v19130_v59 = vadd.f32 1e-05, %v10629_v29  ;;  %v9406_v32 = vsel %vm9358_vm1, %v9404_v24, %v9405_v16  ;;  %v9616_v11 = vsel %vm9358_vm1, %v9613_v9, %v9615_v6  ;;  %v9902_v22 = vrot.slane %v19089_v45, 2 }
 0x700   : > { %v10566_v40 = vsub.f32 %v10438_v20, %v10534_v44  ;;  %v10567_v51 = vsub.f32 %v10439_v39, %v10535_v0  ;;  %14568 = vmatprep.mubr.msk.bf16.mxu1 %vm4665_vm6, %v10912_v43  ;;  %v9698_v46 = vadd.f32 %v9616_v11, %v19089_v45  ;;  %v10172_v37 = vadd.f32 %v10090_v63, %v9754_v3  ;;  %v19178_v0 = vld [vmem:[#allocation3 + $0x100] sm:$0x3] }
 0x701   : > { %v9758_v14 = vrot.slane %v19072_v33, 2  ;;  %v9901_v25 = vrot.slane %v19081_v62, 2  ;;  %v9904_v53 = vrot.slane %v9512_v2, 2  ;;  %v10173_v31 = vadd.f32 %v10091_v47, %v9756_v10 }
 0x702   : > { %v9408_v5 = vsel %vm9358_vm1, %v9405_v16, %v9407_v30  ;;  %v9489_v38 = vadd.f32 %v9406_v32, %v19064_v8  ;;  %v9760_v29 = vrot.slane %v19111_v42, 2  ;;  %v9757_v56 = vrot.slane %v19064_v8, 2 }
 0x703   : > { %v9903_v3 = vsel %vm9711_vm5, %v9901_v25, %v9902_v22  ;;  %v9905_v63 = vsel %vm9711_vm5, %v9902_v22, %v9904_v53  ;;  %v10135_v21 = vadd.f32 %v19098_v17, %v9614_v49  ;;  %v19152_v28 = vmul.f32 %v19137_v1, %v19137_v1 }
 0x704   : > { %v19156_v10 = vmul.f32 %v19139_v41, %v19139_v41  ;;  %v9986_v47 = vadd.f32 %v9903_v3, %v9697_v12  ;;  %v9987_v2 = vadd.f32 %v9905_v63, %v9698_v46  ;;  %v10598_v20 = vmax.f32 %v10566_v40, 0.0 }
 0x705   : > { %v9490_v42 = vadd.f32 %v9408_v5, %v19072_v33  ;;  %v9759_v39 = vsel %vm9711_vm5, %v9757_v56, %v9758_v14  ;;  %v10136_v16 = vadd.f32 %v19105_v19, %v9616_v11  ;;  %v10599_v58 = vmax.f32 %v10567_v51, 0.0 }
 0x706   : > { %v9761_v17 = vsel %vm9711_vm5, %v9758_v14, %v9760_v29  ;;  %v19163_v9 = vadd.f32 %v9986_v47, %v19152_v28  ;;  %v19166_v54 = vadd.f32 %v9987_v2, %v19156_v10  ;;  %v9842_v34 = vadd.f32 %v9759_v39, %v9489_v38 }
 0x707   : > { %v19168_v52 = vadd.f32 %v10135_v21, %v9903_v3  ;;  %v19170_v7 = vadd.f32 %v10136_v16, %v9905_v63  ;;  %v10243_v24 = vadd.f32 %v10172_v37, %v19064_v8  ;;  %v10092_v30 = vadd.f32 %v10016_v36, %v9406_v32  ;;  %v19195_v16 = vld [vmem:[#allocation3 + $0x108] sm:$0xff] }
 0x708   : > { %v10244_v6 = vadd.f32 %v10173_v31, %v19072_v33  ;;  %v10277_v19 = vadd.f32 %v19100_v18, %v19081_v62  ;;  %v10278_v44 = vadd.f32 %v19102_v61, %v19089_v45  ;;  %v10630_v43 = vmul.f32 0.125, %v10598_v20 }
 0x709   : > { %v9843_v12 = vadd.f32 %v9761_v17, %v9490_v42  ;;  %v10093_v40 = vadd.f32 %v19119_v50, %v9408_v5  ;;  %v10319_v51 = vadd.f32 %v10243_v24, %v9406_v32  ;;  %v10631_v46 = vmul.f32 0.125, %v10599_v58  ;;  %v19197_v58 = vld [vmem:[#allocation3 + $0x110] sm:$0xff] }
 0x70a   : > { %v10320_v22 = vadd.f32 %v10244_v6, %v9408_v5  ;;  %v10362_v14 = vadd.f32 %v10277_v19, %v9614_v49  ;;  %v10363_v8 = vadd.f32 %v10278_v44, %v9616_v11  ;;  %v19182_v36 = vadd.f32 %v9842_v34, %v19137_v1 }
 0x70b   : > { %v10401_v33 = vadd.f32 %v10319_v51, %v9759_v39  ;;  %v9410_v62 = vrot.slane %v19139_v41, 1  ;;  %v9513_v45 = vmul.f32 %v19178_v0, %v19178_v0  ;;  %v9409_v25 = vrot.slane %v19137_v1, 1 }
 0x70c   : > { %v10402_v18 = vadd.f32 %v10320_v22, %v9761_v17  ;;  %v10440_v61 = vadd.f32 %v10362_v14, %v9903_v3  ;;  %v10441_v37 = vadd.f32 %v10363_v8, %v9905_v63  ;;  %v9412_v53 = vrot.slane %v19178_v0, 1 }
 0x70d   : > { %v10472_v50 = vmul.f32 0.11111111, %v10401_v33  ;;  %v10504_v32 = vmul.f32 %v10401_v33, %v10401_v33  ;;  %v9617_v49 = vrot.slane %v19152_v28, 1  ;;  %v9618_v5 = vrot.slane %v19156_v10, 1 }
 0x70e   : > { %v10473_v11 = vmul.f32 0.11111111, %v10402_v18  ;;  %v10505_v31 = vmul.f32 %v10402_v18, %v10402_v18  ;;  %v9620_v38 = vrot.slane %v9513_v45, 1  ;;  %v10019_v29 = vadd.f32 %v9843_v12, %v19139_v41 }
 0x70f   : > { %v10174_v56 = vadd.f32 %v10092_v30, %v9759_v39  ;;  %v10536_v21 = vmul.f32 0.11111111, %v10504_v32  ;;  %v9411_v3 = vsel %vm9358_vm1, %v9409_v25, %v9410_v62  ;;  %v9619_v2 = vsel %vm9358_vm1, %v9617_v49, %v9618_v5 }
 0x710   : > { %v10537_v63 = vmul.f32 0.11111111, %v10505_v31  ;;  %v10913_v47 = vpack.c.bf16 %v10473_v11, %v10472_v50  ;;  %v9621_v20 = vsel %vm9358_vm1, %v9618_v5, %v9620_v38  ;;  %v9699_v34 = vadd.f32 %v9619_v2, %v19152_v28 }
 0x711   : > { %v10568_v42 = vsub.f32 %v10440_v61, %v10536_v21  ;;  %v9700_v24 = vadd.f32 %v9621_v20, %v19156_v10  ;;  %v9763_v39 = vrot.slane %v19139_v41, 2  ;;  %v9413_v6 = vsel %vm9358_vm1, %v9410_v62, %v9412_v53 }
 0x712   : > { %v10569_v30 = vsub.f32 %v10441_v37, %v10537_v63  ;;  %14569 = vmatmul.mubr.msk.bf16.gmra.mrb[44].mxu1 %vm4665_vm6, %v10913_v47  ;;  %v9491_v19 = vadd.f32 %v9411_v3, %v19137_v1  ;;  %v9762_v44 = vrot.slane %v19137_v1, 2  ;;  %v9765_v12 = vrot.slane %v19178_v0, 2  ;;  %v19242_v47 = vld [vmem:[#allocation3 + $0x118] sm:$0x3] }
 0x713   : > { %v9906_v51 = vrot.slane %v19152_v28, 2  ;;  %v9907_v22 = vrot.slane %v19156_v10, 2  ;;  %v9909_v14 = vrot.slane %v9513_v45, 2  ;;  %v19209_v8 = vadd.f32 1e-05, %v10630_v43 }
 0x714   : > { %v10175_v33 = vadd.f32 %v10093_v40, %v9761_v17  ;;  %v19213_v18 = vmul.f32 %v19195_v16, %v19195_v16  ;;  %v19217_v62 = vmul.f32 %v19197_v58, %v19197_v58  ;;  %v9492_v61 = vadd.f32 %v9413_v6, %v19139_v41 }
 0x715   : > { %v9764_v0 = vsel %vm9711_vm5, %v9762_v44, %v9763_v39  ;;  %v9908_v37 = vsel %vm9711_vm5, %v9906_v51, %v9907_v22  ;;  %v9910_v25 = vsel %vm9711_vm5, %v9907_v22, %v9909_v14  ;;  %v10137_v17 = vadd.f32 %v19163_v9, %v9619_v2 }
 0x716   : > { %v9844_v45 = vadd.f32 %v9764_v0, %v9491_v19  ;;  %v9988_v43 = vadd.f32 %v9908_v37, %v9699_v34  ;;  %v9989_v50 = vadd.f32 %v9910_v25, %v9700_v24  ;;  %v19224_v40 = vadd.f32 1e-05, %v10631_v46 }
 0x717   : > { %v10600_v32 = vmax.f32 %v10568_v42, 0.0  ;;  %v9766_v53 = vsel %vm9711_vm5, %v9763_v39, %v9765_v12  ;;  %v10138_v49 = vadd.f32 %v19166_v54, %v9621_v20  ;;  %v10601_v11 = vmax.f32 %v10569_v30, 0.0 }
 0x718   : > { %v19229_v31 = vadd.f32 %v9988_v43, %v19213_v18  ;;  %v19232_v5 = vadd.f32 %v9989_v50, %v19217_v62  ;;  %v19234_v38 = vadd.f32 %v10137_v17, %v9908_v37  ;;  %v10245_v9 = vadd.f32 %v10174_v56, %v19137_v1 }
 0x719   : > { %v19236_v21 = vadd.f32 %v10138_v49, %v9910_v25  ;;  %v10246_v46 = vadd.f32 %v10175_v33, %v19139_v41  ;;  %v10279_v63 = vadd.f32 %v19168_v52, %v19152_v28  ;;  %v9845_v54 = vadd.f32 %v9766_v53, %v9492_v61 }
 0x71a   : > { %v19245_v42 = vadd.f32 %v9844_v45, %v19195_v16  ;;  %v10094_v34 = vadd.f32 %v19182_v36, %v9411_v3  ;;  %v10280_v24 = vadd.f32 %v19170_v7, %v19156_v10  ;;  %v10095_v39 = vadd.f32 %v10019_v29, %v9413_v6 }
 0x71b   : > { %v10321_v30 = vadd.f32 %v10245_v9, %v9411_v3  ;;  %v10322_v19 = vadd.f32 %v10246_v46, %v9413_v6  ;;  %v10364_v1 = vadd.f32 %v10279_v63, %v9619_v2  ;;  %v10632_v56 = vmul.f32 0.125, %v10600_v32 }
 0x71c   : > { %v19251_v41 = vadd.f32 %v9845_v54, %v19197_v58  ;;  %v10365_v28 = vadd.f32 %v10280_v24, %v9621_v20  ;;  %v9514_v52 = vmul.f32 %v19242_v47, %v19242_v47  ;;  %v10633_v44 = vmul.f32 0.125, %v10601_v11 }
 0x71d   : > { %v10403_v12 = vadd.f32 %v10321_v30, %v9764_v0  ;;  %v10404_v51 = vadd.f32 %v10322_v19, %v9766_v53  ;;  %v10442_v22 = vadd.f32 %v10364_v1, %v9908_v37  ;;  %v9415_v14 = vrot.slane %v19197_v58, 1  ;;  %v19269_v30 = vld [vmem:[#allocation3 + $0x120] sm:$0xff]  ;;  %v19271_v19 = vld [vmem:[#allocation3 + $0x128] sm:$0xff] }
 0x71e   : > { %v10443_v36 = vadd.f32 %v10365_v28, %v9910_v25  ;;  %v9622_v10 = vrot.slane %v19213_v18, 1  ;;  %v9623_v7 = vrot.slane %v19217_v62, 1  ;;  %v9414_v20 = vrot.slane %v19195_v16, 1 }
 0x71f   : > { %v10474_v29 = vmul.f32 0.11111111, %v10403_v12  ;;  %v10475_v3 = vmul.f32 0.11111111, %v10404_v51  ;;  %v10506_v2 = vmul.f32 %v10403_v12, %v10403_v12  ;;  %v10507_v6 = vmul.f32 %v10404_v51, %v10404_v51 }
 0x720   : > { %v9417_v33 = vrot.slane %v19242_v47, 1  ;;  %v9624_v61 = vsel %vm9358_vm1, %v9622_v10, %v9623_v7  ;;  %v9625_v45 = vrot.slane %v9514_v52, 1  ;;  %v19262_v17 = vadd.f32 1e-05, %v10632_v56 }
 0x721   : > { %v10538_v43 = vmul.f32 0.11111111, %v10506_v2  ;;  %v10539_v37 = vmul.f32 0.11111111, %v10507_v6  ;;  %v10914_v25 = vpack.c.bf16 %v10475_v3, %v10474_v29  ;;  %v9701_v50 = vadd.f32 %v9624_v61, %v19213_v18 }
 0x722   : > { %v10176_v32 = vadd.f32 %v10094_v34, %v9764_v0  ;;  %v9416_v49 = vsel %vm9358_vm1, %v9414_v20, %v9415_v14  ;;  %v9626_v11 = vsel %vm9358_vm1, %v9623_v7, %v9625_v45  ;;  %v9912_v54 = vrot.slane %v19217_v62, 2 }
 0x723   : > { %v10570_v9 = vsub.f32 %v10442_v22, %v10538_v43  ;;  %v10571_v46 = vsub.f32 %v10443_v36, %v10539_v37  ;;  %14572 = vmatprep.mubr.msk.bf16.mxu1 %vm4665_vm6, %v10914_v25  ;;  %v9702_v63 = vadd.f32 %v9626_v11, %v19217_v62  ;;  %v10177_v24 = vadd.f32 %v10095_v39, %v9766_v53 }
 0x724   : > { %v9768_v1 = vrot.slane %v19197_v58, 2  ;;  %v9911_v0 = vrot.slane %v19213_v18, 2  ;;  %v9914_v34 = vrot.slane %v9514_v52, 2  ;;  %v19275_v56 = vadd.f32 1e-05, %v10633_v44 }
 0x725   : > { %v9418_v28 = vsel %vm9358_vm1, %v9415_v14, %v9417_v33  ;;  %v9493_v12 = vadd.f32 %v9416_v49, %v19195_v16  ;;  %v9770_v51 = vrot.slane %v19242_v47, 2  ;;  %v9767_v22 = vrot.slane %v19195_v16, 2 }
 0x726   : > { %v9913_v53 = vsel %vm9711_vm5, %v9911_v0, %v9912_v54  ;;  %v9915_v39 = vsel %vm9711_vm5, %v9912_v54, %v9914_v34  ;;  %v10139_v36 = vadd.f32 %v19229_v31, %v9624_v61  ;;  %v19286_v10 = vmul.f32 %v19269_v30, %v19269_v30 }
 0x727   : > { %v19290_v52 = vmul.f32 %v19271_v19, %v19271_v19  ;;  %v9990_v44 = vadd.f32 %v9913_v53, %v9701_v50  ;;  %v9991_v14 = vadd.f32 %v9915_v39, %v9702_v63  ;;  %v10602_v7 = vmax.f32 %v10570_v9, 0.0 }
 0x728   : > { %v9494_v47 = vadd.f32 %v9418_v28, %v19197_v58  ;;  %v9769_v29 = vsel %vm9711_vm5, %v9767_v22, %v9768_v1  ;;  %v10140_v3 = vadd.f32 %v19232_v5, %v9626_v11  ;;  %v10603_v2 = vmax.f32 %v10571_v46, 0.0  ;;  %v19313_v46 = vld [vmem:[#allocation3 + $0x130] sm:$0x3] }
 0x729   : > { %v9771_v31 = vsel %vm9711_vm5, %v9768_v1, %v9770_v51  ;;  %v19297_v6 = vadd.f32 %v9990_v44, %v19286_v10  ;;  %v19300_v20 = vadd.f32 %v9991_v14, %v19290_v52  ;;  %v9846_v33 = vadd.f32 %v9769_v29, %v9493_v12 }
 0x72a   : > { %v19302_v45 = vadd.f32 %v10139_v36, %v9913_v53  ;;  %v19304_v43 = vadd.f32 %v10140_v3, %v9915_v39  ;;  %v10247_v37 = vadd.f32 %v10176_v32, %v19195_v16  ;;  %v10096_v25 = vadd.f32 %v19245_v42, %v9416_v49 }
 0x72b   : > { %v10248_v5 = vadd.f32 %v10177_v24, %v19197_v58  ;;  %v10281_v50 = vadd.f32 %v19234_v38, %v19213_v18  ;;  %v10282_v9 = vadd.f32 %v19236_v21, %v19217_v62  ;;  %v10634_v63 = vmul.f32 0.125, %v10602_v7 }
 0x72c   : > { %v9847_v54 = vadd.f32 %v9771_v31, %v9494_v47  ;;  %v10097_v1 = vadd.f32 %v19251_v41, %v9418_v28  ;;  %v10323_v0 = vadd.f32 %v10247_v37, %v9416_v49  ;;  %v10635_v34 = vmul.f32 0.125, %v10603_v2 }
 0x72d   : > { %v10324_v12 = vadd.f32 %v10248_v5, %v9418_v28  ;;  %v10366_v16 = vadd.f32 %v10281_v50, %v9624_v61  ;;  %v10367_v32 = vadd.f32 %v10282_v9, %v9626_v11  ;;  %v19317_v42 = vadd.f32 %v9846_v33, %v19269_v30  ;;  %v19330_v5 = vld [vmem:[#allocation3 + $0x138] sm:$0xff]  ;;  %v19332_v50 = vld [vmem:[#allocation3 + $0x140] sm:$0xff] }
 0x72e   : > { %v10405_v58 = vadd.f32 %v10323_v0, %v9769_v29  ;;  %v9420_v18 = vrot.slane %v19271_v19, 1  ;;  %v9515_v62 = vmul.f32 %v19313_v46, %v19313_v46  ;;  %v9419_v51 = vrot.slane %v19269_v30, 1 }
 0x72f   : > { %v10406_v38 = vadd.f32 %v10324_v12, %v9771_v31  ;;  %v10444_v21 = vadd.f32 %v10366_v16, %v9913_v53  ;;  %v10445_v24 = vadd.f32 %v10367_v32, %v9915_v39  ;;  %v9422_v28 = vrot.slane %v19313_v46, 1 }
 0x730   : > { %v10476_v41 = vmul.f32 0.11111111, %v10405_v58  ;;  %v10508_v49 = vmul.f32 %v10405_v58, %v10405_v58  ;;  %v9627_v61 = vrot.slane %v19286_v10, 1  ;;  %v9628_v36 = vrot.slane %v19290_v52, 1 }
 0x731   : > { %v10477_v11 = vmul.f32 0.11111111, %v10406_v38  ;;  %v10509_v22 = vmul.f32 %v10406_v38, %v10406_v38  ;;  %v9630_v44 = vrot.slane %v9515_v62, 1  ;;  %v10023_v14 = vadd.f32 %v9847_v54, %v19271_v19 }
 0x732   : > { %v10178_v7 = vadd.f32 %v10096_v25, %v9769_v29  ;;  %v10540_v47 = vmul.f32 0.11111111, %v10508_v49  ;;  %v9421_v53 = vsel %vm9358_vm1, %v9419_v51, %v9420_v18  ;;  %v9629_v2 = vsel %vm9358_vm1, %v9627_v61, %v9628_v36 }
 0x733   : > { %v10541_v39 = vmul.f32 0.11111111, %v10509_v22  ;;  %v10915_v3 = vpack.c.bf16 %v10477_v11, %v10476_v41  ;;  %v9631_v33 = vsel %vm9358_vm1, %v9628_v36, %v9630_v44  ;;  %v9703_v9 = vadd.f32 %v9629_v2, %v19286_v10 }
 0x734   : > { %v10572_v37 = vsub.f32 %v10444_v21, %v10540_v47  ;;  %v9704_v0 = vadd.f32 %v9631_v33, %v19290_v52  ;;  %v9773_v29 = vrot.slane %v19271_v19, 2  ;;  %v9423_v54 = vsel %vm9358_vm1, %v9420_v18, %v9422_v28 }
 0x735   : > { %v10573_v25 = vsub.f32 %v10445_v24, %v10541_v39  ;;  %14573 = vmatmul.mubr.msk.bf16.gmra.mrb[48].mxu1 %vm4665_vm6, %v10915_v3  ;;  %v9495_v12 = vadd.f32 %v9421_v53, %v19269_v30  ;;  %v9772_v16 = vrot.slane %v19269_v30, 2  ;;  %v9775_v32 = vrot.slane %v19313_v46, 2 }
 0x736   : > { %v9916_v58 = vrot.slane %v19286_v10, 2  ;;  %v9917_v38 = vrot.slane %v19290_v52, 2  ;;  %v9919_v21 = vrot.slane %v9515_v62, 2  ;;  %v19344_v51 = vadd.f32 1e-05, %v10634_v63 }
 0x737   : > { %v10179_v41 = vadd.f32 %v10097_v1, %v9771_v31  ;;  %v19348_v24 = vmul.f32 %v19330_v5, %v19330_v5  ;;  %v19352_v18 = vmul.f32 %v19332_v50, %v19332_v50  ;;  %v9496_v49 = vadd.f32 %v9423_v54, %v19271_v19 }
 0x738   : > { %v9774_v46 = vsel %vm9711_vm5, %v9772_v16, %v9773_v29  ;;  %v9918_v28 = vsel %vm9711_vm5, %v9916_v58, %v9917_v38  ;;  %v9920_v61 = vsel %vm9711_vm5, %v9917_v38, %v9919_v21  ;;  %v10141_v31 = vadd.f32 %v19297_v6, %v9629_v2 }
 0x739   : > { %v9848_v62 = vadd.f32 %v9774_v46, %v9495_v12  ;;  %v9992_v63 = vadd.f32 %v9918_v28, %v9703_v9  ;;  %v9993_v11 = vadd.f32 %v9920_v61, %v9704_v0  ;;  %v19359_v1 = vadd.f32 1e-05, %v10635_v34  ;;  %v19377_v0 = vld [vmem:[#allocation3 + $0x148] sm:$0x3] }
 0x73a   : > { %v10604_v22 = vmax.f32 %v10572_v37, 0.0  ;;  %v9776_v36 = vsel %vm9711_vm5, %v9773_v29, %v9775_v32  ;;  %v10142_v44 = vadd.f32 %v19300_v20, %v9631_v33  ;;  %v10605_v47 = vmax.f32 %v10573_v25, 0.0 }
 0x73b   : > { %v19364_v39 = vadd.f32 %v9992_v63, %v19348_v24  ;;  %v19367_v3 = vadd.f32 %v9993_v11, %v19352_v18  ;;  %v19369_v16 = vadd.f32 %v10141_v31, %v9918_v28  ;;  %v10249_v6 = vadd.f32 %v10178_v7, %v19269_v30 }
 0x73c   : > { %v19371_v9 = vadd.f32 %v10142_v44, %v9920_v61  ;;  %v10250_v34 = vadd.f32 %v10179_v41, %v19271_v19  ;;  %v10283_v37 = vadd.f32 %v19302_v45, %v19286_v10  ;;  %v9849_v20 = vadd.f32 %v9776_v36, %v9496_v49 }
 0x73d   : > { %v19380_v29 = vadd.f32 %v9848_v62, %v19330_v5  ;;  %v10098_v25 = vadd.f32 %v19317_v42, %v9421_v53  ;;  %v10284_v12 = vadd.f32 %v19304_v43, %v19290_v52  ;;  %v10099_v32 = vadd.f32 %v10023_v14, %v9423_v54 }
 0x73e   : > { %v10325_v58 = vadd.f32 %v10249_v6, %v9421_v53  ;;  %v10326_v38 = vadd.f32 %v10250_v34, %v9423_v54  ;;  %v10368_v30 = vadd.f32 %v10283_v37, %v9629_v2  ;;  %v10636_v7 = vmul.f32 0.125, %v10604_v22  ;;  %v19399_v37 = vld [vmem:[#allocation3 + $0x150] sm:$0xff] }
 0x73f   : > { %v19386_v19 = vadd.f32 %v9849_v20, %v19332_v50  ;;  %v10369_v10 = vadd.f32 %v10284_v12, %v9631_v33  ;;  %v9516_v45 = vmul.f32 %v19377_v0, %v19377_v0  ;;  %v10637_v21 = vmul.f32 0.125, %v10605_v47 }
 0x740   : > { %v10407_v41 = vadd.f32 %v10325_v58, %v9774_v46  ;;  %v10408_v49 = vadd.f32 %v10326_v38, %v9776_v36  ;;  %v10446_v62 = vadd.f32 %v10368_v30, %v9918_v28  ;;  %v9425_v63 = vrot.slane %v19332_v50, 1 }
 0x741   : > { %v10447_v42 = vadd.f32 %v10369_v10, %v9920_v61  ;;  %v9632_v52 = vrot.slane %v19348_v24, 1  ;;  %v9633_v43 = vrot.slane %v19352_v18, 1  ;;  %v9424_v33 = vrot.slane %v19330_v5, 1 }
 0x742   : > { %v10478_v14 = vmul.f32 0.11111111, %v10407_v41  ;;  %v10479_v53 = vmul.f32 0.11111111, %v10408_v49  ;;  %v10510_v2 = vmul.f32 %v10407_v41, %v10407_v41  ;;  %v10511_v54 = vmul.f32 %v10408_v49, %v10408_v49  ;;  %v19406_v41 = vld [vmem:[#allocation3 + $0x158] sm:$0xff] }
 0x743   : > { %v9427_v11 = vrot.slane %v19377_v0, 1  ;;  %v9634_v31 = vsel %vm9358_vm1, %v9632_v52, %v9633_v43  ;;  %v9635_v22 = vrot.slane %v9516_v45, 1  ;;  %v19397_v6 = vadd.f32 1e-05, %v10636_v7 }
 0x744   : > { %v10542_v44 = vmul.f32 0.11111111, %v10510_v2  ;;  %v10543_v28 = vmul.f32 0.11111111, %v10511_v54  ;;  %v10916_v61 = vpack.c.bf16 %v10479_v53, %v10478_v14  ;;  %v9705_v47 = vadd.f32 %v9634_v31, %v19348_v24 }
 0x745   : > { %v10180_v34 = vadd.f32 %v10098_v25, %v9774_v46  ;;  %v9426_v20 = vsel %vm9358_vm1, %v9424_v33, %v9425_v63  ;;  %v9636_v12 = vsel %vm9358_vm1, %v9633_v43, %v9635_v22  ;;  %v9922_v10 = vrot.slane %v19352_v18, 2 }
 0x746   : > { %v10574_v58 = vsub.f32 %v10446_v62, %v10542_v44  ;;  %v10575_v38 = vsub.f32 %v10447_v42, %v10543_v28  ;;  %14576 = vmatprep.mubr.msk.bf16.mxu1 %vm4665_vm6, %v10916_v61  ;;  %v9706_v30 = vadd.f32 %v9636_v12, %v19352_v18  ;;  %v9778_v7 = vrot.slane %v19332_v50, 2 }
 0x747   : > { %v9780_v46 = vrot.slane %v19377_v0, 2  ;;  %v9921_v25 = vrot.slane %v19348_v24, 2  ;;  %v9924_v49 = vrot.slane %v9516_v45, 2  ;;  %v19411_v52 = vadd.f32 1e-05, %v10637_v21 }
 0x748   : > { %v10181_v43 = vadd.f32 %v10099_v32, %v9776_v36  ;;  %v19415_v62 = vmul.f32 %v19399_v37, %v19399_v37  ;;  %v9428_v42 = vsel %vm9358_vm1, %v9425_v63, %v9427_v11  ;;  %v9777_v14 = vrot.slane %v19330_v5, 2 }
 0x749   : > { %v9923_v53 = vsel %vm9711_vm5, %v9921_v25, %v9922_v10  ;;  %v9925_v2 = vsel %vm9711_vm5, %v9922_v10, %v9924_v49  ;;  %v10143_v0 = vadd.f32 %v19364_v39, %v9634_v31  ;;  %v19424_v45 = vmul.f32 %v19406_v41, %v19406_v41  ;;  %v19453_v25 = vld [vmem:[#allocation3 + $0x160] sm:$0x3] }
 0x74a   : > { %v9497_v36 = vadd.f32 %v9426_v20, %v19330_v5  ;;  %v9994_v32 = vadd.f32 %v9923_v53, %v9705_v47  ;;  %v9995_v21 = vadd.f32 %v9925_v2, %v9706_v30  ;;  %v9498_v54 = vadd.f32 %v9428_v42, %v19332_v50 }
 0x74b   : > { %v19429_v63 = vsel %vm9711_vm5, %v9777_v14, %v9778_v7  ;;  %v19432_v33 = vsel %vm9711_vm5, %v9778_v7, %v9780_v46  ;;  %v10144_v11 = vadd.f32 %v19367_v3, %v9636_v12  ;;  %v10606_v22 = vmax.f32 %v10574_v58, 0.0 }
 0x74c   : > { %v19436_v39 = vadd.f32 %v9994_v32, %v19415_v62  ;;  %v19439_v44 = vadd.f32 %v9995_v21, %v19424_v45  ;;  %v10100_v28 = vadd.f32 %v19380_v29, %v9426_v20  ;;  %v10607_v61 = vmax.f32 %v10575_v38, 0.0 }
 0x74d   : > { %v19442_v47 = vadd.f32 %v10143_v0, %v9923_v53  ;;  %v19444_v30 = vadd.f32 %v10144_v11, %v9925_v2  ;;  %v10251_v10 = vadd.f32 %v10180_v34, %v19330_v5  ;;  %v9850_v7 = vadd.f32 %v19429_v63, %v9497_v36 }
 0x74e   : > { %v10252_v3 = vadd.f32 %v10181_v43, %v19332_v50  ;;  %v10285_v58 = vadd.f32 %v19369_v16, %v19348_v24  ;;  %v10286_v46 = vadd.f32 %v19371_v9, %v19352_v18  ;;  %v9851_v29 = vadd.f32 %v19432_v33, %v9498_v54 }
 0x74f   : > { %v10101_v38 = vadd.f32 %v19386_v19, %v9428_v42  ;;  %v10327_v49 = vadd.f32 %v10251_v10, %v9426_v20  ;;  %v9430_v14 = vrot.slane %v19406_v41, 1  ;;  %v9429_v50 = vrot.slane %v19399_v37, 1 }
 0x750   : > { %v10328_v5 = vadd.f32 %v10252_v3, %v9428_v42  ;;  %v10370_v34 = vadd.f32 %v10285_v58, %v9634_v31  ;;  %v10371_v0 = vadd.f32 %v10286_v46, %v9636_v12  ;;  %v10638_v43 = vmul.f32 0.125, %v10606_v22 }
 0x751   : > { %v10409_v24 = vadd.f32 %v10327_v49, %v19429_v63  ;;  %v9432_v16 = vrot.slane %v19453_v25, 1  ;;  %v9517_v18 = vmul.f32 %v19453_v25, %v19453_v25  ;;  %v19465_v20 = vsel %vm9358_vm1, %v9429_v50, %v9430_v14 }
 0x752   : > { %v10410_v9 = vadd.f32 %v10328_v5, %v19432_v33  ;;  %v10448_v36 = vadd.f32 %v10370_v34, %v9923_v53  ;;  %v10449_v19 = vadd.f32 %v10371_v0, %v9925_v2  ;;  %v10639_v42 = vmul.f32 0.125, %v10607_v61 }
 0x753   : > { %v10480_v31 = vmul.f32 0.11111111, %v10409_v24  ;;  %v10512_v12 = vmul.f32 %v10409_v24, %v10409_v24  ;;  %v9637_v32 = vrot.slane %v19415_v62, 1  ;;  %v9638_v11 = vrot.slane %v19424_v45, 1 }
 0x754   : > { %v10481_v21 = vmul.f32 0.11111111, %v10410_v9  ;;  %v10513_v54 = vmul.f32 %v10410_v9, %v10410_v9  ;;  %v9640_v22 = vrot.slane %v9517_v18, 1  ;;  %v9433_v3 = vsel %vm9358_vm1, %v9430_v14, %v9432_v16 }
 0x755   : > { %v10544_v10 = vmul.f32 0.11111111, %v10512_v12  ;;  %v9499_v53 = vadd.f32 %v19465_v20, %v19399_v37  ;;  %v9783_v2 = vrot.slane %v19406_v41, 2  ;;  %v9639_v61 = vsel %vm9358_vm1, %v9637_v32, %v9638_v11 }
 0x756   : > { %v10545_v58 = vmul.f32 0.11111111, %v10513_v54  ;;  %v10917_v46 = vpack.c.bf16 %v10481_v21, %v10480_v31  ;;  %v9641_v49 = vsel %vm9358_vm1, %v9638_v11, %v9640_v22  ;;  %v9707_v34 = vadd.f32 %v9639_v61, %v19415_v62  ;;  %v19482_v31 = vld [vmem:[#allocation3 + $0x168] sm:$0xff] }
 0x757   : > { %v10576_v5 = vsub.f32 %v10448_v36, %v10544_v10  ;;  %v9708_v0 = vadd.f32 %v9641_v49, %v19424_v45  ;;  %v9782_v50 = vrot.slane %v19399_v37, 2  ;;  %v10026_v14 = vadd.f32 %v9850_v7, %v19399_v37 }
 0x758   : > { %v10027_v24 = vadd.f32 %v9851_v29, %v19406_v41  ;;  %v10577_v16 = vsub.f32 %v10449_v19, %v10545_v58  ;;  %14577 = vmatmul.mubr.msk.bf16.gmra.mrb[52].mxu1 %vm4665_vm6, %v10917_v46  ;;  %v9785_v9 = vrot.slane %v19453_v25, 2  ;;  %v9926_v36 = vrot.slane %v19415_v62, 2  ;;  %v19492_v29 = vld [vmem:[#allocation3 + $0x170] sm:$0xff] }
 0x759   : > { %v19485_v12 = vsel %vm9711_vm5, %v9782_v50, %v9783_v2  ;;  %v9927_v32 = vrot.slane %v19424_v45, 2  ;;  %v9929_v21 = vrot.slane %v9517_v18, 2  ;;  %v19489_v54 = vadd.f32 1e-05, %v10638_v43 }
 0x75a   : > { %v10182_v7 = vadd.f32 %v10100_v28, %v19429_v63  ;;  %v9500_v19 = vadd.f32 %v9433_v3, %v19406_v41  ;;  %v9852_v25 = vadd.f32 %v19485_v12, %v9499_v53  ;;  %v19496_v11 = vadd.f32 1e-05, %v10639_v42  ;;  %v15356_v42 = vld [vmem:[%s20756_s7] sm:$0xff]  }
 0x75b   : > { %21069 = vst [vmem:[#allocation13_spill] sm:$0xff] %v19489_v54  ;;  %v10183_v22 = vadd.f32 %v10101_v38, %v19432_v33  ;;  %v9928_v10 = vsel %vm9711_vm5, %v9926_v36, %v9927_v32  ;;  %v9930_v58 = vsel %vm9711_vm5, %v9927_v32, %v9929_v21  ;;  %v19503_v43 = vmul.f32 %v19482_v31, %v19482_v31  ;;  %v15357_v33 = vld [vmem:[%s20756_s7 + $0x8] sm:$0xff]   ;;  %v19527_v32 = vld [vmem:[#allocation3 + $0x178] sm:$0x3] }
 0x75c   : > { %21070 = vst [vmem:[#allocation14_spill] sm:$0xff] %v19496_v11  ;;  %v19505_v18 = vadd.f32 %v9928_v10, %v9707_v34  ;;  %v19507_v63 = vadd.f32 %v9930_v58, %v9708_v0  ;;  %v10145_v28 = vadd.f32 %v19436_v39, %v9639_v61  ;;  %v10608_v38 = vmax.f32 %v10576_v5, 0.0  ;;  %14588 = vmatprep.subr.bf16.mxu0 %v15356_v42 }
 0x75d   : > { %v19518_v53 = vmul.f32 %v19492_v29, %v19492_v29  ;;  %v9786_v46 = vsel %vm9711_vm5, %v9783_v2, %v9785_v9  ;;  %v10146_v34 = vadd.f32 %v19439_v44, %v9641_v49  ;;  %v10609_v0 = vmax.f32 %v10577_v16, 0.0  ;;  %14589 = vmatpush3.bf16.msra.mxu0 %v15356_v42 }
 0x75e   : > { %v9853_v50 = vadd.f32 %v9786_v46, %v9500_v19  ;;  %v19523_v39 = vadd.f32 %v9852_v25, %v19482_v31  ;;  %v19525_v36 = vadd.f32 %v10145_v28, %v9928_v10  ;;  %v10253_v5 = vadd.f32 %v10182_v7, %v19399_v37  ;;  %14590 = vmatprep.subr.bf16.mxu0 %v15357_v33  ;;  %v15358_v25 = vld [vmem:[%s20760_s11] sm:$0xff]  }
 0x75f   : > { %v19529_v21 = vadd.f32 %v10146_v34, %v9930_v58  ;;  %v10254_v11 = vadd.f32 %v10183_v22, %v19406_v41  ;;  %v10287_v2 = vadd.f32 %v19442_v47, %v19415_v62  ;;  %v10102_v44 = vadd.f32 %v10026_v14, %v19465_v20 }
 0x760   : > { %v10103_v16 = vadd.f32 %v10027_v24, %v9433_v3  ;;  %v10288_v9 = vadd.f32 %v19444_v30, %v19424_v45  ;;  %v9435_v19 = vrot.slane %v19492_v29, 1  ;;  %v10329_v37 = vadd.f32 %v10253_v5, %v19465_v20 }
 0x761   : > { %v10330_v41 = vadd.f32 %v10254_v11, %v9433_v3  ;;  %v10372_v7 = vadd.f32 %v10287_v2, %v9639_v61  ;;  %v9518_v62 = vmul.f32 %v19527_v32, %v19527_v32  ;;  %v10640_v47 = vmul.f32 0.125, %v10608_v38  ;;  %14591 = vmatpush3.bf16.msra.mxu0 %v15357_v33 }
 0x762   : > { %v10373_v14 = vadd.f32 %v10288_v9, %v9641_v49  ;;  %v9434_v24 = vrot.slane %v19482_v31, 1  ;;  %v9437_v45 = vrot.slane %v19527_v32, 1  ;;  %v10029_v30 = vadd.f32 %v9853_v50, %v19492_v29  ;;  %14660 = vmatprep.subr.bf16.mxu0 %v15358_v25 }
 0x763   : > { %v10411_v22 = vadd.f32 %v10329_v37, %v19485_v12  ;;  %v10412_v28 = vadd.f32 %v10330_v41, %v9786_v46  ;;  %v10450_v42 = vadd.f32 %v10372_v7, %v9928_v10  ;;  %v9643_v3 = vrot.slane %v19518_v53, 1 }
 0x764   : > { %v19549_v34 = vadd.f32 %v10373_v14, %v9930_v58  ;;  %v9436_v20 = vsel %vm9358_vm1, %v9434_v24, %v9435_v19  ;;  %v9645_v61 = vrot.slane %v9518_v62, 1  ;;  %v10641_v2 = vmul.f32 0.125, %v10609_v0 }
 0x765   : > { %v10482_v49 = vmul.f32 0.11111111, %v10411_v22  ;;  %v10483_v11 = vmul.f32 0.11111111, %v10412_v28  ;;  %v10514_v38 = vmul.f32 %v10411_v22, %v10411_v22  ;;  %v10515_v5 = vmul.f32 %v10412_v28, %v10412_v28 }
 0x766   : > { %v19553_v9 = vadd.f32 1e-05, %v10640_v47  ;;  %v9438_v50 = vsel %vm9358_vm1, %v9435_v19, %v9437_v45  ;;  %v9642_v10 = vrot.slane %v19503_v43, 1  ;;  %v9788_v41 = vrot.slane %v19492_v29, 2 }
 0x767   : > { %v10546_v33 = vmul.f32 0.11111111, %v10514_v38  ;;  %v19557_v58 = vmul.f32 0.11111111, %v10515_v5  ;;  %v10918_v37 = vpack.c.bf16 %v10483_v11, %v10482_v49  ;;  %v10184_v7 = vadd.f32 %v10102_v44, %v19485_v12 }
 0x768   : > { %21071 = vst [vmem:[#allocation15_spill] sm:$0xff] %v19553_v9  ;;  %v9501_v25 = vadd.f32 %v9436_v20, %v19482_v31  ;;  %v9644_v14 = vsel %vm9358_vm1, %v9642_v10, %v9643_v3  ;;  %v9646_v0 = vsel %vm9358_vm1, %v9643_v3, %v9645_v61  ;;  %v9787_v24 = vrot.slane %v19482_v31, 2 }
 0x769   : > { %v10578_v47 = vsub.f32 %v10450_v42, %v10546_v33  ;;  %14580 = vmatprep.mubr.msk.bf16.mxu1 %vm4665_vm6, %v10918_v37  ;;  %v9790_v45 = vrot.slane %v19527_v32, 2  ;;  %v10185_v22 = vadd.f32 %v10103_v16, %v9786_v46  ;;  %v9502_v28 = vadd.f32 %v9438_v50, %v19492_v29 }
 0x76a   : > { %v9932_v12 = vrot.slane %v19518_v53, 2  ;;  %v9934_v44 = vrot.slane %v9518_v62, 2  ;;  %v19571_v49 = vadd.f32 1e-05, %v10641_v2  ;;  %v10062_v42 = vadd.f32 %v19505_v18, %v19503_v43 }
 0x76b   : > { %v9709_v3 = vadd.f32 %v9644_v14, %v19503_v43  ;;  %v9789_v61 = vsel %vm9711_vm5, %v9787_v24, %v9788_v41  ;;  %v10063_v11 = vadd.f32 %v19507_v63, %v19518_v53  ;;  %v9710_v32 = vadd.f32 %v9646_v0, %v19518_v53 }
 0x76c   : > { %21072 = vst [vmem:[#allocation17_spill] sm:$0xff] %v19571_v49  ;;  %v9854_v46 = vadd.f32 %v9789_v61, %v9501_v25  ;;  %v9931_v16 = vrot.slane %v19503_v43, 2  ;;  %v19583_v62 = vmax.f32 %v10578_v47, 0.0  ;;  %v9791_v5 = vsel %vm9711_vm5, %v9788_v41, %v9790_v45 }
 0x76d   : > { %v19581_v38 = vpop.f32.mrb[32].mxu1  ;;  %v10104_v18 = vadd.f32 %v19523_v39, %v9436_v20  ;;  %v10105_v2 = vadd.f32 %v10029_v30, %v9438_v50  ;;  %v9855_v33 = vadd.f32 %v9791_v5, %v9502_v28  ;;  %v9935_v63 = vsel %vm9711_vm5, %v9932_v12, %v9934_v44  ;;  %v9273_v44 = vld [vmem:[#allocation3 + $0x188] sm:$0xff] }
 0x76e   : > { %21073 = vst [vmem:[#allocation16_spill] sm:$0xff] %v19581_v38  ;;  %v19587_v10 = vpop.f32.mrb[33].mxu1  ;;  %v9933_v37 = vsel %vm9711_vm5, %v9931_v16, %v9932_v12  ;;  %v10255_v25 = vadd.f32 %v10184_v7, %v19482_v31  ;;  %v10147_v38 = vadd.f32 %v10062_v42, %v9644_v14  ;;  %v10256_v47 = vadd.f32 %v10185_v22, %v19492_v29  ;;  %v9272_v12 = vld [vmem:[#allocation3 + $0x180] sm:$0xff]  ;;  %v9274_v29 = vld [vmem:[#allocation3 + $0x190] sm:$0x3] }
 0x76f   : > { %21074 = vst [vmem:[#allocation18_spill] sm:$0xff] %v19587_v10  ;;  %v19592_v24 = vpop.f32.mrb[34].mxu1  ;;  %v9998_v19 = vadd.f32 %v9933_v37, %v9709_v3  ;;  %v10289_v41 = vadd.f32 %v19525_v36, %v19503_v43  ;;  %v9999_v30 = vadd.f32 %v9935_v63, %v9710_v32  ;;  %v10148_v45 = vadd.f32 %v10063_v11, %v9646_v0 }
 0x770   : > { %21075 = vst [vmem:[#allocation19_spill] sm:$0xff] %v19592_v24  ;;  %v19597_v39 = vpop.f32.mrb[35].mxu1  ;;  %v10290_v28 = vadd.f32 %v19529_v21, %v19518_v53  ;;  %v10331_v16 = vadd.f32 %v10255_v25, %v9436_v20  ;;  %v10186_v31 = vadd.f32 %v10104_v18, %v9789_v61  ;;  %v10187_v7 = vadd.f32 %v10105_v2, %v9791_v5 }
 0x771   : > { %21076 = vst [vmem:[#allocation20_spill] sm:$0xff] %v19597_v39  ;;  %v10332_v24 = vadd.f32 %v10256_v47, %v9438_v50  ;;  %v10374_v3 = vadd.f32 %v10289_v41, %v9644_v14  ;;  %v10030_v22 = vadd.f32 %v9854_v46, %v9272_v12  ;;  %v10031_v49 = vadd.f32 %v9855_v33, %v9273_v44 }
 0x772   : > { %v10375_v42 = vadd.f32 %v10290_v28, %v9646_v0  ;;  %v10413_v10 = vadd.f32 %v10331_v16, %v9789_v61  ;;  %v10032_v36 = vmul.f32 %v9272_v12, %v9272_v12  ;;  %v10033_v39 = vmul.f32 %v9273_v44, %v9273_v44 }
 0x773   : > { %v10414_v43 = vadd.f32 %v10332_v24, %v9791_v5  ;;  %v10070_v32 = vrot.slane %v9273_v44, 1  ;;  %v10452_v11 = vadd.f32 %v10374_v3, %v9933_v37  ;;  %v10069_v53 = vrot.slane %v9272_v12, 1 }
 0x774   : > { %v10484_v9 = vmul.f32 0.11111111, %v10413_v10  ;;  %v10516_v54 = vmul.f32 %v10413_v10, %v10413_v10  ;;  %v10064_v25 = vadd.f32 %v10032_v36, %v9998_v19  ;;  %v10072_v18 = vrot.slane %v9274_v29, 1 }
 0x775   : > { %v10485_v21 = vmul.f32 0.11111111, %v10414_v43  ;;  %v10517_v20 = vmul.f32 %v10414_v43, %v10414_v43  ;;  %v19601_v2 = vadd.f32 %v10375_v42, %v9935_v63  ;;  %v10065_v14 = vadd.f32 %v10033_v39, %v9999_v30 }
 0x776   : > { %v10548_v50 = vmul.f32 0.11111111, %v10516_v54  ;;  %v10108_v0 = vmul.f32 %v9274_v29, %v9274_v29  ;;  %v10071_v5 = vsel %vm9358_vm1, %v10069_v53, %v10070_v32  ;;  %v10113_v33 = vrot.slane %v10033_v39, 1 }
 0x777   : > { %v19603_v61 = vmul.f32 0.11111111, %v10517_v20  ;;  %v10919_v46 = vpack.c.bf16 %v10485_v21, %v10484_v9  ;;  %v10106_v47 = vadd.f32 %v10071_v5, %v10030_v22  ;;  %v10112_v41 = vrot.slane %v10032_v36, 1 }
 0x778   : > { %v10580_v24 = vsub.f32 %v10452_v11, %v10548_v50  ;;  %v10115_v10 = vrot.slane %v10108_v0, 1  ;;  %v10073_v19 = vsel %vm9358_vm1, %v10070_v32, %v10072_v18  ;;  %v10152_v54 = vrot.slane %v9273_v44, 2 }
 0x779   : > { %14581 = vmatmul.mubr.msk.bf16.gmra.mrb[56].mxu1 %vm4665_vm6, %v10919_v46  ;;  %v10154_v30 = vrot.slane %v9274_v29, 2  ;;  %v10225_v16 = vadd.f32 %v10147_v38, %v9933_v37  ;;  %v10226_v3 = vadd.f32 %v10148_v45, %v9935_v63  ;;  %v10107_v42 = vadd.f32 %v10073_v19, %v10031_v49 }
 0x77a   : > { %v10151_v9 = vrot.slane %v9272_v12, 2  ;;  %v21077_v43 = vsub.f32 %v19549_v34, %v19557_v58  ;;  %v10114_v22 = vsel %vm9358_vm1, %v10112_v41, %v10113_v33  ;;  %v10116_v53 = vsel %vm9358_vm1, %v10113_v33, %v10115_v10 }
 0x77b   : > { %v10191_v21 = vrot.slane %v10033_v39, 2  ;;  %v10149_v20 = vadd.f32 %v10114_v22, %v10064_v25  ;;  %v10150_v50 = vadd.f32 %v10116_v53, %v10065_v14  ;;  %v10190_v32 = vrot.slane %v10032_v36, 2  ;;  %v9276_v14 = vld [vmem:[#allocation3 + $0x1a0] sm:$0xff] }
 0x77c   : > { %v10611_v11 = vmax.f32 %v21077_v43, 0.0  ;;  %v10153_v46 = vsel %vm9711_vm5, %v10151_v9, %v10152_v54  ;;  %v10155_v29 = vsel %vm9711_vm5, %v10152_v54, %v10154_v30  ;;  %v10193_v37 = vrot.slane %v10108_v0, 2  ;;  %v9275_v54 = vld [vmem:[#allocation3 + $0x198] sm:$0xff] }
 0x77d   : > { %v10188_v38 = vadd.f32 %v10153_v46, %v10106_v47  ;;  %v10257_v49 = vadd.f32 %v10186_v31, %v9272_v12  ;;  %v10189_v63 = vadd.f32 %v10155_v29, %v10107_v42  ;;  %v10258_v45 = vadd.f32 %v10187_v7, %v9273_v44  ;;  %v9277_v44 = vld [vmem:[#allocation3 + $0x1a8] sm:$0x3] }
 0x77e   : > { %v10291_v18 = vadd.f32 %v10225_v16, %v10032_v36  ;;  %v10292_v34 = vadd.f32 %v10226_v3, %v10033_v39  ;;  %v10642_v58 = vmul.f32 0.125, %v19583_v62  ;;  %v19618_v41 = vmul.f32 0.125, %v10611_v11 }
 0x77f   : > { %v10192_v33 = vsel %vm9711_vm5, %v10190_v32, %v10191_v21  ;;  %v10333_v25 = vadd.f32 %v10257_v49, %v10071_v5  ;;  %v10612_v10 = vmax.f32 %v10580_v24, 0.0  ;;  %v10334_v43 = vadd.f32 %v10258_v45, %v10073_v19 }
 0x780   : > { %v10227_v9 = vadd.f32 %v10192_v33, %v10149_v20  ;;  %v10376_v28 = vadd.f32 %v10291_v18, %v10114_v22  ;;  %v10194_v0 = vsel %vm9711_vm5, %v10191_v21, %v10193_v37  ;;  %v10377_v12 = vadd.f32 %v10292_v34, %v10116_v53 }
 0x781   : > { %v10415_v31 = vadd.f32 %v10333_v25, %v10153_v46  ;;  %v10259_v7 = vadd.f32 %v10188_v38, %v9275_v54  ;;  %v10228_v39 = vadd.f32 %v10194_v0, %v10150_v50  ;;  %v10416_v36 = vadd.f32 %v10334_v43, %v10155_v29 }
 0x782   : > { %v10260_v62 = vadd.f32 %v10189_v63, %v9276_v14  ;;  %v10262_v47 = vmul.f32 %v9276_v14, %v9276_v14  ;;  %v10454_v30 = vadd.f32 %v10376_v28, %v10192_v33  ;;  %v10261_v5 = vmul.f32 %v9275_v54, %v9275_v54 }
 0x783   : > { %v10486_v16 = vmul.f32 0.11111111, %v10415_v31  ;;  %v10518_v3 = vmul.f32 %v10415_v31, %v10415_v31  ;;  %v10487_v42 = vmul.f32 0.11111111, %v10416_v36  ;;  %v10519_v24 = vmul.f32 %v10416_v36, %v10416_v36 }
 0x784   : > { %v10299_v11 = vrot.slane %v9276_v14, 1  ;;  %v10301_v19 = vrot.slane %v9277_v44, 1  ;;  %v10455_v22 = vadd.f32 %v10377_v12, %v10194_v0  ;;  %v10298_v32 = vrot.slane %v9275_v54, 1 }
 0x785   : > { %v10550_v20 = vmul.f32 0.11111111, %v10518_v3  ;;  %v10337_v21 = vmul.f32 %v9277_v44, %v9277_v44  ;;  %v10551_v53 = vmul.f32 0.11111111, %v10519_v24  ;;  %v10920_v46 = vpack.c.bf16 %v10487_v42, %v10486_v16 }
 0x786   : > { %v10293_v37 = vadd.f32 %v10261_v5, %v10227_v9  ;;  %v10342_v38 = vrot.slane %v10262_v47, 1  ;;  %v10300_v29 = vsel %vm9358_vm1, %v10298_v32, %v10299_v11  ;;  %v10302_v28 = vsel %vm9358_vm1, %v10299_v11, %v10301_v19 }
 0x787   : > { %v10582_v50 = vsub.f32 %v10454_v30, %v10550_v20  ;;  %v10341_v49 = vrot.slane %v10261_v5, 1  ;;  %v10583_v63 = vsub.f32 %v10455_v22, %v10551_v53  ;;  %14584 = vmatprep.mubr.msk.bf16.mxu1 %vm4665_vm6, %v10920_v46  ;;  %v10335_v45 = vadd.f32 %v10300_v29, %v10259_v7 }
 0x788   : > { %v10336_v18 = vadd.f32 %v10302_v28, %v10260_v62  ;;  %v10344_v34 = vrot.slane %v10337_v21, 1  ;;  %v10294_v33 = vadd.f32 %v10262_v47, %v10228_v39  ;;  %v10380_v25 = vrot.slane %v9275_v54, 2 }
 0x789   : > { %v10381_v43 = vrot.slane %v9276_v14, 2  ;;  %v10383_v0 = vrot.slane %v9277_v44, 2  ;;  %v19625_v12 = vadd.f32 1e-05, %v10642_v58  ;;  %v21078_v9 = vsub.f32 %v19601_v2, %v19603_v61 }
 0x78a   : > { %v10614_v36 = vmax.f32 %v10582_v50, 0.0  ;;  %v10343_v30 = vsel %vm9358_vm1, %v10341_v49, %v10342_v38  ;;  %v10615_v16 = vmax.f32 %v10583_v63, 0.0  ;;  %v10345_v3 = vsel %vm9358_vm1, %v10342_v38, %v10344_v34 }
 0x78b   : > { %v10613_v31 = vmax.f32 %v21078_v9, 0.0  ;;  %v10382_v7 = vsel %vm9711_vm5, %v10380_v25, %v10381_v43  ;;  %v10384_v62 = vsel %vm9711_vm5, %v10381_v43, %v10383_v0  ;;  %v10420_v14 = vrot.slane %v10262_v47, 2 }
 0x78c   : > { %v10417_v39 = vadd.f32 %v10382_v7, %v10335_v45  ;;  %v10418_v54 = vadd.f32 %v10384_v62, %v10336_v18  ;;  %v10422_v44 = vrot.slane %v10337_v21, 2  ;;  %v10644_v58 = vmul.f32 0.125, %v10612_v10 }
 0x78d   : > { %v10378_v42 = vadd.f32 %v10343_v30, %v10293_v37  ;;  %v10379_v24 = vadd.f32 %v10345_v3, %v10294_v33  ;;  %15360 = vrsqrt.f32 %v18695_v27  ;;  %v10645_v2 = vmul.f32 0.125, %v10613_v31 }
 0x78e   : > { %v10419_v61 = vrot.slane %v10261_v5, 2  ;;  %v10488_v11 = vmul.f32 0.11111111, %v10417_v39  ;;  %v10489_v19 = vmul.f32 0.11111111, %v10418_v54  ;;  %v10646_v22 = vmul.f32 0.125, %v10614_v36 }
 0x78f   : > { %v10647_v20 = vmul.f32 0.125, %v10615_v16  ;;  %v10520_v32 = vmul.f32 %v10417_v39, %v10417_v39  ;;  %v10521_v53 = vmul.f32 %v10418_v54, %v10418_v54  ;;  %v10423_v38 = vsel %vm9711_vm5, %v10420_v14, %v10422_v44 }
 0x790   : > { %v10421_v46 = vsel %vm9711_vm5, %v10419_v61, %v10420_v14  ;;  %v10921_v50 = vpack.c.bf16 %v10489_v19, %v10488_v11  ;;  %15362 = vrsqrt.f32 %v18697_v35  ;;  %v10457_v47 = vadd.f32 %v10423_v38, %v10379_v24 }
 0x791   : > { %v10456_v10 = vadd.f32 %v10421_v46, %v10378_v42  ;;  %v10552_v21 = vmul.f32 0.11111111, %v10520_v32  ;;  %v10553_v37 = vmul.f32 0.11111111, %v10521_v53  ;;  %v19639_v29 = vadd.f32 1e-05, %v19618_v41 }
 0x792   : > { %v19641_v5 = vadd.f32 1e-05, %v10644_v58  ;;  %v19643_v28 = vadd.f32 1e-05, %v10645_v2  ;;  %14585 = vmatmul.mubr.msk.bf16.gmra.mrb[60].mxu1 %vm4665_vm6, %v10921_v50  ;;  %15364 = vrsqrt.f32 %v18813_v26  ;;  %v19647_v49 = vadd.f32 1e-05, %v10646_v22 }
 0x793   : > { %v10584_v63 = vsub.f32 %v10456_v10, %v10552_v21  ;;  %v10585_v45 = vsub.f32 %v10457_v47, %v10553_v37  ;;  %15366 = vrsqrt.f32 %v18817_v4  ;;  %v19650_v18 = vadd.f32 1e-05, %v10647_v20 }
 0x794   : > { %vm10684_vm8 = vcmp.eq.f32.partialorder %v18695_v27, inf  ;;  %vm10686_vm12 = vcmp.eq.f32.partialorder %v18695_v27, 0.0  ;;  %15368 = vrsqrt.f32 %v18884_v57  ;;  %v10687_v33 = vand.u32 2147483648, %v18695_v27 }
 0x795   : > { %v10616_v41 = vmax.f32 %v10584_v63, 0.0  ;;  %v10617_v34 = vmax.f32 %v10585_v45, 0.0  ;;  %vm10691_vm1 = vcmp.eq.f32.partialorder %v18697_v35, inf  ;;  %vm10693_vm5 = vcmp.eq.f32.partialorder %v18697_v35, 0.0 }
 0x796   : > { %v10694_v25 = vand.u32 2147483648, %v18697_v35  ;;  %vm10698_vm9 = vcmp.eq.f32.partialorder %v18813_v26, inf  ;;  %15370 = vrsqrt.f32 %v18891_v15  ;;  %vm10700_vm10 = vcmp.eq.f32.partialorder %v18813_v26, 0.0 }
 0x797   : > { %v15361_v43 = vpop.eup %15360  ;;  %v10648_v0 = vmul.f32 0.125, %v10616_v41  ;;  %v10701_v9 = vand.u32 2147483648, %v18813_v26  ;;  %vm10705_vm11 = vcmp.eq.f32.partialorder %v18817_v4, inf  ;;  %15372 = vrsqrt.f32 %v18985_v60 }
 0x798   : > { %v10649_v31 = vmul.f32 0.125, %v10617_v34  ;;  %v10683_v36 = vmul.f32 %v15361_v43, %v18695_v27  ;;  %vm10707_vm13 = vcmp.eq.f32.partialorder %v18817_v4, 0.0  ;;  %15374 = vrsqrt.f32 %v18993_v55 }
 0x799   : > { %v10708_v30 = vand.u32 2147483648, %v18817_v4  ;;  %vm10712_vm15 = vcmp.eq.f32.partialorder %v18884_v57, inf  ;;  %vm10714_vm14 = vcmp.eq.f32.partialorder %v18884_v57, 0.0  ;;  %v10715_v16 = vand.u32 2147483648, %v18884_v57 }
 0x79a   : > { %v15363_v3 = vpop.eup %15362  ;;  %v10685_v7 = vsel %vm10684_vm8, %v18695_v27, %v10683_v36  ;;  %vm10719_vm3 = vcmp.eq.f32.partialorder %v18891_v15, inf  ;;  %v10722_v62 = vand.u32 2147483648, %v18891_v15  ;;  %15376 = vrsqrt.f32 %v19051_v48 }
 0x79b   : > { %v19678_v39 = vadd.f32 1e-05, %v10648_v0  ;;  %v10690_v54 = vmul.f32 %v15363_v3, %v18697_v35  ;;  %vm10721_vm7 = vcmp.eq.f32.partialorder %v18891_v15, 0.0  ;;  %vm10726_vm4 = vcmp.eq.f32.partialorder %v18985_v60, inf  ;;  %v19684_v44 = vpop.f32.mrb[36].mxu1 }
 0x79c   : > { %v10729_v14 = vand.u32 2147483648, %v18985_v60  ;;  %v15365_v58 = vpop.eup %15364  ;;  %v19686_v42 = vadd.f32 1e-05, %v10649_v31  ;;  %v10688_v24 = vsel %vm10686_vm12, %v10687_v33, %v10685_v7  ;;  %vm10728_vm2 = vcmp.eq.f32.partialorder %v18985_v60, 0.0  ;;  %v19693_v2 = vpop.f32.mrb[37].mxu1 }
 0x79d   : > { %vm10733_vm8 = vcmp.eq.f32.partialorder %v18993_v55, inf  ;;  %15378 = vrsqrt.f32 %v19053_v13  ;;  %v15367_v61 = vpop.eup %15366  ;;  %v10692_v11 = vsel %vm10691_vm1, %v18697_v35, %v10690_v54  ;;  %v10697_v19 = vmul.f32 %v15365_v58, %v18813_v26  ;;  %v19701_v27 = vpop.f32.mrb[38].mxu1 }
 0x79e   : > { %vm10735_vm0 = vcmp.eq.f32.partialorder %v18993_v55, 0.0  ;;  %15380 = vrsqrt.f32 %v19128_v23  ;;  %v15369_v22 = vpop.eup %15368  ;;  %v10695_v20 = vsel %vm10693_vm5, %v10694_v25, %v10692_v11  ;;  %v10704_v32 = vmul.f32 %v15367_v61, %v18817_v4  ;;  %v19708_v46 = vpop.f32.mrb[39].mxu1 }
 0x79f   : > { %v10736_v53 = vand.u32 2147483648, %v18993_v55  ;;  %vm10740_vm12 = vcmp.eq.f32.partialorder %v19051_v48, inf  ;;  %v11496_v38 = vpack.c.bf16 %v10695_v20, %v10688_v24  ;;  %v10699_v50 = vsel %vm10698_vm9, %v18813_v26, %v10697_v19 }
 0x7a0   : > { %v10711_v10 = vmul.f32 %v15369_v22, %v18884_v57  ;;  %15382 = vrsqrt.f32 %v19130_v59  ;;  %v15371_v47 = vpop.eup %15370  ;;  %v10702_v35 = vsel %vm10700_vm10, %v10701_v9, %v10699_v50  ;;  %v10706_v21 = vsel %vm10705_vm11, %v18817_v4, %v10704_v32 }
 0x7a1   : > { %vm10742_vm1 = vcmp.eq.f32.partialorder %v19051_v48, 0.0  ;;  %v10743_v37 = vand.u32 2147483648, %v19051_v48  ;;  %v15373_v63 = vpop.eup %15372  ;;  %14628 = vmatprep.mubr.msk.bf16.mxu1 %vm4665_vm6, %v11496_v38  ;;  %v10709_v45 = vsel %vm10707_vm13, %v10708_v30, %v10706_v21  ;;  %v10718_v26 = vmul.f32 %v15371_v47, %v18891_v15 }
 0x7a2   : > { %v10713_v41 = vsel %vm10712_vm15, %v18884_v57, %v10711_v10  ;;  %vm10747_vm5 = vcmp.eq.f32.partialorder %v19053_v13, inf  ;;  %v15375_v34 = vpop.eup %15374  ;;  %v11497_v33 = vpack.c.bf16 %v10709_v45, %v10702_v35  ;;  %v10725_v43 = vmul.f32 %v15373_v63, %v18985_v60 }
 0x7a3   : > { %v10716_v25 = vsel %vm10714_vm14, %v10715_v16, %v10713_v41  ;;  %15384 = vrsqrt.f32 %v19209_v8  ;;  %v10720_v4 = vsel %vm10719_vm3, %v18891_v15, %v10718_v26  ;;  %v10732_v0 = vmul.f32 %v15375_v34, %v18993_v55 }
 0x7a4   : > { %vm10749_vm9 = vcmp.eq.f32.partialorder %v19053_v13, 0.0  ;;  %v10750_v9 = vand.u32 2147483648, %v19053_v13  ;;  %v15377_v31 = vpop.eup %15376  ;;  %14629 = vmatmul.mubr.msk.bf16.vlgmr.msra.gmra.mrb[64].mxu1 %vm4665_vm6, %v11497_v33  ;;  %v10723_v57 = vsel %vm10721_vm7, %v10722_v62, %v10720_v4  ;;  %v10727_v36 = vsel %vm10726_vm4, %v18985_v60, %v10725_v43  ;;  %v21079_v43 = vld [vmem:[#allocation13_spill] sm:$0xff] }
 0x7a5   : > { %vm10754_vm10 = vcmp.eq.f32.partialorder %v19128_v23, inf  ;;  %15386 = vrsqrt.f32 %v19224_v40  ;;  %v11498_v30 = vpack.c.bf16 %v10723_v57, %v10716_v25  ;;  %v10730_v16 = vsel %vm10728_vm2, %v10729_v14, %v10727_v36  ;;  %v21080_v57 = vld [vmem:[#allocation14_spill] sm:$0xff] }
 0x7a6   : > { %v10734_v3 = vsel %vm10733_vm8, %v18993_v55, %v10732_v0  ;;  %v10739_v7 = vmul.f32 %v15377_v31, %v19051_v48  ;;  %vm10756_vm11 = vcmp.eq.f32.partialorder %v19128_v23, 0.0  ;;  %v10757_v54 = vand.u32 2147483648, %v19128_v23 }
 0x7a7   : > { %v15379_v15 = vpop.eup %15378  ;;  %v10737_v62 = vsel %vm10735_vm0, %v10736_v53, %v10734_v3  ;;  %vm10761_vm13 = vcmp.eq.f32.partialorder %v19130_v59, inf  ;;  %14632 = vmatprep.mubr.msk.bf16.mxu1 %vm4665_vm6, %v11498_v30  ;;  %15388 = vrsqrt.f32 %v19262_v17  ;;  %vm10763_vm0 = vcmp.eq.f32.partialorder %v19130_v59, 0.0 }
 0x7a8   : > { %v15381_v58 = vpop.eup %15380  ;;  %v11499_v60 = vpack.c.bf16 %v10737_v62, %v10730_v16  ;;  %v10741_v14 = vsel %vm10740_vm12, %v19051_v48, %v10739_v7  ;;  %v10746_v24 = vmul.f32 %v15379_v15, %v19053_v13  ;;  %v10764_v11 = vand.u32 2147483648, %v19130_v59  ;;  %v21081_v15 = vld [vmem:[#allocation15_spill] sm:$0xff] }
 0x7a9   : > { %v10744_v55 = vsel %vm10742_vm1, %v10743_v37, %v10741_v14  ;;  %v10753_v61 = vmul.f32 %v15381_v58, %v19128_v23  ;;  %vm10768_vm15 = vcmp.eq.f32.partialorder %v19209_v8, inf  ;;  %vm10770_vm14 = vcmp.eq.f32.partialorder %v19209_v8, 0.0  ;;  %v21082_v58 = vld [vmem:[#allocation17_spill] sm:$0xff] }
 0x7aa   : > { %v15383_v19 = vpop.eup %15382  ;;  %v10748_v22 = vsel %vm10747_vm5, %v19053_v13, %v10746_v24  ;;  %15390 = vrsqrt.f32 %v19275_v56  ;;  %v10771_v53 = vand.u32 2147483648, %v19209_v8  ;;  %vm10775_vm3 = vcmp.eq.f32.partialorder %v19224_v40, inf }
 0x7ab   : > { %v10751_v48 = vsel %vm10749_vm9, %v10750_v9, %v10748_v22  ;;  %v10755_v20 = vsel %vm10754_vm10, %v19128_v23, %v10753_v61  ;;  %v10760_v32 = vmul.f32 %v15383_v19, %v19130_v59  ;;  %15392 = vrsqrt.f32 %v19344_v51 }
 0x7ac   : > { %v11500_v38 = vpack.c.bf16 %v10751_v48, %v10744_v55  ;;  %v10758_v50 = vsel %vm10756_vm11, %v10757_v54, %v10755_v20  ;;  %14633 = vmatmul.mubr.msk.bf16.gmra.mrb[68].mxu1 %vm4665_vm6, %v11499_v60  ;;  %vm10777_vm7 = vcmp.eq.f32.partialorder %v19224_v40, 0.0  ;;  %v10778_v47 = vand.u32 2147483648, %v19224_v40 }
 0x7ad   : > { %v15385_v10 = vpop.eup %15384  ;;  %v10762_v13 = vsel %vm10761_vm13, %v19130_v59, %v10760_v32  ;;  %vm10782_vm4 = vcmp.eq.f32.partialorder %v19262_v17, inf  ;;  %vm10784_vm2 = vcmp.eq.f32.partialorder %v19262_v17, 0.0  ;;  %15394 = vrsqrt.f32 %v19359_v1 }
 0x7ae   : > { %14636 = vmatprep.mubr.msk.bf16.mxu1 %vm4665_vm6, %v11500_v38  ;;  %v10765_v23 = vsel %vm10763_vm0, %v10764_v11, %v10762_v13  ;;  %v10767_v35 = vmul.f32 %v15385_v10, %v19209_v8  ;;  %v10785_v63 = vand.u32 2147483648, %v19262_v17  ;;  %vm10789_vm8 = vcmp.eq.f32.partialorder %v19275_v56, inf }
 0x7af   : > { %v15387_v21 = vpop.eup %15386  ;;  %v11501_v37 = vpack.c.bf16 %v10765_v23, %v10758_v50  ;;  %15396 = vrsqrt.f32 %v19397_v6  ;;  %vm10791_vm12 = vcmp.eq.f32.partialorder %v19275_v56, 0.0  ;;  %v10792_v41 = vand.u32 2147483648, %v19275_v56 }
 0x7b0   : > { %v10769_v45 = vsel %vm10768_vm15, %v19209_v8, %v10767_v35  ;;  %v10774_v59 = vmul.f32 %v15387_v21, %v19224_v40  ;;  %vm10796_vm1 = vcmp.eq.f32.partialorder %v19344_v51, inf  ;;  %vm10798_vm5 = vcmp.eq.f32.partialorder %v19344_v51, 0.0 }
 0x7b1   : > { %v10772_v26 = vsel %vm10770_vm14, %v10771_v53, %v10769_v45  ;;  %15398 = vrsqrt.f32 %v19411_v52  ;;  %v15389_v34 = vpop.eup %15388  ;;  %v10799_v25 = vand.u32 2147483648, %v19344_v51  ;;  %vm10803_vm9 = vcmp.eq.f32.partialorder %v19359_v1, inf }
 0x7b2   : > { %v10776_v33 = vsel %vm10775_vm3, %v19224_v40, %v10774_v59  ;;  %15400 = vrsqrt.f32 %v21079_v43  ;;  %v10781_v4 = vmul.f32 %v15389_v34, %v19262_v17  ;;  %vm10805_vm10 = vcmp.eq.f32.partialorder %v19359_v1, 0.0 }
 0x7b3   : > { %v10779_v8 = vsel %vm10777_vm7, %v10778_v47, %v10776_v33  ;;  %v10806_v0 = vand.u32 2147483648, %v19359_v1  ;;  %vm10810_vm11 = vcmp.eq.f32.partialorder %v19397_v6, inf  ;;  %vm10812_vm13 = vcmp.eq.f32.partialorder %v19397_v6, 0.0 }
 0x7b4   : > { %v15391_v9 = vpop.eup %15390  ;;  %v11502_v31 = vpack.c.bf16 %v10779_v8, %v10772_v26  ;;  %15402 = vrsqrt.f32 %v21080_v57  ;;  %14637 = vmatmul.mubr.msk.bf16.gmra.mrb[72].mxu1 %vm4665_vm6, %v11501_v37  ;;  %v10783_v40 = vsel %vm10782_vm4, %v19262_v17, %v10781_v4  ;;  %v10813_v30 = vand.u32 2147483648, %v19397_v6 }
 0x7b5   : > { %v10788_v36 = vmul.f32 %v15391_v9, %v19275_v56  ;;  %vm10817_vm0 = vcmp.eq.f32.partialorder %v19411_v52, inf  ;;  %v15393_v16 = vpop.eup %15392  ;;  %v10786_v3 = vsel %vm10784_vm2, %v10785_v63, %v10783_v40  ;;  %vm10819_vm15 = vcmp.eq.f32.partialorder %v19411_v52, 0.0 }
 0x7b6   : > { %14640 = vmatprep.mubr.msk.bf16.mxu1 %vm4665_vm6, %v11502_v31  ;;  %v10820_v7 = vand.u32 2147483648, %v19411_v52  ;;  %15404 = vrsqrt.f32 %v21081_v15  ;;  %v10795_v54 = vmul.f32 %v15393_v16, %v19344_v51  ;;  %vm10824_vm14 = vcmp.eq.f32.partialorder %v21079_v43, inf }
 0x7b7   : > { %v10790_v62 = vsel %vm10789_vm8, %v19275_v56, %v10788_v36  ;;  %15406 = vrsqrt.f32 %v21082_v58  ;;  %v15395_v60 = vpop.eup %15394  ;;  %vm10826_vm3 = vcmp.eq.f32.partialorder %v21079_v43, 0.0  ;;  %v10827_v14 = vand.u32 2147483648, %v21079_v43 }
 0x7b8   : > { %v10793_v17 = vsel %vm10791_vm12, %v10792_v41, %v10790_v62  ;;  %vm10831_vm7 = vcmp.eq.f32.partialorder %v21080_v57, inf  ;;  %v10797_v61 = vsel %vm10796_vm1, %v19344_v51, %v10795_v54  ;;  %v10802_v11 = vmul.f32 %v15395_v60, %v19359_v1 }
 0x7b9   : > { %v15397_v24 = vpop.eup %15396  ;;  %v11503_v55 = vpack.c.bf16 %v10793_v17, %v10786_v3  ;;  %vm10833_vm4 = vcmp.eq.f32.partialorder %v21080_v57, 0.0  ;;  %15408 = vrsqrt.f32 %v19625_v12  ;;  %v10800_v56 = vsel %vm10798_vm5, %v10799_v25, %v10797_v61 }
 0x7ba   : > { %v10809_v19 = vmul.f32 %v15397_v24, %v19397_v6  ;;  %v10834_v22 = vand.u32 2147483648, %v21080_v57  ;;  %vm10838_vm2 = vcmp.eq.f32.partialorder %v21081_v15, inf  ;;  %v10804_v20 = vsel %vm10803_vm9, %v19359_v1, %v10802_v11 }
 0x7bb   : > { %v15399_v48 = vpop.eup %15398  ;;  %vm10840_vm8 = vcmp.eq.f32.partialorder %v21081_v15, 0.0  ;;  %v10841_v32 = vand.u32 2147483648, %v21081_v15  ;;  %vm10845_vm12 = vcmp.eq.f32.partialorder %v21082_v58, inf  ;;  %15410 = vrsqrt.f32 %v19639_v29 }
 0x7bc   : > { %v15401_v51 = vpop.eup %15400  ;;  %v10807_v53 = vsel %vm10805_vm10, %v10806_v0, %v10804_v20  ;;  %v10811_v38 = vsel %vm10810_vm11, %v19397_v6, %v10809_v19  ;;  %v10816_v50 = vmul.f32 %v15399_v48, %v19411_v52  ;;  %vm10847_vm1 = vcmp.eq.f32.partialorder %v21082_v58, 0.0  ;;  %14641 = vmatmul.mubr.msk.bf16.gmra.mrb[76].mxu1 %vm4665_vm6, %v11503_v55 }
 0x7bd   : > { %v11504_v10 = vpack.c.bf16 %v10807_v53, %v10800_v56  ;;  %v10814_v13 = vsel %vm10812_vm13, %v10813_v30, %v10811_v38  ;;  %v10823_v47 = vmul.f32 %v15401_v51, %v21079_v43  ;;  %v10848_v23 = vand.u32 2147483648, %v21082_v58  ;;  %v21084_v51 = vld [vmem:[#allocation18_spill] sm:$0xff]  ;;  %v21085_v38 = vld [vmem:[#allocation19_spill] sm:$0xff] }
 0x7be   : > { %v15403_v1 = vpop.eup %15402  ;;  %v10818_v35 = vsel %vm10817_vm0, %v19411_v52, %v10816_v50  ;;  %vm10852_vm5 = vcmp.eq.f32.partialorder %v19625_v12, inf  ;;  %vm10854_vm9 = vcmp.eq.f32.partialorder %v19625_v12, 0.0  ;;  %15412 = vrsqrt.f32 %v19641_v5  ;;  %v21086_v50 = vld [vmem:[#allocation20_spill] sm:$0xff] }
 0x7bf   : > { %14644 = vmatprep.mubr.msk.bf16.mxu1 %vm4665_vm6, %v11504_v10  ;;  %v10821_v6 = vsel %vm10819_vm15, %v10820_v7, %v10818_v35  ;;  %v10825_v21 = vsel %vm10824_vm14, %v21079_v43, %v10823_v47  ;;  %v10830_v37 = vmul.f32 %v15403_v1, %v21080_v57  ;;  %v10855_v63 = vand.u32 2147483648, %v19625_v12 }
 0x7c0   : > { %v15405_v45 = vpop.eup %15404  ;;  %v11505_v59 = vpack.c.bf16 %v10821_v6, %v10814_v13  ;;  %v10828_v41 = vsel %vm10826_vm3, %v10827_v14, %v10825_v21  ;;  %vm10859_vm10 = vcmp.eq.f32.partialorder %v19639_v29, inf  ;;  %15414 = vrsqrt.f32 %v19643_v28 }
 0x7c1   : > { %v15407_v26 = vpop.eup %15406  ;;  %v10832_v52 = vsel %vm10831_vm7, %v21080_v57, %v10830_v37  ;;  %v10837_v34 = vmul.f32 %v15405_v45, %v21081_v15  ;;  %vm10861_vm11 = vcmp.eq.f32.partialorder %v19639_v29, 0.0  ;;  %v10862_v33 = vand.u32 2147483648, %v19639_v29  ;;  %v19911_v8 = vpop.f32.mrb[40].mxu1 }
 0x7c2   : > { %v10835_v25 = vsel %vm10833_vm4, %v10834_v22, %v10832_v52  ;;  %v10844_v43 = vmul.f32 %v15407_v26, %v21082_v58  ;;  %vm10866_vm13 = vcmp.eq.f32.partialorder %v19641_v5, inf  ;;  %15416 = vrsqrt.f32 %v19647_v49  ;;  %v19918_v57 = vpop.f32.mrb[41].mxu1  ;;  %v21083_v22 = vld [vmem:[#allocation16_spill] sm:$0xff] }
 0x7c3   : > { %v15409_v4 = vpop.eup %15408  ;;  %v11506_v0 = vpack.c.bf16 %v10835_v25, %v10828_v41  ;;  %v10839_v9 = vsel %vm10838_vm2, %v21081_v15, %v10837_v34  ;;  %vm10868_vm0 = vcmp.eq.f32.partialorder %v19641_v5, 0.0  ;;  %v10869_v31 = vand.u32 2147483648, %v19641_v5  ;;  %v19927_v16 = vpop.f32.mrb[42].mxu1 }
 0x7c4   : > { %v10842_v40 = vsel %vm10840_vm8, %v10841_v32, %v10839_v9  ;;  %v10846_v36 = vsel %vm10845_vm12, %v21082_v58, %v10844_v43  ;;  %v10851_v30 = vmul.f32 %v15409_v4, %v19625_v12  ;;  %15418 = vrsqrt.f32 %v19650_v18  ;;  %14645 = vmatmul.mubr.msk.bf16.gmra.mrb[80].mxu1 %vm4665_vm6, %v11505_v59  ;;  %v19935_v62 = vpop.f32.mrb[43].mxu1  ;;  %v19946_v58 = vld [vmem:[%s20755_s6] ss:$0 sm:$0xff] }
 0x7c5   : > { %v15411_v3 = vpop.eup %15410  ;;  %v10849_v7 = vsel %vm10847_vm1, %v10848_v23, %v10846_v36  ;;  %vm10873_vm15 = vcmp.eq.f32.partialorder %v19643_v28, inf  ;;  %vm10875_vm14 = vcmp.eq.f32.partialorder %v19643_v28, 0.0  ;;  %v10876_v15 = vand.u32 2147483648, %v19643_v28  ;;  %14648 = vmatprep.mubr.msk.bf16.mxu1 %vm4665_vm6, %v11506_v0 }
 0x7c6   : > { %v11507_v54 = vpack.c.bf16 %v10849_v7, %v10842_v40  ;;  %v10853_v60 = vsel %vm10852_vm5, %v19625_v12, %v10851_v30  ;;  %v10858_v17 = vmul.f32 %v15411_v3, %v19639_v29  ;;  %15420 = vrsqrt.f32 %v19678_v39 }
 0x7c7   : > { %v10856_v14 = vsel %vm10854_vm9, %v10855_v63, %v10853_v60  ;;  %vm10880_vm3 = vcmp.eq.f32.partialorder %v19647_v49, inf  ;;  %vm10882_vm7 = vcmp.eq.f32.partialorder %v19647_v49, 0.0  ;;  %v10883_v24 = vand.u32 2147483648, %v19647_v49 }
 0x7c8   : > { %v15413_v55 = vpop.eup %15412  ;;  %v10860_v61 = vsel %vm10859_vm10, %v19639_v29, %v10858_v17  ;;  %vm10887_vm4 = vcmp.eq.f32.partialorder %v19650_v18, inf  ;;  %v10890_v11 = vand.u32 2147483648, %v19650_v18  ;;  %15422 = vrsqrt.f32 %v19686_v42 }
 0x7c9   : > { %v10863_v12 = vsel %vm10861_vm11, %v10862_v33, %v10860_v61  ;;  %v10865_v56 = vmul.f32 %v15413_v55, %v19641_v5  ;;  %vm10889_vm2 = vcmp.eq.f32.partialorder %v19650_v18, 0.0  ;;  %v10897_v19 = vand.u32 2147483648, %v19678_v39  ;;  %v15448_v55 = vld [vmem:[%s20760_s11] sm:$0xff]  }
 0x7ca   : > { %v11035_v48 = vadd.f32 %v21083_v22, %v19946_v58  ;;  %v15415_v20 = vpop.eup %15414  ;;  %v11508_v32 = vpack.c.bf16 %v10863_v12, %v10856_v14  ;;  %vm10894_vm8 = vcmp.eq.f32.partialorder %v19678_v39, inf  ;;  %v11027_v53 = vadd.f32 %v19946_v58, %v21084_v51 }
 0x7cb   : > { %v11038_v29 = vadd.f32 %v21085_v38, %v19946_v58  ;;  %v11030_v10 = vadd.f32 %v19946_v58, %v21086_v50  ;;  %v10867_v13 = vsel %vm10866_vm13, %v19641_v5, %v10865_v56  ;;  %v10872_v47 = vmul.f32 %v15415_v20, %v19643_v28 }
 0x7cc   : > { %vm11155_vm12 = vcmp.ge.f32.partialorder %v11035_v48, 0.0  ;;  %v11187_v23 = vmul.f32 0.1, %v11035_v48  ;;  %v15417_v1 = vpop.eup %15416  ;;  %v10870_v35 = vsel %vm10868_vm0, %v10869_v31, %v10867_v13  ;;  %vm11153_vm1 = vcmp.ge.f32.partialorder %v11027_v53, 0.0  ;;  %14649 = vmatmul.mubr.msk.bf16.gmra.mrb[84].mxu1 %vm4665_vm6, %v11507_v54 }
 0x7cd   : > { %v11185_v6 = vmul.f32 0.1, %v11027_v53  ;;  %vm11156_vm5 = vcmp.ge.f32.partialorder %v11038_v29, 0.0  ;;  %v10874_v21 = vsel %vm10873_vm15, %v19643_v28, %v10872_v47  ;;  %v10879_v37 = vmul.f32 %v15417_v1, %v19647_v49  ;;  %14652 = vmatprep.mubr.msk.bf16.mxu1 %vm4665_vm6, %v11508_v32 }
 0x7ce   : > { %vm10896_vm9 = vcmp.eq.f32.partialorder %v19678_v39, 0.0  ;;  %v11219_v63 = vsel %vm11155_vm12, %v11035_v48, %v11187_v23  ;;  %v11188_v45 = vmul.f32 0.1, %v11038_v29  ;;  %v15419_v59 = vpop.eup %15418  ;;  %v10877_v5 = vsel %vm10875_vm14, %v10876_v15, %v10874_v21 }
 0x7cf   : > { %v11217_v41 = vsel %vm11153_vm1, %v11027_v53, %v11185_v6  ;;  %vm11154_vm10 = vcmp.ge.f32.partialorder %v11030_v10, 0.0  ;;  %v11186_v26 = vmul.f32 0.1, %v11030_v10  ;;  %v11509_v52 = vpack.c.bf16 %v10877_v5, %v10870_v35 }
 0x7d0   : > { %v10881_v34 = vsel %vm10880_vm3, %v19647_v49, %v10879_v37  ;;  %v10886_v33 = vmul.f32 %v15419_v59, %v19650_v18  ;;  %v11220_v25 = vsel %vm11156_vm5, %v11038_v29, %v11188_v45  ;;  %v15421_v43 = vpop.eup %15420  ;;  %v11051_v28 = vadd.f32 %v19684_v44, %v19946_v58 }
 0x7d1   : > { %v10884_v4 = vsel %vm10882_vm7, %v10883_v24, %v10881_v34  ;;  %v11250_v0 = vpack.c.bf16 %v11220_v25, %v11219_v63  ;;  %v11218_v9 = vsel %vm11154_vm10, %v11030_v10, %v11186_v26  ;;  %v10893_v40 = vmul.f32 %v15421_v43, %v19678_v39 }
 0x7d2   : > { %v10888_v31 = vsel %vm10887_vm4, %v19650_v18, %v10886_v33  ;;  %v11249_v36 = vpack.c.bf16 %v11218_v9, %v11217_v41  ;;  %v11043_v30 = vadd.f32 %v19946_v58, %v19693_v2  ;;  %v15423_v3 = vpop.eup %15422  ;;  %vm10901_vm11 = vcmp.eq.f32.partialorder %v19686_v42, inf  ;;  %v15359_v18 = vld [vmem:[%s20760_s11 + $0x8] sm:$0xff]  }
 0x7d3   : > { %v10891_v49 = vsel %vm10889_vm2, %v10890_v11, %v10888_v31  ;;  %vm10903_vm13 = vcmp.eq.f32.partialorder %v19686_v42, 0.0  ;;  %v11054_v44 = vadd.f32 %v19701_v27, %v19946_v58  ;;  %v10895_v15 = vsel %vm10894_vm8, %v19678_v39, %v10893_v40 }
 0x7d4   : > { %v11510_v7 = vpack.c.bf16 %v10891_v49, %v10884_v4  ;;  %v10900_v54 = vmul.f32 %v15423_v3, %v19686_v42  ;;  %v11191_v60 = vmul.f32 0.1, %v11051_v28  ;;  %14592 = vmatprep.mubr.msk.bf16.mxu0 %vm4665_vm6, %v11249_v36  ;;  %v10904_v2 = vand.u32 2147483648, %v19686_v42  ;;  %14653 = vmatmul.mubr.msk.bf16.gmra.mrb[88].mxu1 %vm4665_vm6, %v11509_v52 }
 0x7d5   : > { %vm11159_vm0 = vcmp.ge.f32.partialorder %v11051_v28, 0.0  ;;  %v11189_v17 = vmul.f32 0.1, %v11043_v30  ;;  %vm11160_vm15 = vcmp.ge.f32.partialorder %v11054_v44, 0.0  ;;  %14593 = vmatmul.mubr.msk.bf16.vlgmr.msra.gmra.mrb[32].mxu0 %vm4665_vm6, %v11250_v0  ;;  %v11192_v14 = vmul.f32 0.1, %v11054_v44 }
 0x7d6   : > { %v10902_v27 = vsel %vm10901_vm11, %v19686_v42, %v10900_v54  ;;  %v11046_v24 = vadd.f32 %v19946_v58, %v19708_v46  ;;  %14661 = vmatpush3.bf16.msra.mxu0 %v15448_v55  ;;  %v11067_v61 = vadd.f32 %v19911_v8, %v19946_v58  ;;  %14656 = vmatprep.mubr.msk.bf16.mxu1 %vm4665_vm6, %v11510_v7  ;;  %vm11157_vm14 = vcmp.ge.f32.partialorder %v11043_v30, 0.0 }
 0x7d7   : > { %v10898_v11 = vsel %vm10896_vm9, %v10897_v19, %v10895_v15  ;;  %v11059_v12 = vadd.f32 %v19946_v58, %v19918_v57  ;;  %v11070_v46 = vadd.f32 %v19927_v16, %v19946_v58  ;;  %v11223_v56 = vsel %vm11159_vm0, %v11051_v28, %v11191_v60  ;;  %14662 = vmatprep.subr.bf16.mxu0 %v15359_v18 }
 0x7d8   : > { %v11224_v22 = vsel %vm11160_vm15, %v11054_v44, %v11192_v14  ;;  %vm11158_vm3 = vcmp.ge.f32.partialorder %v11046_v24, 0.0  ;;  %v11190_v48 = vmul.f32 0.1, %v11046_v24  ;;  %v10905_v8 = vsel %vm10903_vm13, %v10904_v2, %v10902_v27 }
 0x7d9   : > { %v11252_v20 = vpack.c.bf16 %v11224_v22, %v11223_v56  ;;  %vm11163_vm7 = vcmp.ge.f32.partialorder %v11067_v61, 0.0  ;;  %v11195_v39 = vmul.f32 0.1, %v11067_v61  ;;  %v11221_v19 = vsel %vm11157_vm14, %v11043_v30, %v11189_v17 }
 0x7da   : > { %v11222_v32 = vsel %vm11158_vm3, %v11046_v24, %v11190_v48  ;;  %vm11164_vm4 = vcmp.ge.f32.partialorder %v11070_v46, 0.0  ;;  %v11196_v51 = vmul.f32 0.1, %v11070_v46  ;;  %14663 = vmatpush3.bf16.msra.mxu0 %v15359_v18  ;;  %v11193_v53 = vmul.f32 0.1, %v11059_v12 }
 0x7db   : > { %v11251_v57 = vpack.c.bf16 %v11222_v32, %v11221_v19  ;;  %v11062_v16 = vadd.f32 %v19946_v58, %v19935_v62  ;;  %v11511_v38 = vpack.c.bf16 %v10905_v8, %v10898_v11  ;;  %v11227_v29 = vsel %vm11163_vm7, %v11067_v61, %v11195_v39 }
 0x7dc   : > { %vm11161_vm2 = vcmp.ge.f32.partialorder %v11059_v12, 0.0  ;;  %v11228_v50 = vsel %vm11164_vm4, %v11070_v46, %v11196_v51 }
 0x7dd   : > { %v11254_v10 = vpack.c.bf16 %v11228_v50, %v11227_v29  ;;  %vm11162_vm8 = vcmp.ge.f32.partialorder %v11062_v16, 0.0  ;;  %v11194_v42 = vmul.f32 0.1, %v11062_v16  ;;  %14596 = vmatprep.mubr.msk.bf16.mxu0 %vm4665_vm6, %v11251_v57  ;;  %14657 = vmatmul.mubr.msk.bf16.gmra.mrb[92].mxu1 %vm4665_vm6, %v11511_v38  ;;  %v11225_v13 = vsel %vm11161_vm2, %v11059_v12, %v11193_v53 }
 0x7de   : > { %14597 = vmatmul.mubr.msk.bf16.gmra.mrb[36].mxu0 %vm4665_vm6, %v11252_v20 }
 0x7df   : > { %v11226_v47 = vsel %vm11162_vm8, %v11062_v16, %v11194_v42 }
 0x7e0   : > { %v11253_v23 = vpack.c.bf16 %v11226_v47, %v11225_v13 }
 0x7e2   : > { %14600 = vmatprep.mubr.msk.bf16.mxu0 %vm4665_vm6, %v11253_v23 }
 0x7e5   : > { %v14570_v62 = vpop.f32.mrb[44].mxu1 }
 0x7e6   : > { %14601 = vmatmul.mubr.msk.bf16.gmra.mrb[40].mxu0 %vm4665_vm6, %v11254_v10  ;;  %v11083_v1 = vadd.f32 %v14570_v62, %v19946_v58  ;;  %v11074_v35 = vpop.f32.mrb[45].mxu1 }
 0x7e7   : > { %v11075_v6 = vadd.f32 %v19946_v58, %v11074_v35  ;;  %v14571_v21 = vpop.f32.mrb[46].mxu1 }
 0x7e8   : > { %v11199_v37 = vmul.f32 0.1, %v11083_v1  ;;  %v11086_v63 = vadd.f32 %v14571_v21, %v19946_v58  ;;  %v11077_v45 = vpop.f32.mrb[47].mxu1  ;;  %vm11167_vm12 = vcmp.ge.f32.partialorder %v11083_v1, 0.0 }
 0x7e9   : > { %v11197_v59 = vmul.f32 0.1, %v11075_v6  ;;  %v11078_v5 = vadd.f32 %v19946_v58, %v11077_v45  ;;  %vm11165_vm1 = vcmp.ge.f32.partialorder %v11075_v6, 0.0 }
 0x7ea   : > { %vm11168_vm5 = vcmp.ge.f32.partialorder %v11086_v63, 0.0  ;;  %v11200_v41 = vmul.f32 0.1, %v11086_v63  ;;  %v11231_v52 = vsel %vm11167_vm12, %v11083_v1, %v11199_v37 }
 0x7eb   : > { %vm11166_vm9 = vcmp.ge.f32.partialorder %v11078_v5, 0.0  ;;  %v11198_v26 = vmul.f32 0.1, %v11078_v5  ;;  %v11229_v33 = vsel %vm11165_vm1, %v11075_v6, %v11197_v59 }
 0x7ec   : > { %v11232_v34 = vsel %vm11168_vm5, %v11086_v63, %v11200_v41 }
 0x7ed   : > { %v11256_v25 = vpack.c.bf16 %v11232_v34, %v11231_v52  ;;  %v11230_v43 = vsel %vm11166_vm9, %v11078_v5, %v11198_v26 }
 0x7ee   : > { %v11255_v4 = vpack.c.bf16 %v11230_v43, %v11229_v33 }
 0x7f0   : > { %14604 = vmatprep.mubr.msk.bf16.mxu0 %vm4665_vm6, %v11255_v4 }
 0x7f1   : > { %14605 = vmatmul.mubr.msk.bf16.gmra.mrb[44].mxu0 %vm4665_vm6, %v11256_v25 }
 0x808   : > { %v14574_v0 = vpop.f32.mrb[48].mxu1 }
 0x809   : > { %v11099_v9 = vadd.f32 %v14574_v0, %v19946_v58  ;;  %v11090_v28 = vpop.f32.mrb[49].mxu1 }
 0x80a   : > { %v11091_v31 = vadd.f32 %v19946_v58, %v11090_v28  ;;  %v14575_v40 = vpop.f32.mrb[50].mxu1 }
 0x80b   : > { %v11203_v36 = vmul.f32 0.1, %v11099_v9  ;;  %v11102_v30 = vadd.f32 %v14575_v40, %v19946_v58  ;;  %v11093_v3 = vpop.f32.mrb[51].mxu1  ;;  %vm11171_vm10 = vcmp.ge.f32.partialorder %v11099_v9, 0.0 }
 0x80c   : > { %v11201_v49 = vmul.f32 0.1, %v11091_v31  ;;  %v11094_v44 = vadd.f32 %v19946_v58, %v11093_v3  ;;  %vm11169_vm11 = vcmp.ge.f32.partialorder %v11091_v31, 0.0 }
 0x80d   : > { %vm11172_vm13 = vcmp.ge.f32.partialorder %v11102_v30, 0.0  ;;  %v11204_v7 = vmul.f32 0.1, %v11102_v30  ;;  %v11235_v54 = vsel %vm11171_vm10, %v11099_v9, %v11203_v36 }
 0x80e   : > { %vm11170_vm0 = vcmp.ge.f32.partialorder %v11094_v44, 0.0  ;;  %v11202_v15 = vmul.f32 0.1, %v11094_v44  ;;  %v11233_v18 = vsel %vm11169_vm11, %v11091_v31, %v11201_v49 }
 0x80f   : > { %v11236_v60 = vsel %vm11172_vm13, %v11102_v30, %v11204_v7 }
 0x810   : > { %v11258_v2 = vpack.c.bf16 %v11236_v60, %v11235_v54  ;;  %v11234_v17 = vsel %vm11170_vm0, %v11094_v44, %v11202_v15  ;;  %v20080_v44 = vld [vmem:[%s20759_s10] ss:$0 sm:$0xff] }
 0x811   : > { %v11257_v27 = vpack.c.bf16 %v11234_v17, %v11233_v18 }
 0x813   : > { %14608 = vmatprep.mubr.msk.bf16.mxu0 %vm4665_vm6, %v11257_v27 }
 0x814   : > { %14609 = vmatmul.mubr.msk.bf16.gmra.mrb[48].mxu0 %vm4665_vm6, %v11258_v2 }
 0x82b   : > { %v14578_v14 = vpop.f32.mrb[52].mxu1 }
 0x82c   : > { %v11115_v24 = vadd.f32 %v14578_v14, %v19946_v58  ;;  %v11106_v55 = vpop.f32.mrb[53].mxu1 }
 0x82d   : > { %v11107_v61 = vadd.f32 %v19946_v58, %v11106_v55  ;;  %v14579_v11 = vpop.f32.mrb[54].mxu1 }
 0x82e   : > { %v11207_v12 = vmul.f32 0.1, %v11115_v24  ;;  %v11118_v46 = vadd.f32 %v14579_v11, %v19946_v58  ;;  %v11109_v56 = vpop.f32.mrb[55].mxu1  ;;  %vm11175_vm15 = vcmp.ge.f32.partialorder %v11115_v24, 0.0 }
 0x82f   : > { %v11205_v22 = vmul.f32 0.1, %v11107_v61  ;;  %v11110_v48 = vadd.f32 %v19946_v58, %v11109_v56  ;;  %vm11173_vm14 = vcmp.ge.f32.partialorder %v11107_v61, 0.0 }
 0x830   : > { %vm11176_vm3 = vcmp.ge.f32.partialorder %v11118_v46, 0.0  ;;  %v11208_v8 = vmul.f32 0.1, %v11118_v46  ;;  %v11239_v39 = vsel %vm11175_vm15, %v11115_v24, %v11207_v12 }
 0x831   : > { %vm11174_vm7 = vcmp.ge.f32.partialorder %v11110_v48, 0.0  ;;  %v11206_v20 = vmul.f32 0.1, %v11110_v48  ;;  %v11237_v32 = vsel %vm11173_vm14, %v11107_v61, %v11205_v22 }
 0x832   : > { %v11240_v19 = vsel %vm11176_vm3, %v11118_v46, %v11208_v8 }
 0x833   : > { %v11260_v51 = vpack.c.bf16 %v11240_v19, %v11239_v39  ;;  %v11238_v57 = vsel %vm11174_vm7, %v11110_v48, %v11206_v20 }
 0x834   : > { %v11259_v53 = vpack.c.bf16 %v11238_v57, %v11237_v32 }
 0x836   : > { %14612 = vmatprep.mubr.msk.bf16.mxu0 %vm4665_vm6, %v11259_v53 }
 0x837   : > { %14613 = vmatmul.mubr.msk.bf16.gmra.mrb[52].mxu0 %vm4665_vm6, %v11260_v51 }
 0x84c   : > { %v14582_v16 = vpop.f32.mrb[56].mxu1 }
 0x84d   : > { %v11131_v38 = vadd.f32 %v14582_v16, %v19946_v58  ;;  %v11122_v29 = vpop.f32.mrb[57].mxu1 }
 0x84e   : > { %v11123_v50 = vadd.f32 %v19946_v58, %v11122_v29  ;;  %v14583_v10 = vpop.f32.mrb[58].mxu1 }
 0x84f   : > { %v11211_v42 = vmul.f32 0.1, %v11131_v38  ;;  %v11134_v13 = vadd.f32 %v14583_v10, %v19946_v58  ;;  %v11125_v47 = vpop.f32.mrb[59].mxu1  ;;  %vm11179_vm4 = vcmp.ge.f32.partialorder %v11131_v38, 0.0 }
 0x850   : > { %v11209_v23 = vmul.f32 0.1, %v11123_v50  ;;  %v11126_v62 = vadd.f32 %v19946_v58, %v11125_v47  ;;  %vm11177_vm2 = vcmp.ge.f32.partialorder %v11123_v50, 0.0 }
 0x851   : > { %vm11180_vm8 = vcmp.ge.f32.partialorder %v11134_v13, 0.0  ;;  %v11212_v1 = vmul.f32 0.1, %v11134_v13  ;;  %v11243_v6 = vsel %vm11179_vm4, %v11131_v38, %v11211_v42 }
 0x852   : > { %vm11178_vm12 = vcmp.ge.f32.partialorder %v11126_v62, 0.0  ;;  %v11210_v35 = vmul.f32 0.1, %v11126_v62  ;;  %v11241_v37 = vsel %vm11177_vm2, %v11123_v50, %v11209_v23 }
 0x853   : > { %v11244_v21 = vsel %vm11180_vm8, %v11134_v13, %v11212_v1 }
 0x854   : > { %v11262_v63 = vpack.c.bf16 %v11244_v21, %v11243_v6  ;;  %v11242_v45 = vsel %vm11178_vm12, %v11126_v62, %v11210_v35 }
 0x855   : > { %v11261_v59 = vpack.c.bf16 %v11242_v45, %v11241_v37 }
 0x857   : > { %14616 = vmatprep.mubr.msk.bf16.mxu0 %vm4665_vm6, %v11261_v59 }
 0x858   : > { %14617 = vmatmul.mubr.msk.bf16.gmra.mrb[56].mxu0 %vm4665_vm6, %v11262_v63 }
 0x865   : > { %v14586_v5 = vpop.f32.mrb[60].mxu1 }
 0x866   : > { %v11147_v41 = vadd.f32 %v14586_v5, %v19946_v58  ;;  %v11138_v26 = vpop.f32.mrb[61].mxu1 }
 0x867   : > { %v11139_v52 = vadd.f32 %v19946_v58, %v11138_v26  ;;  %v14587_v34 = vpop.f32.mrb[62].mxu1 }
 0x868   : > { %v11215_v33 = vmul.f32 0.1, %v11147_v41  ;;  %v11150_v25 = vadd.f32 %v14587_v34, %v19946_v58  ;;  %v11141_v43 = vpop.f32.mrb[63].mxu1  ;;  %vm11183_vm1 = vcmp.ge.f32.partialorder %v11147_v41, 0.0 }
 0x869   : > { %v11213_v4 = vmul.f32 0.1, %v11139_v52  ;;  %v11142_v0 = vadd.f32 %v19946_v58, %v11141_v43  ;;  %vm11181_vm5 = vcmp.ge.f32.partialorder %v11139_v52, 0.0 }
 0x86a   : > { %vm11184_vm9 = vcmp.ge.f32.partialorder %v11150_v25, 0.0  ;;  %v11216_v9 = vmul.f32 0.1, %v11150_v25  ;;  %v11247_v31 = vsel %vm11183_vm1, %v11147_v41, %v11215_v33 }
 0x86b   : > { %vm11182_vm10 = vcmp.ge.f32.partialorder %v11142_v0, 0.0  ;;  %v11214_v28 = vmul.f32 0.1, %v11142_v0  ;;  %v11245_v36 = vsel %vm11181_vm5, %v11139_v52, %v11213_v4 }
 0x86c   : > { %v11248_v40 = vsel %vm11184_vm9, %v11150_v25, %v11216_v9 }
 0x86d   : > { %v11264_v30 = vpack.c.bf16 %v11248_v40, %v11247_v31  ;;  %v11246_v3 = vsel %vm11182_vm10, %v11142_v0, %v11214_v28 }
 0x86e   : > { %v11263_v49 = vpack.c.bf16 %v11246_v3, %v11245_v36 }
 0x870   : > { %14620 = vmatprep.mubr.msk.bf16.mxu0 %vm4665_vm6, %v11263_v49 }
 0x871   : > { %14621 = vmatmul.mubr.msk.bf16.gmra.mrb[60].mxu0 %vm4665_vm6, %v11264_v30 }
 0x877   : > { %v14630_v58 = vpop.f32.mrb[64].mxu1 }
 0x878   : > { %v11625_v7 = vadd.f32 %v14630_v58, %v20080_v44  ;;  %v11616_v15 = vpop.f32.mrb[65].mxu1 }
 0x879   : > { %v11617_v54 = vadd.f32 %v20080_v44, %v11616_v15  ;;  %v14631_v60 = vpop.f32.mrb[66].mxu1 }
 0x87a   : > { %v11777_v18 = vmul.f32 0.1, %v11625_v7  ;;  %v11628_v2 = vadd.f32 %v14631_v60, %v20080_v44  ;;  %v11619_v17 = vpop.f32.mrb[67].mxu1  ;;  %vm11745_vm11 = vcmp.ge.f32.partialorder %v11625_v7, 0.0 }
 0x87b   : > { %v11775_v27 = vmul.f32 0.1, %v11617_v54  ;;  %v11620_v14 = vadd.f32 %v20080_v44, %v11619_v17  ;;  %vm11743_vm13 = vcmp.ge.f32.partialorder %v11617_v54, 0.0 }
 0x87c   : > { %vm11746_vm0 = vcmp.ge.f32.partialorder %v11628_v2, 0.0  ;;  %v11778_v24 = vmul.f32 0.1, %v11628_v2  ;;  %v11809_v61 = vsel %vm11745_vm11, %v11625_v7, %v11777_v18 }
 0x87d   : > { %vm11744_vm15 = vcmp.ge.f32.partialorder %v11620_v14, 0.0  ;;  %v11776_v55 = vmul.f32 0.1, %v11620_v14  ;;  %v11807_v12 = vsel %vm11743_vm13, %v11617_v54, %v11775_v27 }
 0x87e   : > { %v11810_v11 = vsel %vm11746_vm0, %v11628_v2, %v11778_v24 }
 0x87f   : > { %v11840_v46 = vpack.c.bf16 %v11810_v11, %v11809_v61  ;;  %v11808_v56 = vsel %vm11744_vm15, %v11620_v14, %v11776_v55  ;;  %v14634_v22 = vpop.f32.mrb[68].mxu1 }
 0x880   : > { %v11839_v48 = vpack.c.bf16 %v11808_v56, %v11807_v12  ;;  %v11641_v8 = vadd.f32 %v14634_v22, %v20080_v44  ;;  %v11632_v20 = vpop.f32.mrb[69].mxu1 }
 0x881   : > { %v11633_v39 = vadd.f32 %v20080_v44, %v11632_v20  ;;  %v14635_v19 = vpop.f32.mrb[70].mxu1 }
 0x882   : > { %v11781_v32 = vmul.f32 0.1, %v11641_v8  ;;  %v11644_v51 = vadd.f32 %v14635_v19, %v20080_v44  ;;  %v11635_v57 = vpop.f32.mrb[71].mxu1  ;;  %14664 = vmatprep.mubr.msk.bf16.mxu0 %vm4665_vm6, %v11839_v48  ;;  %vm11749_vm14 = vcmp.ge.f32.partialorder %v11641_v8, 0.0 }
 0x883   : > { %v11779_v53 = vmul.f32 0.1, %v11633_v39  ;;  %v11636_v16 = vadd.f32 %v20080_v44, %v11635_v57  ;;  %14665 = vmatmul.mubr.msk.bf16.vlgmr.msra.gmra.mrb[64].mxu0 %vm4665_vm6, %v11840_v46  ;;  %vm11747_vm3 = vcmp.ge.f32.partialorder %v11633_v39, 0.0 }
 0x884   : > { %vm11750_vm7 = vcmp.ge.f32.partialorder %v11644_v51, 0.0  ;;  %v11782_v38 = vmul.f32 0.1, %v11644_v51  ;;  %v11813_v50 = vsel %vm11749_vm14, %v11641_v8, %v11781_v32 }
 0x885   : > { %vm11748_vm4 = vcmp.ge.f32.partialorder %v11636_v16, 0.0  ;;  %v11780_v29 = vmul.f32 0.1, %v11636_v16  ;;  %v11811_v42 = vsel %vm11747_vm3, %v11633_v39, %v11779_v53 }
 0x886   : > { %v11814_v10 = vsel %vm11750_vm7, %v11644_v51, %v11782_v38 }
 0x887   : > { %v11842_v13 = vpack.c.bf16 %v11814_v10, %v11813_v50  ;;  %v11812_v47 = vsel %vm11748_vm4, %v11636_v16, %v11780_v29  ;;  %v14638_v23 = vpop.f32.mrb[72].mxu1 }
 0x888   : > { %v11841_v62 = vpack.c.bf16 %v11812_v47, %v11811_v42  ;;  %v11657_v1 = vadd.f32 %v14638_v23, %v20080_v44  ;;  %v11648_v35 = vpop.f32.mrb[73].mxu1 }
 0x889   : > { %v11649_v6 = vadd.f32 %v20080_v44, %v11648_v35  ;;  %v14639_v21 = vpop.f32.mrb[74].mxu1 }
 0x88a   : > { %v11785_v37 = vmul.f32 0.1, %v11657_v1  ;;  %v11660_v63 = vadd.f32 %v14639_v21, %v20080_v44  ;;  %v11651_v45 = vpop.f32.mrb[75].mxu1  ;;  %14668 = vmatprep.mubr.msk.bf16.mxu0 %vm4665_vm6, %v11841_v62  ;;  %vm11753_vm2 = vcmp.ge.f32.partialorder %v11657_v1, 0.0 }
 0x88b   : > { %v11783_v59 = vmul.f32 0.1, %v11649_v6  ;;  %v11652_v5 = vadd.f32 %v20080_v44, %v11651_v45  ;;  %14669 = vmatmul.mubr.msk.bf16.gmra.mrb[68].mxu0 %vm4665_vm6, %v11842_v13  ;;  %vm11751_vm8 = vcmp.ge.f32.partialorder %v11649_v6, 0.0 }
 0x88c   : > { %vm11754_vm12 = vcmp.ge.f32.partialorder %v11660_v63, 0.0  ;;  %v11786_v41 = vmul.f32 0.1, %v11660_v63  ;;  %v11817_v52 = vsel %vm11753_vm2, %v11657_v1, %v11785_v37 }
 0x88d   : > { %vm11752_vm1 = vcmp.ge.f32.partialorder %v11652_v5, 0.0  ;;  %v11784_v26 = vmul.f32 0.1, %v11652_v5  ;;  %v11815_v33 = vsel %vm11751_vm8, %v11649_v6, %v11783_v59 }
 0x88e   : > { %v11818_v34 = vsel %vm11754_vm12, %v11660_v63, %v11786_v41 }
 0x88f   : > { %v11844_v25 = vpack.c.bf16 %v11818_v34, %v11817_v52  ;;  %v11816_v43 = vsel %vm11752_vm1, %v11652_v5, %v11784_v26  ;;  %v14642_v4 = vpop.f32.mrb[76].mxu1 }
 0x890   : > { %v11843_v0 = vpack.c.bf16 %v11816_v43, %v11815_v33  ;;  %v11673_v9 = vadd.f32 %v14642_v4, %v20080_v44  ;;  %v11664_v28 = vpop.f32.mrb[77].mxu1 }
 0x891   : > { %v11665_v31 = vadd.f32 %v20080_v44, %v11664_v28  ;;  %v14643_v40 = vpop.f32.mrb[78].mxu1 }
 0x892   : > { %v11789_v36 = vmul.f32 0.1, %v11673_v9  ;;  %v11676_v30 = vadd.f32 %v14643_v40, %v20080_v44  ;;  %v11667_v3 = vpop.f32.mrb[79].mxu1  ;;  %14672 = vmatprep.mubr.msk.bf16.mxu0 %vm4665_vm6, %v11843_v0  ;;  %vm11757_vm5 = vcmp.ge.f32.partialorder %v11673_v9, 0.0 }
 0x893   : > { %v11787_v49 = vmul.f32 0.1, %v11665_v31  ;;  %v11668_v58 = vadd.f32 %v20080_v44, %v11667_v3  ;;  %14673 = vmatmul.mubr.msk.bf16.gmra.mrb[72].mxu0 %vm4665_vm6, %v11844_v25  ;;  %vm11755_vm9 = vcmp.ge.f32.partialorder %v11665_v31, 0.0 }
 0x894   : > { %vm11758_vm10 = vcmp.ge.f32.partialorder %v11676_v30, 0.0  ;;  %v11790_v7 = vmul.f32 0.1, %v11676_v30  ;;  %v11821_v54 = vsel %vm11757_vm5, %v11673_v9, %v11789_v36 }
 0x895   : > { %vm11756_vm11 = vcmp.ge.f32.partialorder %v11668_v58, 0.0  ;;  %v11788_v15 = vmul.f32 0.1, %v11668_v58  ;;  %v11819_v18 = vsel %vm11755_vm9, %v11665_v31, %v11787_v49 }
 0x896   : > { %v11822_v60 = vsel %vm11758_vm10, %v11676_v30, %v11790_v7 }
 0x897   : > { %v11846_v2 = vpack.c.bf16 %v11822_v60, %v11821_v54  ;;  %v11820_v17 = vsel %vm11756_vm11, %v11668_v58, %v11788_v15  ;;  %v14646_v27 = vpop.f32.mrb[80].mxu1 }
 0x898   : > { %v11845_v14 = vpack.c.bf16 %v11820_v17, %v11819_v18  ;;  %v11689_v24 = vadd.f32 %v14646_v27, %v20080_v44  ;;  %v11680_v55 = vpop.f32.mrb[81].mxu1 }
 0x899   : > { %v11681_v61 = vadd.f32 %v20080_v44, %v11680_v55  ;;  %v14647_v11 = vpop.f32.mrb[82].mxu1 }
 0x89a   : > { %v11793_v12 = vmul.f32 0.1, %v11689_v24  ;;  %v11692_v46 = vadd.f32 %v14647_v11, %v20080_v44  ;;  %v11683_v56 = vpop.f32.mrb[83].mxu1  ;;  %14676 = vmatprep.mubr.msk.bf16.mxu0 %vm4665_vm6, %v11845_v14  ;;  %vm11761_vm13 = vcmp.ge.f32.partialorder %v11689_v24, 0.0 }
 0x89b   : > { %v11791_v22 = vmul.f32 0.1, %v11681_v61  ;;  %v11684_v48 = vadd.f32 %v20080_v44, %v11683_v56  ;;  %14677 = vmatmul.mubr.msk.bf16.gmra.mrb[76].mxu0 %vm4665_vm6, %v11846_v2  ;;  %vm11759_vm0 = vcmp.ge.f32.partialorder %v11681_v61, 0.0 }
 0x89c   : > { %vm11762_vm15 = vcmp.ge.f32.partialorder %v11692_v46, 0.0  ;;  %v11794_v8 = vmul.f32 0.1, %v11692_v46  ;;  %v11825_v39 = vsel %vm11761_vm13, %v11689_v24, %v11793_v12 }
 0x89d   : > { %vm11760_vm14 = vcmp.ge.f32.partialorder %v11684_v48, 0.0  ;;  %v11792_v20 = vmul.f32 0.1, %v11684_v48  ;;  %v11823_v32 = vsel %vm11759_vm0, %v11681_v61, %v11791_v22 }
 0x89e   : > { %v11826_v19 = vsel %vm11762_vm15, %v11692_v46, %v11794_v8 }
 0x89f   : > { %v11848_v51 = vpack.c.bf16 %v11826_v19, %v11825_v39  ;;  %v11824_v57 = vsel %vm11760_vm14, %v11684_v48, %v11792_v20  ;;  %v14650_v53 = vpop.f32.mrb[84].mxu1 }
 0x8a0   : > { %v11847_v16 = vpack.c.bf16 %v11824_v57, %v11823_v32  ;;  %v11705_v38 = vadd.f32 %v14650_v53, %v20080_v44  ;;  %v11696_v29 = vpop.f32.mrb[85].mxu1 }
 0x8a1   : > { %v11697_v50 = vadd.f32 %v20080_v44, %v11696_v29  ;;  %v14651_v10 = vpop.f32.mrb[86].mxu1 }
 0x8a2   : > { %v11797_v42 = vmul.f32 0.1, %v11705_v38  ;;  %v11708_v13 = vadd.f32 %v14651_v10, %v20080_v44  ;;  %v11699_v47 = vpop.f32.mrb[87].mxu1  ;;  %14680 = vmatprep.mubr.msk.bf16.mxu0 %vm4665_vm6, %v11847_v16  ;;  %vm11765_vm3 = vcmp.ge.f32.partialorder %v11705_v38, 0.0 }
 0x8a3   : > { %v11795_v23 = vmul.f32 0.1, %v11697_v50  ;;  %v11700_v62 = vadd.f32 %v20080_v44, %v11699_v47  ;;  %14681 = vmatmul.mubr.msk.bf16.gmra.mrb[80].mxu0 %vm4665_vm6, %v11848_v51  ;;  %vm11763_vm7 = vcmp.ge.f32.partialorder %v11697_v50, 0.0 }
 0x8a4   : > { %vm11766_vm4 = vcmp.ge.f32.partialorder %v11708_v13, 0.0  ;;  %v11798_v1 = vmul.f32 0.1, %v11708_v13  ;;  %v11829_v6 = vsel %vm11765_vm3, %v11705_v38, %v11797_v42 }
 0x8a5   : > { %vm11764_vm2 = vcmp.ge.f32.partialorder %v11700_v62, 0.0  ;;  %v11796_v35 = vmul.f32 0.1, %v11700_v62  ;;  %v11827_v63 = vsel %vm11763_vm7, %v11697_v50, %v11795_v23 }
 0x8a6   : > { %v11830_v21 = vsel %vm11766_vm4, %v11708_v13, %v11798_v1 }
 0x8a7   : > { %v11850_v45 = vpack.c.bf16 %v11830_v21, %v11829_v6  ;;  %v11828_v59 = vsel %vm11764_vm2, %v11700_v62, %v11796_v35  ;;  %v14654_v5 = vpop.f32.mrb[88].mxu1  ;;  %v20177_v21 = vld [vmem:[%s15688_s25 + $0x19] sm:$0xff] }
 0x8a8   : > { %v20116_v37 = vpop.f32.mrb[32].mxu0  ;;  %v11849_v26 = vpack.c.bf16 %v11828_v59, %v11827_v63  ;;  %v11721_v52 = vadd.f32 %v14654_v5, %v20080_v44  ;;  %v11712_v34 = vpop.f32.mrb[89].mxu1  ;;  %v20180_v63 = vld [vmem:[%s15688_s25 + $0x21] sm:$0xff] }
 0x8a9   : > { %v20118_v41 = vpop.f32.mrb[33].mxu0  ;;  %v11713_v25 = vadd.f32 %v20080_v44, %v11712_v34  ;;  %v14655_v43 = vpop.f32.mrb[90].mxu1 }
 0x8aa   : > { %v20121_v33 = vpop.f32.mrb[34].mxu0  ;;  %v11801_v0 = vmul.f32 0.1, %v11721_v52  ;;  %v11724_v9 = vadd.f32 %v14655_v43, %v20080_v44  ;;  %v11715_v28 = vpop.f32.mrb[91].mxu1  ;;  %14684 = vmatprep.mubr.msk.bf16.mxu0 %vm4665_vm6, %v11849_v26  ;;  %vm11769_vm8 = vcmp.ge.f32.partialorder %v11721_v52, 0.0  ;;  %v20189_v26 = vld [vmem:[%s15688_s25 + $0x31] sm:$0xff] }
 0x8ab   : > { %v20124_v4 = vpop.f32.mrb[35].mxu0  ;;  %v11799_v31 = vmul.f32 0.1, %v11713_v25  ;;  %v11716_v40 = vadd.f32 %v20080_v44, %v11715_v28  ;;  %14685 = vmatmul.mubr.msk.bf16.gmra.mrb[84].mxu0 %vm4665_vm6, %v11850_v45  ;;  %vm11767_vm12 = vcmp.ge.f32.partialorder %v11713_v25, 0.0 }
 0x8ac   : > { %vm11770_vm1 = vcmp.ge.f32.partialorder %v11724_v9, 0.0  ;;  %v11802_v36 = vmul.f32 0.1, %v11724_v9  ;;  %v11833_v3 = vsel %vm11769_vm8, %v11721_v52, %v11801_v0 }
 0x8ad   : > { %vm11768_vm5 = vcmp.ge.f32.partialorder %v11716_v40, 0.0  ;;  %v11800_v30 = vmul.f32 0.1, %v11716_v40  ;;  %v11831_v58 = vsel %vm11767_vm12, %v11713_v25, %v11799_v31  ;;  %v20194_v25 = vld [vmem:[%s15688_s25 + $0x39] sm:$0xff] }
 0x8ae   : > { %v11834_v49 = vsel %vm11770_vm1, %v11724_v9, %v11802_v36  ;;  %v20199_v9 = vld [vmem:[%s15688_s25 + $0x49] sm:$0xff] }
 0x8af   : > { %v11852_v7 = vpack.c.bf16 %v11834_v49, %v11833_v3  ;;  %v11832_v15 = vsel %vm11768_vm5, %v11716_v40, %v11800_v30  ;;  %v20204_v40 = vld [vmem:[%s15688_s25 + $0x51] sm:$0xff]  ;;  %v20209_v3 = vld [vmem:[%s15688_s25 + $0x61] sm:$0xff] }
 0x8b0   : > { %v14658_v54 = vpop.f32.mrb[92].mxu1  ;;  %v11851_v18 = vpack.c.bf16 %v11832_v15, %v11831_v58 }
 0x8b1   : > { %v20130_v60 = vpop.f32.mrb[36].mxu0  ;;  %v11737_v2 = vadd.f32 %v14658_v54, %v20080_v44  ;;  %v11728_v17 = vpop.f32.mrb[93].mxu1 }
 0x8b2   : > { %v20133_v27 = vpop.f32.mrb[37].mxu0  ;;  %v11729_v14 = vadd.f32 %v20080_v44, %v11728_v17  ;;  %v14659_v24 = vpop.f32.mrb[94].mxu1  ;;  %14688 = vmatprep.mubr.msk.bf16.mxu0 %vm4665_vm6, %v11851_v18  ;;  %v20219_v18 = vld [vmem:[%s15688_s25 + $0x79] sm:$0xff] }
 0x8b3   : > { %v20136_v55 = vpop.f32.mrb[38].mxu0  ;;  %v11805_v61 = vmul.f32 0.1, %v11737_v2  ;;  %v11740_v11 = vadd.f32 %v14659_v24, %v20080_v44  ;;  %v11731_v12 = vpop.f32.mrb[95].mxu1  ;;  %vm11773_vm9 = vcmp.ge.f32.partialorder %v11737_v2, 0.0  ;;  %14689 = vmatmul.mubr.msk.bf16.gmra.mrb[88].mxu0 %vm4665_vm6, %v11852_v7  ;;  %v20214_v7 = vld [vmem:[%s15688_s25 + $0x69] sm:$0xff] }
 0x8b4   : > { %v20140_v46 = vpop.f32.mrb[39].mxu0  ;;  %v11803_v56 = vmul.f32 0.1, %v11729_v14  ;;  %v11732_v22 = vadd.f32 %v20080_v44, %v11731_v12  ;;  %vm11771_vm10 = vcmp.ge.f32.partialorder %v11729_v14, 0.0 }
 0x8b5   : > { %vm11774_vm11 = vcmp.ge.f32.partialorder %v11740_v11, 0.0  ;;  %v11806_v48 = vmul.f32 0.1, %v11740_v11  ;;  %v11837_v20 = vsel %vm11773_vm9, %v11737_v2, %v11805_v61 }
 0x8b6   : > { %vm11772_vm13 = vcmp.ge.f32.partialorder %v11732_v22, 0.0  ;;  %v11804_v8 = vmul.f32 0.1, %v11732_v22  ;;  %v11835_v19 = vsel %vm11771_vm10, %v11729_v14, %v11803_v56  ;;  %v20224_v14 = vld [vmem:[%s15688_s25 + $0x81] sm:$0xff] }
 0x8b7   : > { %v11838_v39 = vsel %vm11774_vm11, %v11740_v11, %v11806_v48  ;;  %v20229_v11 = vld [vmem:[%s15688_s25 + $0x91] sm:$0xff] }
 0x8b8   : > { %v11854_v32 = vpack.c.bf16 %v11838_v39, %v11837_v20  ;;  %v11836_v51 = vsel %vm11772_vm13, %v11732_v22, %v11804_v8  ;;  %v20234_v22 = vld [vmem:[%s15688_s25 + $0x99] sm:$0xff]  ;;  %v20239_v20 = vld [vmem:[%s15688_s25 + $0xa9] sm:$0xff] }
 0x8b9   : > { %v20144_v57 = vpop.f32.mrb[40].mxu0  ;;  %v11853_v53 = vpack.c.bf16 %v11836_v51, %v11835_v19 }
 0x8ba   : > { %v20146_v16 = vpop.f32.mrb[41].mxu0 }
 0x8bb   : > { %v20148_v38 = vpop.f32.mrb[42].mxu0  ;;  %14692 = vmatprep.mubr.msk.bf16.mxu0 %vm4665_vm6, %v11853_v53 }
 0x8bc   : > { %v20151_v44 = vpop.f32.mrb[43].mxu0  ;;  %14693 = vmatmul.mubr.msk.bf16.gmra.mrb[92].mxu0 %vm4665_vm6, %v11854_v32  ;;  %vm21095_vm6 = vcmask 523264   ;;  %v20244_v32 = vld [vmem:[%s15688_s25 + $0xb1] sm:$0xff] }
 0x8bd   : > { %v4087_v59 = vsel %vm21095_vm6, %v20177_v21, 0.0  ;;  %vm21096_vm0 = vmmov %vm21095_vm6 }
 0x8be   : > { %v4088_v5 = vsel %vm21096_vm0, %v20180_v63, 0.0  ;;  %vm21097_vm15 = vmmov %vm21096_vm0 }
 0x8bf   : > { %v4089_v52 = vadd.f32 %v4088_v5, %v4087_v59  ;;  %v4090_v34 = vsel %vm21097_vm15, %v20189_v26, 0.0  ;;  %vm21098_vm14 = vmmov %vm21096_vm0  ;;  %v20249_v59 = vld [vmem:[%s15688_s25 + $0xc1] sm:$0xff] }
 0x8c0   : > { %v4092_v0 = vsel %vm21098_vm14, %v20194_v25, 0.0  ;;  %vm21099_vm3 = vmmov %vm21096_vm0 }
 0x8c1   : > { %v4091_v43 = vadd.f32 %v4090_v34, %v4089_v52  ;;  %v4094_v31 = vsel %vm21099_vm3, %v20199_v9, 0.0  ;;  %vm21100_vm7 = vmmov %vm21096_vm0  ;;  %v20254_v34 = vld [vmem:[%s15688_s25 + $0xc9] sm:$0xff] }
 0x8c2   : > { %v4096_v30 = vsel %vm21100_vm7, %v20204_v40, 0.0  ;;  %vm21101_vm4 = vmmov %vm21096_vm0 }
 0x8c3   : > { %v4093_v28 = vadd.f32 %v4092_v0, %v4091_v43  ;;  %v4098_v58 = vsel %vm21101_vm4, %v20209_v3, 0.0  ;;  %vm21102_vm2 = vmmov %vm21096_vm0 }
 0x8c4   : > { %v20154_v29 = vpop.f32.mrb[44].mxu0  ;;  %v4100_v54 = vsel %vm21102_vm2, %v20214_v7, 0.0  ;;  %vm21103_vm8 = vmmov %vm21096_vm0 }
 0x8c5   : > { %v20156_v50 = vpop.f32.mrb[45].mxu0  ;;  %v4095_v36 = vadd.f32 %v4094_v31, %v4093_v28  ;;  %v4102_v17 = vsel %vm21103_vm8, %v20219_v18, 0.0  ;;  %vm21104_vm12 = vmmov %vm21096_vm0  ;;  %v20259_v28 = vld [vmem:[%s15688_s25 + $0xd9] sm:$0xff] }
 0x8c6   : > { %v20158_v10 = vpop.f32.mrb[46].mxu0  ;;  %v4104_v61 = vsel %vm21104_vm12, %v20224_v14, 0.0  ;;  %vm21105_vm1 = vmmov %vm21096_vm0 }
 0x8c7   : > { %v20160_v42 = vpop.f32.mrb[47].mxu0  ;;  %v4097_v49 = vadd.f32 %v4096_v30, %v4095_v36  ;;  %v4106_v56 = vsel %vm21105_vm1, %v20229_v11, 0.0  ;;  %vm21106_vm5 = vmmov %vm21096_vm0 }
 0x8c8   : > { %v4108_v8 = vsel %vm21106_vm5, %v20234_v22, 0.0  ;;  %vm21107_vm9 = vmmov %vm21096_vm0 }
 0x8c9   : > { %v4099_v15 = vadd.f32 %v4098_v58, %v4097_v49  ;;  %v4110_v19 = vsel %vm21107_vm9, %v20239_v20, 0.0  ;;  %vm21108_vm10 = vmmov %vm21096_vm0  ;;  %v20268_v58 = vld [vmem:[%s15688_s25 + $0xe1] sm:$0xff] }
 0x8ca   : > { %v4112_v53 = vsel %vm21108_vm10, %v20244_v32, 0.0  ;;  %vm21109_vm11 = vmmov %vm21096_vm0 }
 0x8cb   : > { %v4101_v2 = vadd.f32 %v4100_v54, %v4099_v15  ;;  %v4114_v52 = vsel %vm21109_vm11, %v20249_v59, 0.0  ;;  %vm21110_vm13 = vmmov %vm21096_vm0 }
 0x8cc   : > { %v4116_v0 = vsel %vm21110_vm13, %v20254_v34, 0.0  ;;  %vm21112_vm6 = vmmov %vm21096_vm0 }
 0x8cd   : > { %v4103_v24 = vadd.f32 %v4102_v17, %v4101_v2  ;;  %v4118_v30 = vsel %vm21112_vm6, %v20259_v28, 0.0  ;;  %v4120_v2 = vsel %vm21096_vm0, %v20268_v58, 0.0  ;;  %vm21116_vm15 = vmmov %vm21096_vm0 }
 0x8ce   : > { %vm21117_vm14 = vmmov %vm21096_vm0 }
 0x8cf   : > { %v4105_v12 = vadd.f32 %v4104_v61, %v4103_v24  ;;  %v20277_v24 = vld [vmem:[%s15688_s25 + $0xf1] sm:$0xff]  ;;  %vm21118_vm3 = vmmov %vm21096_vm0 }
 0x8d0   : > { %vm21119_vm7 = vmmov %vm21096_vm0 }
 0x8d1   : > { %v4107_v48 = vadd.f32 %v4106_v56, %v4105_v12  ;;  %v4122_v12 = vsel %vm21116_vm15, %v20277_v24, 0.0  ;;  %v20282_v56 = vld [vmem:[%s15688_s25 + $0xf9] sm:$0xff]  ;;  %vm21120_vm4 = vmmov %vm21096_vm0 }
 0x8d2   : > { %vm21121_vm2 = vmmov %vm21096_vm0 }
 0x8d3   : > { %v4109_v39 = vadd.f32 %v4108_v8, %v4107_v48  ;;  %v4124_v8 = vsel %vm21117_vm14, %v20282_v56, 0.0  ;;  %vm21122_vm8 = vmmov %vm21096_vm0 }
 0x8d4   : > { %vm21123_vm12 = vmmov %vm21096_vm0 }
 0x8d5   : > { %v4111_v51 = vadd.f32 %v4110_v19, %v4109_v39  ;;  %v20287_v39 = vld [vmem:[%s15688_s25 + $0x109] sm:$0xff]  ;;  %vm21124_vm1 = vmmov %vm21096_vm0 }
 0x8d6   : > { %vm21125_vm5 = vmmov %vm21096_vm0 }
 0x8d7   : > { %v4113_v5 = vadd.f32 %v4112_v53, %v4111_v51  ;;  %v4126_v51 = vsel %vm21118_vm3, %v20287_v39, 0.0  ;;  %v20292_v53 = vld [vmem:[%s15688_s25 + $0x111] sm:$0xff]  ;;  %vm21126_vm9 = vmmov %vm21096_vm0 }
 0x8d8   : > { %vm21129_vm10 = vmmov %vm21096_vm0 }
 0x8d9   : > { %v4115_v43 = vadd.f32 %v4114_v52, %v4113_v5  ;;  %v4128_v52 = vsel %vm21119_vm7, %v20292_v53, 0.0  ;;  %vm21132_vm11 = vmmov %vm21096_vm0 }
 0x8da   : > { %vm21133_vm13 = vmmov %vm21096_vm0 }
 0x8db   : > { %v4117_v31 = vadd.f32 %v4116_v0, %v4115_v43  ;;  %v20297_v43 = vld [vmem:[%s15688_s25 + $0x121] sm:$0xff]  ;;  %vm21134_vm6 = vmmov %vm21096_vm0 }
 0x8dc   : > { %vm21135_vm15 = vmmov %vm21096_vm0 }
 0x8dd   : > { %v4119_v15 = vadd.f32 %v4118_v30, %v4117_v31  ;;  %v4130_v31 = vsel %vm21120_vm4, %v20297_v43, 0.0  ;;  %v20302_v30 = vld [vmem:[%s15688_s25 + $0x129] sm:$0xff]  ;;  %vm21136_vm14 = vmmov %vm21096_vm0 }
 0x8de   : > { %vm21137_vm3 = vmmov %vm21096_vm0 }
 0x8df   : > { %v4121_v61 = vadd.f32 %v4120_v2, %v4119_v15  ;;  %v4132_v2 = vsel %vm21121_vm2, %v20302_v30, 0.0  ;;  %vm21138_vm7 = vmmov %vm21096_vm0 }
 0x8e0   : > { %vm21139_vm4 = vmmov %vm21096_vm0 }
 0x8e1   : > { %v4123_v48 = vadd.f32 %v4122_v12, %v4121_v61  ;;  %v20307_v61 = vld [vmem:[%s15688_s25 + $0x139] sm:$0xff]  ;;  %vm21140_vm2 = vmmov %vm21096_vm0 }
 0x8e3   : > { %v4125_v19 = vadd.f32 %v4124_v8, %v4123_v48  ;;  %v4134_v48 = vsel %vm21122_vm8, %v20307_v61, 0.0  ;;  %v20312_v8 = vld [vmem:[%s15688_s25 + $0x141] sm:$0xff]  ;;  %vm21141_vm8 = vmmov %vm21096_vm0 }
 0x8e5   : > { %v4127_v5 = vadd.f32 %v4126_v51, %v4125_v19  ;;  %v4136_v51 = vsel %vm21123_vm12, %v20312_v8, 0.0  ;;  %vm21142_vm12 = vmmov %vm21096_vm0 }
 0x8e7   : > { %v20162_v13 = vpop.f32.mrb[48].mxu0  ;;  %v4129_v0 = vadd.f32 %v4128_v52, %v4127_v5  ;;  %v20317_v5 = vld [vmem:[%s15688_s25 + $0x151] sm:$0xff] }
 0x8e8   : > { %21087 = vst [vmem:[#allocation21_spill] sm:$0xff] %v20162_v13  ;;  %v20164_v47 = vpop.f32.mrb[49].mxu0 }
 0x8e9   : > { %21088 = vst [vmem:[#allocation22_spill] sm:$0xff] %v20164_v47  ;;  %v20166_v23 = vpop.f32.mrb[50].mxu0  ;;  %v4131_v15 = vadd.f32 %v4130_v31, %v4129_v0  ;;  %v4138_v0 = vsel %vm21124_vm1, %v20317_v5, 0.0  ;;  %v20322_v31 = vld [vmem:[%s15688_s25 + $0x159] sm:$0xff]  ;;  %vm21143_vm1 = vmmov %vm21096_vm0 }
 0x8ea   : > { %21089 = vst [vmem:[#allocation23_spill] sm:$0xff] %v20166_v23  ;;  %v20168_v62 = vpop.f32.mrb[51].mxu0 }
 0x8eb   : > { %21090 = vst [vmem:[#allocation25_spill] sm:$0xff] %v20168_v62  ;;  %v4133_v12 = vadd.f32 %v4132_v2, %v4131_v15  ;;  %v4140_v2 = vsel %vm21125_vm5, %v20322_v31, 0.0  ;;  %vm21144_vm5 = vmmov %vm21096_vm0 }
 0x8ed   : > { %v4135_v19 = vadd.f32 %v4134_v48, %v4133_v12 }
 0x8ef   : > { %v4137_v52 = vadd.f32 %v4136_v51, %v4135_v19 }
 0x8f1   : > { %v4139_v15 = vadd.f32 %v4138_v0, %v4137_v52  ;;  %v20343_v0 = vld [vmem:[%s15688_s25 + $0x181] sm:$0xff] }
 0x8f3   : > { %v4141_v12 = vadd.f32 %v4140_v2, %v4139_v15  ;;  %v4146_v15 = vsel %vm21132_vm11, %v20343_v0, 0.0  ;;  %v20350_v2 = vld [vmem:[%s15688_s25 + $0x189] sm:$0xff]  ;;  %vm21147_vm11 = vmmov %vm21096_vm0 }
 0x90a   : > { %v20170_v1 = vpop.f32.mrb[52].mxu0 }
 0x90b   : > { %21091 = vst [vmem:[#allocation24_spill] sm:$0xff] %v20170_v1  ;;  %v20172_v35 = vpop.f32.mrb[53].mxu0 }
 0x90c   : > { %21092 = vst [vmem:[#allocation26_spill] sm:$0xff] %v20172_v35  ;;  %v20174_v6 = vpop.f32.mrb[54].mxu0 }
 0x90d   : > { %21093 = vst [vmem:[#allocation27_spill] sm:$0xff] %v20174_v6  ;;  %v20182_v45 = vpop.f32.mrb[55].mxu0 }
 0x90e   : > { %21094 = vst [vmem:[#allocation28_spill] sm:$0xff] %v20182_v45 }
 0x92b   : > { %v20261_v36 = vpop.f32.mrb[56].mxu0 }
 0x92c   : > { %21111 = vst [vmem:[#allocation29_spill] sm:$0xff] %v20261_v36  ;;  %v20265_v49 = vpop.f32.mrb[57].mxu0 }
 0x92d   : > { %21113 = vst [vmem:[#allocation30_spill] sm:$0xff] %v20265_v49  ;;  %v20270_v54 = vpop.f32.mrb[58].mxu0 }
 0x92e   : > { %21114 = vst [vmem:[#allocation31_spill] sm:$0xff] %v20270_v54  ;;  %v20274_v17 = vpop.f32.mrb[59].mxu0  ;;  %v20334_v54 = vld [vmem:[%s15688_s25 + $0x171] sm:$0xff] }
 0x92f   : > { %21115 = vst [vmem:[#allocation32_spill] sm:$0xff] %v20274_v17  ;;  %v20327_v17 = vld [vmem:[%s15688_s25 + $0x169] sm:$0xff]  ;;  %v4144_v36 = vsel %vm21129_vm10, %v20334_v54, 0.0  ;;  %s15546_s25 = smov 64   ;;  %vm21146_vm10 = vmmov %vm21096_vm0 }
 0x930   : > { %v4142_v48 = vsel %vm21126_vm9, %v20327_v17, 0.0  ;;  %vm21145_vm9 = vmmov %vm21096_vm0 }
 0x931   : > { %v4143_v19 = vadd.f32 %v4142_v48, %v4141_v12  ;;  %v4148_v12 = vsel %vm21133_vm13, %v20350_v2, 0.0  ;;  %vm21148_vm13 = vmmov %vm21096_vm0 }
 0x933   : > { %v4145_v45 = vadd.f32 %v4144_v36, %v4143_v19  ;;  %v20357_v36 = vld [vmem:[%s20761_s12] ss:$0 sm:$0xff] }
 0x944   : > { %v20331_v49 = vpop.f32.mrb[60].mxu0 }
 0x945   : > { %21127 = vst [vmem:[#allocation33_spill] sm:$0xff] %v20331_v49  ;;  %v20336_v51 = vpop.f32.mrb[61].mxu0  ;;  %v4147_v49 = vadd.f32 %v4146_v15, %v4145_v45 }
 0x946   : > { %21128 = vst [vmem:[#allocation34_spill] sm:$0xff] %v20336_v51  ;;  %v20340_v52 = vpop.f32.mrb[62].mxu0 }
 0x947   : > { %21130 = vst [vmem:[#allocation35_spill] sm:$0xff] %v20340_v52  ;;  %v20345_v35 = vpop.f32.mrb[63].mxu0  ;;  %v4149_v48 = vadd.f32 %v4148_v12, %v4147_v49 }
 0x948   : > { %21131 = vst [vmem:[#allocation36_spill] sm:$0xff] %v20345_v35 }
 0x949   : > { %v4150_v51 = vrot.slane %v4149_v48, 4 }
 0x94b   : > { %v4151_v6 = vadd.f32 %v4150_v51, %v4149_v48 }
 0x94d   : > { %v4152_v1 = vrot.slane %v4151_v6, 2 }
 0x94f   : > { %v4153_v62 = vadd.f32 %v4152_v1, %v4151_v6 }
 0x951   : > { %v4154_v19 = vrot.slane %v4153_v62, 1 }
 0x953   : > { %v4155_v35 = vadd.f32 %v4154_v19, %v4153_v62 }
 0x955   : > { %v20361_v13 = vmul.f32 0.00390625, %v4155_v35 }
 0x956   : > { %v14666_v52 = vpop.f32.mrb[64].mxu0 }
 0x957   : > { %v11968_v47 = vadd.f32 %v14666_v52, %v20357_v36  ;;  %v11959_v23 = vpop.f32.mrb[65].mxu0  ;;  %v9061_v6 = vsub.f32 %v20177_v21, %v20361_v13  ;;  %v9062_v62 = vsub.f32 %v20180_v63, %v20361_v13  ;;  %v9064_v21 = vsub.f32 %v20194_v25, %v20361_v13 }
 0x958   : > { %v11960_v45 = vadd.f32 %v20357_v36, %v11959_v23  ;;  %v14667_v15 = vpop.f32.mrb[66].mxu0  ;;  %v9063_v23 = vsub.f32 %v20189_v26, %v20361_v13 }
 0x959   : > { %12122 = vrot.lane.b32.xlu1 %v11968_v47, %s15546_s25  ;;  %v11962_v1 = vpop.f32.mrb[67].mxu0  ;;  %v11971_v49 = vadd.f32 %v14667_v15, %v20357_v36  ;;  %v9093_v35 = vmul.f32 %v9061_v6, %v9061_v6  ;;  %v9094_v52 = vmul.f32 %v9062_v62, %v9062_v62  ;;  %v9096_v6 = vmul.f32 %v9064_v21, %v9064_v21 }
 0x95a   : > { %12118 = vrot.lane.b32.xlu0 %v11960_v45, %s15546_s25  ;;  %v11963_v51 = vadd.f32 %v20357_v36, %v11962_v1  ;;  %v9095_v12 = vmul.f32 %v9063_v23, %v9063_v23  ;;  %v9065_v1 = vsub.f32 %v20199_v9, %v20361_v13  ;;  %v9066_v23 = vsub.f32 %v20204_v40, %v20361_v13 }
 0x95b   : > { %v9125_v63 = vsel %vm21134_vm6, %v9093_v35, 0.0  ;;  %v9126_v48 = vsel %vm21096_vm0, %v9094_v52, 0.0  ;;  %v9130_v52 = vsel %vm21136_vm14, %v9096_v6, 0.0  ;;  %v9067_v21 = vsub.f32 %v20209_v3, %v20361_v13  ;;  %vm21149_vm6 = vmmov %vm21096_vm0 }
 0x95c   : > { %v9127_v15 = vadd.f32 %v9126_v48, %v9125_v63  ;;  %v9128_v62 = vsel %vm21135_vm15, %v9095_v12, 0.0  ;;  %v9097_v35 = vmul.f32 %v9065_v1, %v9065_v1  ;;  %v9098_v12 = vmul.f32 %v9066_v23, %v9066_v23  ;;  %vm21150_vm15 = vmmov %vm21096_vm0 }
 0x95d   : > { %12124 = vrot.lane.b32.xlu1 %v11971_v49, %s15546_s25  ;;  %v9068_v40 = vsub.f32 %v20214_v7, %v20361_v13  ;;  %vm21151_vm14 = vmmov %vm21096_vm0 }
 0x95e   : > { %v14670_v47 = vpop.f32.mrb[68].mxu0  ;;  %12120 = vrot.lane.b32.xlu0 %v11963_v51, %s15546_s25  ;;  %v9129_v25 = vadd.f32 %v9128_v62, %v9127_v15  ;;  %v9132_v63 = vsel %vm21137_vm3, %v9097_v35, 0.0  ;;  %v9134_v1 = vsel %vm21138_vm7, %v9098_v12, 0.0  ;;  %v9071_v12 = vsub.f32 %v20229_v11, %v20361_v13  ;;  %vm21152_vm3 = vmmov %vm21096_vm0 }
 0x95f   : > { %v11984_v19 = vadd.f32 %v14670_v47, %v20357_v36  ;;  %v11975_v45 = vpop.f32.mrb[69].mxu0  ;;  %vm21153_vm7 = vmmov %vm21096_vm0 }
 0x960   : > { %v14671_v26 = vpop.f32.mrb[70].mxu0  ;;  %v9131_v47 = vadd.f32 %v9130_v52, %v9129_v25  ;;  %v11976_v9 = vadd.f32 %v20357_v36, %v11975_v45  ;;  %v9070_v52 = vsub.f32 %v20224_v14, %v20361_v13  ;;  %v9072_v14 = vsub.f32 %v20234_v22, %v20361_v13 }
 0x961   : > { %v11987_v49 = vadd.f32 %v14671_v26, %v20357_v36  ;;  %v11978_v51 = vpop.f32.mrb[71].mxu0  ;;  %v9099_v26 = vmul.f32 %v9067_v21, %v9067_v21 }
 0x962   : > { %12130 = vrot.lane.b32.xlu0 %v11984_v19, %s15546_s25  ;;  %v11979_v48 = vadd.f32 %v20357_v36, %v11978_v51  ;;  %v9133_v19 = vadd.f32 %v9132_v63, %v9131_v47  ;;  %v9100_v51 = vmul.f32 %v9068_v40, %v9068_v40  ;;  %v9102_v63 = vmul.f32 %v9070_v52, %v9070_v52 }
 0x963   : > { %12132 = vrot.lane.b32.xlu1 %v11987_v49, %s15546_s25  ;;  %v9069_v49 = vsub.f32 %v20219_v18, %v20361_v13  ;;  %v9136_v25 = vsel %vm21139_vm4, %v9099_v26, 0.0  ;;  %v9103_v26 = vmul.f32 %v9071_v12, %v9071_v12  ;;  %vm21154_vm4 = vmmov %vm21096_vm0 }
 0x964   : > { %v9135_v3 = vadd.f32 %v9134_v1, %v9133_v19  ;;  %v9142_v1 = vsel %vm21142_vm12, %v9102_v63, 0.0  ;;  %vm21157_vm12 = vmmov %vm21096_vm0 }
 0x965   : > { %v9101_v47 = vmul.f32 %v9069_v49, %v9069_v49  ;;  %v9104_v49 = vmul.f32 %v9072_v14, %v9072_v14 }
 0x966   : > { %v14674_v15 = vpop.f32.mrb[72].mxu0  ;;  %12126 = vrot.lane.b32.xlu0 %v11976_v9, %s15546_s25  ;;  %v9137_v7 = vadd.f32 %v9136_v25, %v9135_v3  ;;  %v9138_v9 = vsel %vm21140_vm2, %v9100_v51, 0.0  ;;  %v9144_v51 = vsel %vm21143_vm1, %v9103_v26, 0.0  ;;  %vm21155_vm2 = vmmov %vm21096_vm0 }
 0x967   : > { %v12000_v45 = vadd.f32 %v14674_v15, %v20357_v36  ;;  %v11991_v6 = vpop.f32.mrb[73].mxu0  ;;  %12128 = vrot.lane.b32.xlu1 %v11979_v48, %s15546_s25  ;;  %v9140_v48 = vsel %vm21141_vm8, %v9101_v47, 0.0  ;;  %v9146_v52 = vsel %vm21144_vm5, %v9104_v49, 0.0  ;;  %vm21156_vm8 = vmmov %vm21096_vm0 }
 0x968   : > { %v14675_v62 = vpop.f32.mrb[74].mxu0  ;;  %v9139_v21 = vadd.f32 %v9138_v9, %v9137_v7  ;;  %v11992_v18 = vadd.f32 %v20357_v36, %v11991_v6  ;;  %v9075_v9 = vsub.f32 %v20249_v59, %v20361_v13  ;;  %vm21158_vm1 = vmmov %vm21096_vm0 }
 0x969   : > { %v12003_v23 = vadd.f32 %v14675_v62, %v20357_v36  ;;  %v11994_v35 = vpop.f32.mrb[75].mxu0  ;;  %v9073_v62 = vsub.f32 %v20239_v20, %v20361_v13  ;;  %vm21159_vm5 = vmmov %vm21096_vm0 }
 0x96a   : > { %12138 = vrot.lane.b32.xlu0 %v12000_v45, %s15546_s25  ;;  %v11995_v19 = vadd.f32 %v20357_v36, %v11994_v35  ;;  %v9141_v15 = vadd.f32 %v9140_v48, %v9139_v21  ;;  %v9074_v35 = vsub.f32 %v20244_v32, %v20361_v13  ;;  %v9076_v32 = vsub.f32 %v20254_v34, %v20361_v13 }
 0x96b   : > { %12140 = vrot.lane.b32.xlu1 %v12003_v23, %s15546_s25  ;;  %v9105_v7 = vmul.f32 %v9073_v62, %v9073_v62  ;;  %v9078_v62 = vsub.f32 %v20268_v58, %v20361_v13  ;;  %v9080_v58 = vsub.f32 %v20282_v56, %v20361_v13 }
 0x96c   : > { %v9143_v11 = vadd.f32 %v9142_v1, %v9141_v15  ;;  %v9106_v21 = vmul.f32 %v9074_v35, %v9074_v35  ;;  %v9077_v1 = vsub.f32 %v20259_v28, %v20361_v13 }
 0x96e   : > { %v14678_v40 = vpop.f32.mrb[76].mxu0  ;;  %12134 = vrot.lane.b32.xlu0 %v11992_v18, %s15546_s25  ;;  %v9145_v22 = vadd.f32 %v9144_v51, %v9143_v11  ;;  %v9148_v18 = vsel %vm21145_vm9, %v9105_v7, 0.0  ;;  %v9150_v15 = vsel %vm21146_vm10, %v9106_v21, 0.0  ;;  %v9109_v49 = vmul.f32 %v9077_v1, %v9077_v1  ;;  %vm21160_vm9 = vmmov %vm21096_vm0 }
 0x96f   : > { %v12016_v45 = vadd.f32 %v14678_v40, %v20357_v36  ;;  %v12007_v6 = vpop.f32.mrb[77].mxu0  ;;  %12136 = vrot.lane.b32.xlu1 %v11995_v19, %s15546_s25  ;;  %v9107_v19 = vmul.f32 %v9075_v9, %v9075_v9  ;;  %v9083_v1 = vsub.f32 %v20297_v43, %v20361_v13  ;;  %vm9204_vm10 = vcmask 516096  }
 0x970   : > { %v14679_v3 = vpop.f32.mrb[78].mxu0  ;;  %v9147_v47 = vadd.f32 %v9146_v52, %v9145_v22  ;;  %v12008_v20 = vadd.f32 %v20357_v36, %v12007_v6  ;;  %v9110_v22 = vmul.f32 %v9078_v62, %v9078_v62  ;;  %v9156_v35 = vsel %vm21149_vm6, %v9109_v49, 0.0  ;;  %9205 = vst.msk [vmem:[%s20519_s27] sm:$0x1] %vm9204_vm10, %v20361_v13  ;;  %vm21163_vm6 = vmmov %vm21096_vm0 }
 0x971   : > { %v12019_v25 = vadd.f32 %v14679_v3, %v20357_v36  ;;  %v12010_v23 = vpop.f32.mrb[79].mxu0  ;;  %v9152_v6 = vsel %vm21147_vm11, %v9107_v19, 0.0  ;;  %v9115_v62 = vmul.f32 %v9083_v1, %v9083_v1  ;;  %vm21161_vm11 = vmmov %vm21096_vm0 }
 0x972   : > { %12146 = vrot.lane.b32.xlu0 %v12016_v45, %s15546_s25  ;;  %v12011_v12 = vadd.f32 %v20357_v36, %v12010_v23  ;;  %v9149_v63 = vadd.f32 %v9148_v18, %v9147_v47  ;;  %v9108_v45 = vmul.f32 %v9076_v32, %v9076_v32  ;;  %v9079_v23 = vsub.f32 %v20277_v24, %v20361_v13 }
 0x973   : > { %12148 = vrot.lane.b32.xlu1 %v12019_v25, %s15546_s25  ;;  %v9158_v9 = vsel %vm21096_vm0, %v9110_v22, 0.0 }
 0x974   : > { %v9151_v59 = vadd.f32 %v9150_v15, %v9149_v63  ;;  %v9154_v51 = vsel %vm21148_vm13, %v9108_v45, 0.0  ;;  %v9081_v63 = vsub.f32 %v20287_v39, %v20361_v13  ;;  %vm21162_vm13 = vmmov %vm21096_vm0 }
 0x976   : > { %v14682_v48 = vpop.f32.mrb[80].mxu0  ;;  %12142 = vrot.lane.b32.xlu0 %v12008_v20, %s15546_s25  ;;  %v9153_v34 = vadd.f32 %v9152_v6, %v9151_v59  ;;  %v9111_v20 = vmul.f32 %v9079_v23, %v9079_v23  ;;  %v9085_v23 = vsub.f32 %v20307_v61, %v20361_v13 }
 0x977   : > { %v12032_v40 = vadd.f32 %v14682_v48, %v20357_v36  ;;  %v12023_v14 = vpop.f32.mrb[81].mxu0  ;;  %12144 = vrot.lane.b32.xlu1 %v12011_v12, %s15546_s25  ;;  %v9112_v48 = vmul.f32 %v9080_v58, %v9080_v58 }
 0x978   : > { %v14683_v26 = vpop.f32.mrb[82].mxu0  ;;  %v9155_v25 = vadd.f32 %v9154_v51, %v9153_v34  ;;  %v12024_v28 = vadd.f32 %v20357_v36, %v12023_v14  ;;  %v9160_v32 = vsel %vm21150_vm15, %v9111_v20, 0.0  ;;  %v9113_v14 = vmul.f32 %v9081_v63, %v9081_v63 }
 0x979   : > { %v12035_v11 = vadd.f32 %v14683_v26, %v20357_v36  ;;  %v12026_v3 = vpop.f32.mrb[83].mxu0  ;;  %v9162_v59 = vsel %vm21151_vm14, %v9112_v48, 0.0  ;;  %v9117_v58 = vmul.f32 %v9085_v23, %v9085_v23  ;;  %v9088_v63 = vsub.f32 %v20322_v31, %v20361_v13 }
 0x97a   : > { %12154 = vrot.lane.b32.xlu0 %v12032_v40, %s15546_s25  ;;  %v12027_v7 = vadd.f32 %v20357_v36, %v12026_v3  ;;  %v9157_v52 = vadd.f32 %v9156_v35, %v9155_v25  ;;  %v9082_v40 = vsub.f32 %v20292_v53, %v20361_v13  ;;  %v9164_v6 = vsel %vm21152_vm3, %v9113_v14, 0.0 }
 0x97b   : > { %12156 = vrot.lane.b32.xlu1 %v12035_v11, %s15546_s25  ;;  %v9084_v53 = vsub.f32 %v20302_v30, %v20361_v13  ;;  %v9168_v35 = vsel %vm21154_vm4, %v9115_v62, 0.0  ;;  %v9090_v48 = vsub.f32 %v20334_v54, %v20361_v13  ;;  %v9120_v31 = vmul.f32 %v9088_v63, %v9088_v63 }
 0x97c   : > { %v9159_v24 = vadd.f32 %v9158_v9, %v9157_v52  ;;  %v9114_v45 = vmul.f32 %v9082_v40, %v9082_v40 }
 0x97d   : > { %v9116_v22 = vmul.f32 %v9084_v53, %v9084_v53  ;;  %v9122_v1 = vmul.f32 %v9090_v48, %v9090_v48 }
 0x97e   : > { %v14686_v47 = vpop.f32.mrb[84].mxu0  ;;  %12150 = vrot.lane.b32.xlu0 %v12024_v28, %s15546_s25  ;;  %v9161_v56 = vadd.f32 %v9160_v32, %v9159_v24  ;;  %v9166_v49 = vsel %vm21153_vm7, %v9114_v45, 0.0  ;;  %v9172_v24 = vsel %vm21156_vm8, %v9117_v58, 0.0 }
 0x97f   : > { %v12048_v21 = vadd.f32 %v14686_v47, %v20357_v36  ;;  %v12039_v18 = vpop.f32.mrb[85].mxu0  ;;  %12152 = vrot.lane.b32.xlu1 %v12027_v7, %s15546_s25  ;;  %v9086_v47 = vsub.f32 %v20312_v8, %v20361_v13  ;;  %v9170_v20 = vsel %vm21155_vm2, %v9116_v22, 0.0  ;;  %v9089_v8 = vsub.f32 %v20327_v17, %v20361_v13 }
 0x980   : > { %v14687_v12 = vpop.f32.mrb[86].mxu0  ;;  %v9163_v26 = vadd.f32 %v9162_v59, %v9161_v56  ;;  %v12040_v39 = vadd.f32 %v20357_v36, %v12039_v18  ;;  %v9091_v17 = vsub.f32 %v20343_v0, %v20361_v13 }
 0x981   : > { %v12051_v19 = vadd.f32 %v14687_v12, %v20357_v36  ;;  %v12042_v15 = vpop.f32.mrb[87].mxu0  ;;  %v9118_v18 = vmul.f32 %v9086_v47, %v9086_v47  ;;  %v9121_v40 = vmul.f32 %v9089_v8, %v9089_v8 }
 0x982   : > { %12162 = vrot.lane.b32.xlu0 %v12048_v21, %s15546_s25  ;;  %v12043_v11 = vadd.f32 %v20357_v36, %v12042_v15  ;;  %v9165_v3 = vadd.f32 %v9164_v6, %v9163_v26  ;;  %v9087_v21 = vsub.f32 %v20317_v5, %v20361_v13  ;;  %v9178_v6 = vsel %vm21159_vm5, %v9120_v31, 0.0 }
 0x983   : > { %12164 = vrot.lane.b32.xlu1 %v12051_v19, %s15546_s25  ;;  %v9174_v15 = vsel %vm21157_vm12, %v9118_v18, 0.0 }
 0x984   : > { %v9167_v43 = vadd.f32 %v9166_v49, %v9165_v3  ;;  %v9119_v5 = vmul.f32 %v9087_v21, %v9087_v21  ;;  %v9123_v3 = vmul.f32 %v9091_v17, %v9091_v17  ;;  %v9182_v49 = vsel %vm21161_vm11, %v9122_v1, 0.0 }
 0x986   : > { %v14690_v34 = vpop.f32.mrb[88].mxu0  ;;  %12158 = vrot.lane.b32.xlu0 %v12040_v39, %s15546_s25  ;;  %v9169_v30 = vadd.f32 %v9168_v35, %v9167_v43  ;;  %v9092_v39 = vsub.f32 %v20350_v2, %v20361_v13  ;;  %v9176_v45 = vsel %vm21158_vm1, %v9119_v5, 0.0  ;;  %v9184_v43 = vsel %vm21162_vm13, %v9123_v3, 0.0 }
 0x987   : > { %v12064_v51 = vadd.f32 %v14690_v34, %v20357_v36  ;;  %v12055_v25 = vpop.f32.mrb[89].mxu0  ;;  %12160 = vrot.lane.b32.xlu1 %v12043_v11, %s15546_s25  ;;  %v9180_v34 = vsel %vm21160_vm9, %v9121_v40, 0.0 }
 0x988   : > { %v14691_v28 = vpop.f32.mrb[90].mxu0  ;;  %v9171_v9 = vadd.f32 %v9170_v20, %v9169_v30  ;;  %v12056_v61 = vadd.f32 %v20357_v36, %v12055_v25  ;;  %v9124_v2 = vmul.f32 %v9092_v39, %v9092_v39 }
 0x989   : > { %v12067_v7 = vadd.f32 %v14691_v28, %v20357_v36  ;;  %v12058_v52 = vpop.f32.mrb[91].mxu0 }
 0x98a   : > { %12170 = vrot.lane.b32.xlu0 %v12064_v51, %s15546_s25  ;;  %v12059_v12 = vadd.f32 %v20357_v36, %v12058_v52  ;;  %v9173_v19 = vadd.f32 %v9172_v24, %v9171_v9  ;;  %v9186_v23 = vsel %vm21163_vm6, %v9124_v2, 0.0 }
 0x98b   : > { %12172 = vrot.lane.b32.xlu1 %v12067_v7, %s15546_s25 }
 0x98c   : > { %v9175_v59 = vadd.f32 %v9174_v15, %v9173_v19 }
 0x98e   : > { %12166 = vrot.lane.b32.xlu0 %v12056_v61, %s15546_s25  ;;  %v9177_v0 = vadd.f32 %v9176_v45, %v9175_v59 }
 0x98f   : > { %v14694_v32 = vpop.f32.mrb[92].mxu0  ;;  %12168 = vrot.lane.b32.xlu1 %v12059_v12, %s15546_s25 }
 0x990   : > { %v12071_v56 = vpop.f32.mrb[93].mxu0  ;;  %v12080_v53 = vadd.f32 %v14694_v32, %v20357_v36  ;;  %v9179_v62 = vadd.f32 %v9178_v6, %v9177_v0 }
 0x991   : > { %v12072_v54 = vadd.f32 %v20357_v36, %v12071_v56  ;;  %v14695_v14 = vpop.f32.mrb[94].mxu0 }
 0x992   : > { %v12074_v26 = vpop.f32.mrb[95].mxu0  ;;  %v12083_v51 = vadd.f32 %v14695_v14, %v20357_v36  ;;  %v9181_v25 = vadd.f32 %v9180_v34, %v9179_v62 }
 0x993   : > { %v12075_v11 = vadd.f32 %v20357_v36, %v12074_v26  ;;  %12174 = vrot.lane.b32.xlu0 %v12072_v54, %s15546_s25 }
 0x994   : > { %v9183_v28 = vadd.f32 %v9182_v49, %v9181_v25 }
 0x995   : > { %12176 = vrot.lane.b32.xlu1 %v12075_v11, %s15546_s25 }
 0x996   : > { %v9185_v22 = vadd.f32 %v9184_v43, %v9183_v28 }
 0x997   : > { %12178 = vrot.lane.b32.xlu0 %v12080_v53, %s15546_s25 }
 0x998   : > { %v9187_v35 = vadd.f32 %v9186_v23, %v9185_v22 }
 0x999   : > { %12180 = vrot.lane.b32.xlu1 %v12083_v51, %s15546_s25  ;;  %s15449_s25 = scalar_lea.vmem %s20537_s19, 32 }
 0x99a   : > { %v9188_v13 = vrot.slane %v9187_v35, 4  ;;  %p15450_p11 = scmp.ne.s32.totalorder %s20537_s19, %s15449_s25  ;;  %p15457_p1 = scmp.lt.s32.totalorder %s15455_s22, %s15449_s25 }
 0x99c   : > { %v9189_v7 = vadd.f32 %v9188_v13, %v9187_v35  ;;  %p15451_p12 = pnand %p15450_p11, %p15664_p5  ;;  %p15458_p2 = por %p15457_p1, %p15456_p0 }
 0x99e   : > { %v9190_v52 = vrot.slane %v9189_v7, 2  ;;  %p15452_p13 = pneg %p15451_p12 }
 0x9a0   : > { %v9191_v30 = vadd.f32 %v9190_v52, %v9189_v7  ;;  %p15459_p3 = pnand %p15458_p2, %p15452_p13 }
 0x9a2   : > { %v9192_v47 = vrot.slane %v9191_v30, 1 }
 0x9a4   : > { %v9193_v36 = vadd.f32 %v9192_v47, %v9191_v30 }
 0x9a6   : > { %v9195_v58 = vmul.f32 0.003921569, %v9193_v36 }
 0x9a8   : > { %v9196_v20 = vadd.f32 1e-05, %v9195_v58 }
 0x9aa   : > { %15424 = vrsqrt.f32 %v9196_v20  ;;  %vm9199_vm0 = vcmp.eq.f32.partialorder %v9196_v20, inf  ;;  %v9202_v61 = vand.u32 2147483648, %v9196_v20  ;;  %vm9201_vm15 = vcmp.eq.f32.partialorder %v9196_v20, 0.0 }
 0x9b4   : > { %v15425_v9 = vpop.eup %15424 }
 0x9b5   : > { %v9198_v21 = vmul.f32 %v15425_v9, %v9196_v20 }
 0x9b7   : > { %v9200_v18 = vsel %vm9199_vm0, %v9196_v20, %v9198_v21 }
 0x9b8   : > { %v9203_v24 = vsel %vm9201_vm15, %v9202_v61, %v9200_v18 }
 0x9b9   : > { %9206 = vst.msk [vmem:[%s20519_s27 + $0x1] sm:$0x1] %vm9204_vm10, %v9203_v24 }
 0x9ba   : > { %15462 = shalt.err (!%p15459_p3)
}
 0x9bb   : > { %s15463_s27 = scalar_lea.hbm %s20535_s18, 32  ;;  %s15467_s26 = scalar_lea.hbm %s20763_s14, 64 }
 0x9bc   : > { %p15464_p4 = scmp.ne.s32.totalorder %s20535_s18, %s15463_s27  ;;  %p15468_p9 = scmp.lt.u32.totalorder %s20535_s18, %s20763_s14 }
 0x9bd   : > { %p15469_p10 = scmp.lt.u32.totalorder %s15467_s26, %s15463_s27  ;;  %p15471_p12 = scmp.lt.u32.totalorder %s15463_s27, %s20535_s18 }
 0x9be   : > { %p15465_p7 = pnand %p15464_p4, %p15664_p5 }
 0x9bf   : > { %p15470_p11 = por %p15469_p10, %p15468_p9 }
 0x9c0   : > { %p15466_p8 = pneg %p15465_p7 }
 0x9c1   : > { %p15472_p13 = por %p15471_p12, %p15470_p11 }
 0x9c3   : > { %p15473_p0 = pnand %p15472_p13, %p15466_p8 }
 0x9c5   : > { %15476 = shalt.err (!%p15473_p0)
}
 0x9c6   : > { %15210 = dma.vmem_to_hbm [thread:$0]  (%p15664_p5), %s20537_s19, 32, %s20535_s18, %s12286_s20   ;;  %v20566_v12 = vld [vmem:[%s20757_s8] ss:$0 sm:$0xff]  ;;  %vm21164_vm14 = vmmov %vm21158_vm1  ;;  %v21179_v13 = vld [vmem:[#allocation21_spill] sm:$0xff] }
 0x9c7   : > { %s12415_s15 = sshll.u32 %s20502_s21, 8  ;;  %v11378_v63 = vadd.f32 %v20116_v37, %v20566_v12  ;;  %v11370_v8 = vadd.f32 %v20566_v12, %v20118_v41  ;;  %vm21165_vm3 = vmmov %vm21158_vm1  ;;  %v11381_v37 = vadd.f32 %v20121_v33, %v20566_v12  ;;  %v11373_v41 = vadd.f32 %v20566_v12, %v20124_v4  ;;  %v21180_v52 = vld [vmem:[#allocation23_spill] sm:$0xff]  ;;  %v21183_v58 = vld [vmem:[#allocation22_spill] sm:$0xff]  ;;  %s13453_s19 = sshll.u32 %s15647_s17, 12 }
 0x9c8   : > { %s20574_s1 = scalar_lea.vmem [#allocation4], %s12415_s15  ;;  %vm21166_vm7 = vmmov %vm21158_vm1  ;;  %v11394_v40 = vadd.f32 %v20130_v60, %v20566_v12  ;;  %v11397_v33 = vadd.f32 %v20136_v55, %v20566_v12  ;;  %v11386_v26 = vadd.f32 %v20566_v12, %v20133_v27  ;;  %v11389_v60 = vadd.f32 %v20566_v12, %v20140_v46  ;;  %v21184_v9 = vld [vmem:[#allocation25_spill] sm:$0xff]  ;;  %s20701_s28 = scalar_lea.hbm %s20762_s13, %s13453_s19 }
 0x9c9   : > { %vm21167_vm4 = vmmov %vm21158_vm1  ;;  %v11410_v6 = vadd.f32 %v20144_v57, %v20566_v12  ;;  %v11413_v27 = vadd.f32 %v20148_v38, %v20566_v12  ;;  %v11402_v34 = vadd.f32 %v20566_v12, %v20146_v16  ;;  %v11405_v57 = vadd.f32 %v20566_v12, %v20151_v44  ;;  %s12299_s18 = sshll.u32 %s20574_s1, 4  ;;  %s12281_s17 = scalar_lea.sflag [#allocation5], %s20502_s21  ;;  %s20703_s18 = int_to_ptr.vmem [resolvable:$true] %s12299_s18 }
 0x9ca   : > { %vm21168_vm2 = vmmov %vm21158_vm1  ;;  %v11426_v49 = vadd.f32 %v20154_v29, %v20566_v12  ;;  %v11429_v16 = vadd.f32 %v20158_v10, %v20566_v12  ;;  %v11418_v28 = vadd.f32 %v20566_v12, %v20156_v50  ;;  %v11421_v29 = vadd.f32 %v20566_v12, %v20160_v42  ;;  %s15477_s26 = scalar_lea.vmem %s20703_s18, 4096  ;;  %s15548_s0 = smov [#allocation4]  }
 0x9cb   : > { %v12123_v48 = vpop.permute.xlu1 %12122  ;;  %vm21169_vm8 = vmmov %vm21158_vm1  ;;  %v11442_v7 = vadd.f32 %v21179_v13, %v20566_v12  ;;  %v11445_v50 = vadd.f32 %v21180_v52, %v20566_v12  ;;  %v11434_v20 = vadd.f32 %v20566_v12, %v21183_v58  ;;  %v11437_v61 = vadd.f32 %v20566_v12, %v21184_v9  ;;  %p15478_p1 = scmp.ne.s32.totalorder %s20703_s18, %s15477_s26  ;;  %s15481_s25 = sshll.u32 %s15548_s0, 4  ;;  %s15482_s25 = int_to_ptr.vmem [resolvable:$false] %s15481_s25 }
 0x9cc   : > { %v12216_v32 = vsel %vm21164_vm14, %v11378_v63, %v12123_v48  ;;  %v12119_v5 = vpop.permute.xlu0 %12118  ;;  %vm21170_vm12 = vmmov %vm21158_vm1  ;;  %s15483_s22 = scalar_lea.vmem %s15482_s25, 8192  ;;  %p15484_p4 = scmp.lt.s32.totalorder %s20703_s18, %s15482_s25 }
 0x9cd   : > { %12250 = vst [vmem:[%s20574_s1 + $0x10] sm:$0xff] %v12216_v32  ;;  %v12214_v19 = vsel %vm21165_vm3, %v11370_v8, %v12119_v5  ;;  %vm21171_vm5 = vmmov %vm21158_vm1  ;;  %v21187_v8 = vld [vmem:[#allocation24_spill] sm:$0xff]  ;;  %v21188_v32 = vld [vmem:[#allocation27_spill] sm:$0xff]  ;;  %p15479_p2 = pnand %p15478_p1, %p15664_p5  ;;  %p15485_p7 = scmp.lt.s32.totalorder %s15483_s22, %s15477_s26 }
 0x9ce   : > { %12248 = vst [vmem:[%s20574_s1] sm:$0xff] %v12214_v19  ;;  %vm21172_vm9 = vmmov %vm21158_vm1  ;;  %v11458_v48 = vadd.f32 %v21187_v8, %v20566_v12  ;;  %v11461_v5 = vadd.f32 %v21188_v32, %v20566_v12 }
 0x9cf   : > { %v12125_v15 = vpop.permute.xlu1 %12124  ;;  %vm21173_vm10 = vmmov %vm21158_vm1  ;;  %p15480_p3 = pneg %p15479_p2  ;;  %p15486_p8 = por %p15485_p7, %p15484_p4 }
 0x9d0   : > { %v12217_v56 = vsel %vm21166_vm7, %v11381_v37, %v12125_v15  ;;  %v12121_v17 = vpop.permute.xlu0 %12120  ;;  %vm21174_vm11 = vmmov %vm21158_vm1 }
 0x9d1   : > { %12251 = vst [vmem:[%s20574_s1 + $0x18] sm:$0xff] %v12217_v56  ;;  %v12215_v31 = vsel %vm21167_vm4, %v11373_v41, %v12121_v17  ;;  %vm21175_vm13 = vmmov %vm21158_vm1  ;;  %v21191_v56 = vld [vmem:[#allocation26_spill] sm:$0xff]  ;;  %p15487_p9 = pnand %p15486_p8, %p15480_p3 }
 0x9d2   : > { %12249 = vst [vmem:[%s20574_s1 + $0x8] sm:$0xff] %v12215_v31  ;;  %vm21176_vm6 = vmmov %vm21158_vm1  ;;  %v11450_v17 = vadd.f32 %v20566_v12, %v21191_v56  ;;  %v21192_v31 = vld [vmem:[#allocation28_spill] sm:$0xff] }
 0x9d3   : > { %vm21177_vm0 = vmmov %vm21158_vm1 }
 0x9d4   : > { %v12131_v54 = vpop.permute.xlu0 %12130  ;;  %vm21178_vm15 = vmmov %vm21177_vm0 }
 0x9d5   : > { %v12220_v14 = vsel %vm21168_vm2, %v11394_v40, %v12131_v54  ;;  %v12133_v4 = vpop.permute.xlu1 %12132  ;;  %vm21181_vm14 = vmmov %vm21177_vm0  ;;  %v11453_v40 = vadd.f32 %v20566_v12, %v21192_v31 }
 0x9d6   : > { %12254 = vst [vmem:[%s20574_s1 + $0x30] sm:$0xff] %v12220_v14  ;;  %v12221_v59 = vsel %vm21169_vm8, %v11397_v33, %v12133_v4  ;;  %vm21182_vm3 = vmmov %vm21177_vm0 }
 0x9d7   : > { %12255 = vst [vmem:[%s20574_s1 + $0x38] sm:$0xff] %v12221_v59  ;;  %vm21185_vm7 = vmmov %vm21177_vm0  ;;  %v21195_v59 = vld [vmem:[#allocation29_spill] sm:$0xff] }
 0x9d8   : > { %v12127_v39 = vpop.permute.xlu0 %12126  ;;  %vm21186_vm4 = vmmov %vm21177_vm0 }
 0x9d9   : > { %v12218_v1 = vsel %vm21170_vm12, %v11386_v26, %v12127_v39  ;;  %v12129_v55 = vpop.permute.xlu1 %12128  ;;  %vm21189_vm2 = vmmov %vm21177_vm0  ;;  %v11474_v26 = vadd.f32 %v21195_v59, %v20566_v12 }
 0x9da   : > { %12252 = vst [vmem:[%s20574_s1 + $0x20] sm:$0xff] %v12218_v1  ;;  %v12219_v45 = vsel %vm21158_vm1, %v11389_v60, %v12129_v55  ;;  %vm21190_vm8 = vmmov %vm21177_vm0  ;;  %v21196_v60 = vld [vmem:[#allocation31_spill] sm:$0xff] }
 0x9db   : > { %12253 = vst [vmem:[%s20574_s1 + $0x28] sm:$0xff] %v12219_v45  ;;  %vm21193_vm12 = vmmov %vm21177_vm0  ;;  %v11477_v39 = vadd.f32 %v21196_v60, %v20566_v12 }
 0x9dc   : > { %v12139_v11 = vpop.permute.xlu0 %12138  ;;  %vm21194_vm1 = vmmov %vm21177_vm0 }
 0x9dd   : > { %v12224_v0 = vsel %vm21171_vm5, %v11410_v6, %v12139_v11  ;;  %v12141_v46 = vpop.permute.xlu1 %12140  ;;  %vm21197_vm5 = vmmov %vm21177_vm0 }
 0x9de   : > { %12258 = vst [vmem:[%s20574_s1 + $0x50] sm:$0xff] %v12224_v0  ;;  %v12225_v3 = vsel %vm21172_vm9, %v11413_v27, %v12141_v46  ;;  %vm21198_vm9 = vmmov %vm21177_vm0  ;;  %v21199_v27 = vld [vmem:[#allocation30_spill] sm:$0xff]  ;;  %v21200_v0 = vld [vmem:[#allocation32_spill] sm:$0xff] }
 0x9df   : > { %12259 = vst [vmem:[%s20574_s1 + $0x58] sm:$0xff] %v12225_v3  ;;  %v11466_v11 = vadd.f32 %v20566_v12, %v21199_v27  ;;  %v11469_v46 = vadd.f32 %v20566_v12, %v21200_v0 }
 0x9e0   : > { %v12135_v53 = vpop.permute.xlu0 %12134 }
 0x9e1   : > { %v12222_v62 = vsel %vm21173_vm10, %v11402_v34, %v12135_v53  ;;  %v12137_v38 = vpop.permute.xlu1 %12136  ;;  %vm21201_vm10 = vmmov %vm21177_vm0 }
 0x9e2   : > { %12256 = vst [vmem:[%s20574_s1 + $0x40] sm:$0xff] %v12222_v62  ;;  %v12223_v2 = vsel %vm21174_vm11, %v11405_v57, %v12137_v38  ;;  %vm21202_vm11 = vmmov %vm21177_vm0  ;;  %v21203_v62 = vld [vmem:[#allocation34_spill] sm:$0xff] }
 0x9e3   : > { %12257 = vst [vmem:[%s20574_s1 + $0x48] sm:$0xff] %v12223_v2  ;;  %v11482_v38 = vadd.f32 %v20566_v12, %v21203_v62 }
 0x9e4   : > { %v12147_v51 = vpop.permute.xlu0 %12146 }
 0x9e5   : > { %v12228_v25 = vsel %vm21175_vm13, %v11426_v49, %v12147_v51  ;;  %v12149_v44 = vpop.permute.xlu1 %12148  ;;  %v21204_v49 = vld [vmem:[#allocation36_spill] sm:$0xff]  ;;  %vm21205_vm13 = vmmov %vm21177_vm0 }
 0x9e6   : > { %12262 = vst [vmem:[%s20574_s1 + $0x70] sm:$0xff] %v12228_v25  ;;  %v12229_v43 = vsel %vm21176_vm6, %v11429_v16, %v12149_v44  ;;  %v11485_v16 = vadd.f32 %v20566_v12, %v21204_v49  ;;  %v21206_v44 = vld [vmem:[#allocation33_spill] sm:$0xff]  ;;  %vm21207_vm6 = vmmov %vm21177_vm0 }
 0x9e7   : > { %12263 = vst [vmem:[%s20574_s1 + $0x78] sm:$0xff] %v12229_v43  ;;  %v11490_v43 = vadd.f32 %v21206_v44, %v20566_v12 }
 0x9e8   : > { %v12143_v23 = vpop.permute.xlu0 %12142 }
 0x9e9   : > { %v12226_v22 = vsel %vm21177_vm0, %v11418_v28, %v12143_v23  ;;  %v12145_v10 = vpop.permute.xlu1 %12144  ;;  %v21208_v23 = vld [vmem:[#allocation35_spill] sm:$0xff] }
 0x9ea   : > { %12260 = vst [vmem:[%s20574_s1 + $0x60] sm:$0xff] %v12226_v22  ;;  %v12227_v35 = vsel %vm21178_vm15, %v11421_v29, %v12145_v10  ;;  %v11493_v22 = vadd.f32 %v21208_v23, %v20566_v12  ;;  %vm21209_vm15 = vmmov %vm21177_vm0 }
 0x9eb   : > { %12261 = vst [vmem:[%s20574_s1 + $0x68] sm:$0xff] %v12227_v35 }
 0x9ec   : > { %v12155_v30 = vpop.permute.xlu0 %12154 }
 0x9ed   : > { %v12232_v47 = vsel %vm21181_vm14, %v11442_v7, %v12155_v30  ;;  %v12157_v42 = vpop.permute.xlu1 %12156 }
 0x9ee   : > { %12266 = vst [vmem:[%s20574_s1 + $0x90] sm:$0xff] %v12232_v47  ;;  %v12233_v36 = vsel %vm21182_vm3, %v11445_v50, %v12157_v42 }
 0x9ef   : > { %12267 = vst [vmem:[%s20574_s1 + $0x98] sm:$0xff] %v12233_v36 }
 0x9f0   : > { %v12151_v21 = vpop.permute.xlu0 %12150 }
 0x9f1   : > { %v12230_v18 = vsel %vm21185_vm7, %v11434_v20, %v12151_v21  ;;  %v12153_v24 = vpop.permute.xlu1 %12152 }
 0x9f2   : > { %12264 = vst [vmem:[%s20574_s1 + $0x80] sm:$0xff] %v12230_v18  ;;  %v12231_v63 = vsel %vm21186_vm4, %v11437_v61, %v12153_v24 }
 0x9f3   : > { %12265 = vst [vmem:[%s20574_s1 + $0x88] sm:$0xff] %v12231_v63 }
 0x9f4   : > { %v12163_v19 = vpop.permute.xlu0 %12162 }
 0x9f5   : > { %v12236_v37 = vsel %vm21189_vm2, %v11458_v48, %v12163_v19  ;;  %v12165_v41 = vpop.permute.xlu1 %12164 }
 0x9f6   : > { %12270 = vst [vmem:[%s20574_s1 + $0xb0] sm:$0xff] %v12236_v37  ;;  %v12237_v15 = vsel %vm21190_vm8, %v11461_v5, %v12165_v41 }
 0x9f7   : > { %12271 = vst [vmem:[%s20574_s1 + $0xb8] sm:$0xff] %v12237_v15 }
 0x9f8   : > { %v12159_v33 = vpop.permute.xlu0 %12158 }
 0x9f9   : > { %v12234_v54 = vsel %vm21193_vm12, %v11450_v17, %v12159_v33  ;;  %v12161_v14 = vpop.permute.xlu1 %12160 }
 0x9fa   : > { %12268 = vst [vmem:[%s20574_s1 + $0xa0] sm:$0xff] %v12234_v54  ;;  %v12235_v4 = vsel %vm21194_vm1, %v11453_v40, %v12161_v14 }
 0x9fb   : > { %12269 = vst [vmem:[%s20574_s1 + $0xa8] sm:$0xff] %v12235_v4 }
 0x9fc   : > { %v12171_v1 = vpop.permute.xlu0 %12170 }
 0x9fd   : > { %v12240_v55 = vsel %vm21197_vm5, %v11474_v26, %v12171_v1  ;;  %v12173_v45 = vpop.permute.xlu1 %12172 }
 0x9fe   : > { %12274 = vst [vmem:[%s20574_s1 + $0xd0] sm:$0xff] %v12240_v55  ;;  %v12241_v6 = vsel %vm21198_vm9, %v11477_v39, %v12173_v45 }
 0x9ff   : > { %12275 = vst [vmem:[%s20574_s1 + $0xd8] sm:$0xff] %v12241_v6 }
 0xa00   : > { %v12167_v3 = vpop.permute.xlu0 %12166 }
 0xa01   : > { %v12238_v34 = vsel %vm21201_vm10, %v11466_v11, %v12167_v3  ;;  %v12169_v57 = vpop.permute.xlu1 %12168 }
 0xa02   : > { %12272 = vst [vmem:[%s20574_s1 + $0xc0] sm:$0xff] %v12238_v34  ;;  %v12239_v53 = vsel %vm21202_vm11, %v11469_v46, %v12169_v57 }
 0xa03   : > { %12273 = vst [vmem:[%s20574_s1 + $0xc8] sm:$0xff] %v12239_v53 }
 0xa05   : > { %v12175_v2 = vpop.permute.xlu0 %12174 }
 0xa06   : > { %v12242_v51 = vsel %vm21205_vm13, %v11482_v38, %v12175_v2 }
 0xa07   : > { %12276 = vst [vmem:[%s20574_s1 + $0xe0] sm:$0xff] %v12242_v51  ;;  %v12177_v25 = vpop.permute.xlu1 %12176 }
 0xa08   : > { %v12243_v28 = vsel %vm21207_vm6, %v11485_v16, %v12177_v25 }
 0xa09   : > { %12277 = vst [vmem:[%s20574_s1 + $0xe8] sm:$0xff] %v12243_v28  ;;  %v12179_v29 = vpop.permute.xlu0 %12178 }
 0xa0a   : > { %v12244_v10 = vsel %vm21177_vm0, %v11490_v43, %v12179_v29 }
 0xa0b   : > { %12278 = vst [vmem:[%s20574_s1 + $0xf0] sm:$0xff] %v12244_v10  ;;  %v12181_v35 = vpop.permute.xlu1 %12180 }
 0xa0c   : > { %v12245_v13 = vsel %vm21209_vm15, %v11493_v22, %v12181_v35 }
 0xa0d   : > { %12279 = vst [vmem:[%s20574_s1 + $0xf8] sm:$0xff] %v12245_v13 }
 0xa0e   : > { %15490 = shalt.err (!%p15487_p9)
}
 0xa0f   : > { %s15491_s15 = scalar_lea.hbm %s20701_s28, 4096  ;;  %s15495_s20 = scalar_lea.hbm %s20762_s13, 8192 }
 0xa10   : > { %p15492_p10 = scmp.ne.s32.totalorder %s20701_s28, %s15491_s15  ;;  %p15496_p13 = scmp.lt.u32.totalorder %s20701_s28, %s20762_s13 }
 0xa11   : > { %p15497_p0 = scmp.lt.u32.totalorder %s15495_s20, %s15491_s15  ;;  %p15499_p2 = scmp.lt.u32.totalorder %s15491_s15, %s20701_s28 }
 0xa12   : > { %p15493_p11 = pnand %p15492_p10, %p15664_p5 }
 0xa13   : > { %p15498_p1 = por %p15497_p0, %p15496_p13 }
 0xa14   : > { %p15494_p12 = pneg %p15493_p11 }
 0xa15   : > { %p15500_p3 = por %p15499_p2, %p15498_p1 }
 0xa17   : > { %p15501_p4 = pnand %p15500_p3, %p15494_p12 }
 0xa19   : > { %15504 = shalt.err (!%p15501_p4)
}
 0xa1a   : > { %s15549_s26 = smov 128   ;;  %s15550_s25 = smov 8  }
 0xa1b   : > { %15209 = dma.vmem_to_hbm [thread:$0]  (%p15664_p5), %s20703_s18, 4096, %s20701_s28, %s12281_s17, %s15549_s26, %s15549_s26, %s15550_s25  }
 0xa1c PF: > { %p15220_p7 = scmp.ge.s32.totalorder %s15543_s16, 2  ;;  %s12327_s22 = sand.u32 1, %s15531_s29  }
 0xa1d   : > { %s12328_s15 = scalar_lea.sflag [#allocation5], %s12327_s22 }
 0xa1e   : > { %p15214_p8 = pnand %p15220_p7, %p15668_p6 }
 0xa20   : > { %15522 = dma.done.wait (!%p15214_p8), %s12328_s15, 4096  }
 0xa21   : > { %15524 = vsyncadd (!%p15214_p8), %s12328_s15, 4294963200  ;;  %s12337_s1 = scalar_lea.sflag [#allocation7], %s12327_s22 }
 0xa22   : > { %15526 = dma.done.wait (!%p15214_p8), %s12337_s1, 32  }
 0xa23   : > { %15528 = vsyncadd (!%p15214_p8), %s12337_s1, 4294967264  ;;  %s21210_s16 = sld [smem:[#allocation11_spill]]  ;;  %s21211_s19 = sld [smem:[#allocation10_spill]] }
 0xa24   : > { %s21212_s15 = sld [smem:[#allocation12_spill]]  ;;  %s21213_s29 = smov %s15535_s30 }
 0xa29   : > { %p28_p5 = scmp.ge.s32.totalorder %s21210_s16, 4   ;;  %s21214_s30 = smov %s21211_s19 }
 0xa2b   :  { %30 = sbr.rel (!%p28_p5) target bundleno = 8 (0x8), region = 152 }
 0xa32   :  { %12342 = vsyncpa [#allocation5], 1 }
 0xa33   :  { %12344 = vsyncpa [#allocation5 + $0x1], 1 }
 0xa34   :  { %12345 = vsyncpa [#allocation7], 1 }
 0xa35   :  { %12347 = vsyncpa [#allocation7 + $0x1], 1 }

</bundles_post_ra>
